<compile_context>
chip_gen: v7x
topology: tpu7x:2x2x1
jax: 0.10.0
libtpu: 0.0.40
codegen_flags: <defaults>
</compile_context>

<pallas_src>
import numpy as np
import jax
import jax.numpy as jnp
from jax.experimental import pallas as pl
from jax.experimental.pallas import tpu as pltpu


def _round_up(x, m):
    return ((x + m - 1) // m) * m


def _device_kind():
    try:
        return jax.devices()[0].device_kind.lower()
    except Exception:
        return ""


def _default_pair_taps():
    # v6e / v7x MXUs are 2x256^2: K=256 tap pairing ~halves MXU push cycles.
    # v5e and older are 128-deep, pairing only adds lane-concat work.
    kind = _device_kind()
    if any(g in kind for g in ("v2", "v3", "v4", "v5")):
        return False
    return True


def _vmem_cap_bytes():
    # v7x has 64 MiB VMEM per TensorCore; v2-v6 have 128 MiB.
    kind = _device_kind()
    if kind and "7" not in kind:
        return 100 << 20
    return 56 << 20


def _make_fused_kernel(n_hidden, Cp, Cout_p, M, M_alloc, Mbuf, Wp, W, TM,
                       WRITE_BASE, paired, compute_dtype):
    """Build the fused GenClean kernel.

    Buffer convention: padded-image flat row p lives at buffer row p + S with
    S = WRITE_BASE - (Wp + 1), so a layer's slab row j is STORED at the
    sublane-aligned row WRITE_BASE + j and READ (next layer) at j + tap + S.
    """
    S = WRITE_BASE - (Wp + 1)
    n_chunks = M_alloc // TM
    tail0 = ((WRITE_BASE + M) // 8) * 8        # 8-aligned start of bottom border
    taps = [(t // 3) * Wp + (t % 3) for t in range(9)]
    n_wrap = (Wp + TM - 2) // Wp               # conditional-subtraction count

    def kernel(col0_ref, x_ref, w0_ref, b0_ref, wh_ref, bh_ref, wf_ref,
               bf_ref, o_ref, buf_a, buf_b):
        # Zero ONLY the rows that are read as conv zero-padding and never
        # rewritten: top border [0, WRITE_BASE) and tail [tail0, Mbuf).
        # Interior rows are fully rewritten every layer (garbage columns are
        # masked to zero), so no full-buffer memset.  Runs every grid step on
        # purpose (a program_id==0 one-time init is unsafe under megacore).
        for buf in (buf_a, buf_b):
            buf[pl.ds(0, WRITE_BASE), :] = jnp.zeros((WRITE_BASE, Cp),
                                                     compute_dtype)
            buf[pl.ds(tail0, Mbuf - tail0), :] = jnp.zeros(
                (Mbuf - tail0, Cp), compute_dtype)

        def valid_mask(i, m0):
            # (TM, 1) f32: 1 for real output pixels (col < W and row < M),
            # 0 for the 2 garbage columns per image row / overflow rows.
            # Column index rebuilt from the scalar-prefetched chunk start
            # column via conditional subtraction (no vector int div/rem).
            iota = jax.lax.broadcasted_iota(jnp.int32, (TM, 1), 0)
            col = col0_ref[i] + iota
            for _ in range(n_wrap):
                col = jnp.where(col >= Wp, col - Wp, col)
            rows = m0 + iota
            return ((col < W) & (rows < M)).astype(jnp.float32)

        def epilogue(acc, bias, i, m0, dst_ref, final):
            y = jnp.maximum(acc + bias, 0.0) * valid_mask(i, m0)
            if final:
                # Fused final 1x1 conv (no ReLU); weight is lane-padded to 128
                # so the matmul shape stays uniform, only Cout_p lanes stored.
                o = jnp.dot(y.astype(compute_dtype), wf_ref[...],
                            preferred_element_type=jnp.float32) + bf_ref[...]
                o_ref[pl.ds(m0, TM), :] = o[:, :Cout_p].astype(o_ref.dtype)
            else:
                d0 = pl.multiple_of(WRITE_BASE + m0, 8)   # aligned store
                dst_ref[pl.ds(d0, TM), :] = y.astype(compute_dtype)

        # Layer 0: im2col'd input -> one lane-dense matmul per chunk.
        def layer0_chunk(i, carry):
            m0 = pl.multiple_of(i * TM, TM)
            acc = jnp.dot(x_ref[pl.ds(m0, TM), :], w0_ref[...],
                          preferred_element_type=jnp.float32)
            epilogue(acc, b0_ref[...], i, m0, buf_a, final=False)
            return carry

        jax.lax.fori_loop(0, n_chunks, layer0_chunk, 0)

        # Hidden 3x3 layers ping-pong between buf_a / buf_b; the last one
        # fuses the final 1x1 conv into its epilogue.
        bufs = (buf_a, buf_b)
        for li in range(n_hidden):
            src, dst = bufs[li % 2], bufs[(li + 1) % 2]
            final = (li == n_hidden - 1)

            def layer_chunk(i, carry, li=li, src=src, dst=dst, final=final):
                m0 = pl.multiple_of(i * TM, TM)
                acc = jnp.zeros((TM, Cp), jnp.float32)
                if paired:
                    # K=256 tap pairing to fill the 256-deep MXUs (v6e/v7x).
                    for p in range(5):
                        t0, t1 = 2 * p, min(2 * p + 1, 8)
                        p0 = src[pl.ds(m0 + taps[t0] + S, TM), :]
                        p1 = p0 if t1 == t0 else src[pl.ds(m0 + taps[t1] + S,
                                                           TM), :]
                        patch = jnp.concatenate([p0, p1], axis=1)
                        acc = acc + jnp.dot(patch, wh_ref[li, p],
                                            preferred_element_type=jnp.float32)
                else:
                    for t in range(9):
                        patch = src[pl.ds(m0 + taps[t] + S, TM), :]
                        acc = acc + jnp.dot(patch, wh_ref[li, t],
                                            preferred_element_type=jnp.float32)
                epilogue(acc, bh_ref[li], i, m0, dst, final)
                return carry

            jax.lax.fori_loop(0, n_chunks, layer_chunk, 0)

    return kernel


def init_genclean_params(key, channels=1, num_of_layers=5, features=64):
    """Xavier-uniform HWIO weights / zero biases, matching the PyTorch init."""
    specs = [(3, channels, features)]
    for _ in range(num_of_layers - 2):
        specs.append((3, features, features))
    specs.append((1, features, channels))
    params = []
    for (K, cin, cout) in specs:
        key, sub = jax.random.split(key)
        bound = (6.0 / ((cin + cout) * K * K)) ** 0.5
        w = jax.random.uniform(sub, (K, K, cin, cout), jnp.float32,
                               minval=-bound, maxval=bound)
        params.append((w, jnp.zeros((cout,), jnp.float32)))
    return params


def prepare_genclean_params(params, compute_dtype=jnp.bfloat16, pair_taps=None):
    """One-time weight prep: lane-pad, fold layer 0 to im2col order, optionally
    pair taps to K=256 (256-deep MXUs on v6e/v7x), stack, cast."""
    assert len(params) >= 3, "fused kernel expects num_of_layers >= 3"
    if pair_taps is None:
        pair_taps = _default_pair_taps()
    w0, b0 = params[0]
    hidden = params[1:-1]
    wf, bf = params[-1]
    assert w0.shape[0] == 3 and w0.shape[1] == 3
    assert wf.shape[0] == 1 and wf.shape[1] == 1
    Cin, F = w0.shape[2], w0.shape[3]
    Cout = wf.shape[3]

    Cp = max(_round_up(F, 128), 128)          # hidden width -> lane-dense
    K0p = max(_round_up(9 * Cin, 128), 128)   # im2col'd layer-0 contraction
    WFN = 128                                 # final 1x1 weight lane pad;
                                              # kernel stores only Cout_p lanes

    # Layer 0 (3,3,Cin,F) -> (9*Cin, F), matching the wrapper's im2col order.
    w0_p = jnp.pad(w0.reshape(9 * Cin, F),
                   ((0, K0p - 9 * Cin), (0, Cp - F))).astype(compute_dtype)
    b0_p = jnp.pad(b0, (0, Cp - F)).reshape(1, Cp).astype(jnp.float32)

    # Hidden 3x3 layers, optionally tap-paired to a K=2*Cp contraction.
    whs = []
    for w, _ in hidden:
        wp = jnp.pad(w.reshape(9, F, F), ((0, 0), (0, Cp - F), (0, Cp - F)))
        if pair_taps:
            pairs = []
            for p in range(5):
                a = wp[2 * p]
                b2 = wp[2 * p + 1] if 2 * p + 1 < 9 else jnp.zeros_like(a)
                pairs.append(jnp.concatenate([a, b2], axis=0))   # (2*Cp, Cp)
            wp = jnp.stack(pairs)                                # (5, 2Cp, Cp)
        whs.append(wp)
    wh_p = jnp.stack(whs).astype(compute_dtype)
    bh_p = jnp.stack([jnp.pad(b, (0, Cp - F)).reshape(1, Cp)
                      for _, b in hidden]).astype(jnp.float32)

    wf_p = jnp.pad(wf.reshape(F, Cout),
                   ((0, Cp - F), (0, WFN - Cout))).astype(compute_dtype)
    bf_p = jnp.pad(bf, (0, WFN - Cout)).reshape(1, WFN).astype(jnp.float32)
    return dict(w0=w0_p, b0=b0_p, wh=wh_p, bh=bh_p, wf=wf_p, bf=bf_p)


def genclean_forward(x_nchw, prep):
    """Forward pass matching GenClean.forward.  Input/output are NCHW (f32)."""
    w0, b0 = prep["w0"], prep["b0"]
    wh, bh = prep["wh"], prep["bh"]
    wf, bf = prep["wf"], prep["bf"]
    compute_dtype = w0.dtype
    paired = (wh.shape[1] == 5)
    n_hidden = wh.shape[0]
    K0p, Cp = w0.shape
    WFN = wf.shape[1]

    N, C, H, W = x_nchw.shape
    assert 9 * C <= K0p, "input channels don't match the prepared weights"
    Cout_p = max(_round_up(C, 8), 8)           # narrow output: no 128-lane pad
    assert Cout_p <= WFN

    Wp = W + 2
    M = H * Wp                                  # output-slab rows per conv
    TM = 128                                    # M-chunk size
    n_chunks = (M + TM - 1) // TM
    M_alloc = n_chunks * TM                     # fori_loop uses full chunks
    WRITE_BASE = _round_up(Wp + 1, 8)           # aligned per-layer store base
    Mbuf = _round_up(WRITE_BASE + M_alloc + Wp + 1, 8)

    # Layer-0 im2col: pack the 9 taps x C input values of every output pixel
    # into the lane dimension -> one lane-dense K=K0p matmul per chunk.
    x = jnp.transpose(x_nchw, (0, 2, 3, 1)).astype(jnp.float32)     # NHWC
    xp = jnp.pad(x, ((0, 0), (1, 1), (1, 3), (0, 0)))               # H+2, W+4
    patches = [xp[:, kh:kh + H, kw:kw + Wp, :]
               for kh in range(3) for kw in range(3)]
    xim = jnp.stack(patches, axis=3).reshape(N, M, 9 * C)
    xim = jnp.pad(xim, ((0, 0), (0, M_alloc - M), (0, K0p - 9 * C)))
    xim = xim.astype(compute_dtype)

    # Per-chunk starting column (m0 % Wp), scalar-prefetched to SMEM so the
    # in-kernel mask needs no vector integer division/remainder.
    col0 = jnp.asarray((np.arange(n_chunks) * TM) % Wp, dtype=jnp.int32)

    kernel = _make_fused_kernel(n_hidden, Cp, Cout_p, M, M_alloc, Mbuf, Wp, W,
                                TM, WRITE_BASE, paired, compute_dtype)

    itemsize = jnp.dtype(compute_dtype).itemsize
    weight_bytes = ((w0.size + wh.size + wf.size) * itemsize
                    + (b0.size + bh.size + bf.size) * 4)
    # Double-buffer factors are already included below (no extra x2).
    working = (2 * Mbuf * Cp * itemsize          # ping-pong activation buffers
               + 2 * M_alloc * K0p * itemsize    # double-buffered input block
               + 2 * M_alloc * Cout_p * 4        # double-buffered output block
               + 2 * weight_bytes)               # pipeline double-buffers weights
    vmem_limit = int(min(max(working + (4 << 20), 16 << 20), _vmem_cap_bytes()))

    flops = 2 * N * M_alloc * (K0p * Cp + n_hidden * 9 * Cp * Cp + Cp * WFN)
    bytes_accessed = int(N * M_alloc * K0p * itemsize + weight_bytes
                         + N * M_alloc * Cout_p * 4)

    grid_spec = pltpu.PrefetchScalarGridSpec(
        num_scalar_prefetch=1,
        grid=(N,),
        in_specs=[
            pl.BlockSpec((None, M_alloc, K0p), lambda n, c0: (n, 0, 0)),   # x
            pl.BlockSpec((K0p, Cp), lambda n, c0: (0, 0)),                 # w0
            pl.BlockSpec((1, Cp), lambda n, c0: (0, 0)),                   # b0
            pl.BlockSpec(wh.shape, lambda n, c0: (0, 0, 0, 0)),            # wh
            pl.BlockSpec((n_hidden, 1, Cp), lambda n, c0: (0, 0, 0)),      # bh
            pl.BlockSpec((Cp, WFN), lambda n, c0: (0, 0)),                 # wf
            pl.BlockSpec((1, WFN), lambda n, c0: (0, 0)),                  # bf
        ],
        out_specs=pl.BlockSpec((None, M_alloc, Cout_p),
                               lambda n, c0: (n, 0, 0)),
        scratch_shapes=[pltpu.VMEM((Mbuf, Cp), compute_dtype),
                        pltpu.VMEM((Mbuf, Cp), compute_dtype)],
    )

    out_flat = pl.pallas_call(
        kernel,
        out_shape=jax.ShapeDtypeStruct((N, M_alloc, Cout_p), jnp.float32),
        grid_spec=grid_spec,
        compiler_params=pltpu.CompilerParams(
            dimension_semantics=("parallel",),   # batch feeds both TCs on v7x
            vmem_limit_bytes=vmem_limit),
        cost_estimate=pl.CostEstimate(flops=int(flops), transcendentals=0,
                                      bytes_accessed=bytes_accessed),
    )(col0, xim, w0, b0, wh, bh, wf, bf)

    # Slab row j = h*Wp + w  ->  output pixel (h, w) for w < W.
    out = out_flat[:, :M, :].reshape(N, H, Wp, Cout_p)[:, :, :W, :C]
    return jnp.transpose(out, (0, 3, 1, 2))  # -> NCHW


def genclean_reference(x_nchw, params, compute_dtype=None):
    """Plain-JAX reference (lax.conv).  With compute_dtype=bfloat16 it uses the
    same mixed precision as the kernel (bf16 operands, f32 accumulation)."""
    x = x_nchw.astype(jnp.float32)
    n = len(params)
    for i, (w, b) in enumerate(params):
        lhs = x if compute_dtype is None else x.astype(compute_dtype)
        rhs = w if compute_dtype is None else w.astype(compute_dtype)
        out = jax.lax.conv_general_dilated(
            lhs, rhs, window_strides=(1, 1), padding="SAME",
            dimension_numbers=("NCHW", "HWIO", "NCHW"),
            precision=jax.lax.Precision.HIGHEST,
            preferred_element_type=jnp.float32)
        out = out + b.reshape(1, -1, 1, 1)
        if i < n - 1:
            out = jnp.maximum(out, 0.0)
        x = out
    return x


if __name__ == "__main__":
    key = jax.random.PRNGKey(0)
    k_x, k_p = jax.random.split(key)

    # batch=2, channels=1, 16x16 image, features=64, num_of_layers=5
    # (same layer pattern as the default 17-layer GenClean).
    N, C, H, W = 2, 1, 16, 16
    x = jax.random.normal(k_x, (N, C, H, W), dtype=jnp.float32)
    params = init_genclean_params(k_p, channels=C, num_of_layers=5, features=64)

    fwd = jax.jit(genclean_forward)
    auto_pair = _default_pair_taps()

    # 1) f32 operand path (auto tap layout): check against the XLA conv ref.
    prep_f32 = prepare_genclean_params(params, compute_dtype=jnp.float32)
    out_f32 = jax.block_until_ready(fwd(x, prep_f32))
    ref_f32 = jax.block_until_ready(genclean_reference(x, params))
    assert out_f32.shape == (N, C, H, W), out_f32.shape
    err_f32 = float(jnp.max(jnp.abs(out_f32 - ref_f32)))
    assert jnp.allclose(out_f32, ref_f32, rtol=2e-2, atol=2e-3), err_f32

    # 2) Opposite tap layout (paired vs unpaired), f32: keeps both kernel
    #    code paths verified regardless of which chip this runs on.
    prep_alt = prepare_genclean_params(params, compute_dtype=jnp.float32,
                                       pair_taps=not auto_pair)
    out_alt = jax.block_until_ready(fwd(x, prep_alt))
    err_alt = float(jnp.max(jnp.abs(out_alt - ref_f32)))
    assert jnp.allclose(out_alt, ref_f32, rtol=2e-2, atol=2e-3), err_alt

    # 3) bf16 operand path (fast path on v6e/v7x, f32 accumulation), checked
    #    against a reference using the same mixed precision.
    prep_bf16 = prepare_genclean_params(params, compute_dtype=jnp.bfloat16)
    out_bf16 = jax.block_until_ready(fwd(x, prep_bf16))
    ref_bf16 = jax.block_until_ready(
        genclean_reference(x, params, compute_dtype=jnp.bfloat16))
    err_bf16 = float(jnp.max(jnp.abs(out_bf16 - ref_bf16)))
    assert jnp.allclose(out_bf16, ref_bf16, rtol=3e-2, atol=3e-3), err_bf16

    print("KERNEL_OK")
</pallas_src>

<mosaic_0001>
module attributes {stable_mosaic.version = 11 : i64} {
  func.func @kernel(%arg0: i32, %arg1: memref<3xi32, #tpu.memory_space<smem>>, %arg2: memref<1x384x128xf32, #tpu.memory_space<vmem>>, %arg3: memref<128x128xf32, #tpu.memory_space<vmem>>, %arg4: memref<1x128xf32, #tpu.memory_space<vmem>>, %arg5: memref<3x5x256x128xf32, #tpu.memory_space<vmem>>, %arg6: memref<3x1x128xf32, #tpu.memory_space<vmem>>, %arg7: memref<128x128xf32, #tpu.memory_space<vmem>>, %arg8: memref<1x128xf32, #tpu.memory_space<vmem>>, %arg9: memref<1x384x8xf32, #tpu.memory_space<vmem>>, %arg10: memref<432x128xf32, #tpu.memory_space<vmem>>, %arg11: memref<432x128xf32, #tpu.memory_space<vmem>>) attributes {dimension_semantics = [#tpu.dimension_semantics<parallel>], iteration_bounds = array<i64: 2>, scalar_prefetch = 1 : i64, scratch_operands = 2 : i64, tpu.core_type = #tpu.core_type<tc>, window_params = [{transform_indices = @transform_0, window_bounds = array<i64: 1, 384, 128>}, {pipeline_mode = #tpu.pipeline_mode<synchronous>, transform_indices = @transform_1, window_bounds = array<i64: 128, 128>}, {pipeline_mode = #tpu.pipeline_mode<synchronous>, transform_indices = @transform_2, window_bounds = array<i64: 1, 128>}, {pipeline_mode = #tpu.pipeline_mode<synchronous>, transform_indices = @transform_3, window_bounds = array<i64: 3, 5, 256, 128>}, {pipeline_mode = #tpu.pipeline_mode<synchronous>, transform_indices = @transform_4, window_bounds = array<i64: 3, 1, 128>}, {pipeline_mode = #tpu.pipeline_mode<synchronous>, transform_indices = @transform_5, window_bounds = array<i64: 128, 128>}, {pipeline_mode = #tpu.pipeline_mode<synchronous>, transform_indices = @transform_6, window_bounds = array<i64: 1, 128>}, {transform_indices = @transform_7, window_bounds = array<i64: 1, 384, 8>}]} {
    %cst = arith.constant 0.000000e+00 : f32
    %0 = vector.broadcast %cst : f32 to vector<24x128xf32>
    %c0 = arith.constant 0 : index
    %c0_0 = arith.constant 0 : index
    %1 = vector.load %arg10[%c0, %c0_0] : memref<432x128xf32, #tpu.memory_space<vmem>>, vector<24x128xf32>
    tpu.vector_store %arg10[%c0, %c0_0], %0 {strides = array<i32>} : memref<432x128xf32, #tpu.memory_space<vmem>>, vector<24x128xf32>,
    %cst_1 = arith.constant 0.000000e+00 : f32
    %2 = vector.broadcast %cst_1 : f32 to vector<120x128xf32>
    %c312 = arith.constant 312 : index
    %c0_2 = arith.constant 0 : index
    %3 = vector.load %arg10[%c312, %c0_2] : memref<432x128xf32, #tpu.memory_space<vmem>>, vector<120x128xf32>
    tpu.vector_store %arg10[%c312, %c0_2], %2 {strides = array<i32>} : memref<432x128xf32, #tpu.memory_space<vmem>>, vector<120x128xf32>,
    %cst_3 = arith.constant 0.000000e+00 : f32
    %4 = vector.broadcast %cst_3 : f32 to vector<24x128xf32>
    %c0_4 = arith.constant 0 : index
    %c0_5 = arith.constant 0 : index
    %5 = vector.load %arg11[%c0_4, %c0_5] : memref<432x128xf32, #tpu.memory_space<vmem>>, vector<24x128xf32>
    tpu.vector_store %arg11[%c0_4, %c0_5], %4 {strides = array<i32>} : memref<432x128xf32, #tpu.memory_space<vmem>>, vector<24x128xf32>,
    %cst_6 = arith.constant 0.000000e+00 : f32
    %6 = vector.broadcast %cst_6 : f32 to vector<120x128xf32>
    %c312_7 = arith.constant 312 : index
    %c0_8 = arith.constant 0 : index
    %7 = vector.load %arg11[%c312_7, %c0_8] : memref<432x128xf32, #tpu.memory_space<vmem>>, vector<120x128xf32>
    tpu.vector_store %arg11[%c312_7, %c0_8], %6 {strides = array<i32>} : memref<432x128xf32, #tpu.memory_space<vmem>>, vector<120x128xf32>,
    %c0_i32 = arith.constant 0 : i32
    %c3_i32 = arith.constant 3 : i32
    %8 = arith.addi %c0_i32, %c3_i32 : i32
    %c1_i32 = arith.constant 1 : i32
    scf.for %arg12 = %c0_i32 to %8 step %c1_i32  : i32 {
      %c128_i32 = arith.constant 128 : i32
      %12 = arith.muli %arg12, %c128_i32 : i32
      %13 = tpu.assume_multiple %12, 128 : i32
      %c0_22 = arith.constant 0 : index
      %14 = arith.index_cast %13 : i32 to index
      %c0_23 = arith.constant 0 : index
      %15 = vector.load %arg2[%c0_22, %14, %c0_23] : memref<1x384x128xf32, #tpu.memory_space<vmem>>, vector<1x128x128xf32>
      %16 = vector.shape_cast %15 : vector<1x128x128xf32> to vector<128x128xf32>
      %c0_24 = arith.constant 0 : index
      %c0_25 = arith.constant 0 : index
      %17 = vector.load %arg3[%c0_24, %c0_25] : memref<128x128xf32, #tpu.memory_space<vmem>>, vector<128x128xf32>
      %cst_26 = arith.constant dense<0.000000e+00> : vector<128x128xf32>
      %18 = tpu.matmul %16, %17, %cst_26 {dimension_numbers = #tpu.dot_dimension_numbers<[1], [0], [0], [1], [0, 0, 1, 1], [], []>} : vector<128x128xf32>, vector<128x128xf32>, vector<128x128xf32> -> vector<128x128xf32>
      %c0_27 = arith.constant 0 : index
      %c0_28 = arith.constant 0 : index
      %19 = vector.load %arg4[%c0_27, %c0_28] : memref<1x128xf32, #tpu.memory_space<vmem>>, vector<1x128xf32>
      %20 = vector.broadcast %19 : vector<1x128xf32> to vector<128x128xf32>
      %21 = arith.addf %18, %20 : vector<128x128xf32>
      %cst_29 = arith.constant 0.000000e+00 : f32
      %22 = vector.broadcast %cst_29 : f32 to vector<128x128xf32>
      %23 = arith.maximumf %21, %22 : vector<128x128xf32>
      %24 = tpu.iota {dimensions = array<i32: 0>} : vector<128x1xi32>
      %25 = arith.index_cast %arg12 : i32 to index
      %26 = memref.load %arg1[%25] : memref<3xi32, #tpu.memory_space<smem>>
      %27 = vector.broadcast %26 : i32 to vector<128x1xi32>
      %28 = arith.addi %27, %24 : vector<128x1xi32>
      %c18_i32 = arith.constant 18 : i32
      %29 = vector.broadcast %c18_i32 : i32 to vector<128x1xi32>
      %30 = arith.cmpi sge, %28, %29 : vector<128x1xi32>
      %c18_i32_30 = arith.constant 18 : i32
      %31 = vector.broadcast %c18_i32_30 : i32 to vector<128x1xi32>
      %32 = arith.subi %28, %31 : vector<128x1xi32>
      %33 = arith.select %30, %32, %28 : vector<128x1xi1>, vector<128x1xi32>
      %c18_i32_31 = arith.constant 18 : i32
      %34 = vector.broadcast %c18_i32_31 : i32 to vector<128x1xi32>
      %35 = arith.cmpi sge, %33, %34 : vector<128x1xi32>
      %c18_i32_32 = arith.constant 18 : i32
      %36 = vector.broadcast %c18_i32_32 : i32 to vector<128x1xi32>
      %37 = arith.subi %33, %36 : vector<128x1xi32>
      %38 = arith.select %35, %37, %33 : vector<128x1xi1>, vector<128x1xi32>
      %c18_i32_33 = arith.constant 18 : i32
      %39 = vector.broadcast %c18_i32_33 : i32 to vector<128x1xi32>
      %40 = arith.cmpi sge, %38, %39 : vector<128x1xi32>
      %c18_i32_34 = arith.constant 18 : i32
      %41 = vector.broadcast %c18_i32_34 : i32 to vector<128x1xi32>
      %42 = arith.subi %38, %41 : vector<128x1xi32>
      %43 = arith.select %40, %42, %38 : vector<128x1xi1>, vector<128x1xi32>
      %c18_i32_35 = arith.constant 18 : i32
      %44 = vector.broadcast %c18_i32_35 : i32 to vector<128x1xi32>
      %45 = arith.cmpi sge, %43, %44 : vector<128x1xi32>
      %c18_i32_36 = arith.constant 18 : i32
      %46 = vector.broadcast %c18_i32_36 : i32 to vector<128x1xi32>
      %47 = arith.subi %43, %46 : vector<128x1xi32>
      %48 = arith.select %45, %47, %43 : vector<128x1xi1>, vector<128x1xi32>
      %c18_i32_37 = arith.constant 18 : i32
      %49 = vector.broadcast %c18_i32_37 : i32 to vector<128x1xi32>
      %50 = arith.cmpi sge, %48, %49 : vector<128x1xi32>
      %c18_i32_38 = arith.constant 18 : i32
      %51 = vector.broadcast %c18_i32_38 : i32 to vector<128x1xi32>
      %52 = arith.subi %48, %51 : vector<128x1xi32>
      %53 = arith.select %50, %52, %48 : vector<128x1xi1>, vector<128x1xi32>
      %c18_i32_39 = arith.constant 18 : i32
      %54 = vector.broadcast %c18_i32_39 : i32 to vector<128x1xi32>
      %55 = arith.cmpi sge, %53, %54 : vector<128x1xi32>
      %c18_i32_40 = arith.constant 18 : i32
      %56 = vector.broadcast %c18_i32_40 : i32 to vector<128x1xi32>
      %57 = arith.subi %53, %56 : vector<128x1xi32>
      %58 = arith.select %55, %57, %53 : vector<128x1xi1>, vector<128x1xi32>
      %c18_i32_41 = arith.constant 18 : i32
      %59 = vector.broadcast %c18_i32_41 : i32 to vector<128x1xi32>
      %60 = arith.cmpi sge, %58, %59 : vector<128x1xi32>
      %c18_i32_42 = arith.constant 18 : i32
      %61 = vector.broadcast %c18_i32_42 : i32 to vector<128x1xi32>
      %62 = arith.subi %58, %61 : vector<128x1xi32>
      %63 = arith.select %60, %62, %58 : vector<128x1xi1>, vector<128x1xi32>
      %c18_i32_43 = arith.constant 18 : i32
      %64 = vector.broadcast %c18_i32_43 : i32 to vector<128x1xi32>
      %65 = arith.cmpi sge, %63, %64 : vector<128x1xi32>
      %c18_i32_44 = arith.constant 18 : i32
      %66 = vector.broadcast %c18_i32_44 : i32 to vector<128x1xi32>
      %67 = arith.subi %63, %66 : vector<128x1xi32>
      %68 = arith.select %65, %67, %63 : vector<128x1xi1>, vector<128x1xi32>
      %69 = vector.broadcast %13 : i32 to vector<128x1xi32>
      %70 = arith.addi %69, %24 : vector<128x1xi32>
      %c16_i32 = arith.constant 16 : i32
      %71 = vector.broadcast %c16_i32 : i32 to vector<128x1xi32>
      %72 = arith.cmpi slt, %68, %71 : vector<128x1xi32>
      %c288_i32 = arith.constant 288 : i32
      %73 = vector.broadcast %c288_i32 : i32 to vector<128x1xi32>
      %74 = arith.cmpi slt, %70, %73 : vector<128x1xi32>
      %75 = arith.andi %72, %74 : vector<128x1xi1>
      %76 = arith.extui %75 : vector<128x1xi1> to vector<128x1xi32>
      %77 = arith.sitofp %76 : vector<128x1xi32> to vector<128x1xf32>
      %78 = vector.broadcast %77 : vector<128x1xf32> to vector<128x128xf32>
      %79 = arith.mulf %23, %78 : vector<128x128xf32>
      %c24_i32 = arith.constant 24 : i32
      %80 = arith.addi %c24_i32, %13 : i32
      %81 = tpu.assume_multiple %80, 8 : i32
      %82 = arith.index_cast %81 : i32 to index
      %c0_45 = arith.constant 0 : index
      %83 = vector.load %arg10[%82, %c0_45] : memref<432x128xf32, #tpu.memory_space<vmem>>, vector<128x128xf32>
      tpu.vector_store %arg10[%82, %c0_45], %79 {strides = array<i32>} : memref<432x128xf32, #tpu.memory_space<vmem>>, vector<128x128xf32>,
    }
    %c3_i32_9 = arith.constant 3 : i32
    %c0_i32_10 = arith.constant 0 : i32
    %c3_i32_11 = arith.constant 3 : i32
    %9 = arith.addi %c0_i32_10, %c3_i32_11 : i32
    %c1_i32_12 = arith.constant 1 : i32
    scf.for %arg12 = %c0_i32_10 to %9 step %c1_i32_12  : i32 {
      %c128_i32 = arith.constant 128 : i32
      %12 = arith.muli %arg12, %c128_i32 : i32
      %13 = tpu.assume_multiple %12, 128 : i32
      %cst_22 = arith.constant 0.000000e+00 : f32
      %14 = vector.broadcast %cst_22 : f32 to vector<128x128xf32>
      %c0_i32_23 = arith.constant 0 : i32
      %15 = arith.addi %13, %c0_i32_23 : i32
      %c5_i32 = arith.constant 5 : i32
      %16 = arith.addi %15, %c5_i32 : i32
      %17 = arith.index_cast %16 : i32 to index
      %c0_24 = arith.constant 0 : index
      %18 = vector.load %arg10[%17, %c0_24] : memref<432x128xf32, #tpu.memory_space<vmem>>, vector<128x128xf32>
      %c1_i32_25 = arith.constant 1 : i32
      %19 = arith.addi %13, %c1_i32_25 : i32
      %c5_i32_26 = arith.constant 5 : i32
      %20 = arith.addi %19, %c5_i32_26 : i32
      %21 = arith.index_cast %20 : i32 to index
      %c0_27 = arith.constant 0 : index
      %22 = vector.load %arg10[%21, %c0_27] : memref<432x128xf32, #tpu.memory_space<vmem>>, vector<128x128xf32>
      %23 = tpu.concatenate %18, %22 in 1 : vector<128x128xf32>, vector<128x128xf32> -> vector<128x256xf32>
      %c0_28 = arith.constant 0 : index
      %c0_29 = arith.constant 0 : index
      %c0_30 = arith.constant 0 : index
      %c0_31 = arith.constant 0 : index
      %24 = vector.load %arg5[%c0_28, %c0_29, %c0_30, %c0_31] : memref<3x5x256x128xf32, #tpu.memory_space<vmem>>, vector<1x1x256x128xf32>
      %25 = vector.shape_cast %24 : vector<1x1x256x128xf32> to vector<256x128xf32>
      %cst_32 = arith.constant dense<0.000000e+00> : vector<128x128xf32>
      %26 = tpu.matmul %23, %25, %cst_32 {dimension_numbers = #tpu.dot_dimension_numbers<[1], [0], [0], [1], [0, 0, 1, 1], [], []>} : vector<128x256xf32>, vector<256x128xf32>, vector<128x128xf32> -> vector<128x128xf32>
      %27 = arith.addf %14, %26 : vector<128x128xf32>
      %c2_i32 = arith.constant 2 : i32
      %28 = arith.addi %13, %c2_i32 : i32
      %c5_i32_33 = arith.constant 5 : i32
      %29 = arith.addi %28, %c5_i32_33 : i32
      %30 = arith.index_cast %29 : i32 to index
      %c0_34 = arith.constant 0 : index
      %31 = vector.load %arg10[%30, %c0_34] : memref<432x128xf32, #tpu.memory_space<vmem>>, vector<128x128xf32>
      %c18_i32 = arith.constant 18 : i32
      %32 = arith.addi %13, %c18_i32 : i32
      %c5_i32_35 = arith.constant 5 : i32
      %33 = arith.addi %32, %c5_i32_35 : i32
      %34 = arith.index_cast %33 : i32 to index
      %c0_36 = arith.constant 0 : index
      %35 = vector.load %arg10[%34, %c0_36] : memref<432x128xf32, #tpu.memory_space<vmem>>, vector<128x128xf32>
      %36 = tpu.concatenate %31, %35 in 1 : vector<128x128xf32>, vector<128x128xf32> -> vector<128x256xf32>
      %c0_37 = arith.constant 0 : index
      %c1 = arith.constant 1 : index
      %c0_38 = arith.constant 0 : index
      %c0_39 = arith.constant 0 : index
      %37 = vector.load %arg5[%c0_37, %c1, %c0_38, %c0_39] : memref<3x5x256x128xf32, #tpu.memory_space<vmem>>, vector<1x1x256x128xf32>
      %38 = vector.shape_cast %37 : vector<1x1x256x128xf32> to vector<256x128xf32>
      %cst_40 = arith.constant dense<0.000000e+00> : vector<128x128xf32>
      %39 = tpu.matmul %36, %38, %cst_40 {dimension_numbers = #tpu.dot_dimension_numbers<[1], [0], [0], [1], [0, 0, 1, 1], [], []>} : vector<128x256xf32>, vector<256x128xf32>, vector<128x128xf32> -> vector<128x128xf32>
      %40 = arith.addf %27, %39 : vector<128x128xf32>
      %c19_i32 = arith.constant 19 : i32
      %41 = arith.addi %13, %c19_i32 : i32
      %c5_i32_41 = arith.constant 5 : i32
      %42 = arith.addi %41, %c5_i32_41 : i32
      %43 = arith.index_cast %42 : i32 to index
      %c0_42 = arith.constant 0 : index
      %44 = vector.load %arg10[%43, %c0_42] : memref<432x128xf32, #tpu.memory_space<vmem>>, vector<128x128xf32>
      %c20_i32 = arith.constant 20 : i32
      %45 = arith.addi %13, %c20_i32 : i32
      %c5_i32_43 = arith.constant 5 : i32
      %46 = arith.addi %45, %c5_i32_43 : i32
      %47 = arith.index_cast %46 : i32 to index
      %c0_44 = arith.constant 0 : index
      %48 = vector.load %arg10[%47, %c0_44] : memref<432x128xf32, #tpu.memory_space<vmem>>, vector<128x128xf32>
      %49 = tpu.concatenate %44, %48 in 1 : vector<128x128xf32>, vector<128x128xf32> -> vector<128x256xf32>
      %c0_45 = arith.constant 0 : index
      %c2 = arith.constant 2 : index
      %c0_46 = arith.constant 0 : index
      %c0_47 = arith.constant 0 : index
      %50 = vector.load %arg5[%c0_45, %c2, %c0_46, %c0_47] : memref<3x5x256x128xf32, #tpu.memory_space<vmem>>, vector<1x1x256x128xf32>
      %51 = vector.shape_cast %50 : vector<1x1x256x128xf32> to vector<256x128xf32>
      %cst_48 = arith.constant dense<0.000000e+00> : vector<128x128xf32>
      %52 = tpu.matmul %49, %51, %cst_48 {dimension_numbers = #tpu.dot_dimension_numbers<[1], [0], [0], [1], [0, 0, 1, 1], [], []>} : vector<128x256xf32>, vector<256x128xf32>, vector<128x128xf32> -> vector<128x128xf32>
      %53 = arith.addf %40, %52 : vector<128x128xf32>
      %c36_i32 = arith.constant 36 : i32
      %54 = arith.addi %13, %c36_i32 : i32
      %c5_i32_49 = arith.constant 5 : i32
      %55 = arith.addi %54, %c5_i32_49 : i32
      %56 = arith.index_cast %55 : i32 to index
      %c0_50 = arith.constant 0 : index
      %57 = vector.load %arg10[%56, %c0_50] : memref<432x128xf32, #tpu.memory_space<vmem>>, vector<128x128xf32>
      %c37_i32 = arith.constant 37 : i32
      %58 = arith.addi %13, %c37_i32 : i32
      %c5_i32_51 = arith.constant 5 : i32
      %59 = arith.addi %58, %c5_i32_51 : i32
      %60 = arith.index_cast %59 : i32 to index
      %c0_52 = arith.constant 0 : index
      %61 = vector.load %arg10[%60, %c0_52] : memref<432x128xf32, #tpu.memory_space<vmem>>, vector<128x128xf32>
      %62 = tpu.concatenate %57, %61 in 1 : vector<128x128xf32>, vector<128x128xf32> -> vector<128x256xf32>
      %c0_53 = arith.constant 0 : index
      %c3 = arith.constant 3 : index
      %c0_54 = arith.constant 0 : index
      %c0_55 = arith.constant 0 : index
      %63 = vector.load %arg5[%c0_53, %c3, %c0_54, %c0_55] : memref<3x5x256x128xf32, #tpu.memory_space<vmem>>, vector<1x1x256x128xf32>
      %64 = vector.shape_cast %63 : vector<1x1x256x128xf32> to vector<256x128xf32>
      %cst_56 = arith.constant dense<0.000000e+00> : vector<128x128xf32>
      %65 = tpu.matmul %62, %64, %cst_56 {dimension_numbers = #tpu.dot_dimension_numbers<[1], [0], [0], [1], [0, 0, 1, 1], [], []>} : vector<128x256xf32>, vector<256x128xf32>, vector<128x128xf32> -> vector<128x128xf32>
      %66 = arith.addf %53, %65 : vector<128x128xf32>
      %c38_i32 = arith.constant 38 : i32
      %67 = arith.addi %13, %c38_i32 : i32
      %c5_i32_57 = arith.constant 5 : i32
      %68 = arith.addi %67, %c5_i32_57 : i32
      %69 = arith.index_cast %68 : i32 to index
      %c0_58 = arith.constant 0 : index
      %70 = vector.load %arg10[%69, %c0_58] : memref<432x128xf32, #tpu.memory_space<vmem>>, vector<128x128xf32>
      %71 = tpu.concatenate %70, %70 in 1 : vector<128x128xf32>, vector<128x128xf32> -> vector<128x256xf32>
      %c0_59 = arith.constant 0 : index
      %c4 = arith.constant 4 : index
      %c0_60 = arith.constant 0 : index
      %c0_61 = arith.constant 0 : index
      %72 = vector.load %arg5[%c0_59, %c4, %c0_60, %c0_61] : memref<3x5x256x128xf32, #tpu.memory_space<vmem>>, vector<1x1x256x128xf32>
      %73 = vector.shape_cast %72 : vector<1x1x256x128xf32> to vector<256x128xf32>
      %cst_62 = arith.constant dense<0.000000e+00> : vector<128x128xf32>
      %74 = tpu.matmul %71, %73, %cst_62 {dimension_numbers = #tpu.dot_dimension_numbers<[1], [0], [0], [1], [0, 0, 1, 1], [], []>} : vector<128x256xf32>, vector<256x128xf32>, vector<128x128xf32> -> vector<128x128xf32>
      %75 = arith.addf %66, %74 : vector<128x128xf32>
      %c0_63 = arith.constant 0 : index
      %c0_64 = arith.constant 0 : index
      %c0_65 = arith.constant 0 : index
      %76 = vector.load %arg6[%c0_63, %c0_64, %c0_65] : memref<3x1x128xf32, #tpu.memory_space<vmem>>, vector<1x1x128xf32>
      %77 = vector.shape_cast %76 : vector<1x1x128xf32> to vector<1x128xf32>
      %78 = vector.broadcast %77 : vector<1x128xf32> to vector<128x128xf32>
      %79 = arith.addf %75, %78 : vector<128x128xf32>
      %cst_66 = arith.constant 0.000000e+00 : f32
      %80 = vector.broadcast %cst_66 : f32 to vector<128x128xf32>
      %81 = arith.maximumf %79, %80 : vector<128x128xf32>
      %82 = tpu.iota {dimensions = array<i32: 0>} : vector<128x1xi32>
      %83 = arith.index_cast %arg12 : i32 to index
      %84 = memref.load %arg1[%83] : memref<3xi32, #tpu.memory_space<smem>>
      %85 = vector.broadcast %84 : i32 to vector<128x1xi32>
      %86 = arith.addi %85, %82 : vector<128x1xi32>
      %c18_i32_67 = arith.constant 18 : i32
      %87 = vector.broadcast %c18_i32_67 : i32 to vector<128x1xi32>
      %88 = arith.cmpi sge, %86, %87 : vector<128x1xi32>
      %c18_i32_68 = arith.constant 18 : i32
      %89 = vector.broadcast %c18_i32_68 : i32 to vector<128x1xi32>
      %90 = arith.subi %86, %89 : vector<128x1xi32>
      %91 = arith.select %88, %90, %86 : vector<128x1xi1>, vector<128x1xi32>
      %c18_i32_69 = arith.constant 18 : i32
      %92 = vector.broadcast %c18_i32_69 : i32 to vector<128x1xi32>
      %93 = arith.cmpi sge, %91, %92 : vector<128x1xi32>
      %c18_i32_70 = arith.constant 18 : i32
      %94 = vector.broadcast %c18_i32_70 : i32 to vector<128x1xi32>
      %95 = arith.subi %91, %94 : vector<128x1xi32>
      %96 = arith.select %93, %95, %91 : vector<128x1xi1>, vector<128x1xi32>
      %c18_i32_71 = arith.constant 18 : i32
      %97 = vector.broadcast %c18_i32_71 : i32 to vector<128x1xi32>
      %98 = arith.cmpi sge, %96, %97 : vector<128x1xi32>
      %c18_i32_72 = arith.constant 18 : i32
      %99 = vector.broadcast %c18_i32_72 : i32 to vector<128x1xi32>
      %100 = arith.subi %96, %99 : vector<128x1xi32>
      %101 = arith.select %98, %100, %96 : vector<128x1xi1>, vector<128x1xi32>
      %c18_i32_73 = arith.constant 18 : i32
      %102 = vector.broadcast %c18_i32_73 : i32 to vector<128x1xi32>
      %103 = arith.cmpi sge, %101, %102 : vector<128x1xi32>
      %c18_i32_74 = arith.constant 18 : i32
      %104 = vector.broadcast %c18_i32_74 : i32 to vector<128x1xi32>
      %105 = arith.subi %101, %104 : vector<128x1xi32>
      %106 = arith.select %103, %105, %101 : vector<128x1xi1>, vector<128x1xi32>
      %c18_i32_75 = arith.constant 18 : i32
      %107 = vector.broadcast %c18_i32_75 : i32 to vector<128x1xi32>
      %108 = arith.cmpi sge, %106, %107 : vector<128x1xi32>
      %c18_i32_76 = arith.constant 18 : i32
      %109 = vector.broadcast %c18_i32_76 : i32 to vector<128x1xi32>
      %110 = arith.subi %106, %109 : vector<128x1xi32>
      %111 = arith.select %108, %110, %106 : vector<128x1xi1>, vector<128x1xi32>
      %c18_i32_77 = arith.constant 18 : i32
      %112 = vector.broadcast %c18_i32_77 : i32 to vector<128x1xi32>
      %113 = arith.cmpi sge, %111, %112 : vector<128x1xi32>
      %c18_i32_78 = arith.constant 18 : i32
      %114 = vector.broadcast %c18_i32_78 : i32 to vector<128x1xi32>
      %115 = arith.subi %111, %114 : vector<128x1xi32>
      %116 = arith.select %113, %115, %111 : vector<128x1xi1>, vector<128x1xi32>
      %c18_i32_79 = arith.constant 18 : i32
      %117 = vector.broadcast %c18_i32_79 : i32 to vector<128x1xi32>
      %118 = arith.cmpi sge, %116, %117 : vector<128x1xi32>
      %c18_i32_80 = arith.constant 18 : i32
      %119 = vector.broadcast %c18_i32_80 : i32 to vector<128x1xi32>
      %120 = arith.subi %116, %119 : vector<128x1xi32>
      %121 = arith.select %118, %120, %116 : vector<128x1xi1>, vector<128x1xi32>
      %c18_i32_81 = arith.constant 18 : i32
      %122 = vector.broadcast %c18_i32_81 : i32 to vector<128x1xi32>
      %123 = arith.cmpi sge, %121, %122 : vector<128x1xi32>
      %c18_i32_82 = arith.constant 18 : i32
      %124 = vector.broadcast %c18_i32_82 : i32 to vector<128x1xi32>
      %125 = arith.subi %121, %124 : vector<128x1xi32>
      %126 = arith.select %123, %125, %121 : vector<128x1xi1>, vector<128x1xi32>
      %127 = vector.broadcast %13 : i32 to vector<128x1xi32>
      %128 = arith.addi %127, %82 : vector<128x1xi32>
      %c16_i32 = arith.constant 16 : i32
      %129 = vector.broadcast %c16_i32 : i32 to vector<128x1xi32>
      %130 = arith.cmpi slt, %126, %129 : vector<128x1xi32>
      %c288_i32 = arith.constant 288 : i32
      %131 = vector.broadcast %c288_i32 : i32 to vector<128x1xi32>
      %132 = arith.cmpi slt, %128, %131 : vector<128x1xi32>
      %133 = arith.andi %130, %132 : vector<128x1xi1>
      %134 = arith.extui %133 : vector<128x1xi1> to vector<128x1xi32>
      %135 = arith.sitofp %134 : vector<128x1xi32> to vector<128x1xf32>
      %136 = vector.broadcast %135 : vector<128x1xf32> to vector<128x128xf32>
      %137 = arith.mulf %81, %136 : vector<128x128xf32>
      %c24_i32 = arith.constant 24 : i32
      %138 = arith.addi %c24_i32, %13 : i32
      %139 = tpu.assume_multiple %138, 8 : i32
      %140 = arith.index_cast %139 : i32 to index
      %c0_83 = arith.constant 0 : index
      %141 = vector.load %arg11[%140, %c0_83] : memref<432x128xf32, #tpu.memory_space<vmem>>, vector<128x128xf32>
      tpu.vector_store %arg11[%140, %c0_83], %137 {strides = array<i32>} : memref<432x128xf32, #tpu.memory_space<vmem>>, vector<128x128xf32>,
    }
    %c3_i32_13 = arith.constant 3 : i32
    %c0_i32_14 = arith.constant 0 : i32
    %c3_i32_15 = arith.constant 3 : i32
    %10 = arith.addi %c0_i32_14, %c3_i32_15 : i32
    %c1_i32_16 = arith.constant 1 : i32
    scf.for %arg12 = %c0_i32_14 to %10 step %c1_i32_16  : i32 {
      %c128_i32 = arith.constant 128 : i32
      %12 = arith.muli %arg12, %c128_i32 : i32
      %13 = tpu.assume_multiple %12, 128 : i32
      %cst_22 = arith.constant 0.000000e+00 : f32
      %14 = vector.broadcast %cst_22 : f32 to vector<128x128xf32>
      %c0_i32_23 = arith.constant 0 : i32
      %15 = arith.addi %13, %c0_i32_23 : i32
      %c5_i32 = arith.constant 5 : i32
      %16 = arith.addi %15, %c5_i32 : i32
      %17 = arith.index_cast %16 : i32 to index
      %c0_24 = arith.constant 0 : index
      %18 = vector.load %arg11[%17, %c0_24] : memref<432x128xf32, #tpu.memory_space<vmem>>, vector<128x128xf32>
      %c1_i32_25 = arith.constant 1 : i32
      %19 = arith.addi %13, %c1_i32_25 : i32
      %c5_i32_26 = arith.constant 5 : i32
      %20 = arith.addi %19, %c5_i32_26 : i32
      %21 = arith.index_cast %20 : i32 to index
      %c0_27 = arith.constant 0 : index
      %22 = vector.load %arg11[%21, %c0_27] : memref<432x128xf32, #tpu.memory_space<vmem>>, vector<128x128xf32>
      %23 = tpu.concatenate %18, %22 in 1 : vector<128x128xf32>, vector<128x128xf32> -> vector<128x256xf32>
      %c1 = arith.constant 1 : index
      %c0_28 = arith.constant 0 : index
      %c0_29 = arith.constant 0 : index
      %c0_30 = arith.constant 0 : index
      %24 = vector.load %arg5[%c1, %c0_28, %c0_29, %c0_30] : memref<3x5x256x128xf32, #tpu.memory_space<vmem>>, vector<1x1x256x128xf32>
      %25 = vector.shape_cast %24 : vector<1x1x256x128xf32> to vector<256x128xf32>
      %cst_31 = arith.constant dense<0.000000e+00> : vector<128x128xf32>
      %26 = tpu.matmul %23, %25, %cst_31 {dimension_numbers = #tpu.dot_dimension_numbers<[1], [0], [0], [1], [0, 0, 1, 1], [], []>} : vector<128x256xf32>, vector<256x128xf32>, vector<128x128xf32> -> vector<128x128xf32>
      %27 = arith.addf %14, %26 : vector<128x128xf32>
      %c2_i32 = arith.constant 2 : i32
      %28 = arith.addi %13, %c2_i32 : i32
      %c5_i32_32 = arith.constant 5 : i32
      %29 = arith.addi %28, %c5_i32_32 : i32
      %30 = arith.index_cast %29 : i32 to index
      %c0_33 = arith.constant 0 : index
      %31 = vector.load %arg11[%30, %c0_33] : memref<432x128xf32, #tpu.memory_space<vmem>>, vector<128x128xf32>
      %c18_i32 = arith.constant 18 : i32
      %32 = arith.addi %13, %c18_i32 : i32
      %c5_i32_34 = arith.constant 5 : i32
      %33 = arith.addi %32, %c5_i32_34 : i32
      %34 = arith.index_cast %33 : i32 to index
      %c0_35 = arith.constant 0 : index
      %35 = vector.load %arg11[%34, %c0_35] : memref<432x128xf32, #tpu.memory_space<vmem>>, vector<128x128xf32>
      %36 = tpu.concatenate %31, %35 in 1 : vector<128x128xf32>, vector<128x128xf32> -> vector<128x256xf32>
      %c1_36 = arith.constant 1 : index
      %c1_37 = arith.constant 1 : index
      %c0_38 = arith.constant 0 : index
      %c0_39 = arith.constant 0 : index
      %37 = vector.load %arg5[%c1_36, %c1_37, %c0_38, %c0_39] : memref<3x5x256x128xf32, #tpu.memory_space<vmem>>, vector<1x1x256x128xf32>
      %38 = vector.shape_cast %37 : vector<1x1x256x128xf32> to vector<256x128xf32>
      %cst_40 = arith.constant dense<0.000000e+00> : vector<128x128xf32>
      %39 = tpu.matmul %36, %38, %cst_40 {dimension_numbers = #tpu.dot_dimension_numbers<[1], [0], [0], [1], [0, 0, 1, 1], [], []>} : vector<128x256xf32>, vector<256x128xf32>, vector<128x128xf32> -> vector<128x128xf32>
      %40 = arith.addf %27, %39 : vector<128x128xf32>
      %c19_i32 = arith.constant 19 : i32
      %41 = arith.addi %13, %c19_i32 : i32
      %c5_i32_41 = arith.constant 5 : i32
      %42 = arith.addi %41, %c5_i32_41 : i32
      %43 = arith.index_cast %42 : i32 to index
      %c0_42 = arith.constant 0 : index
      %44 = vector.load %arg11[%43, %c0_42] : memref<432x128xf32, #tpu.memory_space<vmem>>, vector<128x128xf32>
      %c20_i32 = arith.constant 20 : i32
      %45 = arith.addi %13, %c20_i32 : i32
      %c5_i32_43 = arith.constant 5 : i32
      %46 = arith.addi %45, %c5_i32_43 : i32
      %47 = arith.index_cast %46 : i32 to index
      %c0_44 = arith.constant 0 : index
      %48 = vector.load %arg11[%47, %c0_44] : memref<432x128xf32, #tpu.memory_space<vmem>>, vector<128x128xf32>
      %49 = tpu.concatenate %44, %48 in 1 : vector<128x128xf32>, vector<128x128xf32> -> vector<128x256xf32>
      %c1_45 = arith.constant 1 : index
      %c2 = arith.constant 2 : index
      %c0_46 = arith.constant 0 : index
      %c0_47 = arith.constant 0 : index
      %50 = vector.load %arg5[%c1_45, %c2, %c0_46, %c0_47] : memref<3x5x256x128xf32, #tpu.memory_space<vmem>>, vector<1x1x256x128xf32>
      %51 = vector.shape_cast %50 : vector<1x1x256x128xf32> to vector<256x128xf32>
      %cst_48 = arith.constant dense<0.000000e+00> : vector<128x128xf32>
      %52 = tpu.matmul %49, %51, %cst_48 {dimension_numbers = #tpu.dot_dimension_numbers<[1], [0], [0], [1], [0, 0, 1, 1], [], []>} : vector<128x256xf32>, vector<256x128xf32>, vector<128x128xf32> -> vector<128x128xf32>
      %53 = arith.addf %40, %52 : vector<128x128xf32>
      %c36_i32 = arith.constant 36 : i32
      %54 = arith.addi %13, %c36_i32 : i32
      %c5_i32_49 = arith.constant 5 : i32
      %55 = arith.addi %54, %c5_i32_49 : i32
      %56 = arith.index_cast %55 : i32 to index
      %c0_50 = arith.constant 0 : index
      %57 = vector.load %arg11[%56, %c0_50] : memref<432x128xf32, #tpu.memory_space<vmem>>, vector<128x128xf32>
      %c37_i32 = arith.constant 37 : i32
      %58 = arith.addi %13, %c37_i32 : i32
      %c5_i32_51 = arith.constant 5 : i32
      %59 = arith.addi %58, %c5_i32_51 : i32
      %60 = arith.index_cast %59 : i32 to index
      %c0_52 = arith.constant 0 : index
      %61 = vector.load %arg11[%60, %c0_52] : memref<432x128xf32, #tpu.memory_space<vmem>>, vector<128x128xf32>
      %62 = tpu.concatenate %57, %61 in 1 : vector<128x128xf32>, vector<128x128xf32> -> vector<128x256xf32>
      %c1_53 = arith.constant 1 : index
      %c3 = arith.constant 3 : index
      %c0_54 = arith.constant 0 : index
      %c0_55 = arith.constant 0 : index
      %63 = vector.load %arg5[%c1_53, %c3, %c0_54, %c0_55] : memref<3x5x256x128xf32, #tpu.memory_space<vmem>>, vector<1x1x256x128xf32>
      %64 = vector.shape_cast %63 : vector<1x1x256x128xf32> to vector<256x128xf32>
      %cst_56 = arith.constant dense<0.000000e+00> : vector<128x128xf32>
      %65 = tpu.matmul %62, %64, %cst_56 {dimension_numbers = #tpu.dot_dimension_numbers<[1], [0], [0], [1], [0, 0, 1, 1], [], []>} : vector<128x256xf32>, vector<256x128xf32>, vector<128x128xf32> -> vector<128x128xf32>
      %66 = arith.addf %53, %65 : vector<128x128xf32>
      %c38_i32 = arith.constant 38 : i32
      %67 = arith.addi %13, %c38_i32 : i32
      %c5_i32_57 = arith.constant 5 : i32
      %68 = arith.addi %67, %c5_i32_57 : i32
      %69 = arith.index_cast %68 : i32 to index
      %c0_58 = arith.constant 0 : index
      %70 = vector.load %arg11[%69, %c0_58] : memref<432x128xf32, #tpu.memory_space<vmem>>, vector<128x128xf32>
      %71 = tpu.concatenate %70, %70 in 1 : vector<128x128xf32>, vector<128x128xf32> -> vector<128x256xf32>
      %c1_59 = arith.constant 1 : index
      %c4 = arith.constant 4 : index
      %c0_60 = arith.constant 0 : index
      %c0_61 = arith.constant 0 : index
      %72 = vector.load %arg5[%c1_59, %c4, %c0_60, %c0_61] : memref<3x5x256x128xf32, #tpu.memory_space<vmem>>, vector<1x1x256x128xf32>
      %73 = vector.shape_cast %72 : vector<1x1x256x128xf32> to vector<256x128xf32>
      %cst_62 = arith.constant dense<0.000000e+00> : vector<128x128xf32>
      %74 = tpu.matmul %71, %73, %cst_62 {dimension_numbers = #tpu.dot_dimension_numbers<[1], [0], [0], [1], [0, 0, 1, 1], [], []>} : vector<128x256xf32>, vector<256x128xf32>, vector<128x128xf32> -> vector<128x128xf32>
      %75 = arith.addf %66, %74 : vector<128x128xf32>
      %c1_63 = arith.constant 1 : index
      %c0_64 = arith.constant 0 : index
      %c0_65 = arith.constant 0 : index
      %76 = vector.load %arg6[%c1_63, %c0_64, %c0_65] : memref<3x1x128xf32, #tpu.memory_space<vmem>>, vector<1x1x128xf32>
      %77 = vector.shape_cast %76 : vector<1x1x128xf32> to vector<1x128xf32>
      %78 = vector.broadcast %77 : vector<1x128xf32> to vector<128x128xf32>
      %79 = arith.addf %75, %78 : vector<128x128xf32>
      %cst_66 = arith.constant 0.000000e+00 : f32
      %80 = vector.broadcast %cst_66 : f32 to vector<128x128xf32>
      %81 = arith.maximumf %79, %80 : vector<128x128xf32>
      %82 = tpu.iota {dimensions = array<i32: 0>} : vector<128x1xi32>
      %83 = arith.index_cast %arg12 : i32 to index
      %84 = memref.load %arg1[%83] : memref<3xi32, #tpu.memory_space<smem>>
      %85 = vector.broadcast %84 : i32 to vector<128x1xi32>
      %86 = arith.addi %85, %82 : vector<128x1xi32>
      %c18_i32_67 = arith.constant 18 : i32
      %87 = vector.broadcast %c18_i32_67 : i32 to vector<128x1xi32>
      %88 = arith.cmpi sge, %86, %87 : vector<128x1xi32>
      %c18_i32_68 = arith.constant 18 : i32
      %89 = vector.broadcast %c18_i32_68 : i32 to vector<128x1xi32>
      %90 = arith.subi %86, %89 : vector<128x1xi32>
      %91 = arith.select %88, %90, %86 : vector<128x1xi1>, vector<128x1xi32>
      %c18_i32_69 = arith.constant 18 : i32
      %92 = vector.broadcast %c18_i32_69 : i32 to vector<128x1xi32>
      %93 = arith.cmpi sge, %91, %92 : vector<128x1xi32>
      %c18_i32_70 = arith.constant 18 : i32
      %94 = vector.broadcast %c18_i32_70 : i32 to vector<128x1xi32>
      %95 = arith.subi %91, %94 : vector<128x1xi32>
      %96 = arith.select %93, %95, %91 : vector<128x1xi1>, vector<128x1xi32>
      %c18_i32_71 = arith.constant 18 : i32
      %97 = vector.broadcast %c18_i32_71 : i32 to vector<128x1xi32>
      %98 = arith.cmpi sge, %96, %97 : vector<128x1xi32>
      %c18_i32_72 = arith.constant 18 : i32
      %99 = vector.broadcast %c18_i32_72 : i32 to vector<128x1xi32>
      %100 = arith.subi %96, %99 : vector<128x1xi32>
      %101 = arith.select %98, %100, %96 : vector<128x1xi1>, vector<128x1xi32>
      %c18_i32_73 = arith.constant 18 : i32
      %102 = vector.broadcast %c18_i32_73 : i32 to vector<128x1xi32>
      %103 = arith.cmpi sge, %101, %102 : vector<128x1xi32>
      %c18_i32_74 = arith.constant 18 : i32
      %104 = vector.broadcast %c18_i32_74 : i32 to vector<128x1xi32>
      %105 = arith.subi %101, %104 : vector<128x1xi32>
      %106 = arith.select %103, %105, %101 : vector<128x1xi1>, vector<128x1xi32>
      %c18_i32_75 = arith.constant 18 : i32
      %107 = vector.broadcast %c18_i32_75 : i32 to vector<128x1xi32>
      %108 = arith.cmpi sge, %106, %107 : vector<128x1xi32>
      %c18_i32_76 = arith.constant 18 : i32
      %109 = vector.broadcast %c18_i32_76 : i32 to vector<128x1xi32>
      %110 = arith.subi %106, %109 : vector<128x1xi32>
      %111 = arith.select %108, %110, %106 : vector<128x1xi1>, vector<128x1xi32>
      %c18_i32_77 = arith.constant 18 : i32
      %112 = vector.broadcast %c18_i32_77 : i32 to vector<128x1xi32>
      %113 = arith.cmpi sge, %111, %112 : vector<128x1xi32>
      %c18_i32_78 = arith.constant 18 : i32
      %114 = vector.broadcast %c18_i32_78 : i32 to vector<128x1xi32>
      %115 = arith.subi %111, %114 : vector<128x1xi32>
      %116 = arith.select %113, %115, %111 : vector<128x1xi1>, vector<128x1xi32>
      %c18_i32_79 = arith.constant 18 : i32
      %117 = vector.broadcast %c18_i32_79 : i32 to vector<128x1xi32>
      %118 = arith.cmpi sge, %116, %117 : vector<128x1xi32>
      %c18_i32_80 = arith.constant 18 : i32
      %119 = vector.broadcast %c18_i32_80 : i32 to vector<128x1xi32>
      %120 = arith.subi %116, %119 : vector<128x1xi32>
      %121 = arith.select %118, %120, %116 : vector<128x1xi1>, vector<128x1xi32>
      %c18_i32_81 = arith.constant 18 : i32
      %122 = vector.broadcast %c18_i32_81 : i32 to vector<128x1xi32>
      %123 = arith.cmpi sge, %121, %122 : vector<128x1xi32>
      %c18_i32_82 = arith.constant 18 : i32
      %124 = vector.broadcast %c18_i32_82 : i32 to vector<128x1xi32>
      %125 = arith.subi %121, %124 : vector<128x1xi32>
      %126 = arith.select %123, %125, %121 : vector<128x1xi1>, vector<128x1xi32>
      %127 = vector.broadcast %13 : i32 to vector<128x1xi32>
      %128 = arith.addi %127, %82 : vector<128x1xi32>
      %c16_i32 = arith.constant 16 : i32
      %129 = vector.broadcast %c16_i32 : i32 to vector<128x1xi32>
      %130 = arith.cmpi slt, %126, %129 : vector<128x1xi32>
      %c288_i32 = arith.constant 288 : i32
      %131 = vector.broadcast %c288_i32 : i32 to vector<128x1xi32>
      %132 = arith.cmpi slt, %128, %131 : vector<128x1xi32>
      %133 = arith.andi %130, %132 : vector<128x1xi1>
      %134 = arith.extui %133 : vector<128x1xi1> to vector<128x1xi32>
      %135 = arith.sitofp %134 : vector<128x1xi32> to vector<128x1xf32>
      %136 = vector.broadcast %135 : vector<128x1xf32> to vector<128x128xf32>
      %137 = arith.mulf %81, %136 : vector<128x128xf32>
      %c24_i32 = arith.constant 24 : i32
      %138 = arith.addi %c24_i32, %13 : i32
      %139 = tpu.assume_multiple %138, 8 : i32
      %140 = arith.index_cast %139 : i32 to index
      %c0_83 = arith.constant 0 : index
      %141 = vector.load %arg10[%140, %c0_83] : memref<432x128xf32, #tpu.memory_space<vmem>>, vector<128x128xf32>
      tpu.vector_store %arg10[%140, %c0_83], %137 {strides = array<i32>} : memref<432x128xf32, #tpu.memory_space<vmem>>, vector<128x128xf32>,
    }
    %c3_i32_17 = arith.constant 3 : i32
    %c0_i32_18 = arith.constant 0 : i32
    %c3_i32_19 = arith.constant 3 : i32
    %11 = arith.addi %c0_i32_18, %c3_i32_19 : i32
    %c1_i32_20 = arith.constant 1 : i32
    scf.for %arg12 = %c0_i32_18 to %11 step %c1_i32_20  : i32 {
      %c128_i32 = arith.constant 128 : i32
      %12 = arith.muli %arg12, %c128_i32 : i32
      %13 = tpu.assume_multiple %12, 128 : i32
      %cst_22 = arith.constant 0.000000e+00 : f32
      %14 = vector.broadcast %cst_22 : f32 to vector<128x128xf32>
      %c0_i32_23 = arith.constant 0 : i32
      %15 = arith.addi %13, %c0_i32_23 : i32
      %c5_i32 = arith.constant 5 : i32
      %16 = arith.addi %15, %c5_i32 : i32
      %17 = arith.index_cast %16 : i32 to index
      %c0_24 = arith.constant 0 : index
      %18 = vector.load %arg10[%17, %c0_24] : memref<432x128xf32, #tpu.memory_space<vmem>>, vector<128x128xf32>
      %c1_i32_25 = arith.constant 1 : i32
      %19 = arith.addi %13, %c1_i32_25 : i32
      %c5_i32_26 = arith.constant 5 : i32
      %20 = arith.addi %19, %c5_i32_26 : i32
      %21 = arith.index_cast %20 : i32 to index
      %c0_27 = arith.constant 0 : index
      %22 = vector.load %arg10[%21, %c0_27] : memref<432x128xf32, #tpu.memory_space<vmem>>, vector<128x128xf32>
      %23 = tpu.concatenate %18, %22 in 1 : vector<128x128xf32>, vector<128x128xf32> -> vector<128x256xf32>
      %c2 = arith.constant 2 : index
      %c0_28 = arith.constant 0 : index
      %c0_29 = arith.constant 0 : index
      %c0_30 = arith.constant 0 : index
      %24 = vector.load %arg5[%c2, %c0_28, %c0_29, %c0_30] : memref<3x5x256x128xf32, #tpu.memory_space<vmem>>, vector<1x1x256x128xf32>
      %25 = vector.shape_cast %24 : vector<1x1x256x128xf32> to vector<256x128xf32>
      %cst_31 = arith.constant dense<0.000000e+00> : vector<128x128xf32>
      %26 = tpu.matmul %23, %25, %cst_31 {dimension_numbers = #tpu.dot_dimension_numbers<[1], [0], [0], [1], [0, 0, 1, 1], [], []>} : vector<128x256xf32>, vector<256x128xf32>, vector<128x128xf32> -> vector<128x128xf32>
      %27 = arith.addf %14, %26 : vector<128x128xf32>
      %c2_i32 = arith.constant 2 : i32
      %28 = arith.addi %13, %c2_i32 : i32
      %c5_i32_32 = arith.constant 5 : i32
      %29 = arith.addi %28, %c5_i32_32 : i32
      %30 = arith.index_cast %29 : i32 to index
      %c0_33 = arith.constant 0 : index
      %31 = vector.load %arg10[%30, %c0_33] : memref<432x128xf32, #tpu.memory_space<vmem>>, vector<128x128xf32>
      %c18_i32 = arith.constant 18 : i32
      %32 = arith.addi %13, %c18_i32 : i32
      %c5_i32_34 = arith.constant 5 : i32
      %33 = arith.addi %32, %c5_i32_34 : i32
      %34 = arith.index_cast %33 : i32 to index
      %c0_35 = arith.constant 0 : index
      %35 = vector.load %arg10[%34, %c0_35] : memref<432x128xf32, #tpu.memory_space<vmem>>, vector<128x128xf32>
      %36 = tpu.concatenate %31, %35 in 1 : vector<128x128xf32>, vector<128x128xf32> -> vector<128x256xf32>
      %c2_36 = arith.constant 2 : index
      %c1 = arith.constant 1 : index
      %c0_37 = arith.constant 0 : index
      %c0_38 = arith.constant 0 : index
      %37 = vector.load %arg5[%c2_36, %c1, %c0_37, %c0_38] : memref<3x5x256x128xf32, #tpu.memory_space<vmem>>, vector<1x1x256x128xf32>
      %38 = vector.shape_cast %37 : vector<1x1x256x128xf32> to vector<256x128xf32>
      %cst_39 = arith.constant dense<0.000000e+00> : vector<128x128xf32>
      %39 = tpu.matmul %36, %38, %cst_39 {dimension_numbers = #tpu.dot_dimension_numbers<[1], [0], [0], [1], [0, 0, 1, 1], [], []>} : vector<128x256xf32>, vector<256x128xf32>, vector<128x128xf32> -> vector<128x128xf32>
      %40 = arith.addf %27, %39 : vector<128x128xf32>
      %c19_i32 = arith.constant 19 : i32
      %41 = arith.addi %13, %c19_i32 : i32
      %c5_i32_40 = arith.constant 5 : i32
      %42 = arith.addi %41, %c5_i32_40 : i32
      %43 = arith.index_cast %42 : i32 to index
      %c0_41 = arith.constant 0 : index
      %44 = vector.load %arg10[%43, %c0_41] : memref<432x128xf32, #tpu.memory_space<vmem>>, vector<128x128xf32>
      %c20_i32 = arith.constant 20 : i32
      %45 = arith.addi %13, %c20_i32 : i32
      %c5_i32_42 = arith.constant 5 : i32
      %46 = arith.addi %45, %c5_i32_42 : i32
      %47 = arith.index_cast %46 : i32 to index
      %c0_43 = arith.constant 0 : index
      %48 = vector.load %arg10[%47, %c0_43] : memref<432x128xf32, #tpu.memory_space<vmem>>, vector<128x128xf32>
      %49 = tpu.concatenate %44, %48 in 1 : vector<128x128xf32>, vector<128x128xf32> -> vector<128x256xf32>
      %c2_44 = arith.constant 2 : index
      %c2_45 = arith.constant 2 : index
      %c0_46 = arith.constant 0 : index
      %c0_47 = arith.constant 0 : index
      %50 = vector.load %arg5[%c2_44, %c2_45, %c0_46, %c0_47] : memref<3x5x256x128xf32, #tpu.memory_space<vmem>>, vector<1x1x256x128xf32>
      %51 = vector.shape_cast %50 : vector<1x1x256x128xf32> to vector<256x128xf32>
      %cst_48 = arith.constant dense<0.000000e+00> : vector<128x128xf32>
      %52 = tpu.matmul %49, %51, %cst_48 {dimension_numbers = #tpu.dot_dimension_numbers<[1], [0], [0], [1], [0, 0, 1, 1], [], []>} : vector<128x256xf32>, vector<256x128xf32>, vector<128x128xf32> -> vector<128x128xf32>
      %53 = arith.addf %40, %52 : vector<128x128xf32>
      %c36_i32 = arith.constant 36 : i32
      %54 = arith.addi %13, %c36_i32 : i32
      %c5_i32_49 = arith.constant 5 : i32
      %55 = arith.addi %54, %c5_i32_49 : i32
      %56 = arith.index_cast %55 : i32 to index
      %c0_50 = arith.constant 0 : index
      %57 = vector.load %arg10[%56, %c0_50] : memref<432x128xf32, #tpu.memory_space<vmem>>, vector<128x128xf32>
      %c37_i32 = arith.constant 37 : i32
      %58 = arith.addi %13, %c37_i32 : i32
      %c5_i32_51 = arith.constant 5 : i32
      %59 = arith.addi %58, %c5_i32_51 : i32
      %60 = arith.index_cast %59 : i32 to index
      %c0_52 = arith.constant 0 : index
      %61 = vector.load %arg10[%60, %c0_52] : memref<432x128xf32, #tpu.memory_space<vmem>>, vector<128x128xf32>
      %62 = tpu.concatenate %57, %61 in 1 : vector<128x128xf32>, vector<128x128xf32> -> vector<128x256xf32>
      %c2_53 = arith.constant 2 : index
      %c3 = arith.constant 3 : index
      %c0_54 = arith.constant 0 : index
      %c0_55 = arith.constant 0 : index
      %63 = vector.load %arg5[%c2_53, %c3, %c0_54, %c0_55] : memref<3x5x256x128xf32, #tpu.memory_space<vmem>>, vector<1x1x256x128xf32>
      %64 = vector.shape_cast %63 : vector<1x1x256x128xf32> to vector<256x128xf32>
      %cst_56 = arith.constant dense<0.000000e+00> : vector<128x128xf32>
      %65 = tpu.matmul %62, %64, %cst_56 {dimension_numbers = #tpu.dot_dimension_numbers<[1], [0], [0], [1], [0, 0, 1, 1], [], []>} : vector<128x256xf32>, vector<256x128xf32>, vector<128x128xf32> -> vector<128x128xf32>
      %66 = arith.addf %53, %65 : vector<128x128xf32>
      %c38_i32 = arith.constant 38 : i32
      %67 = arith.addi %13, %c38_i32 : i32
      %c5_i32_57 = arith.constant 5 : i32
      %68 = arith.addi %67, %c5_i32_57 : i32
      %69 = arith.index_cast %68 : i32 to index
      %c0_58 = arith.constant 0 : index
      %70 = vector.load %arg10[%69, %c0_58] : memref<432x128xf32, #tpu.memory_space<vmem>>, vector<128x128xf32>
      %71 = tpu.concatenate %70, %70 in 1 : vector<128x128xf32>, vector<128x128xf32> -> vector<128x256xf32>
      %c2_59 = arith.constant 2 : index
      %c4 = arith.constant 4 : index
      %c0_60 = arith.constant 0 : index
      %c0_61 = arith.constant 0 : index
      %72 = vector.load %arg5[%c2_59, %c4, %c0_60, %c0_61] : memref<3x5x256x128xf32, #tpu.memory_space<vmem>>, vector<1x1x256x128xf32>
      %73 = vector.shape_cast %72 : vector<1x1x256x128xf32> to vector<256x128xf32>
      %cst_62 = arith.constant dense<0.000000e+00> : vector<128x128xf32>
      %74 = tpu.matmul %71, %73, %cst_62 {dimension_numbers = #tpu.dot_dimension_numbers<[1], [0], [0], [1], [0, 0, 1, 1], [], []>} : vector<128x256xf32>, vector<256x128xf32>, vector<128x128xf32> -> vector<128x128xf32>
      %75 = arith.addf %66, %74 : vector<128x128xf32>
      %c2_63 = arith.constant 2 : index
      %c0_64 = arith.constant 0 : index
      %c0_65 = arith.constant 0 : index
      %76 = vector.load %arg6[%c2_63, %c0_64, %c0_65] : memref<3x1x128xf32, #tpu.memory_space<vmem>>, vector<1x1x128xf32>
      %77 = vector.shape_cast %76 : vector<1x1x128xf32> to vector<1x128xf32>
      %78 = vector.broadcast %77 : vector<1x128xf32> to vector<128x128xf32>
      %79 = arith.addf %75, %78 : vector<128x128xf32>
      %cst_66 = arith.constant 0.000000e+00 : f32
      %80 = vector.broadcast %cst_66 : f32 to vector<128x128xf32>
      %81 = arith.maximumf %79, %80 : vector<128x128xf32>
      %82 = tpu.iota {dimensions = array<i32: 0>} : vector<128x1xi32>
      %83 = arith.index_cast %arg12 : i32 to index
      %84 = memref.load %arg1[%83] : memref<3xi32, #tpu.memory_space<smem>>
      %85 = vector.broadcast %84 : i32 to vector<128x1xi32>
      %86 = arith.addi %85, %82 : vector<128x1xi32>
      %c18_i32_67 = arith.constant 18 : i32
      %87 = vector.broadcast %c18_i32_67 : i32 to vector<128x1xi32>
      %88 = arith.cmpi sge, %86, %87 : vector<128x1xi32>
      %c18_i32_68 = arith.constant 18 : i32
      %89 = vector.broadcast %c18_i32_68 : i32 to vector<128x1xi32>
      %90 = arith.subi %86, %89 : vector<128x1xi32>
      %91 = arith.select %88, %90, %86 : vector<128x1xi1>, vector<128x1xi32>
      %c18_i32_69 = arith.constant 18 : i32
      %92 = vector.broadcast %c18_i32_69 : i32 to vector<128x1xi32>
      %93 = arith.cmpi sge, %91, %92 : vector<128x1xi32>
      %c18_i32_70 = arith.constant 18 : i32
      %94 = vector.broadcast %c18_i32_70 : i32 to vector<128x1xi32>
      %95 = arith.subi %91, %94 : vector<128x1xi32>
      %96 = arith.select %93, %95, %91 : vector<128x1xi1>, vector<128x1xi32>
      %c18_i32_71 = arith.constant 18 : i32
      %97 = vector.broadcast %c18_i32_71 : i32 to vector<128x1xi32>
      %98 = arith.cmpi sge, %96, %97 : vector<128x1xi32>
      %c18_i32_72 = arith.constant 18 : i32
      %99 = vector.broadcast %c18_i32_72 : i32 to vector<128x1xi32>
      %100 = arith.subi %96, %99 : vector<128x1xi32>
      %101 = arith.select %98, %100, %96 : vector<128x1xi1>, vector<128x1xi32>
      %c18_i32_73 = arith.constant 18 : i32
      %102 = vector.broadcast %c18_i32_73 : i32 to vector<128x1xi32>
      %103 = arith.cmpi sge, %101, %102 : vector<128x1xi32>
      %c18_i32_74 = arith.constant 18 : i32
      %104 = vector.broadcast %c18_i32_74 : i32 to vector<128x1xi32>
      %105 = arith.subi %101, %104 : vector<128x1xi32>
      %106 = arith.select %103, %105, %101 : vector<128x1xi1>, vector<128x1xi32>
      %c18_i32_75 = arith.constant 18 : i32
      %107 = vector.broadcast %c18_i32_75 : i32 to vector<128x1xi32>
      %108 = arith.cmpi sge, %106, %107 : vector<128x1xi32>
      %c18_i32_76 = arith.constant 18 : i32
      %109 = vector.broadcast %c18_i32_76 : i32 to vector<128x1xi32>
      %110 = arith.subi %106, %109 : vector<128x1xi32>
      %111 = arith.select %108, %110, %106 : vector<128x1xi1>, vector<128x1xi32>
      %c18_i32_77 = arith.constant 18 : i32
      %112 = vector.broadcast %c18_i32_77 : i32 to vector<128x1xi32>
      %113 = arith.cmpi sge, %111, %112 : vector<128x1xi32>
      %c18_i32_78 = arith.constant 18 : i32
      %114 = vector.broadcast %c18_i32_78 : i32 to vector<128x1xi32>
      %115 = arith.subi %111, %114 : vector<128x1xi32>
      %116 = arith.select %113, %115, %111 : vector<128x1xi1>, vector<128x1xi32>
      %c18_i32_79 = arith.constant 18 : i32
      %117 = vector.broadcast %c18_i32_79 : i32 to vector<128x1xi32>
      %118 = arith.cmpi sge, %116, %117 : vector<128x1xi32>
      %c18_i32_80 = arith.constant 18 : i32
      %119 = vector.broadcast %c18_i32_80 : i32 to vector<128x1xi32>
      %120 = arith.subi %116, %119 : vector<128x1xi32>
      %121 = arith.select %118, %120, %116 : vector<128x1xi1>, vector<128x1xi32>
      %c18_i32_81 = arith.constant 18 : i32
      %122 = vector.broadcast %c18_i32_81 : i32 to vector<128x1xi32>
      %123 = arith.cmpi sge, %121, %122 : vector<128x1xi32>
      %c18_i32_82 = arith.constant 18 : i32
      %124 = vector.broadcast %c18_i32_82 : i32 to vector<128x1xi32>
      %125 = arith.subi %121, %124 : vector<128x1xi32>
      %126 = arith.select %123, %125, %121 : vector<128x1xi1>, vector<128x1xi32>
      %127 = vector.broadcast %13 : i32 to vector<128x1xi32>
      %128 = arith.addi %127, %82 : vector<128x1xi32>
      %c16_i32 = arith.constant 16 : i32
      %129 = vector.broadcast %c16_i32 : i32 to vector<128x1xi32>
      %130 = arith.cmpi slt, %126, %129 : vector<128x1xi32>
      %c288_i32 = arith.constant 288 : i32
      %131 = vector.broadcast %c288_i32 : i32 to vector<128x1xi32>
      %132 = arith.cmpi slt, %128, %131 : vector<128x1xi32>
      %133 = arith.andi %130, %132 : vector<128x1xi1>
      %134 = arith.extui %133 : vector<128x1xi1> to vector<128x1xi32>
      %135 = arith.sitofp %134 : vector<128x1xi32> to vector<128x1xf32>
      %136 = vector.broadcast %135 : vector<128x1xf32> to vector<128x128xf32>
      %137 = arith.mulf %81, %136 : vector<128x128xf32>
      %c0_83 = arith.constant 0 : index
      %c0_84 = arith.constant 0 : index
      %138 = vector.load %arg7[%c0_83, %c0_84] : memref<128x128xf32, #tpu.memory_space<vmem>>, vector<128x128xf32>
      %cst_85 = arith.constant dense<0.000000e+00> : vector<128x128xf32>
      %139 = tpu.matmul %137, %138, %cst_85 {dimension_numbers = #tpu.dot_dimension_numbers<[1], [0], [0], [1], [0, 0, 1, 1], [], []>} : vector<128x128xf32>, vector<128x128xf32>, vector<128x128xf32> -> vector<128x128xf32>
      %c0_86 = arith.constant 0 : index
      %c0_87 = arith.constant 0 : index
      %140 = vector.load %arg8[%c0_86, %c0_87] : memref<1x128xf32, #tpu.memory_space<vmem>>, vector<1x128xf32>
      %141 = vector.broadcast %140 : vector<1x128xf32> to vector<128x128xf32>
      %142 = arith.addf %139, %141 : vector<128x128xf32>
      %143 = vector.extract_strided_slice %142 {offsets = [0, 0], sizes = [128, 8], strides = [1, 1]} : vector<128x128xf32> to vector<128x8xf32>
      %c0_88 = arith.constant 0 : index
      %144 = arith.index_cast %13 : i32 to index
      %c0_89 = arith.constant 0 : index
      %145 = vector.load %arg9[%c0_88, %144, %c0_89] : memref<1x384x8xf32, #tpu.memory_space<vmem>>, vector<1x128x8xf32>
      %146 = vector.shape_cast %145 : vector<1x128x8xf32> to vector<128x8xf32>
      %147 = vector.shape_cast %143 : vector<128x8xf32> to vector<1x128x8xf32>
      tpu.vector_store %arg9[%c0_88, %144, %c0_89], %147 {strides = array<i32>} : memref<1x384x8xf32, #tpu.memory_space<vmem>>, vector<1x128x8xf32>,
    }
    %c3_i32_21 = arith.constant 3 : i32
    return
  }
  func.func @transform_0(%arg0: i32, %arg1: memref<3xi32, #tpu.memory_space<smem>>) -> (i32, i32, i32) {
    %c0_i32 = arith.constant 0 : i32
    %c0_i32_0 = arith.constant 0 : i32
    %c0_i32_1 = arith.constant 0 : i32
    return %arg0, %c0_i32, %c0_i32_0 : i32, i32, i32
  }
  func.func @transform_1(%arg0: i32, %arg1: memref<3xi32, #tpu.memory_space<smem>>) -> (i32, i32) {
    %c0_i32 = arith.constant 0 : i32
    %c0_i32_0 = arith.constant 0 : i32
    %c0_i32_1 = arith.constant 0 : i32
    return %c0_i32, %c0_i32_0 : i32, i32
  }
  func.func @transform_2(%arg0: i32, %arg1: memref<3xi32, #tpu.memory_space<smem>>) -> (i32, i32) {
    %c0_i32 = arith.constant 0 : i32
    %c0_i32_0 = arith.constant 0 : i32
    %c0_i32_1 = arith.constant 0 : i32
    return %c0_i32, %c0_i32_0 : i32, i32
  }
  func.func @transform_3(%arg0: i32, %arg1: memref<3xi32, #tpu.memory_space<smem>>) -> (i32, i32, i32, i32) {
    %c0_i32 = arith.constant 0 : i32
    %c0_i32_0 = arith.constant 0 : i32
    %c0_i32_1 = arith.constant 0 : i32
    %c0_i32_2 = arith.constant 0 : i32
    %c0_i32_3 = arith.constant 0 : i32
    return %c0_i32, %c0_i32_0, %c0_i32_1, %c0_i32_2 : i32, i32, i32, i32
  }
  func.func @transform_4(%arg0: i32, %arg1: memref<3xi32, #tpu.memory_space<smem>>) -> (i32, i32, i32) {
    %c0_i32 = arith.constant 0 : i32
    %c0_i32_0 = arith.constant 0 : i32
    %c0_i32_1 = arith.constant 0 : i32
    %c0_i32_2 = arith.constant 0 : i32
    return %c0_i32, %c0_i32_0, %c0_i32_1 : i32, i32, i32
  }
  func.func @transform_5(%arg0: i32, %arg1: memref<3xi32, #tpu.memory_space<smem>>) -> (i32, i32) {
    %c0_i32 = arith.constant 0 : i32
    %c0_i32_0 = arith.constant 0 : i32
    %c0_i32_1 = arith.constant 0 : i32
    return %c0_i32, %c0_i32_0 : i32, i32
  }
  func.func @transform_6(%arg0: i32, %arg1: memref<3xi32, #tpu.memory_space<smem>>) -> (i32, i32) {
    %c0_i32 = arith.constant 0 : i32
    %c0_i32_0 = arith.constant 0 : i32
    %c0_i32_1 = arith.constant 0 : i32
    return %c0_i32, %c0_i32_0 : i32, i32
  }
  func.func @transform_7(%arg0: i32, %arg1: memref<3xi32, #tpu.memory_space<smem>>) -> (i32, i32, i32) {
    %c0_i32 = arith.constant 0 : i32
    %c0_i32_0 = arith.constant 0 : i32
    %c0_i32_1 = arith.constant 0 : i32
    return %arg0, %c0_i32, %c0_i32_0 : i32, i32, i32
  }
}

</mosaic_0001>

<bundles_post_ra>
// kernel: genclean_forward.1
= control target key start
LH: loop header
LB: loop body
LE: loop exit
PB: predicated region body
PF: predicated region fallthrough
CT: control target
= control target key end

     0   :  { %s12623_s0 = inlined_call_operand.vmem [shape: s32[3], index: 0, kind: input, shape index: {}]   ;;  %s12624_s1 = inlined_call_operand.vmem [shape: f32[2,384,128], index: 1, kind: input, shape index: {}]   ;;  %s12625_s2 = inlined_call_operand.hbm [shape: f32[128,128], index: 2, kind: input, shape index: {}]   ;;  %s12626_s3 = inlined_call_operand.hbm [shape: f32[1,128], index: 3, kind: input, shape index: {}]   ;;  %s12627_s4 = inlined_call_operand.hbm [shape: f32[3,5,256,128], index: 4, kind: input, shape index: {}]   ;;  %s12628_s5 = inlined_call_operand.hbm [shape: f32[3,1,128], index: 5, kind: input, shape index: {}]   ;;  %s12629_s6 = inlined_call_operand.hbm [shape: f32[128,128], index: 6, kind: input, shape index: {}]   ;;  %s12630_s7 = inlined_call_operand.hbm [shape: f32[1,128], index: 7, kind: input, shape index: {}]   ;;  %s12631_s8 = inlined_call_operand.vmem [shape: f32[2,384,8], index: 8, kind: output, shape index: {}]  }
   0x1   :  { %s13_s29 = sshll.u32 %s12623_s0, 4  ;;  %s14_s29 = int_to_ptr.vmem [resolvable:$true] %s13_s29 }
   0x2   :  { %s9844_s30 = scalar_lea.vmem %s14_s29, 16  ;;  %p9849_p1 = scmp.lt.s32.totalorder %s14_s29, %s14_s29 }
   0x3   :  { %p9845_p0 = scmp.ne.s32.totalorder %s14_s29, %s9844_s30  ;;  %p9850_p2 = scmp.lt.s32.totalorder %s9844_s30, %s9844_s30 }
   0x5   :  { %p9851_p3 = por %p9850_p2, %p9849_p1 }
   0x7   :  { %p9852_p4 = pnand %p9851_p3, %p9845_p0 }
   0x9   :  { %9855 = shalt.err (!%p9852_p4)  }
   0xa   :  { %s10082_s9 = smov [#allocation5]  }
   0xb   :  { %16 = dma.vmem_to_smem %s14_s29, 16, %s10082_s9, [#allocation4] }
   0xc   :  { %10044 = dma.done.wait [#allocation4], 16 }
   0xd   :  { %10045 = vsyncadd [#allocation4], 4294967280 }
   0xe   :  { %18 = sfence }
   0xf   :  { %19 = vsyncpa [#allocation7], 0 }
  0x10   :  { %20 = vsyncpa [#allocation9], 0 }
  0x11   :  { %21 = vsyncpa [#allocation12], 0 }
  0x12   :  { %22 = vsyncpa [#allocation15], 0  ;;  %s10146_s10 = smov 0  }
  0x13 LB: > { %s10083_s0 = smov [#allocation8]   ;;  %s10152_s12 = sadd.s32 4294967295, %s10064_s10   ;;  %s10064_s10 = sphi %s10146_s10, %s28_s10  }
  0x14   : > { %s237_s11 = sshll.u32 %s10083_s0, 4  ;;  %p6650_p5 = scmp.ge.s32.totalorder %s10064_s10, 1  ;;  %s238_s11 = int_to_ptr.vmem [resolvable:$true] %s237_s11 }
  0x15   : > { %p211_p6 = scmp.lt.s32.totalorder %s10064_s10, 3  ;;  %p12632_p7 = scmp.eq.s32.totalorder %s10152_s12, 0 }
  0x16   : > { %s10084_s14 = smov [#allocation11]   ;;  %s10085_s17 = smov [#allocation6]  }
  0x17   : > { %p10157_p8 = pnand %p6650_p5, %p211_p6  ;;  %s260_s15 = sshll.u32 %s10084_s14, 4  ;;  %s10163_s15 = int_to_ptr.vmem [resolvable:$true] %s260_s15 }
  0x18   : > { %s223_s18 = sshll.u32 %s10085_s17, 4  ;;  %s9856_s21 = scalar_lea.hbm %s12626_s3, 16  ;;  %s10171_s18 = int_to_ptr.vmem [resolvable:$true] %s223_s18 }
  0x19   : > { %s12686_s13 = scalar_select %p10157_p8, 1, 0 }
  0x1a   : > { %p9757_p9 = pneg %p10157_p8  ;;  %p9857_p11 = scmp.ne.s32.totalorder %s12626_s3, %s9856_s21 }
  0x1b   : > { %p9863_p1 = scmp.lt.u32.totalorder %s9856_s21, %s12626_s3 }
  0x1c   : > { %p10167_p10 = pnand %p12632_p7, %p9757_p9 }
  0x1e   : > { %p10181_p12 = pneg %p10167_p10 }
  0x20   : > { %p9859_p13 = pnand %p10181_p12, %p9857_p11 }
  0x22   : > { %p9860_p0 = pneg %p9859_p13 }
  0x24   : > { %p9865_p2 = pnand %p9863_p1, %p9860_p0 }
  0x26   : > { %9868 = shalt.err (!%p9865_p2)
}
  0x27   : > { %s9869_s27 = scalar_lea.vmem %s238_s11, 16  ;;  %s9876_s28 = scalar_lea.vmem %s238_s11, 32 }
  0x28   : > { %p9870_p3 = scmp.ne.s32.totalorder %s238_s11, %s9869_s27  ;;  %p9877_p6 = scmp.lt.s32.totalorder %s238_s11, %s238_s11 }
  0x29   : > { %p9878_p9 = scmp.lt.s32.totalorder %s9876_s28, %s9869_s27 }
  0x2a   : > { %p9872_p4 = pnand %p9870_p3, %p10181_p12 }
  0x2b   : > { %p9879_p7 = por %p9878_p9, %p9877_p6 }
  0x2c   : > { %p9873_p5 = pneg %p9872_p4 }
  0x2e   : > { %p9880_p8 = pnand %p9879_p7, %p9873_p5 }
  0x30   : > { %9883 = shalt.err (!%p9880_p8)
}
  0x31   : > { %9763 = dma.hbm_to_vmem [thread:$0]  (!%p10167_p10), %s12626_s3, 16, %s238_s11, [#allocation9]  }
  0x32   : > { %s9884_s14 = scalar_lea.hbm %s12628_s5, 48 }
  0x33   : > { %p9885_p11 = scmp.ne.s32.totalorder %s12628_s5, %s9884_s14  ;;  %p9891_p7 = scmp.lt.u32.totalorder %s9884_s14, %s12628_s5 }
  0x35   : > { %p9887_p13 = pnand %p9885_p11, %p10181_p12 }
  0x37   : > { %p9888_p0 = pneg %p9887_p13 }
  0x39   : > { %p9893_p8 = pnand %p9891_p7, %p9888_p0 }
  0x3b   : > { %9896 = shalt.err (!%p9893_p8)
}
  0x3c   : > { %s9897_s11 = scalar_lea.vmem %s10163_s15, 48  ;;  %s9904_s22 = scalar_lea.vmem %s10163_s15, 64 }
  0x3d   : > { %p9898_p1 = scmp.ne.s32.totalorder %s10163_s15, %s9897_s11  ;;  %p9905_p4 = scmp.lt.s32.totalorder %s10163_s15, %s10163_s15 }
  0x3e   : > { %p9906_p5 = scmp.lt.s32.totalorder %s9904_s22, %s9897_s11 }
  0x3f   : > { %p9900_p2 = pnand %p9898_p1, %p10181_p12 }
  0x40   : > { %p9907_p6 = por %p9906_p5, %p9905_p4 }
  0x41   : > { %p9901_p3 = pneg %p9900_p2 }
  0x43   : > { %p9908_p9 = pnand %p9907_p6, %p9901_p3 }
  0x45   : > { %9911 = shalt.err (!%p9908_p9)
}
  0x46   : > { %s10086_s23 = smov 16   ;;  %s10087_s25 = smov 1  }
  0x47   : > { %9769 = dma.hbm_to_vmem [thread:$0]  (!%p10167_p10), %s12628_s5, 48, %s10163_s15, [#allocation12], %s10086_s23, %s10086_s23, %s10087_s25  }
  0x48   : > { %s9912_s30 = scalar_lea.hbm %s12625_s2, 2048 }
  0x49   : > { %p9913_p11 = scmp.ne.s32.totalorder %s12625_s2, %s9912_s30  ;;  %p9919_p7 = scmp.lt.u32.totalorder %s9912_s30, %s12625_s2 }
  0x4b   : > { %p9915_p13 = pnand %p9913_p11, %p10181_p12 }
  0x4d   : > { %p9916_p0 = pneg %p9915_p13 }
  0x4f   : > { %p9921_p8 = pnand %p9919_p7, %p9916_p0 }
  0x51   : > { %9924 = shalt.err (!%p9921_p8)
}
  0x52   : > { %s9925_s15 = scalar_lea.vmem %s10171_s18, 2048  ;;  %p9933_p4 = scmp.lt.s32.totalorder %s10171_s18, %s10171_s18 }
  0x53   : > { %p9926_p1 = scmp.ne.s32.totalorder %s10171_s18, %s9925_s15  ;;  %p9934_p5 = scmp.lt.s32.totalorder %s9925_s15, %s9925_s15 }
  0x55   : > { %p9928_p2 = pnand %p9926_p1, %p10181_p12  ;;  %p9935_p6 = por %p9934_p5, %p9933_p4 }
  0x57   : > { %p9929_p3 = pneg %p9928_p2 }
  0x59   : > { %p9936_p9 = pnand %p9935_p6, %p9929_p3 }
  0x5b   : > { %9939 = shalt.err (!%p9936_p9)
}
  0x5c   : > { %s10088_s19 = smov 128   ;;  %s10089_s20 = smov 8  }
  0x5d   : > { %9760 = dma.hbm_to_vmem [thread:$0]  (!%p10167_p10), %s12625_s2, 2048, %s10171_s18, [#allocation7], %s10088_s19, %s10088_s19, %s10089_s20  }
  0x5e   : > { %s10090_s22 = smov [#allocation10]   ;;  %s10091_s25 = smov [#allocation13]  }
  0x5f   : > { %s247_s23 = sshll.u32 %s10090_s22, 4  ;;  %s273_s26 = sshll.u32 %s10091_s25, 4  ;;  %s248_s23 = int_to_ptr.vmem [resolvable:$true] %s247_s23  ;;  %s10247_s26 = int_to_ptr.vmem [resolvable:$true] %s273_s26 }
  0x60   : > { %s9940_s29 = scalar_lea.hbm %s12627_s4, 61440 }
  0x61   : > { %p9941_p11 = scmp.ne.s32.totalorder %s12627_s4, %s9940_s29  ;;  %p9947_p7 = scmp.lt.u32.totalorder %s9940_s29, %s12627_s4 }
  0x63   : > { %p9943_p13 = pnand %p9941_p11, %p10181_p12 }
  0x65   : > { %p9944_p0 = pneg %p9943_p13 }
  0x67   : > { %p9949_p8 = pnand %p9947_p7, %p9944_p0 }
  0x69   : > { %9952 = shalt.err (!%p9949_p8)
}
  0x6a   : > { %s9953_s14 = scalar_lea.vmem %s248_s23, 61440  ;;  %p9961_p4 = scmp.lt.s32.totalorder %s248_s23, %s248_s23 }
  0x6b   : > { %p9954_p1 = scmp.ne.s32.totalorder %s248_s23, %s9953_s14  ;;  %p9962_p5 = scmp.lt.s32.totalorder %s9953_s14, %s9953_s14 }
  0x6d   : > { %p9956_p2 = pnand %p9954_p1, %p10181_p12  ;;  %p9963_p6 = por %p9962_p5, %p9961_p4 }
  0x6f   : > { %p9957_p3 = pneg %p9956_p2 }
  0x71   : > { %p9964_p9 = pnand %p9963_p6, %p9957_p3 }
  0x73   : > { %9967 = shalt.err (!%p9964_p9)
}
  0x74   : > { %9766 = dma.hbm_to_vmem [thread:$0]  (!%p10167_p10), %s12627_s4, 61440, %s248_s23, [#allocation9], %s10088_s19, %s10088_s19, %s10089_s20  }
  0x75   : > { %s9968_s22 = scalar_lea.hbm %s12629_s6, 2048 }
  0x76   : > { %p9969_p11 = scmp.ne.s32.totalorder %s12629_s6, %s9968_s22  ;;  %p9975_p7 = scmp.lt.u32.totalorder %s9968_s22, %s12629_s6 }
  0x78   : > { %p9971_p13 = pnand %p9969_p11, %p10181_p12 }
  0x7a   : > { %p9972_p0 = pneg %p9971_p13 }
  0x7c   : > { %p9977_p8 = pnand %p9975_p7, %p9972_p0 }
  0x7e   : > { %9980 = shalt.err (!%p9977_p8)
}
  0x7f   : > { %s9981_s23 = scalar_lea.vmem %s10247_s26, 2048  ;;  %p9989_p4 = scmp.lt.s32.totalorder %s10247_s26, %s10247_s26 }
  0x80   : > { %p9982_p1 = scmp.ne.s32.totalorder %s10247_s26, %s9981_s23  ;;  %p9990_p5 = scmp.lt.s32.totalorder %s9981_s23, %s9981_s23 }
  0x82   : > { %p9984_p2 = pnand %p9982_p1, %p10181_p12  ;;  %p9991_p6 = por %p9990_p5, %p9989_p4 }
  0x84   : > { %p9985_p3 = pneg %p9984_p2 }
  0x86   : > { %p9992_p9 = pnand %p9991_p6, %p9985_p3 }
  0x88   : > { %9995 = shalt.err (!%p9992_p9)
}
  0x89   : > { %9772 = dma.hbm_to_vmem [thread:$0]  (!%p10167_p10), %s12629_s6, 2048, %s10247_s26, [#allocation12], %s10088_s19, %s10088_s19, %s10089_s20  }
  0x8a   : > { %s10092_s0 = smov [#allocation14]   ;;  %s9996_s15 = scalar_lea.hbm %s12630_s7, 16 }
  0x8b   : > { %s287_s18 = sshll.u32 %s10092_s0, 4  ;;  %p9997_p11 = scmp.ne.s32.totalorder %s12630_s7, %s9996_s15  ;;  %s288_s18 = int_to_ptr.vmem [resolvable:$true] %s287_s18 }
  0x8c   : > { %p10003_p7 = scmp.lt.u32.totalorder %s9996_s15, %s12630_s7 }
  0x8d   : > { %p9999_p13 = pnand %p9997_p11, %p10181_p12 }
  0x8f   : > { %p10000_p0 = pneg %p9999_p13 }
  0x91   : > { %p10005_p8 = pnand %p10003_p7, %p10000_p0 }
  0x93   : > { %10008 = shalt.err (!%p10005_p8)
}
  0x94   : > { %s10009_s19 = scalar_lea.vmem %s288_s18, 16  ;;  %s10016_s20 = scalar_lea.vmem %s288_s18, 32 }
  0x95   : > { %p10010_p1 = scmp.ne.s32.totalorder %s288_s18, %s10009_s19  ;;  %p10017_p4 = scmp.lt.s32.totalorder %s288_s18, %s288_s18 }
  0x96   : > { %p10018_p5 = scmp.lt.s32.totalorder %s10016_s20, %s10009_s19 }
  0x97   : > { %p10012_p2 = pnand %p10010_p1, %p10181_p12 }
  0x98   : > { %p10019_p6 = por %p10018_p5, %p10017_p4 }
  0x99   : > { %p10013_p3 = pneg %p10012_p2 }
  0x9b   : > { %p10020_p9 = pnand %p10019_p6, %p10013_p3 }
  0x9d   : > { %10023 = shalt.err (!%p10020_p9)
}
  0x9e   : > { %9775 = dma.hbm_to_vmem [thread:$0]  (!%p10167_p10), %s12630_s7, 16, %s288_s18, [#allocation15]  }
  0x9f   : > { %p12689_p11 = scmp.ne.s32.totalorder %s12686_s13, 0 }
  0xa0   : > { %p12690_p13 = scmp.eq.s32.totalorder (!%p12689_p11), %s10152_s12, 0 }
  0xa1   : > { %308 = sbr.rel (%p12689_p11) target bundleno = 1967 (0x7af), region = 48 }
  0xa8   : > { %10047 = dma.done.wait (%p12690_p13), [#allocation7], 2048   ;;  %p12691_p12 = pmov %p12690_p13 }
  0xaa   : > { %10049 = vsyncadd (%p12691_p12), [#allocation7], 4294965248  ;;  %p12692_p0 = pmov %p12691_p12 }
  0xac   : > { %10051 = dma.done.wait (%p12692_p0), [#allocation9], 61456   ;;  %p12693_p7 = pmov %p12692_p0 }
  0xad   : > { %p12694_p8 = pmov %p12692_p0 }
  0xae   : > { %10053 = vsyncadd (%p12693_p7), [#allocation9], 4294905840 }
  0xaf   : > { %10055 = dma.done.wait (%p12694_p8), [#allocation12], 2096   ;;  %p12695_p10 = pmov %p12692_p0 }
  0xb0   : > { %p12696_p1 = pmov %p12692_p0 }
  0xb1   : > { %10057 = vsyncadd (%p12695_p10), [#allocation12], 4294965200 }
  0xb2   : > { %10059 = dma.done.wait (%p12696_p1), [#allocation15], 16   ;;  %p12697_p2 = pmov %p12692_p0 }
  0xb3   : > { %p360_p3 = scmp.lt.s32.totalorder %s10152_s12, 1  ;;  %v10093_v0 = vmov 0.0   ;;  %s10346_s9 = smov 0  }
  0xb4   : > { %10061 = vsyncadd (%p12697_p2), [#allocation15], 4294967280  ;;  %370 = vst [vmem:[#allocation2] sm:$0xff] %v10093_v0 }
  0xb5   : > { %371 = vst [vmem:[#allocation2 + $0x8] sm:$0xff] %v10093_v0  ;;  %372 = vst [vmem:[#allocation2 + $0x10] sm:$0xff] %v10093_v0  ;;  %s12829_s12 = smov (!%p360_p3, %s10152_s12), 1 }
  0xb6   : > { %373 = vst [vmem:[#allocation2 + $0x138] sm:$0xff] %v10093_v0  ;;  %374 = vst [vmem:[#allocation2 + $0x140] sm:$0xff] %v10093_v0  ;;  %s9732_s13 = smul.u32 384, %s12829_s12 }
  0xb7   : > { %375 = vst [vmem:[#allocation2 + $0x148] sm:$0xff] %v10093_v0  ;;  %376 = vst [vmem:[#allocation2 + $0x150] sm:$0xff] %v10093_v0 }
  0xb8   : > { %377 = vst [vmem:[#allocation2 + $0x158] sm:$0xff] %v10093_v0  ;;  %378 = vst [vmem:[#allocation2 + $0x160] sm:$0xff] %v10093_v0  ;;  %s10339_s28 = scalar_lea.vmem %s12624_s1, %s9732_s13  ;;  %s10344_s30 = scalar_lea.vmem %s12631_s8, %s9732_s13 }
  0xb9   : > { %379 = vst [vmem:[#allocation2 + $0x168] sm:$0xff] %v10093_v0  ;;  %380 = vst [vmem:[#allocation2 + $0x170] sm:$0xff] %v10093_v0 }
  0xba   : > { %381 = vst [vmem:[#allocation2 + $0x178] sm:$0xff] %v10093_v0  ;;  %382 = vst [vmem:[#allocation2 + $0x180] sm:$0xff] %v10093_v0 }
  0xbb   : > { %383 = vst [vmem:[#allocation2 + $0x188] sm:$0xff] %v10093_v0  ;;  %384 = vst [vmem:[#allocation2 + $0x190] sm:$0xff] %v10093_v0 }
  0xbc   : > { %385 = vst [vmem:[#allocation2 + $0x198] sm:$0xff] %v10093_v0  ;;  %386 = vst [vmem:[#allocation2 + $0x1a0] sm:$0xff] %v10093_v0 }
  0xbd   : > { %387 = vst [vmem:[#allocation2 + $0x1a8] sm:$0xff] %v10093_v0  ;;  %388 = vst [vmem:[#allocation3] sm:$0xff] %v10093_v0 }
  0xbe   : > { %389 = vst [vmem:[#allocation3 + $0x8] sm:$0xff] %v10093_v0  ;;  %390 = vst [vmem:[#allocation3 + $0x10] sm:$0xff] %v10093_v0 }
  0xbf   : > { %391 = vst [vmem:[#allocation3 + $0x138] sm:$0xff] %v10093_v0  ;;  %392 = vst [vmem:[#allocation3 + $0x140] sm:$0xff] %v10093_v0 }
  0xc0   : > { %393 = vst [vmem:[#allocation3 + $0x148] sm:$0xff] %v10093_v0  ;;  %394 = vst [vmem:[#allocation3 + $0x150] sm:$0xff] %v10093_v0 }
  0xc1   : > { %395 = vst [vmem:[#allocation3 + $0x158] sm:$0xff] %v10093_v0  ;;  %396 = vst [vmem:[#allocation3 + $0x160] sm:$0xff] %v10093_v0 }
  0xc2   : > { %397 = vst [vmem:[#allocation3 + $0x168] sm:$0xff] %v10093_v0  ;;  %398 = vst [vmem:[#allocation3 + $0x170] sm:$0xff] %v10093_v0 }
  0xc3   : > { %399 = vst [vmem:[#allocation3 + $0x178] sm:$0xff] %v10093_v0  ;;  %400 = vst [vmem:[#allocation3 + $0x180] sm:$0xff] %v10093_v0 }
  0xc4   : > { %401 = vst [vmem:[#allocation3 + $0x188] sm:$0xff] %v10093_v0  ;;  %402 = vst [vmem:[#allocation3 + $0x190] sm:$0xff] %v10093_v0 }
  0xc5   : > { %403 = vst [vmem:[#allocation3 + $0x198] sm:$0xff] %v10093_v0  ;;  %404 = vst [vmem:[#allocation3 + $0x1a0] sm:$0xff] %v10093_v0 }
  0xc6   : > { %405 = vst [vmem:[#allocation3 + $0x1a8] sm:$0xff] %v10093_v0 }
  0xc7 LB: >> { %v430_v1 = vld [vmem:[#allocation6] sm:$0xff]  ;;  %v431_v2 = vld [vmem:[#allocation6 + $0x8] sm:$0xff]  ;;  %v432_v3 = vld [vmem:[#allocation6 + $0x10] sm:$0xff]  ;;  %s10352_s12 = sshll.u32 %s10068_s9, 7  ;;  %s631_s18 = sld [smem:[#allocation5 + %s10068_s9]]  ;;  %v614_v41 = vlaneseq  ;;  %s10068_s9 = sphi %s10346_s9, %s411_s9  }
  0xc8   : >> { %v9140_v4 = vpack.c.bf16 %v431_v2, %v430_v1  ;;  %v433_v5 = vld [vmem:[#allocation6 + $0x18] sm:$0xff]  ;;  %v434_v7 = vld [vmem:[#allocation6 + $0x20] sm:$0xff]  ;;  %v435_v8 = vld [vmem:[#allocation6 + $0x28] sm:$0xff]  ;;  %s10356_s0 = scalar_lea.vmem %s10339_s28, %s10352_s12  ;;  %v10393_v49 = vstv %s10352_s12  ;;  %s10602_s14 = scalar_lea.vmem [#allocation2], %s10352_s12 }
  0xc9   : >> { %v9144_v6 = vpack.c.bf16 %v433_v5, %v432_v3  ;;  %v9148_v9 = vpack.c.bf16 %v435_v8, %v434_v7  ;;  %v414_v10 = vld [vmem:[%s10356_s0] sm:$0xff]  ;;  %v436_v12 = vld [vmem:[#allocation6 + $0x30] sm:$0xff]  ;;  %v437_v13 = vld [vmem:[#allocation6 + $0x38] sm:$0xff]  ;;  %v10375_v42 = vshrl.u32 %v614_v41, 7  ;;  %s411_s9 = sadd.s32 1, %s10068_s9  }
  0xca   : >> { %9141 = vmatprep.subr.bf16.mxu0 %v9140_v4  ;;  %9684 = vmatprep.subr.bf16.mxu1 %v9140_v4  ;;  %v422_v11 = vld [vmem:[%s10356_s0 + $0x40] sm:$0xff]  ;;  %v9152_v14 = vpack.c.bf16 %v437_v13, %v436_v12  ;;  %v439_v16 = vld [vmem:[#allocation6 + $0x48] sm:$0xff]  ;;  %v440_v18 = vld [vmem:[#allocation6 + $0x50] sm:$0xff]  ;;  %p408_p4 = scmp.ge.s32.totalorder %s411_s9, 3  }
  0xcb   : >> { %9143 = vmatpush3.bf16.msra.mxu0 %v9140_v4  ;;  %9692 = vmatpush3.bf16.msra.mxu1 %v9140_v4  ;;  %v438_v15 = vld [vmem:[#allocation6 + $0x40] sm:$0xff]  ;;  %v441_v19 = vld [vmem:[#allocation6 + $0x58] sm:$0xff]  ;;  %v443_v22 = vld [vmem:[#allocation6 + $0x68] sm:$0xff]  ;;  %12698 = vst [vmem:[#allocation21_spill] sm:$0xff] %v10375_v42  ;;  %v10380_v44 = vadd.s32 8, %v10375_v42  ;;  %v10383_v45 = vadd.s32 72, %v10375_v42 }
  0xcc   : >> { %9145 = vmatprep.subr.bf16.mxu0 %v9144_v6  ;;  %9685 = vmatprep.subr.bf16.mxu1 %v9144_v6  ;;  %v9156_v17 = vpack.c.bf16 %v439_v16, %v438_v15  ;;  %v9160_v20 = vpack.c.bf16 %v441_v19, %v440_v18  ;;  %v442_v21 = vld [vmem:[#allocation6 + $0x60] sm:$0xff]  ;;  %v444_v24 = vld [vmem:[#allocation6 + $0x70] sm:$0xff]  ;;  %v445_v25 = vld [vmem:[#allocation6 + $0x78] sm:$0xff]  ;;  %v10386_v46 = vadd.s32 64, %v10375_v42  ;;  %v10400_v54 = vadd.s32 24, %v10375_v42  ;;  %s10661_s17 = smov (%p408_p4), 0  }
  0xcd   : >> { %9060 = vmatprep.mubr.f32.mxu0 %v414_v10  ;;  %9072 = vmatprep.mubr.f32.mxu1 %v422_v11  ;;  %v9164_v23 = vpack.c.bf16 %v443_v22, %v442_v21  ;;  %v9168_v26 = vpack.c.bf16 %v445_v25, %v444_v24  ;;  %v415_v27 = vld [vmem:[%s10356_s0 + $0x8] sm:$0xff]  ;;  %v416_v29 = vld [vmem:[%s10356_s0 + $0x10] sm:$0xff]  ;;  %v417_v31 = vld [vmem:[%s10356_s0 + $0x18] sm:$0xff]  ;;  %v10377_v43 = vstv %s631_s18  ;;  %12699 = vst [vmem:[#allocation22_spill] sm:$0xff] %v10380_v44  ;;  %v10403_v55 = vadd.s32 88, %v10375_v42 }
  0xce   : >> { %v423_v28 = vld [vmem:[%s10356_s0 + $0x48] sm:$0xff]  ;;  %v424_v30 = vld [vmem:[%s10356_s0 + $0x50] sm:$0xff]  ;;  %v425_v32 = vld [vmem:[%s10356_s0 + $0x58] sm:$0xff]  ;;  %12700 = vst [vmem:[#allocation23_spill] sm:$0xff] %v10383_v45  ;;  %v634_v47 = vadd.s32 %v10377_v43, %v10380_v44  ;;  %v642_v48 = vadd.s32 %v10377_v43, %v10383_v45  ;;  %v633_v50 = vadd.s32 %v10377_v43, %v10375_v42  ;;  %v641_v51 = vadd.s32 %v10377_v43, %v10386_v46 }
  0xcf   : >> { %9147 = vmatpush3.bf16.msra.mxu0 %v9144_v6  ;;  %9693 = vmatpush3.bf16.msra.mxu1 %v9144_v6  ;;  %v418_v33 = vld [vmem:[%s10356_s0 + $0x20] sm:$0xff]  ;;  %v419_v35 = vld [vmem:[%s10356_s0 + $0x28] sm:$0xff]  ;;  %v420_v37 = vld [vmem:[%s10356_s0 + $0x30] sm:$0xff]  ;;  %12701 = vst [vmem:[#allocation24_spill] sm:$0xff] %v10386_v46 }
  0xd0   : >> { %9149 = vmatprep.subr.bf16.mxu0 %v9148_v9  ;;  %9686 = vmatprep.subr.bf16.mxu1 %v9148_v9  ;;  %v426_v34 = vld [vmem:[%s10356_s0 + $0x60] sm:$0xff]  ;;  %v427_v36 = vld [vmem:[%s10356_s0 + $0x68] sm:$0xff]  ;;  %v428_v38 = vld [vmem:[%s10356_s0 + $0x70] sm:$0xff]  ;;  %v6670_v52 = vadd.s32 4294967278, %v634_v47  ;;  %v6678_v53 = vadd.s32 4294967278, %v642_v48  ;;  %12702 = vst [vmem:[#allocation25_spill] sm:$0xff] %v10400_v54 }
  0xd1   : >> { %v421_v39 = vld [vmem:[%s10356_s0 + $0x38] sm:$0xff]  ;;  %12703 = vst [vmem:[#allocation26_spill] sm:$0xff] %v10403_v55  ;;  %vm650_vm0 = vcmp.ge.s32.totalorder %v634_v47, 18  ;;  %vm658_vm1 = vcmp.ge.s32.totalorder %v642_v48, 18  ;;  %v6669_v56 = vadd.s32 4294967278, %v633_v50  ;;  %v6677_v57 = vadd.s32 4294967278, %v641_v51 }
  0xd2   : >> { %v429_v40 = vld [vmem:[%s10356_s0 + $0x78] sm:$0xff]  ;;  %v682_v58 = vsel %vm650_vm0, %v6670_v52, %v634_v47  ;;  %v690_v59 = vsel %vm658_vm1, %v6678_v53, %v642_v48  ;;  %vm649_vm2 = vcmp.ge.s32.totalorder %v633_v50, 18  ;;  %vm657_vm3 = vcmp.ge.s32.totalorder %v641_v51, 18 }
  0xd3   : >> { %9151 = vmatpush3.bf16.msra.mxu0 %v9148_v9  ;;  %9694 = vmatpush3.bf16.msra.mxu1 %v9148_v9  ;;  %v6686_v60 = vadd.s32 4294967278, %v682_v58  ;;  %v6694_v61 = vadd.s32 4294967278, %v690_v59  ;;  %v681_v62 = vsel %vm649_vm2, %v6669_v56, %v633_v50  ;;  %v689_v63 = vsel %vm657_vm3, %v6677_v57, %v641_v51 }
  0xd4   : >> { %9153 = vmatprep.subr.bf16.mxu0 %v9152_v14  ;;  %9687 = vmatprep.subr.bf16.mxu1 %v9152_v14  ;;  %vm698_vm4 = vcmp.ge.s32.totalorder %v682_v58, 18  ;;  %vm706_vm5 = vcmp.ge.s32.totalorder %v690_v59, 18  ;;  %v6685_v0 = vadd.s32 4294967278, %v681_v62  ;;  %v6693_v1 = vadd.s32 4294967278, %v689_v63 }
  0xd5   : >> { %v730_v2 = vsel %vm698_vm4, %v6686_v60, %v682_v58  ;;  %v738_v3 = vsel %vm706_vm5, %v6694_v61, %v690_v59  ;;  %vm697_vm6 = vcmp.ge.s32.totalorder %v681_v62, 18  ;;  %vm705_vm7 = vcmp.ge.s32.totalorder %v689_v63, 18 }
  0xd6   : >> { %v6702_v4 = vadd.s32 4294967278, %v730_v2  ;;  %v6710_v5 = vadd.s32 4294967278, %v738_v3  ;;  %v729_v6 = vsel %vm697_vm6, %v6685_v0, %v681_v62  ;;  %v737_v7 = vsel %vm705_vm7, %v6693_v1, %v689_v63 }
  0xd7   : >> { %9155 = vmatpush3.bf16.msra.mxu0 %v9152_v14  ;;  %9695 = vmatpush3.bf16.msra.mxu1 %v9152_v14  ;;  %vm746_vm8 = vcmp.ge.s32.totalorder %v730_v2, 18  ;;  %vm754_vm9 = vcmp.ge.s32.totalorder %v738_v3, 18  ;;  %v6701_v8 = vadd.s32 4294967278, %v729_v6  ;;  %v6709_v9 = vadd.s32 4294967278, %v737_v7 }
  0xd8   : >> { %9157 = vmatprep.subr.bf16.mxu0 %v9156_v17  ;;  %9688 = vmatprep.subr.bf16.mxu1 %v9156_v17  ;;  %v778_v10 = vsel %vm746_vm8, %v6702_v4, %v730_v2  ;;  %v786_v11 = vsel %vm754_vm9, %v6710_v5, %v738_v3  ;;  %vm745_vm10 = vcmp.ge.s32.totalorder %v729_v6, 18  ;;  %vm753_vm11 = vcmp.ge.s32.totalorder %v737_v7, 18 }
  0xd9   : >> { %v6718_v12 = vadd.s32 4294967278, %v778_v10  ;;  %v6726_v13 = vadd.s32 4294967278, %v786_v11  ;;  %v777_v14 = vsel %vm745_vm10, %v6701_v8, %v729_v6  ;;  %v785_v15 = vsel %vm753_vm11, %v6709_v9, %v737_v7 }
  0xda   : >> { %vm794_vm12 = vcmp.ge.s32.totalorder %v778_v10, 18  ;;  %vm802_vm13 = vcmp.ge.s32.totalorder %v786_v11, 18  ;;  %v6717_v16 = vadd.s32 4294967278, %v777_v14  ;;  %vm793_vm14 = vcmp.ge.s32.totalorder %v777_v14, 18 }
  0xdb   : >> { %9159 = vmatpush3.bf16.msra.mxu0 %v9156_v17  ;;  %9696 = vmatpush3.bf16.msra.mxu1 %v9156_v17  ;;  %v6725_v17 = vadd.s32 4294967278, %v785_v15  ;;  %v826_v18 = vsel %vm794_vm12, %v6718_v12, %v778_v10  ;;  %v834_v19 = vsel %vm802_vm13, %v6726_v13, %v786_v11  ;;  %vm801_vm15 = vcmp.ge.s32.totalorder %v785_v15, 18 }
  0xdc   : >> { %9161 = vmatprep.subr.bf16.mxu0 %v9160_v20  ;;  %9689 = vmatprep.subr.bf16.mxu1 %v9160_v20  ;;  %v6742_v21 = vadd.s32 4294967278, %v834_v19  ;;  %v825_v22 = vsel %vm793_vm14, %v6717_v16, %v777_v14  ;;  %vm842_vm0 = vcmp.ge.s32.totalorder %v826_v18, 18  ;;  %vm850_vm1 = vcmp.ge.s32.totalorder %v834_v19, 18 }
  0xdd   : >> { %v6733_v24 = vadd.s32 4294967278, %v825_v22  ;;  %vm841_vm2 = vcmp.ge.s32.totalorder %v825_v22, 18  ;;  %v1035_v56 = vadd.s32 %v10393_v49, %v10380_v44  ;;  %v1043_v57 = vadd.s32 %v10393_v49, %v10383_v45 }
  0xde   : >> { %v1034_v63 = vadd.s32 %v10393_v49, %v10375_v42  ;;  %v1042_v2 = vadd.s32 %v10393_v49, %v10386_v46  ;;  %v636_v3 = vadd.s32 %v10377_v43, %v10400_v54  ;;  %v644_v6 = vadd.s32 %v10377_v43, %v10403_v55 }
  0xdf   : >> { %9163 = vmatpush3.bf16.msra.mxu0 %v9160_v20  ;;  %9697 = vmatpush3.bf16.msra.mxu1 %v9160_v20  ;;  %v6734_v20 = vadd.s32 4294967278, %v826_v18  ;;  %v10434_v11 = vadd.s32 16, %v10375_v42  ;;  %v10437_v12 = vadd.s32 80, %v10375_v42 }
  0xe0   : >> { %9165 = vmatprep.subr.bf16.mxu0 %v9164_v23  ;;  %9690 = vmatprep.subr.bf16.mxu1 %v9164_v23  ;;  %v6672_v7 = vadd.s32 4294967278, %v636_v3  ;;  %v6680_v9 = vadd.s32 4294967278, %v644_v6 }
  0xe1   : >> { %12712 = vst [vmem:[#allocation27_spill] sm:$0xff] %v10434_v11  ;;  %12713 = vst [vmem:[#allocation28_spill] sm:$0xff] %v10437_v12 }
  0xe3   : >> { %9167 = vmatpush3.bf16.msra.mxu0 %v9164_v23  ;;  %9698 = vmatpush3.bf16.msra.mxu1 %v9164_v23  ;;  %v833_v23 = vsel %vm801_vm15, %v6725_v17, %v785_v15  ;;  %v10440_v15 = vadd.s32 40, %v10375_v42  ;;  %v635_v17 = vadd.s32 %v10377_v43, %v10434_v11 }
  0xe4   : >> { %9169 = vmatprep.subr.bf16.mxu0 %v9168_v26  ;;  %9691 = vmatprep.subr.bf16.mxu1 %v9168_v26  ;;  %v6741_v25 = vadd.s32 4294967278, %v833_v23  ;;  %vm849_vm3 = vcmp.ge.s32.totalorder %v833_v23, 18 }
  0xe5   : >> { %12714 = vst [vmem:[#allocation29_spill] sm:$0xff] %v10440_v15 }
  0xe7   : >> { %9171 = vmatpush3.bf16.msra.mxu0 %v9168_v26  ;;  %9699 = vmatpush3.bf16.msra.mxu1 %v9168_v26  ;;  %v874_v26 = vsel %vm842_vm0, %v6734_v20, %v826_v18  ;;  %vm1067_vm0 = vcmp.lt.s32.totalorder %v1035_v56, 288  ;;  %v10450_v20 = vadd.s32 %v10393_v49, %v10403_v55 }
  0xe8   : >> { %vm890_vm4 = vcmp.ge.s32.totalorder %v874_v26, 18 }
  0xea   : >> { %9061 = vmatmul.mubr.f32.vlgmr.msra.gmra.mrb[0].mxu0 %v415_v27  ;;  %9073 = vmatmul.mubr.f32.vlgmr.msra.gmra.mrb[0].mxu1 %v423_v28  ;;  %v882_v27 = vsel %vm850_vm1, %v6742_v21, %v834_v19  ;;  %v6750_v28 = vadd.s32 4294967278, %v874_v26  ;;  %v10446_v19 = vadd.s32 %v10393_v49, %v10400_v54  ;;  %v643_v21 = vadd.s32 %v10377_v43, %v10437_v12 }
  0xeb   : >> { %9063 = vmatprep.mubr.f32.mxu0 %v416_v29  ;;  %9075 = vmatprep.mubr.f32.mxu1 %v424_v30  ;;  %v6758_v29 = vadd.s32 4294967278, %v882_v27  ;;  %v873_v30 = vsel %vm841_vm2, %v6733_v24, %v825_v22  ;;  %vm898_vm5 = vcmp.ge.s32.totalorder %v882_v27, 18  ;;  %vm1075_vm2 = vcmp.lt.s32.totalorder %v1043_v57, 288 }
  0xec   : >> { %vm889_vm6 = vcmp.ge.s32.totalorder %v873_v30, 18 }
  0xee   : >> { %9064 = vmatmul.mubr.f32.gmra.mrb[2].mxu0 %v417_v31  ;;  %9076 = vmatmul.mubr.f32.gmra.mrb[2].mxu1 %v425_v32  ;;  %v881_v31 = vsel %vm849_vm3, %v6741_v25, %v833_v23  ;;  %v6749_v32 = vadd.s32 4294967278, %v873_v30  ;;  %v6671_v25 = vadd.s32 4294967278, %v635_v17 }
  0xef   : >> { %9066 = vmatprep.mubr.f32.mxu0 %v418_v33  ;;  %9078 = vmatprep.mubr.f32.mxu1 %v426_v34  ;;  %v6757_v33 = vadd.s32 4294967278, %v881_v31  ;;  %v922_v34 = vsel %vm890_vm4, %v6750_v28, %v874_v26  ;;  %vm897_vm7 = vcmp.ge.s32.totalorder %v881_v31, 18  ;;  %v638_v26 = vadd.s32 %v10377_v43, %v10440_v15 }
  0xf0   : >> { %vm938_vm8 = vcmp.ge.s32.totalorder %v922_v34, 18  ;;  %v10458_v28 = vadd.s32 %v10393_v49, %v10434_v11 }
  0xf2   : >> { %9067 = vmatmul.mubr.f32.gmra.mrb[4].mxu0 %v419_v35  ;;  %9079 = vmatmul.mubr.f32.gmra.mrb[4].mxu1 %v427_v36  ;;  %v930_v35 = vsel %vm898_vm5, %v6758_v29, %v882_v27  ;;  %v6766_v36 = vadd.s32 4294967278, %v922_v34  ;;  %v6679_v29 = vadd.s32 4294967278, %v643_v21 }
  0xf3   : >> { %9069 = vmatprep.mubr.f32.mxu0 %v420_v37  ;;  %9081 = vmatprep.mubr.f32.mxu1 %v428_v38  ;;  %v6774_v37 = vadd.s32 4294967278, %v930_v35  ;;  %v921_v38 = vsel %vm889_vm6, %v6749_v32, %v873_v30  ;;  %vm946_vm9 = vcmp.ge.s32.totalorder %v930_v35, 18 }
  0xf4   : >> { %v970_v47 = vsel %vm938_vm8, %v6766_v36, %v922_v34  ;;  %vm937_vm10 = vcmp.ge.s32.totalorder %v921_v38, 18 }
  0xf5   : >> { %v978_v48 = vsel %vm946_vm9, %v6774_v37, %v930_v35  ;;  %v6782_v50 = vadd.s32 4294967278, %v970_v47  ;;  %vm986_vm12 = vcmp.ge.s32.totalorder %v970_v47, 18  ;;  %vm1074_vm9 = vcmp.lt.s32.totalorder %v1042_v2, 288 }
  0xf6   : >> { %9070 = vmatmul.mubr.f32.gmra.mrb[6].mxu0 %v421_v39  ;;  %9082 = vmatmul.mubr.f32.gmra.mrb[6].mxu1 %v429_v40  ;;  %v929_v39 = vsel %vm897_vm7, %v6757_v33, %v881_v31  ;;  %v6765_v40 = vadd.s32 4294967278, %v921_v38  ;;  %v6790_v51 = vadd.s32 4294967278, %v978_v48  ;;  %vm994_vm13 = vcmp.ge.s32.totalorder %v978_v48, 18 }
  0xf7   : >> { %v6773_v41 = vadd.s32 4294967278, %v929_v39  ;;  %vm945_vm11 = vcmp.ge.s32.totalorder %v929_v39, 18  ;;  %v1018_v58 = vsel %vm986_vm12, %v6782_v50, %v970_v47  ;;  %vm1066_vm7 = vcmp.lt.s32.totalorder %v1034_v63, 288 }
  0xf8   : >> { %v969_v52 = vsel %vm937_vm10, %v6765_v40, %v921_v38  ;;  %v1026_v59 = vsel %vm994_vm13, %v6790_v51, %v978_v48  ;;  %vm1051_vm15 = vcmp.lt.s32.totalorder %v1018_v58, 16  ;;  %vm660_vm13 = vcmp.ge.s32.totalorder %v644_v6, 18 }
  0xf9   : >> { %v977_v53 = vsel %vm945_vm11, %v6773_v41, %v929_v39  ;;  %vm985_vm14 = vcmp.ge.s32.totalorder %v969_v52, 18  ;;  %v6781_v60 = vadd.s32 4294967278, %v969_v52  ;;  %vm1059_vm1 = vcmp.lt.s32.totalorder %v1026_v59, 16  ;;  %vm10409_vm3 = vmand %vm1051_vm15, %vm1067_vm0 }
  0xfa   : >> { %vm993_vm4 = vcmp.ge.s32.totalorder %v977_v53, 18  ;;  %vm10415_vm5 = vmand %vm1059_vm1, %vm1075_vm2  ;;  %v6789_v1 = vadd.s32 4294967278, %v977_v53  ;;  %vm652_vm11 = vcmp.ge.s32.totalorder %v636_v3, 18  ;;  %v692_v14 = vsel %vm660_vm13, %v6680_v9, %v644_v6 }
  0xfb   : >> { %v1017_v62 = vsel %vm985_vm14, %v6781_v60, %v969_v52  ;;  %v684_v10 = vsel %vm652_vm11, %v6672_v7, %v636_v3  ;;  %vm708_vm15 = vcmp.ge.s32.totalorder %v692_v14, 18  ;;  %v6696_v16 = vadd.s32 4294967278, %v692_v14 }
  0xfc   : >> { %vm1050_vm6 = vcmp.lt.s32.totalorder %v1017_v62, 16  ;;  %v1025_v5 = vsel %vm993_vm4, %v6789_v1, %v977_v53  ;;  %vm700_vm14 = vcmp.ge.s32.totalorder %v684_v10, 18  ;;  %v6688_v13 = vadd.s32 4294967278, %v684_v10 }
  0xfd   : >> { %vm10423_vm8 = vmand %vm1050_vm6, %vm1066_vm7  ;;  %vm1058_vm10 = vcmp.lt.s32.totalorder %v1025_v5, 16  ;;  %v740_v23 = vsel %vm708_vm15, %v6696_v16, %v692_v14  ;;  %vm651_vm1 = vcmp.ge.s32.totalorder %v635_v17, 18  ;;  %vm659_vm4 = vcmp.ge.s32.totalorder %v643_v21, 18 }
  0xfe   : >> { %vm10429_vm12 = vmand %vm1058_vm10, %vm1074_vm9  ;;  %v732_v18 = vsel %vm700_vm14, %v6688_v13, %v684_v10  ;;  %vm756_vm2 = vcmp.ge.s32.totalorder %v740_v23, 18  ;;  %v6712_v24 = vadd.s32 4294967278, %v740_v23  ;;  %v683_v32 = vsel %vm651_vm1, %v6671_v25, %v635_v17 }
  0xff   : >> { %vm748_vm0 = vcmp.ge.s32.totalorder %v732_v18, 18  ;;  %v6704_v22 = vadd.s32 4294967278, %v732_v18  ;;  %vm699_vm9 = vcmp.ge.s32.totalorder %v683_v32, 18  ;;  %v6687_v34 = vadd.s32 4294967278, %v683_v32 }
 0x100   : >> { %v788_v31 = vsel %vm756_vm2, %v6712_v24, %v740_v23  ;;  %v691_v36 = vsel %vm659_vm4, %v6679_v29, %v643_v21  ;;  %vm654_vm10 = vcmp.ge.s32.totalorder %v638_v26, 18  ;;  %v6674_v37 = vadd.s32 4294967278, %v638_v26 }
 0x101   : >> { %v780_v27 = vsel %vm748_vm0, %v6704_v22, %v732_v18  ;;  %vm804_vm7 = vcmp.ge.s32.totalorder %v788_v31, 18  ;;  %v6728_v33 = vadd.s32 4294967278, %v788_v31  ;;  %v731_v40 = vsel %vm699_vm9, %v6687_v34, %v683_v32 }
 0x102   : >> { %vm796_vm6 = vcmp.ge.s32.totalorder %v780_v27, 18  ;;  %v6720_v30 = vadd.s32 4294967278, %v780_v27  ;;  %vm747_vm14 = vcmp.ge.s32.totalorder %v731_v40, 18  ;;  %v6703_v47 = vadd.s32 4294967278, %v731_v40 }
 0x103   : >> { %v836_v39 = vsel %vm804_vm7, %v6728_v33, %v788_v31  ;;  %vm1069_vm15 = vcmp.lt.s32.totalorder %v10446_v19, 288  ;;  %vm707_vm0 = vcmp.ge.s32.totalorder %v691_v36, 18  ;;  %v6695_v50 = vadd.s32 4294967278, %v691_v36 }
 0x104   : >> { %v828_v35 = vsel %vm796_vm6, %v6720_v30, %v780_v27  ;;  %vm852_vm13 = vcmp.ge.s32.totalorder %v836_v39, 18  ;;  %v6744_v41 = vadd.s32 4294967278, %v836_v39  ;;  %v686_v51 = vsel %vm654_vm10, %v6674_v37, %v638_v26 }
 0x105   : >> { %vm844_vm11 = vcmp.ge.s32.totalorder %v828_v35, 18  ;;  %v6736_v38 = vadd.s32 4294967278, %v828_v35  ;;  %v779_v56 = vsel %vm747_vm14, %v6703_v47, %v731_v40  ;;  %v739_v60 = vsel %vm707_vm0, %v6695_v50, %v691_v36 }
 0x106   : >> { %v884_v53 = vsel %vm852_vm13, %v6744_v41, %v836_v39  ;;  %vm795_vm6 = vcmp.ge.s32.totalorder %v779_v56, 18  ;;  %v6719_v58 = vadd.s32 4294967278, %v779_v56  ;;  %vm702_vm7 = vcmp.ge.s32.totalorder %v686_v51, 18 }
 0x107   : >> { %v876_v48 = vsel %vm844_vm11, %v6736_v38, %v828_v35  ;;  %vm900_vm4 = vcmp.ge.s32.totalorder %v884_v53, 18  ;;  %v6760_v57 = vadd.s32 4294967278, %v884_v53  ;;  %v6690_v62 = vadd.s32 4294967278, %v686_v51 }
 0x108   : >> { %vm892_vm1 = vcmp.ge.s32.totalorder %v876_v48, 18  ;;  %v6752_v52 = vadd.s32 4294967278, %v876_v48  ;;  %v827_v2 = vsel %vm795_vm6, %v6719_v58, %v779_v56  ;;  %vm755_vm13 = vcmp.ge.s32.totalorder %v739_v60, 18 }
 0x109   : >> { %v932_v1 = vsel %vm900_vm4, %v6760_v57, %v884_v53  ;;  %vm843_vm10 = vcmp.ge.s32.totalorder %v827_v2, 18  ;;  %v6735_v5 = vadd.s32 4294967278, %v827_v2  ;;  %v6711_v7 = vadd.s32 4294967278, %v739_v60 }
 0x10a   : >> { %v924_v59 = vsel %vm892_vm1, %v6752_v52, %v876_v48  ;;  %vm948_vm11 = vcmp.ge.s32.totalorder %v932_v1, 18  ;;  %v6776_v3 = vadd.s32 4294967278, %v932_v1  ;;  %v734_v9 = vsel %vm702_vm7, %v6690_v62, %v686_v51 }
 0x10b   : >> { %vm940_vm9 = vcmp.ge.s32.totalorder %v924_v59, 18  ;;  %v6768_v63 = vadd.s32 4294967278, %v924_v59  ;;  %v875_v14 = vsel %vm843_vm10, %v6735_v5, %v827_v2  ;;  %v787_v21 = vsel %vm755_vm13, %v6711_v7, %v739_v60 }
 0x10c   : >> { %v980_v13 = vsel %vm948_vm11, %v6776_v3, %v932_v1  ;;  %vm891_vm0 = vcmp.ge.s32.totalorder %v875_v14, 18  ;;  %v6751_v17 = vadd.s32 4294967278, %v875_v14  ;;  %vm750_vm4 = vcmp.ge.s32.totalorder %v734_v9, 18 }
 0x10d   : >> { %v972_v6 = vsel %vm940_vm9, %v6768_v63, %v924_v59  ;;  %vm996_vm1 = vcmp.ge.s32.totalorder %v980_v13, 18  ;;  %v6792_v16 = vadd.s32 4294967278, %v980_v13  ;;  %v6706_v22 = vadd.s32 4294967278, %v734_v9 }
 0x10e   : >> { %vm988_vm14 = vcmp.ge.s32.totalorder %v972_v6, 18  ;;  %v6784_v10 = vadd.s32 4294967278, %v972_v6  ;;  %v923_v24 = vsel %vm891_vm0, %v6751_v17, %v875_v14  ;;  %vm803_vm2 = vcmp.ge.s32.totalorder %v787_v21, 18 }
 0x10f   : >> { %v1028_v23 = vsel %vm996_vm1, %v6792_v16, %v980_v13  ;;  %v12715_v25 = vmov 0  ;;  %vm939_vm11 = vcmp.ge.s32.totalorder %v923_v24, 18  ;;  %v6767_v26 = vadd.s32 4294967278, %v923_v24 }
 0x110   : >> { %v1020_v18 = vsel %vm988_vm14, %v6784_v10, %v972_v6  ;;  %vm1061_vm7 = vcmp.lt.s32.totalorder %v1028_v23, 16  ;;  %v6727_v27 = vadd.s32 4294967278, %v787_v21  ;;  %vm12717_vm10 = vcmp.lt.s32.totalorder %v10450_v20, 288 }
 0x111   : >> { %vm1053_vm6 = vcmp.lt.s32.totalorder %v1020_v18, 16  ;;  %vm10470_vm14 = vmand %vm1061_vm7, %vm12717_vm10  ;;  %v12718_v29 = vmov 0  ;;  %v782_v30 = vsel %vm750_vm4, %v6706_v22, %v734_v9  ;;  %v10475_v31 = vadd.s32 104, %v10375_v42 }
 0x112   : >> { %vm10464_vm9 = vmand %vm1053_vm6, %vm1069_vm15  ;;  %v12719_v29 = vsel %vm10470_vm14, 4294967295, %v12718_v29  ;;  %v971_v32 = vsel %vm939_vm11, %v6767_v26, %v923_v24  ;;  %v835_v19 = vsel %vm803_vm2, %v6727_v27, %v787_v21  ;;  %vm798_vm15 = vcmp.ge.s32.totalorder %v782_v30, 18 }
 0x113   : >> { %v12716_v25 = vsel %vm10464_vm9, 4294967295, %v12715_v25  ;;  %vm987_vm13 = vcmp.ge.s32.totalorder %v971_v32, 18  ;;  %v6783_v33 = vadd.s32 4294967278, %v971_v32  ;;  %vm851_vm1 = vcmp.ge.s32.totalorder %v835_v19, 18 }
 0x114   : >> { %v6743_v34 = vadd.s32 4294967278, %v835_v19  ;;  %vm1068_vm0 = vcmp.lt.s32.totalorder %v10458_v28, 288  ;;  %v1044_v20 = vadd.s32 %v10393_v49, %v10437_v12  ;;  %v6722_v35 = vadd.s32 4294967278, %v782_v30 }
 0x115   : >> { %v646_v36 = vadd.s32 %v10377_v43, %v10475_v31  ;;  %v1019_v37 = vsel %vm987_vm13, %v6783_v33, %v971_v32  ;;  %v10483_v39 = vadd.s32 32, %v10375_v42  ;;  %v12721_v47 = vmov 0 }
 0x116   : >> { %v883_v38 = vsel %vm851_vm1, %v6743_v34, %v835_v19  ;;  %vm1052_vm2 = vcmp.lt.s32.totalorder %v1019_v37, 16  ;;  %v830_v41 = vsel %vm798_vm15, %v6722_v35, %v782_v30  ;;  %v10492_v52 = vadd.s32 96, %v10375_v42 }
 0x117   : >> { %12720 = vst [vmem:[#allocation30_spill] sm:$0xff] %v10483_v39  ;;  %vm899_vm4 = vcmp.ge.s32.totalorder %v883_v38, 18  ;;  %v6759_v40 = vadd.s32 4294967278, %v883_v38  ;;  %vm10485_vm6 = vmand %vm1052_vm2, %vm1068_vm0  ;;  %vm846_vm7 = vcmp.ge.s32.totalorder %v830_v41, 18  ;;  %v6738_v28 = vadd.s32 4294967278, %v830_v41 }
 0x118   : >> { %v12722_v47 = vsel %vm10485_vm6, 4294967295, %v12721_v47  ;;  %vm662_vm11 = vcmp.ge.s32.totalorder %v646_v36, 18  ;;  %v6682_v48 = vadd.s32 4294967278, %v646_v36  ;;  %v637_v51 = vadd.s32 %v10377_v43, %v10483_v39 }
 0x119   : >> { %v931_v50 = vsel %vm899_vm4, %v6759_v40, %v883_v38  ;;  %v878_v56 = vsel %vm846_vm7, %v6738_v28, %v830_v41  ;;  %v1039_v62 = vadd.s32 %v10393_v49, %v10440_v15  ;;  %v645_v10 = vadd.s32 %v10377_v43, %v10492_v52 }
 0x11a   : >> { %vm947_vm13 = vcmp.ge.s32.totalorder %v931_v50, 18  ;;  %v6775_v53 = vadd.s32 4294967278, %v931_v50  ;;  %v694_v57 = vsel %vm662_vm11, %v6682_v48, %v646_v36  ;;  %vm894_vm15 = vcmp.ge.s32.totalorder %v878_v56, 18 }
 0x11b   : >> { %v6754_v58 = vadd.s32 4294967278, %v878_v56  ;;  %vm710_vm1 = vcmp.ge.s32.totalorder %v694_v57, 18  ;;  %v6698_v59 = vadd.s32 4294967278, %v694_v57  ;;  %vm653_vm0 = vcmp.ge.s32.totalorder %v637_v51, 18 }
 0x11c   : >> { %v979_v60 = vsel %vm947_vm13, %v6775_v53, %v931_v50  ;;  %v6673_v63 = vadd.s32 4294967278, %v637_v51  ;;  %vm12723_vm13 = vcmp.lt.s32.totalorder %v1044_v20, 288  ;;  %v12724_v16 = vmov 0 }
 0x11d   : >> { %vm995_vm2 = vcmp.ge.s32.totalorder %v979_v60, 18  ;;  %v6791_v1 = vadd.s32 4294967278, %v979_v60  ;;  %v926_v2 = vsel %vm894_vm15, %v6754_v58, %v878_v56  ;;  %v742_v3 = vsel %vm710_vm1, %v6698_v59, %v694_v57 }
 0x11e   : >> { %vm942_vm4 = vcmp.ge.s32.totalorder %v926_v2, 18  ;;  %v6770_v5 = vadd.s32 4294967278, %v926_v2  ;;  %vm758_vm10 = vcmp.ge.s32.totalorder %v742_v3, 18  ;;  %v6714_v6 = vadd.s32 4294967278, %v742_v3 }
 0x11f   : >> { %v1027_v7 = vsel %vm995_vm2, %v6791_v1, %v979_v60  ;;  %v685_v9 = vsel %vm653_vm0, %v6673_v63, %v637_v51  ;;  %vm1071_vm14 = vcmp.lt.s32.totalorder %v1039_v62, 288  ;;  %vm661_vm2 = vcmp.ge.s32.totalorder %v645_v10, 18 }
 0x120   : >> { %vm1060_vm7 = vcmp.lt.s32.totalorder %v1027_v7, 16  ;;  %v974_v13 = vsel %vm942_vm4, %v6770_v5, %v926_v2  ;;  %v790_v14 = vsel %vm758_vm10, %v6714_v6, %v742_v3  ;;  %vm701_vm11 = vcmp.ge.s32.totalorder %v685_v9, 18 }
 0x121   : >> { %vm10499_vm6 = vmand %vm1060_vm7, %vm12723_vm13  ;;  %vm990_vm15 = vcmp.ge.s32.totalorder %v974_v13, 18  ;;  %v6786_v17 = vadd.s32 4294967278, %v974_v13  ;;  %vm806_vm1 = vcmp.ge.s32.totalorder %v790_v14, 18  ;;  %v6730_v18 = vadd.s32 4294967278, %v790_v14 }
 0x122   : >> { %v12725_v16 = vsel %vm10499_vm6, 4294967295, %v12724_v16  ;;  %v6689_v21 = vadd.s32 4294967278, %v685_v9  ;;  %v6681_v22 = vadd.s32 4294967278, %v645_v10  ;;  %v1047_v26 = vadd.s32 %v10393_v49, %v10475_v31 }
 0x123   : >> { %v1022_v23 = vsel %vm990_vm15, %v6786_v17, %v974_v13  ;;  %v838_v24 = vsel %vm806_vm1, %v6730_v18, %v790_v14  ;;  %v10506_v27 = vadd.s32 56, %v10375_v42  ;;  %v12727_v19 = vmov 0 }
 0x124   : >> { %vm1055_vm10 = vcmp.lt.s32.totalorder %v1022_v23, 16  ;;  %vm854_vm0 = vcmp.ge.s32.totalorder %v838_v24, 18  ;;  %v6746_v30 = vadd.s32 4294967278, %v838_v24  ;;  %v733_v32 = vsel %vm701_vm11, %v6689_v21, %v685_v9 }
 0x125   : >> { %12726 = vst [vmem:[#allocation31_spill] sm:$0xff] %v10506_v27  ;;  %vm10509_vm4 = vmand %vm1055_vm10, %vm1071_vm14  ;;  %vm749_vm7 = vcmp.ge.s32.totalorder %v733_v32, 18  ;;  %v6705_v33 = vadd.s32 4294967278, %v733_v32  ;;  %v693_v34 = vsel %vm661_vm2, %v6681_v22, %v645_v10  ;;  %v640_v38 = vadd.s32 %v10377_v43, %v10506_v27 }
 0x126   : >> { %v12728_v19 = vsel %vm10509_vm4, 4294967295, %v12727_v19  ;;  %v886_v20 = vsel %vm854_vm0, %v6746_v30, %v838_v24  ;;  %vm709_vm13 = vcmp.ge.s32.totalorder %v693_v34, 18  ;;  %v6697_v35 = vadd.s32 4294967278, %v693_v34 }
 0x127   : >> { %vm902_vm15 = vcmp.ge.s32.totalorder %v886_v20, 18  ;;  %v6762_v36 = vadd.s32 4294967278, %v886_v20  ;;  %v781_v37 = vsel %vm749_vm7, %v6705_v33, %v733_v32  ;;  %vm656_vm11 = vcmp.ge.s32.totalorder %v640_v38, 18 }
 0x128   : >> { %vm797_vm6 = vcmp.ge.s32.totalorder %v781_v37, 18  ;;  %v6721_v40 = vadd.s32 4294967278, %v781_v37  ;;  %v741_v41 = vsel %vm709_vm13, %v6697_v35, %v693_v34  ;;  %v6676_v53 = vadd.s32 4294967278, %v640_v38 }
 0x129   : >> { %v934_v28 = vsel %vm902_vm15, %v6762_v36, %v886_v20  ;;  %vm757_vm14 = vcmp.ge.s32.totalorder %v741_v41, 18  ;;  %v6713_v48 = vadd.s32 4294967278, %v741_v41  ;;  %v1038_v57 = vadd.s32 %v10393_v49, %v10483_v39 }
 0x12a   : >> { %vm950_vm10 = vcmp.ge.s32.totalorder %v934_v28, 18  ;;  %v6778_v50 = vadd.s32 4294967278, %v934_v28  ;;  %v829_v51 = vsel %vm797_vm6, %v6721_v40, %v781_v37  ;;  %v688_v62 = vsel %vm656_vm11, %v6676_v53, %v640_v38 }
 0x12b   : >> { %vm845_vm2 = vcmp.ge.s32.totalorder %v829_v51, 18  ;;  %v6737_v56 = vadd.s32 4294967278, %v829_v51  ;;  %v789_v58 = vsel %vm757_vm14, %v6713_v48, %v741_v41  ;;  %vm704_vm13 = vcmp.ge.s32.totalorder %v688_v62, 18 }
 0x12c   : >> { %v982_v59 = vsel %vm950_vm10, %v6778_v50, %v934_v28  ;;  %vm805_vm0 = vcmp.ge.s32.totalorder %v789_v58, 18  ;;  %v6729_v60 = vadd.s32 4294967278, %v789_v58  ;;  %v6692_v5 = vadd.s32 4294967278, %v688_v62 }
 0x12d   : >> { %vm998_vm7 = vcmp.ge.s32.totalorder %v982_v59, 18  ;;  %v6794_v63 = vadd.s32 4294967278, %v982_v59  ;;  %v877_v1 = vsel %vm845_vm2, %v6737_v56, %v829_v51  ;;  %v10518_v9 = vadd.s32 120, %v10375_v42 }
 0x12e   : >> { %vm893_vm15 = vcmp.ge.s32.totalorder %v877_v1, 18  ;;  %v6753_v2 = vadd.s32 4294967278, %v877_v1  ;;  %v837_v3 = vsel %vm805_vm0, %v6729_v60, %v789_v58  ;;  %v736_v13 = vsel %vm704_vm13, %v6692_v5, %v688_v62 }
 0x12f   : >> { %v1030_v6 = vsel %vm998_vm7, %v6794_v63, %v982_v59  ;;  %vm853_vm6 = vcmp.ge.s32.totalorder %v837_v3, 18  ;;  %v6745_v7 = vadd.s32 4294967278, %v837_v3  ;;  %v10521_v14 = vadd.s32 48, %v10375_v42 }
 0x130   : >> { %vm1063_vm1 = vcmp.lt.s32.totalorder %v1030_v6, 16  ;;  %v925_v10 = vsel %vm893_vm15, %v6753_v2, %v877_v1  ;;  %vm12730_vm14 = vcmp.lt.s32.totalorder %v1047_v26, 288  ;;  %v12731_v17 = vmov 0 }
 0x131   : >> { %12729 = vst [vmem:[#allocation32_spill] sm:$0xff] %v10521_v14  ;;  %vm10524_vm11 = vmand %vm1063_vm1, %vm12730_vm14  ;;  %vm941_vm10 = vcmp.ge.s32.totalorder %v925_v10, 18  ;;  %v6769_v18 = vadd.s32 4294967278, %v925_v10  ;;  %v885_v21 = vsel %vm853_vm6, %v6745_v7, %v837_v3  ;;  %vm752_vm2 = vcmp.ge.s32.totalorder %v736_v13, 18 }
 0x132   : >> { %v12732_v17 = vsel %vm10524_vm11, 4294967295, %v12731_v17  ;;  %vm1070_vm0 = vcmp.lt.s32.totalorder %v1038_v57, 288  ;;  %vm901_vm7 = vcmp.ge.s32.totalorder %v885_v21, 18  ;;  %v6761_v22 = vadd.s32 4294967278, %v885_v21 }
 0x133   : >> { %v6708_v23 = vadd.s32 4294967278, %v736_v13  ;;  %v973_v24 = vsel %vm941_vm10, %v6769_v18, %v925_v10  ;;  %v1046_v30 = vadd.s32 %v10393_v49, %v10492_v52  ;;  %v648_v32 = vadd.s32 %v10377_v43, %v10518_v9 }
 0x134   : >> { %v639_v26 = vadd.s32 %v10377_v43, %v10521_v14  ;;  %vm989_vm1 = vcmp.ge.s32.totalorder %v973_v24, 18  ;;  %v6785_v33 = vadd.s32 4294967278, %v973_v24  ;;  %v933_v34 = vsel %vm901_vm7, %v6761_v22, %v885_v21 }
 0x135   : >> { %v784_v20 = vsel %vm752_vm2, %v6708_v23, %v736_v13  ;;  %vm949_vm13 = vcmp.ge.s32.totalorder %v933_v34, 18  ;;  %v6777_v35 = vadd.s32 4294967278, %v933_v34  ;;  %vm664_vm6 = vcmp.ge.s32.totalorder %v648_v32, 18 }
 0x136   : >> { %vm800_vm15 = vcmp.ge.s32.totalorder %v784_v20, 18  ;;  %v6724_v36 = vadd.s32 4294967278, %v784_v20  ;;  %v1021_v37 = vsel %vm989_vm1, %v6785_v33, %v973_v24  ;;  %v6684_v38 = vadd.s32 4294967278, %v648_v32 }
 0x137   : >> { %vm1054_vm14 = vcmp.lt.s32.totalorder %v1021_v37, 16  ;;  %v981_v40 = vsel %vm949_vm13, %v6777_v35, %v933_v34  ;;  %vm655_vm10 = vcmp.ge.s32.totalorder %v639_v26, 18  ;;  %v12733_v28 = vmov 0 }
 0x138   : >> { %v832_v41 = vsel %vm800_vm15, %v6724_v36, %v784_v20  ;;  %vm10535_vm11 = vmand %vm1054_vm14, %vm1070_vm0  ;;  %vm997_vm4 = vcmp.ge.s32.totalorder %v981_v40, 18  ;;  %v6793_v48 = vadd.s32 4294967278, %v981_v40  ;;  %vm1078_vm2 = vcmp.lt.s32.totalorder %v1046_v30, 288 }
 0x139   : >> { %v12734_v28 = vsel %vm10535_vm11, 4294967295, %v12733_v28  ;;  %vm848_vm7 = vcmp.ge.s32.totalorder %v832_v41, 18  ;;  %v6740_v50 = vadd.s32 4294967278, %v832_v41  ;;  %v696_v51 = vsel %vm664_vm6, %v6684_v38, %v648_v32 }
 0x13a   : >> { %v6675_v53 = vadd.s32 4294967278, %v639_v26  ;;  %v1029_v56 = vsel %vm997_vm4, %v6793_v48, %v981_v40  ;;  %vm712_vm1 = vcmp.ge.s32.totalorder %v696_v51, 18  ;;  %v6700_v59 = vadd.s32 4294967278, %v696_v51 }
 0x13b   : >> { %v880_v58 = vsel %vm848_vm7, %v6740_v50, %v832_v41  ;;  %vm1062_vm9 = vcmp.lt.s32.totalorder %v1029_v56, 16  ;;  %v12735_v62 = vmov 0  ;;  %v1041_v3 = vadd.s32 %v10393_v49, %v10506_v27 }
 0x13c   : >> { %vm896_vm13 = vcmp.ge.s32.totalorder %v880_v58, 18  ;;  %v6756_v60 = vadd.s32 4294967278, %v880_v58  ;;  %v687_v57 = vsel %vm655_vm10, %v6675_v53, %v639_v26  ;;  %vm10540_vm0 = vmand %vm1062_vm9, %vm1078_vm2  ;;  %v744_v63 = vsel %vm712_vm1, %v6700_v59, %v696_v51 }
 0x13d   : >> { %v12736_v62 = vsel %vm10540_vm0, 4294967295, %v12735_v62  ;;  %vm703_vm15 = vcmp.ge.s32.totalorder %v687_v57, 18  ;;  %v6691_v1 = vadd.s32 4294967278, %v687_v57  ;;  %vm760_vm4 = vcmp.ge.s32.totalorder %v744_v63, 18 }
 0x13e   : >> { %v928_v2 = vsel %vm896_vm13, %v6756_v60, %v880_v58  ;;  %v6716_v5 = vadd.s32 4294967278, %v744_v63  ;;  %v10547_v10 = vadd.s32 112, %v10375_v42  ;;  %vm1073_vm7 = vcmp.lt.s32.totalorder %v1041_v3, 288 }
 0x13f   : >> { %vm944_vm6 = vcmp.ge.s32.totalorder %v928_v2, 18  ;;  %v6772_v6 = vadd.s32 4294967278, %v928_v2  ;;  %v735_v7 = vsel %vm703_vm15, %v6691_v1, %v687_v57  ;;  %v12737_v36 = vmov 0 }
 0x140   : >> { %v792_v13 = vsel %vm760_vm4, %v6716_v5, %v744_v63  ;;  %vm751_vm9 = vcmp.ge.s32.totalorder %v735_v7, 18  ;;  %v6707_v18 = vadd.s32 4294967278, %v735_v7  ;;  %v647_v23 = vadd.s32 %v10377_v43, %v10547_v10 }
 0x141   : >> { %v976_v21 = vsel %vm944_vm6, %v6772_v6, %v928_v2  ;;  %vm808_vm14 = vcmp.ge.s32.totalorder %v792_v13, 18  ;;  %v6732_v22 = vadd.s32 4294967278, %v792_v13  ;;  %v1049_v56 = vadd.s32 %v10393_v49, %v10518_v9 }
 0x142   : >> { %vm992_vm10 = vcmp.ge.s32.totalorder %v976_v21, 18  ;;  %v6788_v24 = vadd.s32 4294967278, %v976_v21  ;;  %v783_v30 = vsel %vm751_vm9, %v6707_v18, %v735_v7  ;;  %vm663_vm1 = vcmp.ge.s32.totalorder %v647_v23, 18 }
 0x143   : >> { %v840_v32 = vsel %vm808_vm14, %v6732_v22, %v792_v13  ;;  %vm799_vm2 = vcmp.ge.s32.totalorder %v783_v30, 18  ;;  %v6723_v26 = vadd.s32 4294967278, %v783_v30  ;;  %v6683_v20 = vadd.s32 4294967278, %v647_v23 }
 0x144   : >> { %v1024_v33 = vsel %vm992_vm10, %v6788_v24, %v976_v21  ;;  %vm856_vm13 = vcmp.ge.s32.totalorder %v840_v32, 18  ;;  %v6748_v34 = vadd.s32 4294967278, %v840_v32  ;;  %v1040_v1 = vadd.s32 %v10393_v49, %v10521_v14 }
 0x145   : >> { %vm1057_vm15 = vcmp.lt.s32.totalorder %v1024_v33, 16  ;;  %v831_v35 = vsel %vm799_vm2, %v6723_v26, %v783_v30  ;;  %v695_v38 = vsel %vm663_vm1, %v6683_v20, %v647_v23 }
 0x146   : >> { %vm10551_vm4 = vmand %vm1057_vm15, %vm1073_vm7  ;;  %v888_v37 = vsel %vm856_vm13, %v6748_v34, %v840_v32  ;;  %vm847_vm6 = vcmp.ge.s32.totalorder %v831_v35, 18  ;;  %v6739_v43 = vadd.s32 4294967278, %v831_v35  ;;  %vm711_vm9 = vcmp.ge.s32.totalorder %v695_v38, 18 }
 0x147   : >> { %v12738_v36 = vsel %vm10551_vm4, 4294967295, %v12737_v36  ;;  %vm904_vm0 = vcmp.ge.s32.totalorder %v888_v37, 18  ;;  %v6764_v40 = vadd.s32 4294967278, %v888_v37  ;;  %v6699_v48 = vadd.s32 4294967278, %v695_v38 }
 0x148   : >> { %v879_v41 = vsel %vm847_vm6, %v6739_v43, %v831_v35  ;;  %v1048_v34 = vadd.s32 %v10393_v49, %v10547_v10 }
 0x149   : >> { %v936_v50 = vsel %vm904_vm0, %v6764_v40, %v888_v37  ;;  %vm895_vm14 = vcmp.ge.s32.totalorder %v879_v41, 18  ;;  %v6755_v51 = vadd.s32 4294967278, %v879_v41  ;;  %v743_v58 = vsel %vm711_vm9, %v6699_v48, %v695_v38  ;;  %v10573_v38 = vld [vmem:[#allocation8] ss:$0 sm:$0xff] }
 0x14a   : >> { %vm952_vm10 = vcmp.ge.s32.totalorder %v936_v50, 18  ;;  %v6780_v53 = vadd.s32 4294967278, %v936_v50  ;;  %vm759_vm7 = vcmp.ge.s32.totalorder %v743_v58, 18  ;;  %v6715_v60 = vadd.s32 4294967278, %v743_v58 }
 0x14b   : >> { %v927_v59 = vsel %vm895_vm14, %v6755_v51, %v879_v41  ;;  %vm1081_vm0 = vcmp.lt.s32.totalorder %v1049_v56, 288  ;;  %vm1072_vm9 = vcmp.lt.s32.totalorder %v1040_v1, 288 }
 0x14c   : >> { %v984_v57 = vsel %vm952_vm10, %v6780_v53, %v936_v50  ;;  %vm943_vm2 = vcmp.ge.s32.totalorder %v927_v59, 18  ;;  %v6771_v63 = vadd.s32 4294967278, %v927_v59  ;;  %v791_v3 = vsel %vm759_vm7, %v6715_v60, %v743_v58 }
 0x14d   : >> { %vm1000_vm1 = vcmp.ge.s32.totalorder %v984_v57, 18  ;;  %v6796_v2 = vadd.s32 4294967278, %v984_v57  ;;  %vm807_vm13 = vcmp.ge.s32.totalorder %v791_v3, 18  ;;  %v6731_v6 = vadd.s32 4294967278, %v791_v3 }
 0x14e   : >> { %v975_v5 = vsel %vm943_vm2, %v6771_v63, %v927_v59  ;;  %v10094_v53 = vmov 0.0  }
 0x14f   : >> { %v1032_v7 = vsel %vm1000_vm1, %v6796_v2, %v984_v57  ;;  %vm991_vm15 = vcmp.ge.s32.totalorder %v975_v5, 18  ;;  %v6787_v13 = vadd.s32 4294967278, %v975_v5  ;;  %v839_v18 = vsel %vm807_vm13, %v6731_v6, %v791_v3 }
 0x150   : >> { %vm1065_vm6 = vcmp.lt.s32.totalorder %v1032_v7, 16  ;;  %vm855_vm10 = vcmp.ge.s32.totalorder %v839_v18, 18  ;;  %v6747_v23 = vadd.s32 4294967278, %v839_v18  ;;  %v6798_v56 = vsel %vm10409_vm3, 1.0, %v10094_v53 }
 0x151   : >> { %vm10559_vm14 = vmand %vm1065_vm6, %vm1081_vm0  ;;  %v1023_v22 = vsel %vm991_vm15, %v6787_v13, %v975_v5  ;;  %vm1080_vm0 = vcmp.lt.s32.totalorder %v1048_v34, 288  ;;  %v6806_v58 = vsel %vm10415_vm5, 1.0, %v10094_v53  ;;  %v6797_v1 = vsel %vm10423_vm8, 1.0, %v10094_v53 }
 0x152   : >> { %vm1056_vm4 = vcmp.lt.s32.totalorder %v1023_v22, 16  ;;  %v887_v30 = vsel %vm855_vm10, %v6747_v23, %v839_v18  ;;  %v6805_v2 = vsel %vm10429_vm12, 1.0, %v10094_v53  ;;  %vm12745_vm3 = vnez %v12716_v25 }
 0x153   : >> { %vm10563_vm11 = vmand %vm1056_vm4, %vm1072_vm9  ;;  %vm903_vm7 = vcmp.ge.s32.totalorder %v887_v30, 18  ;;  %v6763_v32 = vadd.s32 4294967278, %v887_v30  ;;  %v6800_v0 = vsel %vm12745_vm3, 1.0, %v10094_v53  ;;  %vm12746_vm5 = vnez %v12719_v29 }
 0x154   : >> { %v6808_v7 = vsel %vm12746_vm5, 1.0, %v10094_v53  ;;  %vm12747_vm8 = vnez %v12722_v47  ;;  %vm12748_vm12 = vnez %v12725_v16  ;;  %vm12749_vm4 = vnez %v12728_v19 }
 0x155   : >> { %v935_v26 = vsel %vm903_vm7, %v6763_v32, %v887_v30  ;;  %v6799_v34 = vsel %vm12747_vm8, 1.0, %v10094_v53  ;;  %vm12750_vm6 = vnez %v12732_v17  ;;  %vm12751_vm9 = vnez %v12734_v28 }
 0x156   : >> { %vm951_vm2 = vcmp.ge.s32.totalorder %v935_v26, 18  ;;  %v6779_v33 = vadd.s32 4294967278, %v935_v26  ;;  %v6810_v47 = vsel %vm12750_vm6, 1.0, %v10094_v53  ;;  %vm12752_vm10 = vnez %v12736_v62 }
 0x157   : >> { %vm12753_vm7 = vnez %v12738_v36  ;;  %v6812_v28 = vsel %vm10559_vm14, 1.0, %v10094_v53 }
 0x158   : >> { %v983_v20 = vsel %vm951_vm2, %v6779_v33, %v935_v26 }
 0x159   : >> { %vm999_vm1 = vcmp.ge.s32.totalorder %v983_v20, 18  ;;  %v6795_v35 = vadd.s32 4294967278, %v983_v20 }
 0x15b   : >> { %v1031_v37 = vsel %vm999_vm1, %v6795_v35, %v983_v20  ;;  %v6807_v20 = vsel %vm12748_vm12, 1.0, %v10094_v53 }
 0x15c   : >> { %vm1064_vm13 = vcmp.lt.s32.totalorder %v1031_v37, 16 }
 0x15d   : >> { %vm10569_vm15 = vmand %vm1064_vm13, %vm1080_vm0 }
 0x1bd   : >> { %v9062_v40 = vpop.f32.mrb[0].mxu0  ;;  %v9074_v41 = vpop.f32.mrb[0].mxu1 }
 0x1be   : >> { %v525_v48 = vadd.f32 %v9062_v40, %v10573_v38  ;;  %v565_v50 = vadd.f32 %v9074_v41, %v10573_v38  ;;  %v519_v51 = vpop.f32.mrb[1].mxu0  ;;  %v559_v49 = vpop.f32.mrb[1].mxu1  ;;  %v6802_v41 = vsel %vm12749_vm4, 1.0, %v10094_v53 }
 0x1bf   : >> { %v520_v59 = vadd.f32 %v10573_v38, %v519_v51  ;;  %v560_v60 = vadd.f32 %v10573_v38, %v559_v49 }
 0x1c0   : >> { %v599_v57 = vmax.f32 %v525_v48, 0.0  ;;  %v607_v63 = vmax.f32 %v565_v50, 0.0 }
 0x1c1   : >> { %v598_v61 = vmax.f32 %v520_v59, 0.0  ;;  %v606_v3 = vmax.f32 %v560_v60, 0.0  ;;  %v9065_v5 = vpop.f32.mrb[2].mxu0  ;;  %v9077_v6 = vpop.f32.mrb[2].mxu1 }
 0x1c2   : >> { %v1131_v13 = vmul.f32 %v6798_v56, %v599_v57  ;;  %v1139_v4 = vmul.f32 %v6806_v58, %v607_v63  ;;  %v535_v18 = vadd.f32 %v9065_v5, %v10573_v38  ;;  %v575_v8 = vadd.f32 %v9077_v6, %v10573_v38  ;;  %v529_v22 = vpop.f32.mrb[3].mxu0  ;;  %v569_v23 = vpop.f32.mrb[3].mxu1 }
 0x1c3   : >> { %v1130_v30 = vmul.f32 %v6797_v1, %v598_v61  ;;  %v1138_v32 = vmul.f32 %v6805_v2, %v606_v3  ;;  %v530_v26 = vadd.f32 %v10573_v38, %v529_v22  ;;  %v570_v25 = vadd.f32 %v10573_v38, %v569_v23 }
 0x1c4   : >> { %6815 = vst [vmem:[%s10602_s14 + $0x20] sm:$0xff] %v1131_v13  ;;  %6823 = vst [vmem:[%s10602_s14 + $0x60] sm:$0xff] %v1139_v4  ;;  %v601_v29 = vmax.f32 %v535_v18, 0.0  ;;  %v609_v33 = vmax.f32 %v575_v8, 0.0  ;;  %v6801_v1 = vsel %vm12751_vm9, 1.0, %v10094_v53  ;;  %v6809_v2 = vsel %vm12752_vm10, 1.0, %v10094_v53 }
 0x1c5   : >> { %6814 = vst [vmem:[%s10602_s14 + $0x18] sm:$0xff] %v1130_v30  ;;  %6822 = vst [vmem:[%s10602_s14 + $0x58] sm:$0xff] %v1138_v32  ;;  %v600_v35 = vmax.f32 %v530_v26, 0.0  ;;  %v608_v37 = vmax.f32 %v570_v25, 0.0  ;;  %v9068_v40 = vpop.f32.mrb[4].mxu0  ;;  %v9080_v48 = vpop.f32.mrb[4].mxu1 }
 0x1c6   : >> { %v1133_v50 = vmul.f32 %v6800_v0, %v601_v29  ;;  %v1141_v16 = vmul.f32 %v6808_v7, %v609_v33  ;;  %v545_v51 = vadd.f32 %v9068_v40, %v10573_v38  ;;  %v585_v49 = vadd.f32 %v9080_v48, %v10573_v38  ;;  %v539_v56 = vpop.f32.mrb[5].mxu0  ;;  %v579_v58 = vpop.f32.mrb[5].mxu1 }
 0x1c7   : >> { %v1132_v59 = vmul.f32 %v6799_v34, %v600_v35  ;;  %v1140_v60 = vmul.f32 %v6807_v20, %v608_v37  ;;  %v540_v19 = vadd.f32 %v10573_v38, %v539_v56  ;;  %v580_v57 = vadd.f32 %v10573_v38, %v579_v58 }
 0x1c8   : >> { %6817 = vst [vmem:[%s10602_s14 + $0x30] sm:$0xff] %v1133_v50  ;;  %6825 = vst [vmem:[%s10602_s14 + $0x70] sm:$0xff] %v1141_v16  ;;  %v603_v17 = vmax.f32 %v545_v51, 0.0  ;;  %v611_v63 = vmax.f32 %v585_v49, 0.0  ;;  %v6804_v0 = vsel %vm12753_vm7, 1.0, %v10094_v53  ;;  %v6803_v26 = vsel %vm10563_vm11, 1.0, %v10094_v53 }
 0x1c9   : >> { %6816 = vst [vmem:[%s10602_s14 + $0x28] sm:$0xff] %v1132_v59  ;;  %6824 = vst [vmem:[%s10602_s14 + $0x68] sm:$0xff] %v1140_v60  ;;  %v602_v61 = vmax.f32 %v540_v19, 0.0  ;;  %v610_v3 = vmax.f32 %v580_v57, 0.0  ;;  %v9071_v5 = vpop.f32.mrb[6].mxu0  ;;  %v9083_v6 = vpop.f32.mrb[6].mxu1 }
 0x1ca   : >> { %v1135_v7 = vmul.f32 %v6802_v41, %v603_v17  ;;  %v1143_v62 = vmul.f32 %v6810_v47, %v611_v63  ;;  %v555_v13 = vadd.f32 %v9071_v5, %v10573_v38  ;;  %v595_v4 = vadd.f32 %v9083_v6, %v10573_v38  ;;  %v549_v18 = vpop.f32.mrb[7].mxu0  ;;  %v589_v8 = vpop.f32.mrb[7].mxu1 }
 0x1cb   : >> { %v1134_v22 = vmul.f32 %v6801_v1, %v602_v61  ;;  %v1142_v23 = vmul.f32 %v6809_v2, %v610_v3  ;;  %v550_v36 = vadd.f32 %v10573_v38, %v549_v18  ;;  %v590_v30 = vadd.f32 %v10573_v38, %v589_v8  ;;  %410 = sbr.rel (!%p408_p4) target bundleno = 199 (0xc7), region = 179 }
 0x1cc   : >> { %6819 = vst [vmem:[%s10602_s14 + $0x40] sm:$0xff] %v1135_v7  ;;  %6827 = vst [vmem:[%s10602_s14 + $0x80] sm:$0xff] %v1143_v62  ;;  %v605_v21 = vmax.f32 %v555_v13, 0.0  ;;  %v613_v32 = vmax.f32 %v595_v4, 0.0  ;;  %v6811_v25 = vsel %vm10569_vm15, 1.0, %v10094_v53 }
 0x1cd   : >> { %6818 = vst [vmem:[%s10602_s14 + $0x38] sm:$0xff] %v1134_v22  ;;  %6826 = vst [vmem:[%s10602_s14 + $0x78] sm:$0xff] %v1142_v23  ;;  %v604_v29 = vmax.f32 %v550_v36, 0.0  ;;  %v612_v33 = vmax.f32 %v590_v30, 0.0 }
 0x1ce   : >> { %v1137_v38 = vmul.f32 %v6804_v0, %v605_v21  ;;  %v1145_v34 = vmul.f32 %v6812_v28, %v613_v32 }
 0x1cf   : >> { %v1136_v20 = vmul.f32 %v6803_v26, %v604_v29  ;;  %v1144_v35 = vmul.f32 %v6811_v25, %v612_v33 }
 0x1d0   : >> { %6821 = vst [vmem:[%s10602_s14 + $0x50] sm:$0xff] %v1137_v38  ;;  %6829 = vst [vmem:[%s10602_s14 + $0x90] sm:$0xff] %v1145_v34 }
 0x1d1   : >> { %6820 = vst [vmem:[%s10602_s14 + $0x48] sm:$0xff] %v1136_v20  ;;  %6828 = vst [vmem:[%s10602_s14 + $0x88] sm:$0xff] %v1144_v35 }
 0x1d2 LB: >> { %v12754_v45 = vld [vmem:[#allocation23_spill] sm:$0xff]  ;;  %v12755_v12 = vld [vmem:[#allocation28_spill] sm:$0xff]  ;;  %v12756_v55 = vld [vmem:[#allocation26_spill] sm:$0xff]  ;;  %s10667_s15 = sshll.u32 %s10072_s17, 7  ;;  %s2326_s11 = sld [smem:[#allocation5 + %s10072_s17]]  ;;  %s10072_s17 = sphi %s10661_s17, %s1169_s17  }
 0x1d3   : >> { %v12757_v42 = vld [vmem:[#allocation21_spill] sm:$0xff]  ;;  %v12758_v14 = vld [vmem:[#allocation32_spill] sm:$0xff]  ;;  %v12759_v27 = vld [vmem:[#allocation31_spill] sm:$0xff]  ;;  %s10670_s21 = scalar_lea.vmem [#allocation2], %s10667_s15  ;;  %s11204_s22 = scalar_lea.vmem [#allocation3], %s10667_s15 }
 0x1d4   : >> { %v12760_v46 = vld [vmem:[#allocation24_spill] sm:$0xff]  ;;  %v12761_v44 = vld [vmem:[#allocation22_spill] sm:$0xff]  ;;  %v12763_v15 = vld [vmem:[#allocation29_spill] sm:$0xff]  ;;  %s1169_s17 = sadd.s32 1, %s10072_s17  }
 0x1d5   : >> { %v12762_v39 = vld [vmem:[#allocation30_spill] sm:$0xff]  ;;  %v12764_v11 = vld [vmem:[#allocation27_spill] sm:$0xff]  ;;  %v12765_v54 = vld [vmem:[#allocation25_spill] sm:$0xff]  ;;  %p1166_p5 = scmp.ge.s32.totalorder %s1169_s17, 3  }
 0x1d6   : >> { %v1292_v24 = vld [vmem:[#allocation10 + $0x180] sm:$0xff]  ;;  %v1293_v43 = vld [vmem:[#allocation10 + $0x188] sm:$0xff]  ;;  %v1294_v41 = vld [vmem:[#allocation10 + $0x190] sm:$0xff]  ;;  %s11333_s25 = smov (%p1166_p5), 0  }
 0x1d7   : >> { %v1276_v53 = vld [vmem:[#allocation10 + $0x100] sm:$0xff]  ;;  %v9172_v37 = vpack.c.bf16 %v1293_v43, %v1292_v24  ;;  %v1277_v40 = vld [vmem:[#allocation10 + $0x108] sm:$0xff]  ;;  %v1295_v48 = vld [vmem:[#allocation10 + $0x198] sm:$0xff] }
 0x1d8   : >> { %v9174_v47 = vpack.c.bf16 %v1277_v40, %v1276_v53  ;;  %v9176_v50 = vpack.c.bf16 %v1295_v48, %v1294_v41  ;;  %v1278_v16 = vld [vmem:[#allocation10 + $0x110] sm:$0xff]  ;;  %v1279_v51 = vld [vmem:[#allocation10 + $0x118] sm:$0xff]  ;;  %v1296_v49 = vld [vmem:[#allocation10 + $0x1a0] sm:$0xff] }
 0x1d9   : >> { %9700 = vmatprep.subr.bf16.mxu1 %v9172_v37  ;;  %9173 = vmatprep.subr.bf16.mxu0 %v9172_v37  ;;  %v1297_v56 = vld [vmem:[#allocation10 + $0x1a8] sm:$0xff]  ;;  %v9178_v58 = vpack.c.bf16 %v1279_v51, %v1278_v16  ;;  %v1280_v60 = vld [vmem:[#allocation10 + $0x120] sm:$0xff]  ;;  %v1298_v57 = vld [vmem:[#allocation10 + $0x1b0] sm:$0xff] }
 0x1da   : >> { %9708 = vmatpush3.bf16.msra.mxu1 %v9174_v47  ;;  %9175 = vmatpush3.bf16.msra.mxu0 %v9174_v47  ;;  %v9180_v59 = vpack.c.bf16 %v1297_v56, %v1296_v49  ;;  %v1281_v19 = vld [vmem:[#allocation10 + $0x128] sm:$0xff]  ;;  %v1299_v17 = vld [vmem:[#allocation10 + $0x1b8] sm:$0xff]  ;;  %v1282_v2 = vld [vmem:[#allocation10 + $0x130] sm:$0xff] }
 0x1db   : >> { %9701 = vmatprep.subr.bf16.mxu1 %v9176_v50  ;;  %9177 = vmatprep.subr.bf16.mxu0 %v9176_v50  ;;  %v9182_v63 = vpack.c.bf16 %v1281_v19, %v1280_v60  ;;  %v9184_v1 = vpack.c.bf16 %v1299_v17, %v1298_v57  ;;  %v1283_v61 = vld [vmem:[#allocation10 + $0x138] sm:$0xff]  ;;  %v1300_v3 = vld [vmem:[#allocation10 + $0x1c0] sm:$0xff]  ;;  %v1301_v5 = vld [vmem:[#allocation10 + $0x1c8] sm:$0xff] }
 0x1dc   : >> { %v10673_v0 = vld [vmem:[%s10670_s21 + $0x57] sm:$0xff]  ;;  %v9186_v6 = vpack.c.bf16 %v1283_v61, %v1282_v2  ;;  %v9188_v7 = vpack.c.bf16 %v1301_v5, %v1300_v3  ;;  %v1284_v62 = vld [vmem:[#allocation10 + $0x140] sm:$0xff]  ;;  %v1285_v13 = vld [vmem:[#allocation10 + $0x148] sm:$0xff] }
 0x1dd   : >> { %1412 = vmatprep.mubr.f32.mxu1 %v10673_v0  ;;  %v10677_v28 = vld [vmem:[%s10670_s21 + $0x17] sm:$0xff]  ;;  %v9190_v8 = vpack.c.bf16 %v1285_v13, %v1284_v62  ;;  %v1304_v30 = vld [vmem:[#allocation10 + $0x1e0] sm:$0xff]  ;;  %v1305_v21 = vld [vmem:[#allocation10 + $0x1e8] sm:$0xff] }
 0x1de   : >> { %9709 = vmatpush3.bf16.msra.mxu1 %v9178_v58  ;;  %9179 = vmatpush3.bf16.msra.mxu0 %v9178_v58  ;;  %v1302_v4 = vld [vmem:[#allocation10 + $0x1d0] sm:$0xff]  ;;  %v1303_v18 = vld [vmem:[#allocation10 + $0x1d8] sm:$0xff]  ;;  %v9196_v26 = vpack.c.bf16 %v1305_v21, %v1304_v30  ;;  %v1288_v25 = vld [vmem:[#allocation10 + $0x160] sm:$0xff] }
 0x1df   : >> { %9702 = vmatprep.subr.bf16.mxu1 %v9180_v59  ;;  %9181 = vmatprep.subr.bf16.mxu0 %v9180_v59  ;;  %v9192_v22 = vpack.c.bf16 %v1303_v18, %v1302_v4  ;;  %v1286_v23 = vld [vmem:[#allocation10 + $0x150] sm:$0xff]  ;;  %v1287_v36 = vld [vmem:[#allocation10 + $0x158] sm:$0xff]  ;;  %v1289_v29 = vld [vmem:[#allocation10 + $0x168] sm:$0xff] }
 0x1e0   : >> { %1372 = vmatprep.mubr.f32.mxu0 %v10677_v28  ;;  %v9194_v32 = vpack.c.bf16 %v1287_v36, %v1286_v23  ;;  %v1306_v33 = vld [vmem:[#allocation10 + $0x1f0] sm:$0xff]  ;;  %v1307_v38 = vld [vmem:[#allocation10 + $0x1f8] sm:$0xff]  ;;  %v9198_v34 = vpack.c.bf16 %v1289_v29, %v1288_v25  ;;  %v1223_v43 = vld [vmem:[#allocation10 + $0x80] sm:$0xff] }
 0x1e1   : >> { %v9200_v20 = vpack.c.bf16 %v1307_v38, %v1306_v33  ;;  %v1290_v35 = vld [vmem:[#allocation10 + $0x170] sm:$0xff]  ;;  %v1291_v24 = vld [vmem:[#allocation10 + $0x178] sm:$0xff]  ;;  %v1224_v53 = vld [vmem:[#allocation10 + $0x88] sm:$0xff] }
 0x1e2   : >> { %9710 = vmatpush3.bf16.msra.mxu1 %v9182_v63  ;;  %9183 = vmatpush3.bf16.msra.mxu0 %v9182_v63  ;;  %v1651_v37 = vld [vmem:[#allocation10 + $0x280] sm:$0xff]  ;;  %v1652_v40 = vld [vmem:[#allocation10 + $0x288] sm:$0xff]  ;;  %v9202_v41 = vpack.c.bf16 %v1291_v24, %v1290_v35  ;;  %v9204_v48 = vpack.c.bf16 %v1224_v53, %v1223_v43  ;;  %v1225_v56 = vld [vmem:[#allocation10 + $0x90] sm:$0xff] }
 0x1e3   : >> { %9703 = vmatprep.subr.bf16.mxu1 %v9184_v1  ;;  %9185 = vmatprep.subr.bf16.mxu0 %v9184_v1  ;;  %v1207_v47 = vld [vmem:[#allocation10] sm:$0xff]  ;;  %v1208_v50 = vld [vmem:[#allocation10 + $0x8] sm:$0xff]  ;;  %v9236_v16 = vpack.c.bf16 %v1652_v40, %v1651_v37  ;;  %v1226_v58 = vld [vmem:[#allocation10 + $0x98] sm:$0xff] }
 0x1e4   : >> { %v1635_v51 = vld [vmem:[#allocation10 + $0x200] sm:$0xff]  ;;  %v1636_v49 = vld [vmem:[#allocation10 + $0x208] sm:$0xff]  ;;  %v1653_v59 = vld [vmem:[#allocation10 + $0x290] sm:$0xff]  ;;  %v9206_v57 = vpack.c.bf16 %v1208_v50, %v1207_v47  ;;  %v9208_v2 = vpack.c.bf16 %v1226_v58, %v1225_v56 }
 0x1e5   : >> { %v1654_v60 = vld [vmem:[#allocation10 + $0x298] sm:$0xff]  ;;  %v10681_v19 = vld [vmem:[%s10670_s21 + $0x47] sm:$0xff]  ;;  %v9238_v1 = vpack.c.bf16 %v1636_v49, %v1635_v51  ;;  %v1209_v61 = vld [vmem:[#allocation10 + $0x10] sm:$0xff] }
 0x1e6   : >> { %9711 = vmatpush3.bf16.msra.mxu1 %v9186_v6  ;;  %9187 = vmatpush3.bf16.msra.mxu0 %v9186_v6  ;;  %v6866_v17 = vld [vmem:[%s10670_s21 + $0x7] sm:$0xff]  ;;  %v10685_v63 = vld [vmem:[%s10670_s21 + $0x5f] sm:$0xff]  ;;  %v1637_v5 = vld [vmem:[#allocation10 + $0x210] sm:$0xff]  ;;  %v9240_v6 = vpack.c.bf16 %v1654_v60, %v1653_v59 }
 0x1e7   : >> { %9704 = vmatprep.subr.bf16.mxu1 %v9188_v7  ;;  %9189 = vmatprep.subr.bf16.mxu0 %v9188_v7  ;;  %v1210_v3 = vld [vmem:[#allocation10 + $0x18] sm:$0xff]  ;;  %v1227_v62 = vld [vmem:[#allocation10 + $0xa0] sm:$0xff]  ;;  %v1228_v13 = vld [vmem:[#allocation10 + $0xa8] sm:$0xff] }
 0x1e8   : >> { %v1638_v7 = vld [vmem:[#allocation10 + $0x218] sm:$0xff]  ;;  %v1655_v18 = vld [vmem:[#allocation10 + $0x2a0] sm:$0xff]  ;;  %v9210_v23 = vpack.c.bf16 %v1210_v3, %v1209_v61  ;;  %v6867_v36 = vld [vmem:[%s10670_s21 + $0xf] sm:$0xff] }
 0x1e9   : >> { %v10689_v4 = vld [vmem:[%s10670_s21 + $0x1f] sm:$0xff]  ;;  %v10697_v30 = vld [vmem:[%s10670_s21 + $0x67] sm:$0xff]  ;;  %v9242_v21 = vpack.c.bf16 %v1638_v7, %v1637_v5  ;;  %v1657_v24 = vld [vmem:[#allocation10 + $0x2b0] sm:$0xff] }
 0x1ea   : >> { %9712 = vmatpush3.bf16.msra.mxu1 %v9190_v8  ;;  %9191 = vmatpush3.bf16.msra.mxu0 %v9190_v8  ;;  %v1656_v8 = vld [vmem:[#allocation10 + $0x2a8] sm:$0xff]  ;;  %v1639_v29 = vld [vmem:[#allocation10 + $0x220] sm:$0xff]  ;;  %v1658_v43 = vld [vmem:[#allocation10 + $0x2b8] sm:$0xff] }
 0x1eb   : >> { %9705 = vmatprep.subr.bf16.mxu1 %v9192_v22  ;;  %9193 = vmatprep.subr.bf16.mxu0 %v9192_v22  ;;  %v10693_v22 = vld [vmem:[%s10670_s21 + $0x4f] sm:$0xff]  ;;  %v9244_v33 = vpack.c.bf16 %v1656_v8, %v1655_v18  ;;  %v10702_v35 = vld [vmem:[%s10670_s21 + $0x27] sm:$0xff]  ;;  %v1214_v47 = vld [vmem:[#allocation10 + $0x38] sm:$0xff] }
 0x1ec   : >> { %v1212_v25 = vld [vmem:[#allocation10 + $0x28] sm:$0xff]  ;;  %v1641_v50 = vld [vmem:[#allocation10 + $0x230] sm:$0xff]  ;;  %v1642_v51 = vld [vmem:[#allocation10 + $0x238] sm:$0xff] }
 0x1ed   : >> { %v1640_v38 = vld [vmem:[#allocation10 + $0x228] sm:$0xff]  ;;  %v1231_v49 = vld [vmem:[#allocation10 + $0xc0] sm:$0xff]  ;;  %v1234_v7 = vld [vmem:[#allocation10 + $0xd8] sm:$0xff] }
 0x1ee   : >> { %9713 = vmatpush3.bf16.msra.mxu1 %v9194_v32  ;;  %9195 = vmatpush3.bf16.msra.mxu0 %v9194_v32  ;;  %v9212_v32 = vpack.c.bf16 %v1228_v13, %v1227_v62  ;;  %v10706_v37 = vld [vmem:[%s10670_s21 + $0x6f] sm:$0xff]  ;;  %v9246_v40 = vpack.c.bf16 %v1640_v38, %v1639_v29  ;;  %v1659_v59 = vld [vmem:[#allocation10 + $0x2c0] sm:$0xff]  ;;  %v10722_v62 = vld [vmem:[%s10670_s21 + $0x37] sm:$0xff] }
 0x1ef   : >> { %9706 = vmatprep.subr.bf16.mxu1 %v9196_v26  ;;  %9197 = vmatprep.subr.bf16.mxu0 %v9196_v26  ;;  %v1211_v26 = vld [vmem:[#allocation10 + $0x20] sm:$0xff]  ;;  %v1232_v56 = vld [vmem:[#allocation10 + $0xc8] sm:$0xff]  ;;  %v1661_v13 = vld [vmem:[#allocation10 + $0x2d0] sm:$0xff] }
 0x1f0   : >> { %v9214_v53 = vpack.c.bf16 %v1212_v25, %v1211_v26  ;;  %v10712_v58 = vld [vmem:[%s10670_s21 + $0x2f] sm:$0xff]  ;;  %v1215_v61 = vld [vmem:[#allocation10 + $0x40] sm:$0xff]  ;;  %v1662_v18 = vld [vmem:[#allocation10 + $0x2d8] sm:$0xff] }
 0x1f1   : >> { %v1660_v60 = vld [vmem:[#allocation10 + $0x2c8] sm:$0xff]  ;;  %v1218_v26 = vld [vmem:[#allocation10 + $0x58] sm:$0xff]  ;;  %v1235_v29 = vld [vmem:[#allocation10 + $0xe0] sm:$0xff] }
 0x1f2   : >> { %9714 = vmatpush3.bf16.msra.mxu1 %v9198_v34  ;;  %9199 = vmatpush3.bf16.msra.mxu0 %v9198_v34  ;;  %v1229_v34 = vld [vmem:[#allocation10 + $0xb0] sm:$0xff]  ;;  %v1216_v3 = vld [vmem:[#allocation10 + $0x48] sm:$0xff]  ;;  %v1646_v25 = vld [vmem:[#allocation10 + $0x258] sm:$0xff] }
 0x1f3   : >> { %9707 = vmatprep.subr.bf16.mxu1 %v9200_v20  ;;  %9201 = vmatprep.subr.bf16.mxu0 %v9200_v20  ;;  %v1230_v20 = vld [vmem:[#allocation10 + $0xb8] sm:$0xff]  ;;  %v1644_v5 = vld [vmem:[#allocation10 + $0x248] sm:$0xff]  ;;  %v9222_v8 = vpack.c.bf16 %v1216_v3, %v1215_v61  ;;  %v1649_v61 = vld [vmem:[#allocation10 + $0x270] sm:$0xff] }
 0x1f4   : >> { %v6888_v38 = vld [vmem:[%s10670_s21 + $0x3f] sm:$0xff] }
 0x1f5   : >> { %v1650_v3 = vld [vmem:[#allocation10 + $0x278] sm:$0xff] }
 0x1f6   : >> { %9715 = vmatpush3.bf16.msra.mxu1 %v9202_v41  ;;  %9203 = vmatpush3.bf16.msra.mxu0 %v9202_v41  ;;  %v9216_v41 = vpack.c.bf16 %v1230_v20, %v1229_v34  ;;  %v1663_v34 = vld [vmem:[#allocation10 + $0x2e0] sm:$0xff]  ;;  %v1664_v20 = vld [vmem:[#allocation10 + $0x2e8] sm:$0xff] }
 0x1f7   : >> { %9205 = vmatprep.subr.bf16.mxu1 %v9204_v48  ;;  %9237 = vmatprep.subr.bf16.mxu0 %v9236_v16  ;;  %v1213_v48 = vld [vmem:[#allocation10 + $0x30] sm:$0xff]  ;;  %v9248_v16 = vpack.c.bf16 %v1658_v43, %v1657_v24  ;;  %v6897_v43 = vld [vmem:[%s10670_s21 + $0x87] sm:$0xff] }
 0x1f9   : >> { %1413 = vmatmul.mubr.f32.vlgmr.msra.gmra.mrb[0].mxu1 %v10681_v19  ;;  %1373 = vmatmul.mubr.f32.vlgmr.msra.gmra.mrb[0].mxu0 %v6866_v17  ;;  %v10716_v17 = vld [vmem:[%s10670_s21 + $0x77] sm:$0xff] }
 0x1fa   : >> { %9207 = vmatpush3.bf16.msra.mxu1 %v9206_v57  ;;  %1417 = vmatprep.mubr.f32.mxu1 %v10685_v63  ;;  %v9218_v57 = vpack.c.bf16 %v1214_v47, %v1213_v48  ;;  %v1220_v48 = vld [vmem:[#allocation10 + $0x68] sm:$0xff]  ;;  %v1647_v47 = vld [vmem:[#allocation10 + $0x260] sm:$0xff] }
 0x1fb   : >> { %9239 = vmatpush3.bf16.msra.mxu0 %v9238_v1  ;;  %9209 = vmatprep.subr.bf16.mxu1 %v9208_v2  ;;  %v9250_v1 = vpack.c.bf16 %v1642_v51, %v1641_v50  ;;  %v9220_v2 = vpack.c.bf16 %v1232_v56, %v1231_v49  ;;  %v1237_v50 = vld [vmem:[#allocation10 + $0xf0] sm:$0xff]  ;;  %v1666_v49 = vld [vmem:[#allocation10 + $0x2f8] sm:$0xff] }
 0x1fc   : >> { %1377 = vmatprep.mubr.f32.mxu0 %v10689_v4  ;;  %9241 = vmatprep.subr.bf16.mxu0 %v9240_v6  ;;  %v1233_v6 = vld [vmem:[#allocation10 + $0xd0] sm:$0xff] }
 0x1fd   : >> { %1418 = vmatmul.mubr.f32.gmra.mrb[2].mxu1 %v10693_v22  ;;  %1378 = vmatmul.mubr.f32.gmra.mrb[2].mxu0 %v6867_v36  ;;  %v1665_v51 = vld [vmem:[#allocation10 + $0x2f0] sm:$0xff] }
 0x1fe   : >> { %9211 = vmatpush3.bf16.msra.mxu1 %v9210_v23  ;;  %1422 = vmatprep.mubr.f32.mxu1 %v10697_v30  ;;  %v10726_v23 = vld [vmem:[%s10670_s21 + $0x7f] sm:$0xff] }
 0x1ff   : >> { %9243 = vmatpush3.bf16.msra.mxu0 %v9242_v21  ;;  %9213 = vmatprep.subr.bf16.mxu1 %v9212_v32  ;;  %v9224_v21 = vpack.c.bf16 %v1234_v7, %v1233_v6  ;;  %v1217_v32 = vld [vmem:[#allocation10 + $0x50] sm:$0xff]  ;;  %v6849_v7 = vld [vmem:[%s10670_s21 + $0x6] sm:$0xff] }
 0x200   : >> { %1382 = vmatprep.mubr.f32.mxu0 %v10702_v35  ;;  %9245 = vmatprep.subr.bf16.mxu0 %v9244_v33  ;;  %v1236_v33 = vld [vmem:[#allocation10 + $0xe8] sm:$0xff]  ;;  %v9226_v24 = vpack.c.bf16 %v1218_v26, %v1217_v32  ;;  %v1883_v32 = vld [vmem:[#allocation10 + $0x390] sm:$0xff]  ;;  %v1884_v26 = vld [vmem:[#allocation10 + $0x398] sm:$0xff] }
 0x201   : >> { %1423 = vmatmul.mubr.f32.gmra.mrb[4].mxu1 %v10673_v0  ;;  %1383 = vmatmul.mubr.f32.gmra.mrb[4].mxu0 %v10677_v28  ;;  %v1643_v0 = vld [vmem:[#allocation10 + $0x240] sm:$0xff]  ;;  %v9252_v28 = vpack.c.bf16 %v1660_v60, %v1659_v59  ;;  %v6898_v59 = vld [vmem:[%s10670_s21 + $0x8f] sm:$0xff] }
 0x202   : >> { %9215 = vmatpush3.bf16.msra.mxu1 %v9214_v53  ;;  %1427 = vmatprep.mubr.f32.mxu1 %v10706_v37  ;;  %v9254_v36 = vpack.c.bf16 %v1644_v5, %v1643_v0  ;;  %v1882_v0 = vld [vmem:[#allocation10 + $0x388] sm:$0xff] }
 0x203   : >> { %9247 = vmatpush3.bf16.msra.mxu0 %v9246_v40  ;;  %9217 = vmatprep.subr.bf16.mxu1 %v9216_v41  ;;  %v9228_v40 = vpack.c.bf16 %v1236_v33, %v1235_v29  ;;  %v1219_v41 = vld [vmem:[#allocation10 + $0x60] sm:$0xff]  ;;  %v2094_v5 = vld [vmem:[#allocation10 + $0x488] sm:$0xff]  ;;  %v2096_v29 = vld [vmem:[#allocation10 + $0x498] sm:$0xff] }
 0x204   : >> { %1387 = vmatprep.mubr.f32.mxu0 %v10712_v58  ;;  %9249 = vmatprep.subr.bf16.mxu0 %v9248_v16  ;;  %v1238_v16 = vld [vmem:[#allocation10 + $0xf8] sm:$0xff]  ;;  %v9230_v56 = vpack.c.bf16 %v1220_v48, %v1219_v41  ;;  %v6850_v33 = vld [vmem:[%s10670_s21 + $0xe] sm:$0xff]  ;;  %v1885_v41 = vld [vmem:[#allocation10 + $0x3a0] sm:$0xff] }
 0x205   : >> { %1428 = vmatmul.mubr.f32.gmra.mrb[6].mxu1 %v10685_v63  ;;  %1388 = vmatmul.mubr.f32.gmra.mrb[6].mxu0 %v10689_v4  ;;  %v1645_v63 = vld [vmem:[#allocation10 + $0x250] sm:$0xff]  ;;  %v9256_v4 = vpack.c.bf16 %v1662_v18, %v1661_v13  ;;  %v9266_v13 = vpack.c.bf16 %v1650_v3, %v1649_v61  ;;  %v1865_v18 = vld [vmem:[#allocation10 + $0x300] sm:$0xff]  ;;  %v1886_v48 = vld [vmem:[#allocation10 + $0x3a8] sm:$0xff] }
 0x206   : >> { %9219 = vmatpush3.bf16.msra.mxu1 %v9218_v57  ;;  %1432 = vmatprep.mubr.f32.mxu1 %v10716_v17  ;;  %v9258_v53 = vpack.c.bf16 %v1646_v25, %v1645_v63  ;;  %v9232_v57 = vpack.c.bf16 %v1238_v16, %v1237_v50  ;;  %v6832_v63 = vld [vmem:[%s10670_s21 + $0x5] sm:$0xff]  ;;  %v2095_v25 = vld [vmem:[#allocation10 + $0x490] sm:$0xff]  ;;  %v1888_v3 = vld [vmem:[#allocation10 + $0x3b8] sm:$0xff] }
 0x207   : >> { %9251 = vmatpush3.bf16.msra.mxu0 %v9250_v1  ;;  %9221 = vmatprep.subr.bf16.mxu1 %v9220_v2  ;;  %v1221_v1 = vld [vmem:[#allocation10 + $0x70] sm:$0xff]  ;;  %v1222_v2 = vld [vmem:[#allocation10 + $0x78] sm:$0xff]  ;;  %v2082_v61 = vld [vmem:[#allocation10 + $0x428] sm:$0xff] }
 0x208   : >> { %1392 = vmatprep.mubr.f32.mxu0 %v10722_v62  ;;  %9253 = vmatprep.subr.bf16.mxu0 %v9252_v28  ;;  %v2093_v28 = vld [vmem:[#allocation10 + $0x480] sm:$0xff]  ;;  %v9234_v6 = vpack.c.bf16 %v1222_v2, %v1221_v1  ;;  %v6851_v16 = vld [vmem:[%s10670_s21 + $0x16] sm:$0xff] }
 0x209   : >> { %1433 = vmatmul.mubr.f32.gmra.mrb[8].mxu1 %v10697_v30  ;;  %1393 = vmatmul.mubr.f32.gmra.mrb[8].mxu0 %v10702_v35  ;;  %v9260_v30 = vpack.c.bf16 %v1664_v20, %v1663_v34  ;;  %v1648_v35 = vld [vmem:[#allocation10 + $0x268] sm:$0xff]  ;;  %v6918_v20 = vld [vmem:[%s10670_s21 + $0x21] sm:$0xff] }
 0x20a   : >> { %9223 = vmatpush3.bf16.msra.mxu1 %v9222_v8  ;;  %1437 = vmatprep.mubr.f32.mxu1 %v10726_v23  ;;  %v9262_v60 = vpack.c.bf16 %v1648_v35, %v1647_v47  ;;  %v1866_v8 = vld [vmem:[#allocation10 + $0x308] sm:$0xff]  ;;  %v6901_v50 = vld [vmem:[%s10670_s21 + $0x20] sm:$0xff] }
 0x20b   : >> { %9255 = vmatpush3.bf16.msra.mxu0 %v9254_v36  ;;  %9225 = vmatprep.subr.bf16.mxu1 %v9224_v21  ;;  %v2078_v36 = vld [vmem:[#allocation10 + $0x408] sm:$0xff]  ;;  %v6917_v21 = vld [vmem:[%s10670_s21 + $0x19] sm:$0xff]  ;;  %v2081_v1 = vld [vmem:[#allocation10 + $0x420] sm:$0xff] }
 0x20c   : >> { %1397 = vmatprep.mubr.f32.mxu0 %v6888_v38  ;;  %9257 = vmatprep.subr.bf16.mxu0 %v9256_v4  ;;  %v9270_v4 = vpack.c.bf16 %v1866_v8, %v1865_v18  ;;  %v6833_v47 = vld [vmem:[%s10670_s21 + $0xd] sm:$0xff] }
 0x20d   : >> { %1438 = vmatmul.mubr.f32.gmra.mrb[10].mxu1 %v10706_v37  ;;  %1398 = vmatmul.mubr.f32.gmra.mrb[10].mxu0 %v10712_v58  ;;  %v9264_v37 = vpack.c.bf16 %v1666_v49, %v1665_v51  ;;  %v1881_v58 = vld [vmem:[#allocation10 + $0x380] sm:$0xff]  ;;  %v2098_v35 = vld [vmem:[#allocation10 + $0x4a8] sm:$0xff]  ;;  %v1871_v8 = vld [vmem:[#allocation10 + $0x330] sm:$0xff] }
 0x20e   : >> { %9227 = vmatpush3.bf16.msra.mxu1 %v9226_v24  ;;  %1442 = vmatprep.mubr.f32.mxu1 %v6897_v43  ;;  %v1868_v24 = vld [vmem:[#allocation10 + $0x318] sm:$0xff]  ;;  %v2079_v43 = vld [vmem:[#allocation10 + $0x410] sm:$0xff]  ;;  %v10752_v51 = vld [vmem:[%s10670_s21 + $0x29] sm:$0xff] }
 0x20f   : >> { %9259 = vmatpush3.bf16.msra.mxu0 %v9258_v53  ;;  %9229 = vmatprep.subr.bf16.mxu1 %v9228_v40  ;;  %v9304_v53 = vpack.c.bf16 %v2096_v29, %v2095_v25  ;;  %v2080_v40 = vld [vmem:[#allocation10 + $0x418] sm:$0xff]  ;;  %v2102_v25 = vld [vmem:[#allocation10 + $0x4c8] sm:$0xff] }
 0x210   : >> { %1402 = vmatprep.mubr.f32.mxu0 %v10681_v19  ;;  %9261 = vmatprep.subr.bf16.mxu0 %v9260_v30  ;;  %v9268_v19 = vpack.c.bf16 %v1882_v0, %v1881_v58  ;;  %v2097_v30 = vld [vmem:[#allocation10 + $0x4a0] sm:$0xff]  ;;  %v6834_v58 = vld [vmem:[%s10670_s21 + $0x15] sm:$0xff] }
 0x211   : >> { %1443 = vmatmul.mubr.f32.gmra.mrb[12].mxu1 %v10716_v17  ;;  %1403 = vmatmul.mubr.f32.gmra.mrb[12].mxu0 %v10722_v62  ;;  %v9300_v17 = vpack.c.bf16 %v2094_v5, %v2093_v28  ;;  %v2077_v62 = vld [vmem:[#allocation10 + $0x400] sm:$0xff]  ;;  %v9308_v2 = vpack.c.bf16 %v2098_v35, %v2097_v30  ;;  %v2099_v0 = vld [vmem:[#allocation10 + $0x4b0] sm:$0xff]  ;;  %v2100_v28 = vld [vmem:[#allocation10 + $0x4b8] sm:$0xff] }
 0x212   : >> { %9231 = vmatpush3.bf16.msra.mxu1 %v9230_v56  ;;  %1447 = vmatprep.mubr.f32.mxu1 %v6898_v59  ;;  %v9302_v34 = vpack.c.bf16 %v2078_v36, %v2077_v62  ;;  %v9306_v56 = vpack.c.bf16 %v2080_v40, %v2079_v43  ;;  %v9276_v59 = vpack.c.bf16 %v1886_v48, %v1885_v41  ;;  %v6902_v5 = vld [vmem:[%s10670_s21 + $0x28] sm:$0xff]  ;;  %v2083_v62 = vld [vmem:[#allocation10 + $0x430] sm:$0xff]  ;;  %v1892_v48 = vld [vmem:[#allocation10 + $0x3d8] sm:$0xff] }
 0x213   : >> { %9263 = vmatpush3.bf16.msra.mxu0 %v9262_v60  ;;  %9233 = vmatprep.subr.bf16.mxu1 %v9232_v57  ;;  %v1869_v60 = vld [vmem:[#allocation10 + $0x320] sm:$0xff]  ;;  %v1870_v57 = vld [vmem:[#allocation10 + $0x328] sm:$0xff]  ;;  %v9312_v36 = vpack.c.bf16 %v2100_v28, %v2099_v0  ;;  %v1891_v41 = vld [vmem:[#allocation10 + $0x3d0] sm:$0xff] }
 0x214   : >> { %1407 = vmatprep.mubr.f32.mxu0 %v10693_v22  ;;  %9265 = vmatprep.subr.bf16.mxu0 %v9264_v37  ;;  %v6900_v22 = vld [vmem:[%s10670_s21 + $0x18] sm:$0xff]  ;;  %v6903_v29 = vld [vmem:[%s10670_s21 + $0x30] sm:$0xff]  ;;  %v2085_v43 = vld [vmem:[#allocation10 + $0x440] sm:$0xff] }
 0x215   : >> { %1448 = vmatmul.mubr.f32.gmra.mrb[14].mxu1 %v10726_v23  ;;  %1408 = vmatmul.mubr.f32.gmra.mrb[14].mxu0 %v6888_v38  ;;  %v9272_v23 = vpack.c.bf16 %v1884_v26, %v1883_v32  ;;  %v1867_v38 = vld [vmem:[#allocation10 + $0x310] sm:$0xff]  ;;  %v1889_v32 = vld [vmem:[#allocation10 + $0x3c0] sm:$0xff]  ;;  %v1890_v26 = vld [vmem:[#allocation10 + $0x3c8] sm:$0xff] }
 0x216   : >> { %9235 = vmatpush3.bf16.msra.mxu1 %v9234_v6  ;;  %1517 = vmatprep.mubr.f32.mxu1 %v6849_v7  ;;  %v9274_v49 = vpack.c.bf16 %v1868_v24, %v1867_v38  ;;  %v1887_v37 = vld [vmem:[#allocation10 + $0x3b0] sm:$0xff]  ;;  %v6852_v6 = vld [vmem:[%s10670_s21 + $0x1e] sm:$0xff]  ;;  %v1874_v24 = vld [vmem:[#allocation10 + $0x348] sm:$0xff] }
 0x217   : >> { %9267 = vmatpush3.bf16.msra.mxu0 %v9266_v13  ;;  %9269 = vmatprep.subr.bf16.mxu1 %v9268_v19  ;;  %v10759_v7 = vld [vmem:[%s10670_s21 + $0x31] sm:$0xff]  ;;  %v9278_v13 = vpack.c.bf16 %v1870_v57, %v1869_v60  ;;  %v9310_v19 = vpack.c.bf16 %v2082_v61, %v2081_v1  ;;  %v9280_v18 = vpack.c.bf16 %v1888_v3, %v1887_v37  ;;  %v1873_v38 = vld [vmem:[#allocation10 + $0x340] sm:$0xff]  ;;  %v2104_v35 = vld [vmem:[#allocation10 + $0x4d8] sm:$0xff] }
 0x218   : >> { %1731 = vmatprep.mubr.f32.mxu0 %v6917_v21  ;;  %9301 = vmatprep.subr.bf16.mxu0 %v9300_v17  ;;  %v1872_v17 = vld [vmem:[#allocation10 + $0x338] sm:$0xff]  ;;  %v2086_v40 = vld [vmem:[#allocation10 + $0x448] sm:$0xff]  ;;  %v2103_v30 = vld [vmem:[#allocation10 + $0x4d0] sm:$0xff]  ;;  %v9288_v60 = vpack.c.bf16 %v1892_v48, %v1891_v41 }
 0x219   : >> { %1518 = vmatmul.mubr.f32.vlgmr.msra.gmra.mrb[16].mxu1 %v6832_v63  ;;  %v2084_v21 = vld [vmem:[#allocation10 + $0x438] sm:$0xff]  ;;  %v1875_v57 = vld [vmem:[#allocation10 + $0x350] sm:$0xff]  ;;  %v9320_v61 = vpack.c.bf16 %v2104_v35, %v2103_v30  ;;  %v1893_v3 = vld [vmem:[#allocation10 + $0x3e0] sm:$0xff] }
 0x21a   : >> { %9271 = vmatpush3.bf16.msra.mxu1 %v9270_v4  ;;  %1732 = vmatmul.mubr.f32.vlgmr.msra.gmra.mrb[16].mxu0 %v6900_v22  ;;  %v6835_v63 = vld [vmem:[%s10670_s21 + $0x1d] sm:$0xff]  ;;  %v6853_v22 = vld [vmem:[%s10670_s21 + $0x26] sm:$0xff]  ;;  %v2091_v48 = vld [vmem:[#allocation10 + $0x470] sm:$0xff] }
 0x21b   : >> { %1522 = vmatprep.mubr.f32.mxu1 %v6850_v33  ;;  %9303 = vmatpush3.bf16.msra.mxu0 %v9302_v34  ;;  %v2101_v4 = vld [vmem:[#allocation10 + $0x4c0] sm:$0xff]  ;;  %v10766_v33 = vld [vmem:[%s10670_s21 + $0x39] sm:$0xff]  ;;  %v9282_v34 = vpack.c.bf16 %v1872_v17, %v1871_v8  ;;  %v6837_v0 = vld [vmem:[%s10670_s21 + $0x2d] sm:$0xff] }
 0x21c   : >> { %1736 = vmatprep.mubr.f32.mxu0 %v6918_v20  ;;  %9273 = vmatprep.subr.bf16.mxu1 %v9272_v23  ;;  %v9314_v20 = vpack.c.bf16 %v2084_v21, %v2083_v62  ;;  %v9284_v23 = vpack.c.bf16 %v1890_v26, %v1889_v32  ;;  %v1876_v1 = vld [vmem:[#allocation10 + $0x358] sm:$0xff]  ;;  %v2105_v28 = vld [vmem:[#allocation10 + $0x4e0] sm:$0xff]  ;;  %v2090_v26 = vld [vmem:[#allocation10 + $0x468] sm:$0xff] }
 0x21d   : >> { %1523 = vmatmul.mubr.f32.gmra.mrb[18].mxu1 %v6833_v47  ;;  %9305 = vmatprep.subr.bf16.mxu0 %v9304_v53  ;;  %v9316_v53 = vpack.c.bf16 %v2102_v25, %v2101_v4  ;;  %v6836_v47 = vld [vmem:[%s10670_s21 + $0x25] sm:$0xff]  ;;  %v2088_v37 = vld [vmem:[#allocation10 + $0x458] sm:$0xff]  ;;  %v6907_v35 = vld [vmem:[%s10670_s21 + $0x50] sm:$0xff] }
 0x21e   : >> { %1737 = vmatmul.mubr.f32.gmra.mrb[18].mxu0 %v6901_v50  ;;  %1527 = vmatprep.mubr.f32.mxu1 %v6851_v16  ;;  %v6904_v50 = vld [vmem:[%s10670_s21 + $0x38] sm:$0xff]  ;;  %v6854_v16 = vld [vmem:[%s10670_s21 + $0x2e] sm:$0xff]  ;;  %v1877_v62 = vld [vmem:[#allocation10 + $0x360] sm:$0xff] }
 0x21f   : >> { %1741 = vmatprep.mubr.f32.mxu0 %v10752_v51  ;;  %9275 = vmatpush3.bf16.msra.mxu1 %v9274_v49  ;;  %v10773_v49 = vld [vmem:[%s10670_s21 + $0x41] sm:$0xff]  ;;  %v6838_v25 = vld [vmem:[%s10670_s21 + $0x35] sm:$0xff] }
 0x220   : >> { %9307 = vmatpush3.bf16.msra.mxu0 %v9306_v56  ;;  %9277 = vmatprep.subr.bf16.mxu1 %v9276_v59  ;;  %v9286_v56 = vpack.c.bf16 %v1874_v24, %v1873_v38  ;;  %v9318_v59 = vpack.c.bf16 %v2086_v40, %v2085_v43  ;;  %v2089_v21 = vld [vmem:[#allocation10 + $0x460] sm:$0xff]  ;;  %v1896_v4 = vld [vmem:[#allocation10 + $0x3f8] sm:$0xff]  ;;  %v10787_v38 = vld [vmem:[%s10670_s21 + $0x51] sm:$0xff] }
 0x221   : >> { %1528 = vmatmul.mubr.f32.gmra.mrb[20].mxu1 %v6834_v58  ;;  %9309 = vmatprep.subr.bf16.mxu0 %v9308_v2  ;;  %v2087_v2 = vld [vmem:[#allocation10 + $0x450] sm:$0xff]  ;;  %v1894_v58 = vld [vmem:[#allocation10 + $0x3e8] sm:$0xff]  ;;  %v9326_v24 = vpack.c.bf16 %v2090_v26, %v2089_v21  ;;  %v1880_v40 = vld [vmem:[#allocation10 + $0x378] sm:$0xff] }
 0x222   : >> { %1742 = vmatmul.mubr.f32.gmra.mrb[20].mxu0 %v6902_v5  ;;  %1532 = vmatprep.mubr.f32.mxu1 %v6852_v6  ;;  %v2106_v5 = vld [vmem:[#allocation10 + $0x4e8] sm:$0xff]  ;;  %v6905_v6 = vld [vmem:[%s10670_s21 + $0x40] sm:$0xff]  ;;  %v9322_v8 = vpack.c.bf16 %v2088_v37, %v2087_v2  ;;  %v9292_v17 = vpack.c.bf16 %v1894_v58, %v1893_v3  ;;  %v6859_v3 = vld [vmem:[%s10670_s21 + $0x56] sm:$0xff] }
 0x223   : >> { %1746 = vmatprep.mubr.f32.mxu0 %v10759_v7  ;;  %9279 = vmatpush3.bf16.msra.mxu1 %v9278_v13  ;;  %v6855_v13 = vld [vmem:[%s10670_s21 + $0x36] sm:$0xff]  ;;  %v9324_v32 = vpack.c.bf16 %v2106_v5, %v2105_v28  ;;  %v10801_v2 = vld [vmem:[%s10670_s21 + $0x61] sm:$0xff]  ;;  %v10808_v58 = vld [vmem:[%s10670_s21 + $0x69] sm:$0xff] }
 0x224   : >> { %9311 = vmatpush3.bf16.msra.mxu0 %v9310_v19  ;;  %9281 = vmatprep.subr.bf16.mxu1 %v9280_v18  ;;  %v10780_v19 = vld [vmem:[%s10670_s21 + $0x49] sm:$0xff]  ;;  %v9290_v18 = vpack.c.bf16 %v1876_v1, %v1875_v57  ;;  %v6839_v30 = vld [vmem:[%s10670_s21 + $0x3d] sm:$0xff] }
 0x225   : >> { %1533 = vmatmul.mubr.f32.gmra.mrb[22].mxu1 %v6835_v63  ;;  %9313 = vmatprep.subr.bf16.mxu0 %v9312_v36  ;;  %v1878_v36 = vld [vmem:[#allocation10 + $0x368] sm:$0xff]  ;;  %v1895_v63 = vld [vmem:[#allocation10 + $0x3f0] sm:$0xff]  ;;  %v6909_v37 = vld [vmem:[%s10670_s21 + $0x60] sm:$0xff] }
 0x226   : >> { %1747 = vmatmul.mubr.f32.gmra.mrb[22].mxu0 %v6903_v29  ;;  %1537 = vmatprep.mubr.f32.mxu1 %v6853_v22  ;;  %v2107_v29 = vld [vmem:[#allocation10 + $0x4f0] sm:$0xff]  ;;  %v2108_v22 = vld [vmem:[#allocation10 + $0x4f8] sm:$0xff]  ;;  %v9296_v43 = vpack.c.bf16 %v1896_v4, %v1895_v63  ;;  %v6910_v28 = vld [vmem:[%s10670_s21 + $0x68] sm:$0xff] }
 0x227   : >> { %1751 = vmatprep.mubr.f32.mxu0 %v10766_v33  ;;  %9283 = vmatpush3.bf16.msra.mxu1 %v9282_v34  ;;  %v6906_v34 = vld [vmem:[%s10670_s21 + $0x48] sm:$0xff]  ;;  %v9328_v41 = vpack.c.bf16 %v2108_v22, %v2107_v29  ;;  %v6908_v57 = vld [vmem:[%s10670_s21 + $0x58] sm:$0xff]  ;;  %v6913_v63 = vld [vmem:[%s10670_s21 + $0x80] sm:$0xff] }
 0x228   : >> { %9315 = vmatpush3.bf16.msra.mxu0 %v9314_v20  ;;  %9285 = vmatprep.subr.bf16.mxu1 %v9284_v23  ;;  %v6856_v20 = vld [vmem:[%s10670_s21 + $0x3e] sm:$0xff]  ;;  %v9294_v23 = vpack.c.bf16 %v1878_v36, %v1877_v62  ;;  %v6858_v1 = vld [vmem:[%s10670_s21 + $0x4e] sm:$0xff]  ;;  %v6863_v4 = vld [vmem:[%s10670_s21 + $0x76] sm:$0xff] }
 0x229   : >> { %1538 = vmatmul.mubr.f32.gmra.mrb[24].mxu1 %v6836_v47  ;;  %9317 = vmatprep.subr.bf16.mxu0 %v9316_v53  ;;  %v1879_v53 = vld [vmem:[#allocation10 + $0x370] sm:$0xff]  ;;  %v2092_v47 = vld [vmem:[#allocation10 + $0x478] sm:$0xff]  ;;  %v6844_v62 = vld [vmem:[%s10670_s21 + $0x65] sm:$0xff] }
 0x22a   : >> { %1752 = vmatmul.mubr.f32.gmra.mrb[24].mxu0 %v6904_v50  ;;  %1542 = vmatprep.mubr.f32.mxu1 %v6854_v16  ;;  %v6857_v50 = vld [vmem:[%s10670_s21 + $0x46] sm:$0xff]  ;;  %v9298_v16 = vpack.c.bf16 %v1880_v40, %v1879_v53  ;;  %v6860_v5 = vld [vmem:[%s10670_s21 + $0x5e] sm:$0xff]  ;;  %v6862_v21 = vld [vmem:[%s10670_s21 + $0x6e] sm:$0xff] }
 0x22b   : >> { %1756 = vmatprep.mubr.f32.mxu0 %v10773_v49  ;;  %9287 = vmatpush3.bf16.msra.mxu1 %v9286_v56  ;;  %v10794_v56 = vld [vmem:[%s10670_s21 + $0x59] sm:$0xff]  ;;  %v6845_v26 = vld [vmem:[%s10670_s21 + $0x6d] sm:$0xff] }
 0x22c   : >> { %9319 = vmatpush3.bf16.msra.mxu0 %v9318_v59  ;;  %9289 = vmatprep.subr.bf16.mxu1 %v9288_v60  ;;  %v9330_v59 = vpack.c.bf16 %v2092_v47, %v2091_v48  ;;  %v6840_v60 = vld [vmem:[%s10670_s21 + $0x45] sm:$0xff]  ;;  %v6912_v36 = vld [vmem:[%s10670_s21 + $0x78] sm:$0xff] }
 0x22d   : >> { %1543 = vmatmul.mubr.f32.gmra.mrb[26].mxu1 %v6837_v0  ;;  %9321 = vmatprep.subr.bf16.mxu0 %v9320_v61  ;;  %v6841_v61 = vld [vmem:[%s10670_s21 + $0x4d] sm:$0xff]  ;;  %v6842_v0 = vld [vmem:[%s10670_s21 + $0x55] sm:$0xff] }
 0x22e   : >> { %1757 = vmatmul.mubr.f32.gmra.mrb[26].mxu0 %v6905_v6  ;;  %1547 = vmatprep.mubr.f32.mxu1 %v6855_v13  ;;  %v10815_v6 = vld [vmem:[%s10670_s21 + $0x71] sm:$0xff]  ;;  %v6843_v13 = vld [vmem:[%s10670_s21 + $0x5d] sm:$0xff]  ;;  %v6914_v22 = vld [vmem:[%s10670_s21 + $0x88] sm:$0xff] }
 0x22f   : >> { %1761 = vmatprep.mubr.f32.mxu0 %v10780_v19  ;;  %9291 = vmatpush3.bf16.msra.mxu1 %v9290_v18  ;;  %v6911_v18 = vld [vmem:[%s10670_s21 + $0x70] sm:$0xff]  ;;  %v6953_v48 = vld [vmem:[%s10670_s21 + $0x3a] sm:$0xff] }
 0x230   : >> { %9323 = vmatpush3.bf16.msra.mxu0 %v9322_v8  ;;  %9293 = vmatprep.subr.bf16.mxu1 %v9292_v17  ;;  %v6861_v8 = vld [vmem:[%s10670_s21 + $0x66] sm:$0xff]  ;;  %v10822_v17 = vld [vmem:[%s10670_s21 + $0x79] sm:$0xff] }
 0x231   : >> { %1548 = vmatmul.mubr.f32.gmra.mrb[28].mxu1 %v6838_v25  ;;  %9325 = vmatprep.subr.bf16.mxu0 %v9324_v32  ;;  %v10829_v32 = vld [vmem:[%s10670_s21 + $0x81] sm:$0xff]  ;;  %v10836_v25 = vld [vmem:[%s10670_s21 + $0x89] sm:$0xff]  ;;  %v6846_v29 = vld [vmem:[%s10670_s21 + $0x75] sm:$0xff] }
 0x232   : >> { %1762 = vmatmul.mubr.f32.gmra.mrb[28].mxu0 %v6906_v34  ;;  %1552 = vmatprep.mubr.f32.mxu1 %v6856_v20  ;;  %v6864_v34 = vld [vmem:[%s10670_s21 + $0x7e] sm:$0xff]  ;;  %v10843_v20 = vld [vmem:[%s10670_s21 + $0x91] sm:$0xff] }
 0x233   : >> { %1766 = vmatprep.mubr.f32.mxu0 %v10787_v38  ;;  %9295 = vmatpush3.bf16.msra.mxu1 %v9294_v23  ;;  %v6847_v23 = vld [vmem:[%s10670_s21 + $0x7d] sm:$0xff]  ;;  %v6968_v53 = vld [vmem:[%s10670_s21 + $0x2b] sm:$0xff] }
 0x234   : >> { %9327 = vmatpush3.bf16.msra.mxu0 %v9326_v24  ;;  %9297 = vmatprep.subr.bf16.mxu1 %v9296_v43  ;;  %v6915_v24 = vld [vmem:[%s10670_s21 + $0x90] sm:$0xff]  ;;  %v6970_v47 = vld [vmem:[%s10670_s21 + $0x3b] sm:$0xff] }
 0x235   : >> { %1553 = vmatmul.mubr.f32.gmra.mrb[30].mxu1 %v6839_v30  ;;  %9329 = vmatprep.subr.bf16.mxu0 %v9328_v41  ;;  %v6951_v43 = vld [vmem:[%s10670_s21 + $0x2a] sm:$0xff]  ;;  %v6952_v40 = vld [vmem:[%s10670_s21 + $0x32] sm:$0xff]  ;;  %v6954_v30 = vld [vmem:[%s10670_s21 + $0x42] sm:$0xff] }
 0x236   : >> { %1767 = vmatmul.mubr.f32.gmra.mrb[30].mxu0 %v6907_v35  ;;  %1557 = vmatprep.mubr.f32.mxu1 %v6857_v50  ;;  %v6969_v41 = vld [vmem:[%s10670_s21 + $0x33] sm:$0xff]  ;;  %v6971_v35 = vld [vmem:[%s10670_s21 + $0x43] sm:$0xff]  ;;  %v6972_v50 = vld [vmem:[%s10670_s21 + $0x4b] sm:$0xff] }
 0x237   : >> { %1771 = vmatprep.mubr.f32.mxu0 %v10794_v56  ;;  %9299 = vmatpush3.bf16.msra.mxu1 %v9298_v16  ;;  %v6973_v16 = vld [vmem:[%s10670_s21 + $0x53] sm:$0xff] }
 0x238   : >> { %9331 = vmatpush3.bf16.msra.mxu0 %v9330_v59  ;;  %v6974_v59 = vld [vmem:[%s10670_s21 + $0x5b] sm:$0xff] }
 0x239   : >> { %1558 = vmatmul.mubr.f32.gmra.mrb[32].mxu1 %v6840_v60  ;;  %v6975_v60 = vld [vmem:[%s10670_s21 + $0x63] sm:$0xff] }
 0x23a   : >> { %1772 = vmatmul.mubr.f32.gmra.mrb[32].mxu0 %v6908_v57  ;;  %1562 = vmatprep.mubr.f32.mxu1 %v6858_v1  ;;  %v6976_v57 = vld [vmem:[%s10670_s21 + $0x6b] sm:$0xff]  ;;  %v6977_v1 = vld [vmem:[%s10670_s21 + $0x73] sm:$0xff] }
 0x23b   : >> { %1776 = vmatprep.mubr.f32.mxu0 %v10801_v2 }
 0x23d   : >> { %1563 = vmatmul.mubr.f32.gmra.mrb[34].mxu1 %v6841_v61  ;;  %v6978_v61 = vld [vmem:[%s10670_s21 + $0x7b] sm:$0xff] }
 0x23e   : >> { %1777 = vmatmul.mubr.f32.gmra.mrb[34].mxu0 %v6909_v37  ;;  %1567 = vmatprep.mubr.f32.mxu1 %v6859_v3  ;;  %v6979_v37 = vld [vmem:[%s10670_s21 + $0x83] sm:$0xff] }
 0x23f   : >> { %1781 = vmatprep.mubr.f32.mxu0 %v10808_v58  ;;  %v6963_v3 = vld [vmem:[%s10670_s21 + $0x8a] sm:$0xff] }
 0x241   : >> { %1568 = vmatmul.mubr.f32.gmra.mrb[36].mxu1 %v6842_v0  ;;  %v6964_v0 = vld [vmem:[%s10670_s21 + $0x92] sm:$0xff] }
 0x242   : >> { %1782 = vmatmul.mubr.f32.gmra.mrb[36].mxu0 %v6910_v28  ;;  %1572 = vmatprep.mubr.f32.mxu1 %v6860_v5  ;;  %v6981_v28 = vld [vmem:[%s10670_s21 + $0x93] sm:$0xff] }
 0x243   : >> { %1786 = vmatprep.mubr.f32.mxu0 %v10815_v6  ;;  %v6965_v5 = vld [vmem:[%s10670_s21 + $0x9a] sm:$0xff] }
 0x245   : >> { %1573 = vmatmul.mubr.f32.gmra.mrb[38].mxu1 %v6843_v13  ;;  %v6948_v13 = vld [vmem:[%s10670_s21 + $0x99] sm:$0xff] }
 0x246   : >> { %1787 = vmatmul.mubr.f32.gmra.mrb[38].mxu0 %v6911_v18  ;;  %1577 = vmatprep.mubr.f32.mxu1 %v6861_v8  ;;  %v6966_v18 = vld [vmem:[%s10670_s21 + $0xa2] sm:$0xff] }
 0x247   : >> { %1791 = vmatprep.mubr.f32.mxu0 %v10822_v17  ;;  %v6983_v8 = vld [vmem:[%s10670_s21 + $0xa3] sm:$0xff] }
 0x249   : >> { %1578 = vmatmul.mubr.f32.gmra.mrb[40].mxu1 %v6844_v62  ;;  %v10897_v62 = vstv %s2326_s11 }
 0x24a   : >> { %1792 = vmatmul.mubr.f32.gmra.mrb[40].mxu0 %v6912_v36  ;;  %1582 = vmatprep.mubr.f32.mxu1 %v6862_v21  ;;  %v2328_v36 = vadd.s32 %v10897_v62, %v12757_v42 }
 0x24b   : >> { %1796 = vmatprep.mubr.f32.mxu0 %v10829_v32 }
 0x24c   : >> { %v6985_v21 = vadd.s32 4294967278, %v2328_v36  ;;  %vm2344_vm11 = vcmp.ge.s32.totalorder %v2328_v36, 18 }
 0x24d   : >> { %1583 = vmatmul.mubr.f32.gmra.mrb[42].mxu1 %v6845_v26  ;;  %v2329_v26 = vadd.s32 %v10897_v62, %v12761_v44 }
 0x24e   : >> { %1797 = vmatmul.mubr.f32.gmra.mrb[42].mxu0 %v6913_v63  ;;  %1587 = vmatprep.mubr.f32.mxu1 %v6863_v4 }
 0x24f   : >> { %1801 = vmatprep.mubr.f32.mxu0 %v10836_v25  ;;  %v6986_v4 = vadd.s32 4294967278, %v2329_v26  ;;  %vm2345_vm2 = vcmp.ge.s32.totalorder %v2329_v26, 18 }
 0x251   : >> { %1588 = vmatmul.mubr.f32.gmra.mrb[44].mxu1 %v6846_v29  ;;  %v2330_v29 = vadd.s32 %v10897_v62, %v12764_v11 }
 0x252   : >> { %1802 = vmatmul.mubr.f32.gmra.mrb[44].mxu0 %v6914_v22  ;;  %1592 = vmatprep.mubr.f32.mxu1 %v6864_v34  ;;  %v2377_v22 = vsel %vm2345_vm2, %v6986_v4, %v2329_v26 }
 0x253   : >> { %1806 = vmatprep.mubr.f32.mxu0 %v10843_v20  ;;  %vm2393_vm0 = vcmp.ge.s32.totalorder %v2377_v22, 18  ;;  %vm2346_vm13 = vcmp.ge.s32.totalorder %v2330_v29, 18 }
 0x255   : >> { %1593 = vmatmul.mubr.f32.gmra.mrb[46].mxu1 %v6847_v23  ;;  %v6987_v23 = vadd.s32 4294967278, %v2330_v29 }
 0x256   : >> { %1807 = vmatmul.mubr.f32.gmra.mrb[46].mxu0 %v6915_v24  ;;  %1961 = vmatprep.mubr.f32.mxu1 %v6951_v43 }
 0x257   : >> { %2173 = vmatprep.mubr.f32.mxu0 %v6968_v53 }
 0x259   : >> { %1962 = vmatmul.mubr.f32.vlgmr.msra.gmra.mrb[48].mxu1 %v10752_v51  ;;  %v6955_v51 = vld [vmem:[%s10670_s21 + $0x4a] sm:$0xff] }
 0x25a   : >> { %2174 = vmatmul.mubr.f32.vlgmr.msra.gmra.mrb[48].mxu0 %v6968_v53  ;;  %1966 = vmatprep.mubr.f32.mxu1 %v6952_v40  ;;  %v2378_v53 = vsel %vm2346_vm13, %v6987_v23, %v2330_v29 }
 0x25b   : >> { %2178 = vmatprep.mubr.f32.mxu0 %v6969_v41  ;;  %vm2394_vm5 = vcmp.ge.s32.totalorder %v2378_v53, 18 }
 0x25d   : >> { %1967 = vmatmul.mubr.f32.gmra.mrb[50].mxu1 %v10759_v7  ;;  %v6956_v7 = vld [vmem:[%s10670_s21 + $0x52] sm:$0xff] }
 0x25e   : >> { %2179 = vmatmul.mubr.f32.gmra.mrb[50].mxu0 %v6969_v41  ;;  %1971 = vmatprep.mubr.f32.mxu1 %v6953_v48  ;;  %v7003_v48 = vadd.s32 4294967278, %v2378_v53 }
 0x25f   : >> { %2183 = vmatprep.mubr.f32.mxu0 %v6970_v47 }
 0x261   : >> { %1972 = vmatmul.mubr.f32.gmra.mrb[52].mxu1 %v10766_v33  ;;  %v6957_v33 = vld [vmem:[%s10670_s21 + $0x5a] sm:$0xff] }
 0x262   : >> { %2184 = vmatmul.mubr.f32.gmra.mrb[52].mxu0 %v6970_v47  ;;  %1976 = vmatprep.mubr.f32.mxu1 %v6954_v30  ;;  %v2331_v47 = vadd.s32 %v10897_v62, %v12765_v54 }
 0x263   : >> { %2188 = vmatprep.mubr.f32.mxu0 %v6971_v35 }
 0x264   : >> { %vm2347_vm8 = vcmp.ge.s32.totalorder %v2331_v47, 18 }
 0x265   : >> { %1977 = vmatmul.mubr.f32.gmra.mrb[54].mxu1 %v10773_v49  ;;  %v6958_v49 = vld [vmem:[%s10670_s21 + $0x62] sm:$0xff] }
 0x266   : >> { %2189 = vmatmul.mubr.f32.gmra.mrb[54].mxu0 %v6971_v35  ;;  %1981 = vmatprep.mubr.f32.mxu1 %v6955_v51  ;;  %v2426_v51 = vsel %vm2394_vm5, %v7003_v48, %v2378_v53 }
 0x267   : >> { %2193 = vmatprep.mubr.f32.mxu0 %v6972_v50  ;;  %vm2442_vm6 = vcmp.ge.s32.totalorder %v2426_v51, 18 }
 0x269   : >> { %1982 = vmatmul.mubr.f32.gmra.mrb[56].mxu1 %v10780_v19  ;;  %v6959_v19 = vld [vmem:[%s10670_s21 + $0x6a] sm:$0xff] }
 0x26a   : >> { %2194 = vmatmul.mubr.f32.gmra.mrb[56].mxu0 %v6972_v50  ;;  %1986 = vmatprep.mubr.f32.mxu1 %v6956_v7  ;;  %v6988_v50 = vadd.s32 4294967278, %v2331_v47 }
 0x26b   : >> { %2198 = vmatprep.mubr.f32.mxu0 %v6973_v16 }
 0x26d   : >> { %1987 = vmatmul.mubr.f32.gmra.mrb[58].mxu1 %v10787_v38  ;;  %v6960_v38 = vld [vmem:[%s10670_s21 + $0x72] sm:$0xff] }
 0x26e   : >> { %2199 = vmatmul.mubr.f32.gmra.mrb[58].mxu0 %v6973_v16  ;;  %1991 = vmatprep.mubr.f32.mxu1 %v6957_v33  ;;  %v7019_v33 = vadd.s32 4294967278, %v2426_v51 }
 0x26f   : >> { %2203 = vmatprep.mubr.f32.mxu0 %v6974_v59 }
 0x271   : >> { %1992 = vmatmul.mubr.f32.gmra.mrb[60].mxu1 %v10794_v56  ;;  %v6961_v56 = vld [vmem:[%s10670_s21 + $0x7a] sm:$0xff] }
 0x272   : >> { %2204 = vmatmul.mubr.f32.gmra.mrb[60].mxu0 %v6974_v59  ;;  %1996 = vmatprep.mubr.f32.mxu1 %v6958_v49  ;;  %v2379_v59 = vsel %vm2347_vm8, %v6988_v50, %v2331_v47 }
 0x273   : >> { %2208 = vmatprep.mubr.f32.mxu0 %v6975_v60  ;;  %vm2395_vm9 = vcmp.ge.s32.totalorder %v2379_v59, 18 }
 0x275   : >> { %1997 = vmatmul.mubr.f32.gmra.mrb[62].mxu1 %v10801_v2  ;;  %v6962_v2 = vld [vmem:[%s10670_s21 + $0x82] sm:$0xff] }
 0x276   : >> { %2209 = vmatmul.mubr.f32.gmra.mrb[62].mxu0 %v6975_v60  ;;  %2001 = vmatprep.mubr.f32.mxu1 %v6959_v19  ;;  %v2474_v19 = vsel %vm2442_vm6, %v7019_v33, %v2426_v51 }
 0x277   : >> { %2213 = vmatprep.mubr.f32.mxu0 %v6976_v57 }
 0x279   : >> { %2002 = vmatmul.mubr.f32.gmra.mrb[64].mxu1 %v10808_v58  ;;  %v6980_v58 = vld [vmem:[%s10670_s21 + $0x8b] sm:$0xff] }
 0x27a   : >> { %2214 = vmatmul.mubr.f32.gmra.mrb[64].mxu0 %v6976_v57  ;;  %2006 = vmatprep.mubr.f32.mxu1 %v6960_v38  ;;  %v7004_v57 = vadd.s32 4294967278, %v2379_v59 }
 0x27b   : >> { %2218 = vmatprep.mubr.f32.mxu0 %v6977_v1 }
 0x27d   : >> { %2007 = vmatmul.mubr.f32.gmra.mrb[66].mxu1 %v10815_v6  ;;  %v6982_v6 = vld [vmem:[%s10670_s21 + $0x9b] sm:$0xff] }
 0x27e   : >> { %2219 = vmatmul.mubr.f32.gmra.mrb[66].mxu0 %v6977_v1  ;;  %2011 = vmatprep.mubr.f32.mxu1 %v6961_v56 }
 0x27f   : >> { %2223 = vmatprep.mubr.f32.mxu0 %v6978_v61 }
 0x281   : >> { %2012 = vmatmul.mubr.f32.gmra.mrb[68].mxu1 %v10822_v17  ;;  %v6949_v17 = vld [vmem:[%s10670_s21 + $0xa1] sm:$0xff] }
 0x282   : >> { %2224 = vmatmul.mubr.f32.gmra.mrb[68].mxu0 %v6978_v61  ;;  %2016 = vmatprep.mubr.f32.mxu1 %v6962_v2 }
 0x283   : >> { %2228 = vmatprep.mubr.f32.mxu0 %v6979_v37 }
 0x285   : >> { %2017 = vmatmul.mubr.f32.gmra.mrb[70].mxu1 %v10829_v32  ;;  %v2376_v32 = vsel %vm2344_vm11, %v6985_v21, %v2328_v36  ;;  %vm2490_vm11 = vcmp.ge.s32.totalorder %v2474_v19, 18 }
 0x286   : >> { %2229 = vmatmul.mubr.f32.gmra.mrb[70].mxu0 %v6979_v37  ;;  %2021 = vmatprep.mubr.f32.mxu1 %v6963_v3  ;;  %v7001_v63 = vadd.s32 4294967278, %v2376_v32  ;;  %vm2392_vm14 = vcmp.ge.s32.totalorder %v2376_v32, 18  ;;  %v7035_v3 = vadd.s32 4294967278, %v2474_v19 }
 0x287   : >> { %2233 = vmatprep.mubr.f32.mxu0 %v6980_v58 }
 0x288   : >> { %v2522_v36 = vsel %vm2490_vm11, %v7035_v3, %v2474_v19 }
 0x289   : >> { %2022 = vmatmul.mubr.f32.gmra.mrb[72].mxu1 %v10836_v25  ;;  %v2424_v25 = vsel %vm2392_vm14, %v7001_v63, %v2376_v32  ;;  %v2332_v63 = vadd.s32 %v10897_v62, %v12762_v39  ;;  %v7051_v23 = vadd.s32 4294967278, %v2522_v36 }
 0x28a   : >> { %2234 = vmatmul.mubr.f32.gmra.mrb[72].mxu0 %v6980_v58  ;;  %2026 = vmatprep.mubr.f32.mxu1 %v6964_v0  ;;  %v7017_v34 = vadd.s32 4294967278, %v2424_v25  ;;  %vm2440_vm1 = vcmp.ge.s32.totalorder %v2424_v25, 18 }
 0x28b   : >> { %2238 = vmatprep.mubr.f32.mxu0 %v6981_v28  ;;  %vm2348_vm13 = vcmp.ge.s32.totalorder %v2332_v63, 18 }
 0x28c   : >> { %v2472_v24 = vsel %vm2440_vm1, %v7017_v34, %v2424_v25  ;;  %vm2538_vm1 = vcmp.ge.s32.totalorder %v2522_v36, 18 }
 0x28d   : >> { %2027 = vmatmul.mubr.f32.gmra.mrb[74].mxu1 %v10843_v20  ;;  %v7002_v20 = vadd.s32 4294967278, %v2377_v22  ;;  %v7033_v40 = vadd.s32 4294967278, %v2472_v24  ;;  %vm2488_vm15 = vcmp.ge.s32.totalorder %v2472_v24, 18  ;;  %v2570_v50 = vsel %vm2538_vm1, %v7051_v23, %v2522_v36 }
 0x28e   : >> { %2239 = vmatmul.mubr.f32.gmra.mrb[74].mxu0 %v6981_v28  ;;  %2031 = vmatprep.mubr.f32.mxu1 %v6965_v5  ;;  %v2427_v28 = vsel %vm2395_vm9, %v7004_v57, %v2379_v59  ;;  %v7067_v57 = vadd.s32 4294967278, %v2570_v50  ;;  %vm2586_vm5 = vcmp.ge.s32.totalorder %v2570_v50, 18 }
 0x28f   : >> { %2243 = vmatprep.mubr.f32.mxu0 %v6982_v6  ;;  %v2425_v43 = vsel %vm2393_vm0, %v7002_v20, %v2377_v22  ;;  %v2520_v30 = vsel %vm2488_vm15, %v7033_v40, %v2472_v24  ;;  %v7020_v21 = vadd.s32 4294967278, %v2427_v28  ;;  %vm2443_vm14 = vcmp.ge.s32.totalorder %v2427_v28, 18 }
 0x290   : >> { %v7018_v41 = vadd.s32 4294967278, %v2425_v43  ;;  %vm2441_vm3 = vcmp.ge.s32.totalorder %v2425_v43, 18  ;;  %v7049_v7 = vadd.s32 4294967278, %v2520_v30  ;;  %vm2536_vm12 = vcmp.ge.s32.totalorder %v2520_v30, 18 }
 0x291   : >> { %2032 = vmatmul.mubr.f32.gmra.mrb[76].mxu1 %v6948_v13  ;;  %v2475_v24 = vsel %vm2443_vm14, %v7020_v21, %v2427_v28  ;;  %v6989_v40 = vadd.s32 4294967278, %v2332_v63 }
 0x292   : >> { %2244 = vmatmul.mubr.f32.gmra.mrb[76].mxu0 %v6982_v6  ;;  %2036 = vmatprep.mubr.f32.mxu1 %v6966_v18  ;;  %v2473_v35 = vsel %vm2441_vm3, %v7018_v41, %v2425_v43  ;;  %v2568_v49 = vsel %vm2536_vm12, %v7049_v7, %v2520_v30  ;;  %v7036_v30 = vadd.s32 4294967278, %v2475_v24  ;;  %vm2491_vm15 = vcmp.ge.s32.totalorder %v2475_v24, 18 }
 0x293   : >> { %2248 = vmatprep.mubr.f32.mxu0 %v6983_v8  ;;  %v7034_v16 = vadd.s32 4294967278, %v2473_v35  ;;  %vm2489_vm4 = vcmp.ge.s32.totalorder %v2473_v35, 18  ;;  %v7065_v56 = vadd.s32 4294967278, %v2568_v49  ;;  %vm2584_vm10 = vcmp.ge.s32.totalorder %v2568_v49, 18 }
 0x294   : >> { %v2380_v59 = vsel %vm2348_vm13, %v6989_v40, %v2332_v63 }
 0x295   : >> { %2037 = vmatmul.mubr.f32.gmra.mrb[78].mxu1 %v6949_v17  ;;  %v2521_v60 = vsel %vm2489_vm4, %v7034_v16, %v2473_v35  ;;  %vm2396_vm8 = vcmp.ge.s32.totalorder %v2380_v59, 18 }
 0x296   : >> { %2249 = vmatmul.mubr.f32.gmra.mrb[78].mxu0 %v6983_v8  ;;  %vm2537_vm7 = vcmp.ge.s32.totalorder %v2521_v60, 18  ;;  %v7050_v37 = vadd.s32 4294967278, %v2521_v60  ;;  %v2616_v8 = vsel %vm2584_vm10, %v7065_v56, %v2568_v49 }
 0x297   : >> { %v7081_v20 = vadd.s32 4294967278, %v2616_v8  ;;  %vm2632_vm0 = vcmp.ge.s32.totalorder %v2616_v8, 18 }
 0x298   : >> { %v2569_v17 = vsel %vm2537_vm7, %v7050_v37, %v2521_v60  ;;  %v7005_v37 = vadd.s32 4294967278, %v2380_v59 }
 0x299   : >> { %v7066_v29 = vadd.s32 4294967278, %v2569_v17  ;;  %vm2585_vm2 = vcmp.ge.s32.totalorder %v2569_v17, 18  ;;  %v2664_v33 = vsel %vm2632_vm0, %v7081_v20, %v2616_v8 }
 0x29a   : >> { %vm2680_vm12 = vcmp.ge.s32.totalorder %v2664_v33, 18 }
 0x29b   : >> { %v2617_v47 = vsel %vm2585_vm2, %v7066_v29, %v2569_v17  ;;  %v2618_v17 = vsel %vm2586_vm5, %v7067_v57, %v2570_v50 }
 0x29c   : >> { %v7082_v49 = vadd.s32 4294967278, %v2617_v47  ;;  %vm2633_vm3 = vcmp.ge.s32.totalorder %v2617_v47, 18  ;;  %v7083_v23 = vadd.s32 4294967278, %v2618_v17  ;;  %vm2634_vm10 = vcmp.ge.s32.totalorder %v2618_v17, 18 }
 0x2cc   : >> { %v7852_v38 = vpop.f32.mrb[0].mxu1  ;;  %v7828_v1 = vpop.f32.mrb[0].mxu0 }
 0x2cd   : >> { %v7853_v61 = vpop.f32.mrb[1].mxu1  ;;  %v7829_v2 = vpop.f32.mrb[1].mxu0 }
 0x2ce   : >> { %v10907_v58 = vadd.f32 %v7853_v61, %v7852_v38  ;;  %v10909_v0 = vadd.f32 %v7829_v2, %v7828_v1  ;;  %v2523_v38 = vsel %vm2491_vm15, %v7036_v30, %v2475_v24  ;;  %v2333_v1 = vadd.s32 %v10897_v62, %v12763_v15 }
 0x2cf   : >> { %v7097_v2 = vadd.s32 4294967278, %v2664_v33  ;;  %vm2539_vm4 = vcmp.ge.s32.totalorder %v2523_v38, 18  ;;  %v2334_v30 = vadd.s32 %v10897_v62, %v12758_v14 }
 0x2d0   : >> { %v7855_v5 = vpop.f32.mrb[2].mxu1  ;;  %v7831_v6 = vpop.f32.mrb[2].mxu0  ;;  %v6990_v36 = vadd.s32 4294967278, %v2333_v1  ;;  %vm2349_vm6 = vcmp.ge.s32.totalorder %v2333_v1, 18 }
 0x2d1   : >> { %v7856_v13 = vpop.f32.mrb[3].mxu1  ;;  %v7832_v18 = vpop.f32.mrb[3].mxu0  ;;  %vm2350_vm13 = vcmp.ge.s32.totalorder %v2334_v30, 18 }
 0x2d2   : >> { %v10911_v32 = vadd.f32 %v7856_v13, %v7855_v5  ;;  %v10913_v26 = vadd.f32 %v7832_v18, %v7831_v6  ;;  %v10932_v5 = vstv %s10667_s15  ;;  %v2665_v6 = vsel %vm2633_vm3, %v7082_v49, %v2617_v47 }
 0x2d3   : >> { %v7052_v13 = vadd.s32 4294967278, %v2523_v38  ;;  %v7098_v20 = vadd.s32 4294967278, %v2665_v6  ;;  %vm2681_vm9 = vcmp.ge.s32.totalorder %v2665_v6, 18  ;;  %v2381_v47 = vsel %vm2349_vm6, %v6990_v36, %v2333_v1 }
 0x2d4   : >> { %v7858_v4 = vpop.f32.mrb[4].mxu1  ;;  %v7834_v25 = vpop.f32.mrb[4].mxu0  ;;  %v7006_v57 = vadd.s32 4294967278, %v2381_v47  ;;  %vm2397_vm1 = vcmp.ge.s32.totalorder %v2381_v47, 18 }
 0x2d5   : >> { %v7859_v22 = vpop.f32.mrb[5].mxu1  ;;  %v7835_v34 = vpop.f32.mrb[5].mxu0  ;;  %v2571_v24 = vsel %vm2539_vm4, %v7052_v13, %v2523_v38 }
 0x2d6   : >> { %v10917_v43 = vadd.f32 %v7859_v22, %v7858_v4  ;;  %v10919_v53 = vadd.f32 %v7835_v34, %v7834_v25  ;;  %v2729_v4 = vadd.s32 %v10932_v5, %v12757_v42  ;;  %v2428_v25 = vsel %vm2396_vm8, %v7005_v37, %v2380_v59 }
 0x2d7   : >> { %v2712_v34 = vsel %vm2680_vm12, %v7097_v2, %v2664_v33  ;;  %vm2444_vm14 = vcmp.ge.s32.totalorder %v2428_v25, 18  ;;  %v2713_v59 = vsel %vm2681_vm9, %v7098_v20, %v2665_v6  ;;  %v7068_v49 = vadd.s32 4294967278, %v2571_v24 }
 0x2d8   : >> { %v7861_v41 = vpop.f32.mrb[6].mxu1  ;;  %v7837_v48 = vpop.f32.mrb[6].mxu0  ;;  %vm2745_vm7 = vcmp.lt.s32.totalorder %v2712_v34, 16  ;;  %vm2761_vm11 = vcmp.lt.s32.totalorder %v2729_v4, 288  ;;  %vm2587_vm2 = vcmp.ge.s32.totalorder %v2571_v24, 18  ;;  %vm2746_vm0 = vcmp.lt.s32.totalorder %v2713_v59, 16 }
 0x2d9   : >> { %v7862_v35 = vpop.f32.mrb[7].mxu1  ;;  %v7838_v51 = vpop.f32.mrb[7].mxu0  ;;  %vm2777_vm15 = vmand %vm2745_vm7, %vm2761_vm11  ;;  %v2429_v36 = vsel %vm2397_vm1, %v7006_v57, %v2381_v47  ;;  %v2731_v4 = vadd.s32 %v10932_v5, %v12764_v11 }
 0x2da   : >> { %v10921_v7 = vadd.f32 %v7862_v35, %v7861_v41  ;;  %v10923_v16 = vadd.f32 %v7838_v51, %v7837_v48  ;;  %v7021_v48 = vadd.s32 4294967278, %v2428_v25  ;;  %vm2445_vm6 = vcmp.ge.s32.totalorder %v2429_v36, 18 }
 0x2db   : >> { %vm2763_vm11 = vcmp.lt.s32.totalorder %v2731_v4, 288 }
 0x2dc   : >> { %v7864_v60 = vpop.f32.mrb[8].mxu1  ;;  %v7840_v19 = vpop.f32.mrb[8].mxu0 }
 0x2dd   : >> { %v7865_v56 = vpop.f32.mrb[9].mxu1  ;;  %v7841_v61 = vpop.f32.mrb[9].mxu0 }
 0x2de   : >> { %v10927_v3 = vadd.f32 %v7865_v56, %v7864_v60  ;;  %v10929_v28 = vadd.f32 %v7841_v61, %v7840_v19  ;;  %v2730_v60 = vadd.s32 %v10932_v5, %v12761_v44  ;;  %v2666_v19 = vsel %vm2634_vm10, %v7083_v23, %v2618_v17 }
 0x2df   : >> { %v2476_v56 = vsel %vm2444_vm14, %v7021_v48, %v2428_v25  ;;  %v6991_v61 = vadd.s32 4294967278, %v2334_v30  ;;  %v7099_v6 = vadd.s32 4294967278, %v2666_v19  ;;  %vm2682_vm5 = vcmp.ge.s32.totalorder %v2666_v19, 18 }
 0x2e0   : >> { %v7867_v18 = vpop.f32.mrb[10].mxu1  ;;  %v7843_v8 = vpop.f32.mrb[10].mxu0  ;;  %vm2762_vm3 = vcmp.lt.s32.totalorder %v2730_v60, 288  ;;  %v7037_v17 = vadd.s32 4294967278, %v2476_v56  ;;  %vm2492_vm8 = vcmp.ge.s32.totalorder %v2476_v56, 18  ;;  %v2335_v25 = vadd.s32 %v10897_v62, %v12759_v27 }
 0x2e1   : >> { %v7868_v21 = vpop.f32.mrb[11].mxu1  ;;  %v7844_v63 = vpop.f32.mrb[11].mxu0  ;;  %vm2778_vm12 = vmand %vm2746_vm0, %vm2762_vm3  ;;  %v2714_v47 = vsel %vm2682_vm5, %v7099_v6, %v2666_v19 }
 0x2e2   : >> { %v10936_v29 = vadd.f32 %v7868_v21, %v7867_v18  ;;  %v10938_v22 = vadd.f32 %v7844_v63, %v7843_v8  ;;  %v2619_v8 = vsel %vm2587_vm2, %v7068_v49, %v2571_v24  ;;  %v2382_v63 = vsel %vm2350_vm13, %v6991_v61, %v2334_v30 }
 0x2e3   : >> { %v7084_v34 = vadd.s32 4294967278, %v2619_v8  ;;  %vm2635_vm4 = vcmp.ge.s32.totalorder %v2619_v8, 18  ;;  %v7022_v30 = vadd.s32 4294967278, %v2429_v36  ;;  %v7007_v49 = vadd.s32 4294967278, %v2382_v63 }
 0x2e4   : >> { %v7870_v40 = vpop.f32.mrb[12].mxu1  ;;  %v7846_v41 = vpop.f32.mrb[12].mxu0  ;;  %vm2398_vm9 = vcmp.ge.s32.totalorder %v2382_v63, 18  ;;  %v2336_v61 = vadd.s32 %v10897_v62, %v12760_v46  ;;  %vm2747_vm10 = vcmp.lt.s32.totalorder %v2714_v47, 16  ;;  %vm2351_vm7 = vcmp.ge.s32.totalorder %v2335_v25, 18 }
 0x2e5   : >> { %v7871_v35 = vpop.f32.mrb[13].mxu1  ;;  %v7847_v51 = vpop.f32.mrb[13].mxu0  ;;  %v2667_v19 = vsel %vm2635_vm4, %v7084_v34, %v2619_v8  ;;  %vm2779_vm13 = vmand %vm2747_vm10, %vm2763_vm11 }
 0x2e6   : >> { %v10942_v50 = vadd.f32 %v7871_v35, %v7870_v40  ;;  %v10944_v33 = vadd.f32 %v7847_v51, %v7846_v41  ;;  %v12634_v40 = vmov 0.0   ;;  %v2524_v51 = vsel %vm2492_vm8, %v7037_v17, %v2476_v56 }
 0x2e7   : >> { %v10958_v41 = vsel %vm2777_vm15, 1.0, %v12634_v40  ;;  %v7053_v17 = vadd.s32 4294967278, %v2524_v51  ;;  %vm2540_vm14 = vcmp.ge.s32.totalorder %v2524_v51, 18  ;;  %v6993_v34 = vadd.s32 4294967278, %v2336_v61 }
 0x2e8   : >> { %v7873_v38 = vpop.f32.mrb[14].mxu1  ;;  %v7849_v1 = vpop.f32.mrb[14].mxu0  ;;  %vm2683_vm2 = vcmp.ge.s32.totalorder %v2667_v19, 18  ;;  %vm2352_vm0 = vcmp.ge.s32.totalorder %v2336_v61, 18  ;;  %v10990_v4 = vsel %vm2779_vm13, 1.0, %v12634_v40 }
 0x2e9   : >> { %v7874_v2 = vpop.f32.mrb[15].mxu1  ;;  %v7850_v37 = vpop.f32.mrb[15].mxu0 }
 0x2ea   : >> { %v10949_v13 = vadd.f32 %v7874_v2, %v7873_v38  ;;  %v10951_v18 = vadd.f32 %v7850_v37, %v7849_v1  ;;  %v6992_v1 = vadd.s32 4294967278, %v2335_v25  ;;  %v10970_v2 = vsel %vm2778_vm12, 1.0, %v12634_v40 }
 0x2ec   : >> { %v7908_v21 = vpop.f32.mrb[16].mxu1  ;;  %v2383_v8 = vsel %vm2351_vm7, %v6992_v1, %v2335_v25 }
 0x2ed   : >> { %v7909_v20 = vpop.f32.mrb[17].mxu1  ;;  %v7988_v23 = vpop.f32.mrb[16].mxu0  ;;  %v7008_v25 = vadd.s32 4294967278, %v2383_v8  ;;  %vm2399_vm3 = vcmp.ge.s32.totalorder %v2383_v8, 18 }
 0x2ee   : >> { %v7910_v24 = vadd.f32 %v7909_v20, %v7908_v21  ;;  %v7989_v48 = vpop.f32.mrb[17].mxu0  ;;  %v2430_v20 = vsel %vm2398_vm9, %v7007_v49, %v2382_v63 }
 0x2ef   : >> { %v7990_v35 = vadd.f32 %v7989_v48, %v7988_v23  ;;  %v10979_v48 = vadd.s32 %v10932_v5, %v12765_v54  ;;  %v7023_v63 = vadd.s32 4294967278, %v2430_v20  ;;  %vm2446_vm15 = vcmp.ge.s32.totalorder %v2430_v20, 18 }
 0x2f0   : >> { %v1520_v57 = vadd.f32 %v7910_v24, %v10909_v0  ;;  %v7911_v38 = vpop.f32.mrb[18].mxu1  ;;  %v2477_v0 = vsel %vm2445_vm6, %v7022_v30, %v2429_v36 }
 0x2f1   : >> { %v7912_v60 = vpop.f32.mrb[19].mxu1  ;;  %v7991_v59 = vpop.f32.mrb[18].mxu0  ;;  %vm2493_vm1 = vcmp.ge.s32.totalorder %v2477_v0, 18  ;;  %vm2764_vm5 = vcmp.lt.s32.totalorder %v10979_v48, 288 }
 0x2f2   : >> { %v10972_v37 = vadd.f32 %v7990_v35, %v1520_v57  ;;  %v7913_v56 = vadd.f32 %v7912_v60, %v7911_v38  ;;  %v7992_v6 = vpop.f32.mrb[19].mxu0  ;;  %v7038_v38 = vadd.s32 4294967278, %v2477_v0 }
 0x2f3   : >> { %v7993_v21 = vadd.f32 %v7992_v6, %v7991_v59  ;;  %v7100_v59 = vadd.s32 4294967278, %v2667_v19  ;;  %v2384_v6 = vsel %vm2352_vm0, %v6993_v34, %v2336_v61  ;;  %v2478_v61 = vsel %vm2446_vm15, %v7023_v63, %v2430_v20 }
 0x2f4   : >> { %v1525_v23 = vadd.f32 %v7913_v56, %v10913_v26  ;;  %v7914_v24 = vpop.f32.mrb[20].mxu1  ;;  %v2572_v26 = vsel %vm2540_vm14, %v7053_v17, %v2524_v51  ;;  %v2525_v51 = vsel %vm2493_vm1, %v7038_v38, %v2477_v0  ;;  %vm2400_vm4 = vcmp.ge.s32.totalorder %v2384_v6, 18 }
 0x2f5   : >> { %v7915_v35 = vpop.f32.mrb[21].mxu1  ;;  %v7994_v57 = vpop.f32.mrb[20].mxu0  ;;  %v7069_v47 = vadd.s32 4294967278, %v2572_v26  ;;  %vm2588_vm8 = vcmp.ge.s32.totalorder %v2572_v26, 18  ;;  %vm2541_vm12 = vcmp.ge.s32.totalorder %v2525_v51, 18  ;;  %vm2494_vm9 = vcmp.ge.s32.totalorder %v2478_v61, 18 }
 0x2f6   : >> { %v10981_v36 = vadd.f32 %v7993_v21, %v1525_v23  ;;  %v7916_v30 = vadd.f32 %v7915_v35, %v7914_v24  ;;  %v7995_v60 = vpop.f32.mrb[21].mxu0  ;;  %v2337_v21 = vadd.s32 %v10897_v62, %v12754_v45 }
 0x2f7   : >> { %v7996_v49 = vadd.f32 %v7995_v60, %v7994_v57  ;;  %v2715_v57 = vsel %vm2683_vm2, %v7100_v59, %v2667_v19  ;;  %v7009_v60 = vadd.s32 4294967278, %v2384_v6 }
 0x2f8   : >> { %v1530_v1 = vadd.f32 %v7916_v30, %v10919_v53  ;;  %v7917_v56 = vpop.f32.mrb[22].mxu1  ;;  %v2431_v30 = vsel %vm2399_vm3, %v7008_v25, %v2383_v8  ;;  %v6994_v11 = vadd.s32 4294967278, %v2337_v21  ;;  %vm2353_vm6 = vcmp.ge.s32.totalorder %v2337_v21, 18 }
 0x2f9   : >> { %v7918_v23 = vpop.f32.mrb[23].mxu1  ;;  %v7997_v24 = vpop.f32.mrb[22].mxu0  ;;  %v7024_v19 = vadd.s32 4294967278, %v2431_v30  ;;  %vm2447_vm10 = vcmp.ge.s32.totalorder %v2431_v30, 18  ;;  %v2432_v59 = vsel %vm2400_vm4, %v7009_v60, %v2384_v6  ;;  %vm2748_vm7 = vcmp.lt.s32.totalorder %v2715_v57, 16 }
 0x2fa   : >> { %v10994_v17 = vadd.f32 %v7996_v49, %v1530_v1  ;;  %v7919_v35 = vadd.f32 %v7918_v23, %v7917_v56  ;;  %v7998_v53 = vpop.f32.mrb[23].mxu0  ;;  %v2620_v49 = vsel %vm2588_vm8, %v7069_v47, %v2572_v26  ;;  %v7054_v1 = vadd.s32 4294967278, %v2525_v51  ;;  %vm11023_vm2 = vmand %vm2748_vm7, %vm2764_vm5 }
 0x2fb   : >> { %v7999_v34 = vadd.f32 %v7998_v53, %v7997_v24  ;;  %v7039_v56 = vadd.s32 4294967278, %v2478_v61  ;;  %vm2636_vm11 = vcmp.ge.s32.totalorder %v2620_v49, 18  ;;  %vm2448_vm14 = vcmp.ge.s32.totalorder %v2432_v59, 18 }
 0x2fc   : >> { %v1535_v40 = vadd.f32 %v7919_v35, %v10923_v16  ;;  %v7920_v54 = vpop.f32.mrb[24].mxu1  ;;  %v11004_v16 = vadd.s32 %v10932_v5, %v12762_v39  ;;  %v7085_v35 = vadd.s32 4294967278, %v2620_v49  ;;  %v2573_v53 = vsel %vm2541_vm12, %v7054_v1, %v2525_v51 }
 0x2fd   : >> { %v7921_v0 = vpop.f32.mrb[25].mxu1  ;;  %v8000_v38 = vpop.f32.mrb[24].mxu0  ;;  %vm2589_vm1 = vcmp.ge.s32.totalorder %v2573_v53, 18 }
 0x2fe   : >> { %v11000_v23 = vadd.f32 %v7999_v34, %v1535_v40  ;;  %v7922_v20 = vadd.f32 %v7921_v0, %v7920_v54  ;;  %v8001_v63 = vpop.f32.mrb[25].mxu0  ;;  %v11010_v40 = vadd.s32 %v10932_v5, %v12763_v15  ;;  %v2385_v54 = vsel %vm2353_vm6, %v6994_v11, %v2337_v21 }
 0x2ff   : >> { %v8002_v8 = vadd.f32 %v8001_v63, %v8000_v38  ;;  %v2526_v34 = vsel %vm2494_vm9, %v7039_v56, %v2478_v61  ;;  %v7025_v38 = vadd.s32 4294967278, %v2432_v59  ;;  %v7010_v63 = vadd.s32 4294967278, %v2385_v54 }
 0x300   : >> { %v1540_v25 = vadd.f32 %v7922_v20, %v10929_v28  ;;  %v7923_v26 = vpop.f32.mrb[26].mxu1  ;;  %v2479_v28 = vsel %vm2447_vm10, %v7024_v19, %v2431_v30  ;;  %v2338_v11 = vadd.s32 %v10897_v62, %v12755_v12  ;;  %v7070_v61 = vadd.s32 4294967278, %v2573_v53 }
 0x301   : >> { %v7924_v24 = vpop.f32.mrb[27].mxu1  ;;  %v8003_v47 = vpop.f32.mrb[26].mxu0  ;;  %vm2401_vm0 = vcmp.ge.s32.totalorder %v2385_v54, 18  ;;  %v2668_v56 = vsel %vm2636_vm11, %v7085_v35, %v2620_v49  ;;  %vm2542_vm13 = vcmp.ge.s32.totalorder %v2526_v34, 18  ;;  %v7055_v19 = vadd.s32 4294967278, %v2526_v34 }
 0x302   : >> { %v11014_v0 = vadd.f32 %v8002_v8, %v1540_v25  ;;  %v7925_v6 = vadd.f32 %v7924_v24, %v7923_v26  ;;  %v8004_v60 = vpop.f32.mrb[27].mxu0  ;;  %v7040_v8 = vadd.s32 4294967278, %v2479_v28  ;;  %vm2495_vm15 = vcmp.ge.s32.totalorder %v2479_v28, 18 }
 0x303   : >> { %v8005_v20 = vadd.f32 %v8004_v60, %v8003_v47  ;;  %v2480_v48 = vsel %vm2448_vm14, %v7025_v38, %v2432_v59  ;;  %v12768_v24 = vmov 0.0   ;;  %v6995_v60 = vadd.s32 4294967278, %v2338_v11 }
 0x304   : >> { %v1545_v21 = vadd.f32 %v7925_v6, %v10938_v22  ;;  %v7926_v15 = vpop.f32.mrb[28].mxu1  ;;  %v11034_v47 = vsel %vm11023_vm2, 1.0, %v12768_v24  ;;  %v2433_v6 = vsel %vm2401_vm0, %v7010_v63, %v2385_v54  ;;  %v7101_v39 = vadd.s32 4294967278, %v2668_v56 }
 0x305   : >> { %v7927_v30 = vpop.f32.mrb[29].mxu1  ;;  %v8006_v1 = vpop.f32.mrb[28].mxu0  ;;  %vm2354_vm3 = vcmp.ge.s32.totalorder %v2338_v11, 18  ;;  %vm2684_vm5 = vcmp.ge.s32.totalorder %v2668_v56, 18  ;;  %vm2765_vm8 = vcmp.lt.s32.totalorder %v11004_v16, 288  ;;  %v2574_v59 = vsel %vm2542_vm13, %v7055_v19, %v2526_v34 }
 0x306   : >> { %v11028_v25 = vadd.f32 %v8005_v20, %v1545_v21  ;;  %v7928_v22 = vadd.f32 %v7927_v30, %v7926_v15  ;;  %v8007_v26 = vpop.f32.mrb[29].mxu0  ;;  %v2621_v20 = vsel %vm2589_vm1, %v7070_v61, %v2573_v53  ;;  %v2527_v38 = vsel %vm2495_vm15, %v7040_v8, %v2479_v28 }
 0x307   : >> { %v8008_v57 = vadd.f32 %v8007_v26, %v8006_v1  ;;  %v7041_v51 = vadd.s32 4294967278, %v2480_v48  ;;  %vm2496_vm12 = vcmp.ge.s32.totalorder %v2480_v48, 18  ;;  %vm2449_vm4 = vcmp.ge.s32.totalorder %v2433_v6, 18 }
 0x308   : >> { %v1550_v49 = vadd.f32 %v7928_v22, %v10944_v33  ;;  %v7929_v35 = vpop.f32.mrb[30].mxu1  ;;  %v7026_v33 = vadd.s32 4294967278, %v2433_v6  ;;  %v7086_v22 = vadd.s32 4294967278, %v2621_v20  ;;  %v2386_v53 = vsel %vm2354_vm3, %v6995_v60, %v2338_v11 }
 0x309   : >> { %v7930_v15 = vpop.f32.mrb[31].mxu1  ;;  %v8009_v21 = vpop.f32.mrb[30].mxu0  ;;  %v2716_v44 = vsel %vm2684_vm5, %v7101_v39, %v2668_v56  ;;  %v7071_v34 = vadd.s32 4294967278, %v2574_v59  ;;  %v7056_v19 = vadd.s32 4294967278, %v2527_v38  ;;  %vm2637_vm6 = vcmp.ge.s32.totalorder %v2621_v20, 18 }
 0x30a   : >> { %v11041_v30 = vadd.f32 %v8008_v57, %v1550_v49  ;;  %v7931_v54 = vadd.f32 %v7930_v15, %v7929_v35  ;;  %v8010_v63 = vpop.f32.mrb[31].mxu0  ;;  %vm2590_vm9 = vcmp.ge.s32.totalorder %v2574_v59, 18  ;;  %vm2543_vm10 = vcmp.ge.s32.totalorder %v2527_v38, 18 }
 0x30b   : >> { %v8011_v1 = vadd.f32 %v8010_v63, %v8009_v21  ;;  %v2528_v57 = vsel %vm2496_vm12, %v7041_v51, %v2480_v48  ;;  %v2481_v11 = vsel %vm2449_vm4, %v7026_v33, %v2433_v6  ;;  %v7011_v60 = vadd.s32 4294967278, %v2386_v53 }
 0x30c   : >> { %v1555_v61 = vadd.f32 %v7931_v54, %v10951_v18  ;;  %v7932_v26 = vpop.f32.mrb[32].mxu1  ;;  %vm2749_vm7 = vcmp.lt.s32.totalorder %v2716_v44, 16  ;;  %v11052_v39 = vadd.s32 %v10932_v5, %v12758_v14  ;;  %vm2402_vm11 = vcmp.ge.s32.totalorder %v2386_v53, 18 }
 0x30d   : >> { %v7933_v28 = vpop.f32.mrb[33].mxu1  ;;  %v8012_v8 = vpop.f32.mrb[32].mxu0  ;;  %v2669_v54 = vsel %vm2637_vm6, %v7086_v22, %v2621_v20  ;;  %v2622_v63 = vsel %vm2590_vm9, %v7071_v34, %v2574_v59  ;;  %v2575_v48 = vsel %vm2543_vm10, %v7056_v19, %v2527_v38  ;;  %vm2544_vm14 = vcmp.ge.s32.totalorder %v2528_v57, 18  ;;  %vm11068_vm0 = vmand %vm2749_vm7, %vm2765_vm8 }
 0x30e   : >> { %v11047_v49 = vadd.f32 %v8011_v1, %v1555_v61  ;;  %v7934_v35 = vadd.f32 %v7933_v28, %v7932_v26  ;;  %v8013_v15 = vpop.f32.mrb[33].mxu0  ;;  %v7057_v61 = vadd.s32 4294967278, %v2528_v57  ;;  %v7042_v26 = vadd.s32 4294967278, %v2481_v11 }
 0x30f   : >> { %v8014_v18 = vadd.f32 %v8013_v15, %v8012_v8  ;;  %v2339_v6 = vadd.s32 %v10897_v62, %v12756_v55  ;;  %vm2497_vm2 = vcmp.ge.s32.totalorder %v2481_v11, 18  ;;  %v2434_v15 = vsel %vm2402_vm11, %v7011_v60, %v2386_v53 }
 0x310   : >> { %v1560_v56 = vadd.f32 %v7934_v35, %v10907_v58  ;;  %v7935_v21 = vpop.f32.mrb[34].mxu1  ;;  %vm2685_vm1 = vcmp.ge.s32.totalorder %v2669_v54, 18  ;;  %v7102_v20 = vadd.s32 4294967278, %v2669_v54  ;;  %v11062_v59 = vadd.s32 %v10932_v5, %v12759_v27 }
 0x311   : >> { %v7936_v51 = vpop.f32.mrb[35].mxu1  ;;  %v8015_v1 = vpop.f32.mrb[34].mxu0  ;;  %vm2638_vm13 = vcmp.ge.s32.totalorder %v2622_v63, 18  ;;  %v7087_v19 = vadd.s32 4294967278, %v2622_v63  ;;  %v7072_v53 = vadd.s32 4294967278, %v2575_v48  ;;  %vm2591_vm15 = vcmp.ge.s32.totalorder %v2575_v48, 18 }
 0x312   : >> { %v11057_v33 = vadd.f32 %v8014_v18, %v1560_v56  ;;  %v7937_v28 = vadd.f32 %v7936_v51, %v7935_v21  ;;  %v8016_v8 = vpop.f32.mrb[35].mxu0  ;;  %v2576_v18 = vsel %vm2544_vm14, %v7057_v61, %v2528_v57  ;;  %v2529_v56 = vsel %vm2497_vm2, %v7042_v26, %v2481_v11 }
 0x313   : >> { %v8017_v58 = vadd.f32 %v8016_v8, %v8015_v1  ;;  %v7027_v21 = vadd.s32 4294967278, %v2434_v15  ;;  %vm2450_vm3 = vcmp.ge.s32.totalorder %v2434_v15, 18  ;;  %v6996_v44 = vadd.s32 4294967278, %v2339_v6 }
 0x314   : >> { %v1565_v38 = vadd.f32 %v7937_v28, %v10911_v32  ;;  %v7938_v22 = vpop.f32.mrb[36].mxu1  ;;  %v11079_v28 = vsel %vm11068_vm0, 1.0, %v12768_v24  ;;  %v11083_v8 = vadd.s32 %v10932_v5, %v12760_v46  ;;  %vm2355_vm5 = vcmp.ge.s32.totalorder %v2339_v6, 18 }
 0x315   : >> { %v7939_v35 = vpop.f32.mrb[37].mxu1  ;;  %v8018_v60 = vpop.f32.mrb[36].mxu0  ;;  %v2670_v61 = vsel %vm2638_vm13, %v7087_v19, %v2622_v63  ;;  %v2623_v26 = vsel %vm2591_vm15, %v7072_v53, %v2575_v48  ;;  %vm2766_vm8 = vcmp.lt.s32.totalorder %v11010_v40, 288  ;;  %vm2592_vm12 = vcmp.ge.s32.totalorder %v2576_v18, 18 }
 0x316   : >> { %v11074_v32 = vadd.f32 %v8017_v58, %v1565_v38  ;;  %v7940_v51 = vadd.f32 %v7939_v35, %v7938_v22  ;;  %v8019_v16 = vpop.f32.mrb[37].mxu0  ;;  %v7073_v58 = vadd.s32 4294967278, %v2576_v18  ;;  %vm2545_vm4 = vcmp.ge.s32.totalorder %v2529_v56, 18 }
 0x317   : >> { %v8020_v1 = vadd.f32 %v8019_v16, %v8018_v60  ;;  %v7058_v34 = vadd.s32 4294967278, %v2529_v56  ;;  %v2482_v35 = vsel %vm2450_vm3, %v7027_v21, %v2434_v15  ;;  %v2340_v63 = vadd.s32 %v10897_v62, %v10492_v52 }
 0x318   : >> { %v1570_v57 = vadd.f32 %v7940_v51, %v10917_v43  ;;  %v7941_v11 = vpop.f32.mrb[38].mxu1  ;;  %v2387_v43 = vsel %vm2355_vm5, %v6996_v44, %v2339_v6  ;;  %v2717_v19 = vsel %vm2685_vm1, %v7102_v20, %v2669_v54  ;;  %vm2686_vm6 = vcmp.ge.s32.totalorder %v2670_v61, 18 }
 0x319   : >> { %v7942_v38 = vpop.f32.mrb[39].mxu1  ;;  %v8021_v22 = vpop.f32.mrb[38].mxu0  ;;  %v7103_v53 = vadd.s32 4294967278, %v2670_v61  ;;  %vm2639_vm9 = vcmp.ge.s32.totalorder %v2623_v26, 18  ;;  %v7088_v14 = vadd.s32 4294967278, %v2623_v26  ;;  %v2624_v15 = vsel %vm2592_vm12, %v7073_v58, %v2576_v18 }
 0x31a   : >> { %v11090_v60 = vadd.f32 %v8020_v1, %v1570_v57  ;;  %v7943_v16 = vadd.f32 %v7942_v38, %v7941_v11  ;;  %v8022_v46 = vpop.f32.mrb[39].mxu0  ;;  %vm2767_vm10 = vcmp.lt.s32.totalorder %v11052_v39, 288  ;;  %v2577_v6 = vsel %vm2545_vm4, %v7058_v34, %v2529_v56 }
 0x31b   : >> { %v8023_v48 = vadd.f32 %v8022_v46, %v8021_v22  ;;  %vm2498_vm7 = vcmp.ge.s32.totalorder %v2482_v35, 18  ;;  %v7043_v44 = vadd.s32 4294967278, %v2482_v35  ;;  %v7012_v46 = vadd.s32 4294967278, %v2387_v43 }
 0x31c   : >> { %v1575_v51 = vadd.f32 %v7943_v16, %v10921_v7  ;;  %v7944_v27 = vpop.f32.mrb[40].mxu1  ;;  %vm2403_vm11 = vcmp.ge.s32.totalorder %v2387_v43, 18  ;;  %v6997_v7 = vadd.s32 4294967278, %v2340_v63  ;;  %vm2750_vm14 = vcmp.lt.s32.totalorder %v2717_v19, 16 }
 0x31d   : >> { %v7945_v21 = vpop.f32.mrb[41].mxu1  ;;  %v8024_v1 = vpop.f32.mrb[40].mxu0  ;;  %v2718_v38 = vsel %vm2686_vm6, %v7103_v53, %v2670_v61  ;;  %vm2356_vm2 = vcmp.ge.s32.totalorder %v2340_v63, 18  ;;  %v2671_v22 = vsel %vm2639_vm9, %v7088_v14, %v2623_v26  ;;  %v7089_v56 = vadd.s32 4294967278, %v2624_v15  ;;  %vm11116_vm5 = vmand %vm2750_vm14, %vm2766_vm8 }
 0x31e   : >> { %v11100_v57 = vadd.f32 %v8023_v48, %v1575_v51  ;;  %v7946_v54 = vadd.f32 %v7945_v21, %v7944_v27  ;;  %v8025_v20 = vpop.f32.mrb[41].mxu0  ;;  %v7074_v34 = vadd.s32 4294967278, %v2577_v6  ;;  %vm2640_vm1 = vcmp.ge.s32.totalorder %v2624_v15, 18 }
 0x31f   : >> { %v8026_v11 = vadd.f32 %v8025_v20, %v8024_v1  ;;  %vm2593_vm0 = vcmp.ge.s32.totalorder %v2577_v6, 18  ;;  %v2530_v27 = vsel %vm2498_vm7, %v7043_v44, %v2482_v35  ;;  %v2435_v48 = vsel %vm2403_vm11, %v7012_v46, %v2387_v43 }
 0x320   : >> { %v1580_v18 = vadd.f32 %v7946_v54, %v10927_v3  ;;  %v7947_v58 = vpop.f32.mrb[42].mxu1  ;;  %v2388_v53 = vsel %vm2356_vm2, %v6997_v7, %v2340_v63  ;;  %v2341_v3 = vadd.s32 %v10897_v62, %v10475_v31  ;;  %vm2751_vm13 = vcmp.lt.s32.totalorder %v2718_v38, 16 }
 0x321   : >> { %v7948_v16 = vpop.f32.mrb[43].mxu1  ;;  %v8027_v42 = vpop.f32.mrb[42].mxu0  ;;  %vm2687_vm15 = vcmp.ge.s32.totalorder %v2671_v22, 18  ;;  %v7104_v14 = vadd.s32 4294967278, %v2671_v22  ;;  %vm2768_vm3 = vcmp.lt.s32.totalorder %v11062_v59, 288  ;;  %v2672_v43 = vsel %vm2640_vm1, %v7089_v56, %v2624_v15  ;;  %vm11134_vm9 = vmand %vm2751_vm13, %vm2767_vm10 }
 0x322   : >> { %v11107_v51 = vadd.f32 %v8026_v11, %v1580_v18  ;;  %v7949_v21 = vadd.f32 %v7948_v16, %v7947_v58  ;;  %v8028_v61 = vpop.f32.mrb[43].mxu0  ;;  %v2625_v63 = vsel %vm2593_vm0, %v7074_v34, %v2577_v6  ;;  %vm2546_vm12 = vcmp.ge.s32.totalorder %v2530_v27, 18 }
 0x323   : >> { %v8029_v1 = vadd.f32 %v8028_v61, %v8027_v42  ;;  %v7059_v46 = vadd.s32 4294967278, %v2530_v27  ;;  %vm2451_vm4 = vcmp.ge.s32.totalorder %v2435_v48, 18  ;;  %v7028_v20 = vadd.s32 4294967278, %v2435_v48 }
 0x324   : >> { %v1585_v26 = vadd.f32 %v7949_v21, %v10936_v29  ;;  %v7950_v54 = vpop.f32.mrb[44].mxu1  ;;  %v7013_v7 = vadd.s32 4294967278, %v2388_v53  ;;  %vm2404_vm6 = vcmp.ge.s32.totalorder %v2388_v53, 18  ;;  %v6998_v19 = vadd.s32 4294967278, %v2341_v3 }
 0x325   : >> { %v7951_v42 = vpop.f32.mrb[45].mxu1  ;;  %v8030_v44 = vpop.f32.mrb[44].mxu0  ;;  %v11127_v15 = vsel %vm11116_vm5, 1.0, %v12768_v24  ;;  %v2719_v6 = vsel %vm2687_vm15, %v7104_v14, %v2671_v22  ;;  %vm2357_vm8 = vcmp.ge.s32.totalorder %v2341_v3, 18  ;;  %vm2688_vm7 = vcmp.ge.s32.totalorder %v2672_v43, 18 }
 0x326   : >> { %v11122_v29 = vadd.f32 %v8029_v1, %v1585_v26  ;;  %v7952_v11 = vadd.f32 %v7951_v42, %v7950_v54  ;;  %v8031_v40 = vpop.f32.mrb[45].mxu0  ;;  %v7105_v16 = vadd.s32 4294967278, %v2672_v43  ;;  %v7090_v21 = vadd.s32 4294967278, %v2625_v63 }
 0x327   : >> { %v8032_v18 = vadd.f32 %v8031_v40, %v8030_v44  ;;  %vm2641_vm11 = vcmp.ge.s32.totalorder %v2625_v63, 18  ;;  %v2578_v26 = vsel %vm2546_vm12, %v7059_v46, %v2530_v27  ;;  %v2483_v22 = vsel %vm2451_vm4, %v7028_v20, %v2435_v48 }
 0x328   : >> { %v1590_v58 = vadd.f32 %v7952_v11, %v10942_v50  ;;  %v7953_v56 = vpop.f32.mrb[46].mxu1  ;;  %v2436_v50 = vsel %vm2404_vm6, %v7013_v7, %v2388_v53  ;;  %v2389_v54 = vsel %vm2357_vm8, %v6998_v19, %v2341_v3  ;;  %v2342_v35 = vadd.s32 %v10897_v62, %v10547_v10 }
 0x329   : >> { %v7954_v61 = vpop.f32.mrb[47].mxu1  ;;  %v8033_v1 = vpop.f32.mrb[46].mxu0  ;;  %v11149_v44 = vsel %vm11134_vm9, 1.0, %v12768_v24  ;;  %vm2752_vm10 = vcmp.lt.s32.totalorder %v2719_v6, 16  ;;  %v11153_v27 = vadd.s32 %v10932_v5, %v12754_v45  ;;  %v11157_v46 = vsel %vm2688_vm7, %v7105_v16, %v2672_v43 }
 0x32a   : >> { %v11141_v14 = vadd.f32 %v8032_v18, %v1590_v58  ;;  %v7955_v39 = vadd.f32 %v7954_v61, %v7953_v56  ;;  %v8034_v38 = vpop.f32.mrb[47].mxu0  ;;  %v11160_v3 = vsel %vm2641_vm11, %v7090_v21, %v2625_v63  ;;  %v11164_v20 = vadd.s32 %v10932_v5, %v12755_v12  ;;  %vm2784_vm14 = vmand %vm2752_vm10, %vm2768_vm3  ;;  %v11174_v61 = vld [vmem:[#allocation11] ss:$0 sm:$0xff] }
 0x32b   : >> { %v8035_v42 = vadd.f32 %v8034_v38, %v8033_v1  ;;  %v7075_v40 = vadd.s32 4294967278, %v2578_v26  ;;  %v7044_v19 = vadd.s32 4294967278, %v2483_v22  ;;  %v7029_v18 = vadd.s32 4294967278, %v2436_v50 }
 0x32c   : >> { %12775 = vst [vmem:[#allocation33_spill] sm:$0xff] %v11141_v14  ;;  %v1595_v48 = vadd.f32 %v7955_v39, %v10949_v13  ;;  %v8068_v53 = vpop.f32.mrb[48].mxu1  ;;  %v7014_v58 = vadd.s32 4294967278, %v2389_v54  ;;  %vm2405_vm2 = vcmp.ge.s32.totalorder %v2389_v54, 18  ;;  %v6999_v43 = vadd.s32 4294967278, %v2342_v35 }
 0x32d   : >> { %v8069_v7 = vpop.f32.mrb[49].mxu1  ;;  %v8148_v11 = vpop.f32.mrb[48].mxu0  ;;  %vm2452_vm1 = vcmp.ge.s32.totalorder %v2436_v50, 18  ;;  %vm2358_vm0 = vcmp.ge.s32.totalorder %v2342_v35, 18  ;;  %v2343_v16 = vadd.s32 %v10897_v62, %v10518_v9  ;;  %vm2594_vm13 = vcmp.ge.s32.totalorder %v2578_v26, 18 }
 0x32e   : >> { %v11166_v56 = vadd.f32 %v8035_v42, %v1595_v48  ;;  %v8070_v13 = vadd.f32 %v8069_v7, %v8068_v53  ;;  %v8149_v34 = vpop.f32.mrb[49].mxu0  ;;  %vm2499_vm15 = vcmp.ge.s32.totalorder %v2483_v22, 18  ;;  %v11178_v59 = vadd.s32 %v10932_v5, %v12756_v55 }
 0x32f   : >> { %v8150_v63 = vadd.f32 %v8149_v34, %v8148_v11  ;;  %v11181_v38 = vsel %vm2784_vm14, 1.0, %v12768_v24  ;;  %vm2753_vm3 = vcmp.lt.s32.totalorder %v11157_v46, 16  ;;  %vm2769_vm5 = vcmp.lt.s32.totalorder %v11083_v8, 288 }
 0x330   : >> { %12776 = vst [vmem:[#allocation34_spill] sm:$0xff] %v11166_v56  ;;  %v2042_v21 = vadd.f32 %v8070_v13, %v10972_v37  ;;  %v8071_v1 = vpop.f32.mrb[50].mxu1  ;;  %v11186_v62 = vadd.s32 4294967278, %v11160_v3  ;;  %v2437_v37 = vsel %vm2405_vm2, %v7014_v58, %v2389_v54  ;;  %v2484_v7 = vsel %vm2452_vm1, %v7029_v18, %v2436_v50  ;;  %vm2785_vm14 = vmand %vm2753_vm3, %vm2769_vm5 }
 0x331   : >> { %v8072_v6 = vpop.f32.mrb[51].mxu1  ;;  %v8151_v39 = vpop.f32.mrb[50].mxu0  ;;  %v2390_v11 = vsel %vm2358_vm0, %v6999_v43, %v2342_v35  ;;  %v11192_v34 = vsel %vm2594_vm13, %v7075_v40, %v2578_v26  ;;  %v2531_v55 = vsel %vm2499_vm15, %v7044_v19, %v2483_v22  ;;  %v7000_v12 = vadd.s32 4294967278, %v2343_v16 }
 0x332   : >> { %v2254_v42 = vadd.f32 %v8150_v63, %v2042_v21  ;;  %v8073_v48 = vadd.f32 %v8072_v6, %v8071_v1  ;;  %v8152_v53 = vpop.f32.mrb[51].mxu0  ;;  %v7030_v54 = vadd.s32 4294967278, %v2437_v37  ;;  %vm2359_vm12 = vcmp.ge.s32.totalorder %v2343_v16, 18 }
 0x333   : >> { %v8153_v13 = vadd.f32 %v8152_v53, %v8151_v39  ;;  %vm2500_vm4 = vcmp.ge.s32.totalorder %v2484_v7, 18  ;;  %v7045_v50 = vadd.s32 4294967278, %v2484_v7  ;;  %vm2453_vm6 = vcmp.ge.s32.totalorder %v2437_v37, 18 }
 0x334   : >> { %v2277_v45 = vadd.f32 %v11174_v61, %v2254_v42  ;;  %v2043_v56 = vadd.f32 %v8073_v48, %v10981_v36  ;;  %v8074_v14 = vpop.f32.mrb[52].mxu1  ;;  %v7015_v35 = vadd.s32 4294967278, %v2390_v11  ;;  %vm2406_vm8 = vcmp.ge.s32.totalorder %v2390_v11, 18 }
 0x335   : >> { %v8075_v58 = vpop.f32.mrb[53].mxu1  ;;  %v8154_v63 = vpop.f32.mrb[52].mxu0  ;;  %vm2642_vm9 = vcmp.ge.s32.totalorder %v11192_v34, 18  ;;  %v7091_v36 = vadd.s32 4294967278, %v11192_v34  ;;  %v2391_v19 = vsel %vm2359_vm12, %v7000_v12, %v2343_v16  ;;  %v2485_v42 = vsel %vm2453_vm6, %v7030_v54, %v2437_v37 }
 0x336   : >> { %v2293_v18 = vmax.f32 %v2277_v45, 0.0  ;;  %v2255_v43 = vadd.f32 %v8153_v13, %v2043_v56  ;;  %v8076_v26 = vadd.f32 %v8075_v58, %v8074_v14  ;;  %v8155_v40 = vpop.f32.mrb[53].mxu0  ;;  %vm2547_vm7 = vcmp.ge.s32.totalorder %v2531_v55, 18 }
 0x337   : >> { %v8156_v22 = vadd.f32 %v8155_v40, %v8154_v63  ;;  %v7060_v14 = vadd.s32 4294967278, %v2531_v55  ;;  %v2532_v48 = vsel %vm2500_vm4, %v7045_v50, %v2484_v7  ;;  %v2438_v53 = vsel %vm2406_vm8, %v7015_v35, %v2390_v11 }
 0x338   : >> { %v2825_v21 = vmul.f32 %v10958_v41, %v2293_v18  ;;  %v2278_v1 = vadd.f32 %v11174_v61, %v2255_v43  ;;  %v2044_v6 = vadd.f32 %v8076_v26, %v10994_v17  ;;  %v8077_v39 = vpop.f32.mrb[54].mxu1  ;;  %v7016_v58 = vadd.s32 4294967278, %v2391_v19 }
 0x339   : >> { %v8078_v45 = vpop.f32.mrb[55].mxu1  ;;  %v8157_v56 = vpop.f32.mrb[54].mxu0  ;;  %vm2501_vm11 = vcmp.ge.s32.totalorder %v2485_v42, 18  ;;  %v7046_v17 = vadd.s32 4294967278, %v2485_v42  ;;  %vm2407_vm10 = vcmp.ge.s32.totalorder %v2391_v19, 18  ;;  %v7031_v50 = vadd.s32 4294967278, %v2438_v53 }
 0x33a   : >> { %7130 = vst [vmem:[%s11204_s22 + $0x18] sm:$0xff] %v2825_v21  ;;  %v2294_v12 = vmax.f32 %v2278_v1, 0.0  ;;  %v2256_v16 = vadd.f32 %v8156_v22, %v2044_v6  ;;  %v8079_v41 = vadd.f32 %v8078_v45, %v8077_v39  ;;  %v8158_v13 = vpop.f32.mrb[55].mxu0  ;;  %v2579_v43 = vsel %vm2547_vm7, %v7060_v14, %v2531_v55 }
 0x33b   : >> { %v8159_v63 = vadd.f32 %v8158_v13, %v8157_v56  ;;  %vm2548_vm2 = vcmp.ge.s32.totalorder %v2532_v48, 18  ;;  %v7061_v26 = vadd.s32 4294967278, %v2532_v48  ;;  %vm2454_vm1 = vcmp.ge.s32.totalorder %v2438_v53, 18 }
 0x33c   : >> { %v2826_v37 = vmul.f32 %v10970_v2, %v2294_v12  ;;  %v2279_v54 = vadd.f32 %v11174_v61, %v2256_v16  ;;  %v2045_v7 = vadd.f32 %v8079_v41, %v11000_v23  ;;  %v8080_v11 = vpop.f32.mrb[56].mxu1  ;;  %v2439_v23 = vsel %vm2407_vm10, %v7016_v58, %v2391_v19 }
 0x33d   : >> { %v8081_v35 = vpop.f32.mrb[57].mxu1  ;;  %v8160_v18 = vpop.f32.mrb[56].mxu0  ;;  %v11218_v46 = vsel %vm2785_vm14, 1.0, %v12768_v24  ;;  %v11223_v1 = vsel %vm2642_vm9, %v7091_v36, %v11192_v34  ;;  %v2533_v55 = vsel %vm2501_vm11, %v7046_v17, %v2485_v42  ;;  %v2486_v19 = vsel %vm2454_vm1, %v7031_v50, %v2438_v53 }
 0x33e   : >> { %7131 = vst [vmem:[%s11204_s22 + $0x20] sm:$0xff] %v2826_v37  ;;  %v2295_v2 = vmax.f32 %v2279_v54, 0.0  ;;  %v2257_v40 = vadd.f32 %v8159_v63, %v2045_v7  ;;  %v8082_v22 = vadd.f32 %v8081_v35, %v8080_v11  ;;  %v8161_v21 = vpop.f32.mrb[57].mxu0  ;;  %vm2595_vm0 = vcmp.ge.s32.totalorder %v2579_v43, 18 }
 0x33f   : >> { %v8162_v8 = vadd.f32 %v8161_v21, %v8160_v18  ;;  %v7076_v16 = vadd.s32 4294967278, %v2579_v43  ;;  %v2580_v41 = vsel %vm2548_vm2, %v7061_v26, %v2532_v48  ;;  %v7032_v13 = vadd.s32 4294967278, %v2439_v23 }
 0x340   : >> { %v2827_v6 = vmul.f32 %v10990_v4, %v2295_v2  ;;  %v2280_v39 = vadd.f32 %v11174_v61, %v2257_v40  ;;  %v2046_v45 = vadd.f32 %v8082_v22, %v11014_v0  ;;  %v8083_v56 = vpop.f32.mrb[58].mxu1  ;;  %vm2689_vm13 = vcmp.ge.s32.totalorder %v11160_v3, 18 }
 0x341   : >> { %v8084_v14 = vpop.f32.mrb[59].mxu1  ;;  %v8163_v12 = vpop.f32.mrb[58].mxu0  ;;  %vm2455_vm15 = vcmp.ge.s32.totalorder %v2439_v23, 18  ;;  %vm2549_vm3 = vcmp.ge.s32.totalorder %v2533_v55, 18  ;;  %v7062_v0 = vadd.s32 4294967278, %v2533_v55  ;;  %v7047_v53 = vadd.s32 4294967278, %v2486_v19 }
 0x342   : >> { %7132 = vst [vmem:[%s11204_s22 + $0x28] sm:$0xff] %v2827_v6  ;;  %v2296_v34 = vmax.f32 %v2280_v39, 0.0  ;;  %v2258_v36 = vadd.f32 %v8162_v8, %v2046_v45  ;;  %v8085_v58 = vadd.f32 %v8084_v14, %v8083_v56  ;;  %v8164_v42 = vpop.f32.mrb[59].mxu0  ;;  %vm2502_vm5 = vcmp.ge.s32.totalorder %v2486_v19, 18 }
 0x343   : >> { %v8165_v4 = vadd.f32 %v8164_v42, %v8163_v12  ;;  %vm2690_vm12 = vcmp.ge.s32.totalorder %v11223_v1, 18  ;;  %v2627_v11 = vsel %vm2595_vm0, %v7076_v16, %v2579_v43  ;;  %v7077_v50 = vadd.s32 4294967278, %v2580_v41 }
 0x344   : >> { %v2828_v63 = vmul.f32 %v11034_v47, %v2296_v34  ;;  %v2281_v17 = vadd.f32 %v11174_v61, %v2258_v36  ;;  %v2047_v48 = vadd.f32 %v8085_v58, %v11028_v25  ;;  %v8086_v37 = vpop.f32.mrb[60].mxu1  ;;  %v2487_v35 = vsel %vm2455_vm15, %v7032_v13, %v2439_v23 }
 0x345   : >> { %v8087_v54 = vpop.f32.mrb[61].mxu1  ;;  %v8166_v7 = vpop.f32.mrb[60].mxu0  ;;  %vm2596_vm4 = vcmp.ge.s32.totalorder %v2580_v41, 18  ;;  %v7107_v25 = vadd.s32 4294967278, %v11223_v1  ;;  %v2581_v22 = vsel %vm2549_vm3, %v7062_v0, %v2533_v55  ;;  %v2534_v21 = vsel %vm2502_vm5, %v7047_v53, %v2486_v19 }
 0x346   : >> { %7133 = vst [vmem:[%s11204_s22 + $0x30] sm:$0xff] %v2828_v63  ;;  %v2297_v18 = vmax.f32 %v2281_v17, 0.0  ;;  %v2259_v26 = vadd.f32 %v8165_v4, %v2047_v48  ;;  %v8088_v2 = vadd.f32 %v8087_v54, %v8086_v37  ;;  %v8167_v40 = vpop.f32.mrb[61].mxu0  ;;  %v7048_v39 = vadd.s32 4294967278, %v2487_v35 }
 0x347   : >> { %v8168_v47 = vadd.f32 %v8167_v40, %v8166_v7  ;;  %vm2643_vm6 = vcmp.ge.s32.totalorder %v2627_v11, 18  ;;  %v7092_v14 = vadd.s32 4294967278, %v2627_v11  ;;  %v2628_v12 = vsel %vm2596_vm4, %v7077_v50, %v2580_v41 }
 0x348   : >> { %v2829_v8 = vmul.f32 %v11079_v28, %v2297_v18  ;;  %v2282_v43 = vadd.f32 %v11174_v61, %v2259_v26  ;;  %v2048_v23 = vadd.f32 %v8088_v2, %v11041_v30  ;;  %v8089_v6 = vpop.f32.mrb[62].mxu1  ;;  %vm2503_vm8 = vcmp.ge.s32.totalorder %v2487_v35, 18 }
 0x349   : >> { %v8090_v45 = vpop.f32.mrb[63].mxu1  ;;  %v8169_v56 = vpop.f32.mrb[62].mxu0  ;;  %v7063_v19 = vadd.s32 4294967278, %v2534_v21  ;;  %vm2770_vm9 = vcmp.lt.s32.totalorder %v11153_v27, 288  ;;  %vm2597_vm7 = vcmp.ge.s32.totalorder %v2581_v22, 18  ;;  %v7078_v30 = vadd.s32 4294967278, %v2581_v22 }
 0x34a   : >> { %7134 = vst [vmem:[%s11204_s22 + $0x38] sm:$0xff] %v2829_v8  ;;  %v2298_v16 = vmax.f32 %v2282_v43, 0.0  ;;  %v2260_v13 = vadd.f32 %v8168_v47, %v2048_v23  ;;  %v8091_v55 = vadd.f32 %v8090_v45, %v8089_v6  ;;  %v8170_v34 = vpop.f32.mrb[63].mxu0  ;;  %vm2550_vm11 = vcmp.ge.s32.totalorder %v2534_v21, 18 }
 0x34b   : >> { %v8171_v36 = vadd.f32 %v8170_v34, %v8169_v56  ;;  %v2535_v4 = vsel %vm2503_vm8, %v7048_v39, %v2487_v35  ;;  %v2721_v63 = vsel %vm2689_vm13, %v11186_v62, %v11160_v3  ;;  %v2675_v17 = vsel %vm2643_vm6, %v7092_v14, %v2627_v11 }
 0x34c   : >> { %v2830_v28 = vmul.f32 %v11127_v15, %v2298_v16  ;;  %v2283_v58 = vadd.f32 %v11174_v61, %v2260_v13  ;;  %v2049_v41 = vadd.f32 %v8091_v55, %v11047_v49  ;;  %v8092_v42 = vpop.f32.mrb[64].mxu1  ;;  %vm2644_vm10 = vcmp.ge.s32.totalorder %v2628_v12, 18 }
 0x34d   : >> { %v8093_v0 = vpop.f32.mrb[65].mxu1  ;;  %v8172_v53 = vpop.f32.mrb[64].mxu0  ;;  %v7093_v48 = vadd.s32 4294967278, %v2628_v12  ;;  %v2582_v49 = vsel %vm2550_vm11, %v7063_v19, %v2534_v21  ;;  %v2722_v35 = vsel %vm2690_vm12, %v7107_v25, %v11223_v1  ;;  %vm2771_vm14 = vcmp.lt.s32.totalorder %v11164_v20, 288 }
 0x34e   : >> { %7135 = vst [vmem:[%s11204_s22 + $0x40] sm:$0xff] %v2830_v28  ;;  %v2299_v15 = vmax.f32 %v2283_v58, 0.0  ;;  %v2261_v37 = vadd.f32 %v8171_v36, %v2049_v41  ;;  %v8094_v54 = vadd.f32 %v8093_v0, %v8092_v42  ;;  %v8173_v7 = vpop.f32.mrb[65].mxu0  ;;  %v2629_v3 = vsel %vm2597_vm7, %v7078_v30, %v2581_v22 }
 0x34f   : >> { %v8174_v50 = vadd.f32 %v8173_v7, %v8172_v53  ;;  %v7064_v62 = vadd.s32 4294967278, %v2535_v4  ;;  %vm2551_vm2 = vcmp.ge.s32.totalorder %v2535_v4, 18  ;;  %vm2691_vm1 = vcmp.ge.s32.totalorder %v2675_v17, 18 }
 0x350   : >> { %v2831_v11 = vmul.f32 %v11149_v44, %v2299_v15  ;;  %v2284_v18 = vadd.f32 %v11174_v61, %v2261_v37  ;;  %v2050_v26 = vadd.f32 %v8094_v54, %v11057_v33  ;;  %v8095_v2 = vpop.f32.mrb[66].mxu1  ;;  %v7108_v21 = vadd.s32 4294967278, %v2675_v17 }
 0x351   : >> { %v8096_v40 = vpop.f32.mrb[67].mxu1  ;;  %v8175_v47 = vpop.f32.mrb[66].mxu0  ;;  %v2676_v8 = vsel %vm2644_vm10, %v7093_v48, %v2628_v12  ;;  %v7079_v1 = vadd.s32 4294967278, %v2582_v49  ;;  %vm2598_vm0 = vcmp.ge.s32.totalorder %v2582_v49, 18  ;;  %vm2754_vm13 = vcmp.lt.s32.totalorder %v2721_v63, 16 }
 0x352   : >> { %7136 = vst [vmem:[%s11204_s22 + $0x48] sm:$0xff] %v2831_v11  ;;  %v2300_v25 = vmax.f32 %v2284_v18, 0.0  ;;  %v2262_v43 = vadd.f32 %v8174_v50, %v2050_v26  ;;  %v8097_v22 = vadd.f32 %v8096_v40, %v8095_v2  ;;  %v8176_v23 = vpop.f32.mrb[67].mxu0  ;;  %vm2772_vm15 = vcmp.lt.s32.totalorder %v11178_v59, 288  ;;  %vm2786_vm4 = vmand %vm2754_vm13, %vm2770_vm9 }
 0x353   : >> { %v8177_v44 = vadd.f32 %v8176_v23, %v8175_v47  ;;  %v7094_v33 = vadd.s32 4294967278, %v2629_v3  ;;  %v2583_v6 = vsel %vm2551_vm2, %v7064_v62, %v2535_v4  ;;  %vm2645_vm3 = vcmp.ge.s32.totalorder %v2629_v3, 18 }
 0x354   : >> { %v2832_v39 = vmul.f32 %v11181_v38, %v2300_v25  ;;  %v2285_v45 = vadd.f32 %v11174_v61, %v2262_v43  ;;  %v2051_v56 = vadd.f32 %v8097_v22, %v11074_v32  ;;  %v8098_v14 = vpop.f32.mrb[68].mxu1  ;;  %vm2755_vm5 = vcmp.lt.s32.totalorder %v2722_v35, 16 }
 0x355   : >> { %v8099_v12 = vpop.f32.mrb[69].mxu1  ;;  %v8178_v16 = vpop.f32.mrb[68].mxu0  ;;  %v2723_v13 = vsel %vm2691_vm1, %v7108_v21, %v2675_v17  ;;  %vm2692_vm12 = vcmp.ge.s32.totalorder %v2676_v8, 18  ;;  %v2630_v55 = vsel %vm2598_vm0, %v7079_v1, %v2582_v49  ;;  %v7080_v32 = vadd.s32 4294967278, %v2583_v6  ;;  %vm2787_vm7 = vmand %vm2755_vm5, %vm2771_vm14 }
 0x356   : >> { %7137 = vst [vmem:[%s11204_s22 + $0x50] sm:$0xff] %v2832_v39  ;;  %v2301_v34 = vmax.f32 %v2285_v45, 0.0  ;;  %v2263_v19 = vadd.f32 %v8177_v44, %v2051_v56  ;;  %v8100_v38 = vadd.f32 %v8099_v12, %v8098_v14  ;;  %v8179_v36 = vpop.f32.mrb[69].mxu0  ;;  %v7109_v28 = vadd.s32 4294967278, %v2676_v8 }
 0x357   : >> { %v8180_v30 = vadd.f32 %v8179_v36, %v8178_v16  ;;  %v2677_v58 = vsel %vm2645_vm3, %v7094_v33, %v2629_v3  ;;  %vm2599_vm6 = vcmp.ge.s32.totalorder %v2583_v6, 18  ;;  %v7095_v53 = vadd.s32 4294967278, %v2630_v55 }
 0x358   : >> { %v2833_v41 = vmul.f32 %v11218_v46, %v2301_v34  ;;  %v2286_v42 = vadd.f32 %v11174_v61, %v2263_v19  ;;  %v2052_v4 = vadd.f32 %v8100_v38, %v11090_v60  ;;  %v8101_v0 = vpop.f32.mrb[70].mxu1  ;;  %v7122_v27 = vsel %vm2786_vm4, 1.0, %v12768_v24 }
 0x359   : >> { %v8102_v63 = vpop.f32.mrb[71].mxu1  ;;  %v8181_v17 = vpop.f32.mrb[70].mxu0  ;;  %vm2756_vm8 = vcmp.lt.s32.totalorder %v2723_v13, 16  ;;  %v2741_v48 = vadd.s32 %v10932_v5, %v10492_v52  ;;  %vm2646_vm9 = vcmp.ge.s32.totalorder %v2630_v55, 18  ;;  %v2631_v54 = vsel %vm2599_vm6, %v7080_v32, %v2583_v6 }
 0x35a   : >> { %7138 = vst [vmem:[%s11204_s22 + $0x58] sm:$0xff] %v2833_v41  ;;  %v2302_v15 = vmax.f32 %v2286_v42, 0.0  ;;  %v2264_v37 = vadd.f32 %v8180_v30, %v2052_v4  ;;  %v8103_v46 = vadd.f32 %v8102_v63, %v8101_v0  ;;  %v8182_v60 = vpop.f32.mrb[71].mxu0  ;;  %v2724_v49 = vsel %vm2692_vm12, %v7109_v28, %v2676_v8  ;;  %vm2788_vm14 = vmand %vm2756_vm8, %vm2772_vm15 }
 0x35b   : >> { %v8183_v7 = vadd.f32 %v8182_v60, %v8181_v17  ;;  %vm2693_vm11 = vcmp.ge.s32.totalorder %v2677_v58, 18  ;;  %v7110_v50 = vadd.s32 4294967278, %v2677_v58  ;;  %v2678_v20 = vsel %vm2646_vm9, %v7095_v53, %v2630_v55 }
 0x35c   : >> { %v2834_v3 = vmul.f32 %v7122_v27, %v2302_v15  ;;  %v2287_v62 = vadd.f32 %v11174_v61, %v2264_v37  ;;  %v2053_v11 = vadd.f32 %v8103_v46, %v11100_v57  ;;  %v8104_v18 = vpop.f32.mrb[72].mxu1  ;;  %v7123_v35 = vsel %vm2787_vm7, 1.0, %v12768_v24 }
 0x35d   : >> { %v8105_v26 = vpop.f32.mrb[73].mxu1  ;;  %v8184_v2 = vpop.f32.mrb[72].mxu0  ;;  %vm2773_vm10 = vcmp.lt.s32.totalorder %v2741_v48, 288  ;;  %v2742_v40 = vadd.s32 %v10932_v5, %v10475_v31  ;;  %v7096_v47 = vadd.s32 4294967278, %v2631_v54  ;;  %vm2647_vm2 = vcmp.ge.s32.totalorder %v2631_v54, 18  ;;  %v12777_v48 = vld [vmem:[#allocation33_spill] sm:$0xff] }
 0x35e   : >> { %7139 = vst [vmem:[%s11204_s22 + $0x60] sm:$0xff] %v2834_v3  ;;  %v2303_v21 = vmax.f32 %v2287_v62, 0.0  ;;  %v2265_v8 = vadd.f32 %v8183_v7, %v2053_v11  ;;  %v8106_v57 = vadd.f32 %v8105_v26, %v8104_v18  ;;  %v8185_v1 = vpop.f32.mrb[73].mxu0  ;;  %vm2757_vm1 = vcmp.lt.s32.totalorder %v2724_v49, 16 }
 0x35f   : >> { %v8186_v25 = vadd.f32 %v8185_v1, %v8184_v2  ;;  %v2725_v43 = vsel %vm2693_vm11, %v7110_v50, %v2677_v58  ;;  %v7111_v22 = vadd.s32 4294967278, %v2678_v20  ;;  %vm2694_vm0 = vcmp.ge.s32.totalorder %v2678_v20, 18  ;;  %vm2789_vm13 = vmand %vm2757_vm1, %vm2773_vm10 }
 0x360   : >> { %v2835_v23 = vmul.f32 %v7123_v35, %v2303_v21  ;;  %v2288_v44 = vadd.f32 %v11174_v61, %v2265_v8  ;;  %v2054_v33 = vadd.f32 %v8106_v57, %v11107_v51  ;;  %v8107_v6 = vpop.f32.mrb[74].mxu1  ;;  %v7124_v59 = vsel %vm2788_vm14, 1.0, %v12768_v24 }
 0x361   : >> { %v8108_v39 = vpop.f32.mrb[75].mxu1  ;;  %v8187_v45 = vpop.f32.mrb[74].mxu0  ;;  %v2679_v56 = vsel %vm2647_vm2, %v7096_v47, %v2631_v54  ;;  %vm2774_vm15 = vcmp.lt.s32.totalorder %v2742_v40, 288  ;;  %vm2758_vm3 = vcmp.lt.s32.totalorder %v2725_v43, 16  ;;  %v2726_v51 = vsel %vm2694_vm0, %v7111_v22, %v2678_v20  ;;  %v12778_v20 = vld [vmem:[#allocation34_spill] sm:$0xff] }
 0x362   : >> { %7140 = vst [vmem:[%s11204_s22 + $0x68] sm:$0xff] %v2835_v23  ;;  %v2304_v14 = vmax.f32 %v2288_v44, 0.0  ;;  %v2266_v12 = vadd.f32 %v8186_v25, %v2054_v33  ;;  %v8109_v16 = vadd.f32 %v8108_v39, %v8107_v6  ;;  %v8188_v13 = vpop.f32.mrb[75].mxu0  ;;  %v2743_v34 = vadd.s32 %v10932_v5, %v10547_v10  ;;  %vm2790_vm12 = vmand %vm2758_vm3, %vm2774_vm15 }
 0x363   : >> { %v8189_v55 = vadd.f32 %v8188_v13, %v8187_v45  ;;  %v7112_v30 = vadd.s32 4294967278, %v2679_v56  ;;  %v7125_v28 = vsel %vm2789_vm13, 1.0, %v12768_v24  ;;  %vm2695_vm5 = vcmp.ge.s32.totalorder %v2679_v56, 18 }
 0x364   : >> { %v2836_v19 = vmul.f32 %v7124_v59, %v2304_v14  ;;  %v2289_v38 = vadd.f32 %v11174_v61, %v2266_v12  ;;  %v2055_v36 = vadd.f32 %v8109_v16, %v11122_v29  ;;  %v8110_v32 = vpop.f32.mrb[76].mxu1  ;;  %vm2759_vm4 = vcmp.lt.s32.totalorder %v2726_v51, 16 }
 0x365   : >> { %v8111_v58 = vpop.f32.mrb[77].mxu1  ;;  %v8190_v41 = vpop.f32.mrb[76].mxu0  ;;  %vm2775_vm6 = vcmp.lt.s32.totalorder %v2743_v34, 288  ;;  %v2744_v29 = vadd.s32 %v10932_v5, %v10518_v9  ;;  %v2727_v46 = vsel %vm2695_vm5, %v7112_v30, %v2679_v56  ;;  %v7126_v60 = vsel %vm2790_vm12, 1.0, %v12768_v24 }
 0x366   : >> { %7141 = vst [vmem:[%s11204_s22 + $0x70] sm:$0xff] %v2836_v19  ;;  %v2305_v42 = vmax.f32 %v2289_v38, 0.0  ;;  %v2267_v4 = vadd.f32 %v8189_v55, %v2055_v36  ;;  %v8112_v0 = vadd.f32 %v8111_v58, %v8110_v32  ;;  %v8191_v53 = vpop.f32.mrb[77].mxu0  ;;  %vm2791_vm8 = vmand %vm2759_vm4, %vm2775_vm6  ;;  %vm2760_vm9 = vcmp.lt.s32.totalorder %v2727_v46, 16 }
 0x367   : >> { %v8192_v27 = vadd.f32 %v8191_v53, %v8190_v41  ;;  %vm2776_vm7 = vcmp.lt.s32.totalorder %v2744_v29, 288  ;;  %v7127_v26 = vsel %vm2791_vm8, 1.0, %v12768_v24 }
 0x368   : >> { %v2837_v63 = vmul.f32 %v7125_v28, %v2305_v42  ;;  %v2290_v17 = vadd.f32 %v11174_v61, %v2267_v4  ;;  %v2056_v15 = vadd.f32 %v8112_v0, %v12777_v48  ;;  %v8113_v37 = vpop.f32.mrb[78].mxu1  ;;  %vm2792_vm11 = vmand %vm2760_vm9, %vm2776_vm7 }
 0x369   : >> { %v8114_v54 = vpop.f32.mrb[79].mxu1  ;;  %v8193_v7 = vpop.f32.mrb[78].mxu0  ;;  %v7128_v8 = vsel %vm2792_vm11, 1.0, %v12768_v24 }
 0x36a   : >> { %7142 = vst [vmem:[%s11204_s22 + $0x78] sm:$0xff] %v2837_v63  ;;  %v2306_v49 = vmax.f32 %v2290_v17, 0.0  ;;  %v2268_v50 = vadd.f32 %v8192_v27, %v2056_v15  ;;  %v8115_v3 = vadd.f32 %v8114_v54, %v8113_v37  ;;  %v8194_v62 = vpop.f32.mrb[79].mxu0 }
 0x36b   : >> { %v8195_v5 = vadd.f32 %v8194_v62, %v8193_v7 }
 0x36c   : >> { %v2838_v11 = vmul.f32 %v7126_v60, %v2306_v49  ;;  %v2291_v18 = vadd.f32 %v11174_v61, %v2268_v50  ;;  %v2057_v35 = vadd.f32 %v8115_v3, %v12778_v20 }
 0x36e   : >> { %7143 = vst [vmem:[%s11204_s22 + $0x80] sm:$0xff] %v2838_v11  ;;  %v2307_v2 = vmax.f32 %v2291_v18, 0.0  ;;  %v2269_v40 = vadd.f32 %v8195_v5, %v2057_v35 }
 0x370   : >> { %v2839_v47 = vmul.f32 %v7127_v26, %v2307_v2  ;;  %v2292_v21 = vadd.f32 %v11174_v61, %v2269_v40  ;;  %1168 = sbr.rel (!%p1166_p5) target bundleno = 466 (0x1d2), region = 190 }
 0x372   : >> { %7144 = vst [vmem:[%s11204_s22 + $0x88] sm:$0xff] %v2839_v47  ;;  %v2308_v57 = vmax.f32 %v2292_v21, 0.0 }
 0x374   : >> { %v2840_v1 = vmul.f32 %v7128_v8, %v2308_v57 }
 0x376   : >> { %7145 = vst [vmem:[%s11204_s22 + $0x90] sm:$0xff] %v2840_v1 }
 0x377 LB: >> { %v2987_v61 = vld [vmem:[#allocation10 + $0x680] sm:$0xff]  ;;  %v2988_v25 = vld [vmem:[#allocation10 + $0x688] sm:$0xff]  ;;  %v2989_v23 = vld [vmem:[#allocation10 + $0x690] sm:$0xff]  ;;  %s11339_s19 = sshll.u32 %s10076_s25, 7  ;;  %s4022_s26 = sld [smem:[#allocation5 + %s10076_s25]]  ;;  %s10076_s25 = sphi %s11333_s25, %s2863_s25  }
 0x378   : >> { %v2971_v24 = vld [vmem:[#allocation10 + $0x600] sm:$0xff]  ;;  %v9332_v43 = vpack.c.bf16 %v2988_v25, %v2987_v61  ;;  %v2972_v22 = vld [vmem:[#allocation10 + $0x608] sm:$0xff]  ;;  %v2990_v44 = vld [vmem:[#allocation10 + $0x698] sm:$0xff]  ;;  %s11342_s20 = scalar_lea.vmem [#allocation3], %s11339_s19  ;;  %s11876_s27 = scalar_lea.vmem [#allocation2], %s11339_s19 }
 0x379   : >> { %v9334_v33 = vpack.c.bf16 %v2972_v22, %v2971_v24  ;;  %v9336_v6 = vpack.c.bf16 %v2990_v44, %v2989_v23  ;;  %v2973_v59 = vld [vmem:[#allocation10 + $0x610] sm:$0xff]  ;;  %v2974_v39 = vld [vmem:[#allocation10 + $0x618] sm:$0xff]  ;;  %v2991_v45 = vld [vmem:[#allocation10 + $0x6a0] sm:$0xff]  ;;  %s2863_s25 = sadd.s32 1, %s10076_s25  }
 0x37a   : >> { %9716 = vmatprep.subr.bf16.mxu1 %v9332_v43  ;;  %9333 = vmatprep.subr.bf16.mxu0 %v9332_v43  ;;  %v2992_v56 = vld [vmem:[#allocation10 + $0x6a8] sm:$0xff]  ;;  %v9338_v14 = vpack.c.bf16 %v2974_v39, %v2973_v59  ;;  %v2975_v16 = vld [vmem:[#allocation10 + $0x620] sm:$0xff]  ;;  %v2993_v55 = vld [vmem:[#allocation10 + $0x6b0] sm:$0xff]  ;;  %p2860_p6 = scmp.ge.s32.totalorder %s2863_s25, 3  }
 0x37b   : >> { %9724 = vmatpush3.bf16.msra.mxu1 %v9334_v33  ;;  %9335 = vmatpush3.bf16.msra.mxu0 %v9334_v33  ;;  %v9340_v12 = vpack.c.bf16 %v2992_v56, %v2991_v45  ;;  %v2976_v13 = vld [vmem:[#allocation10 + $0x628] sm:$0xff]  ;;  %v2994_v51 = vld [vmem:[#allocation10 + $0x6b8] sm:$0xff]  ;;  %v2977_v38 = vld [vmem:[#allocation10 + $0x630] sm:$0xff]  ;;  %s12005_s13 = smov (%p2860_p6), 0  }
 0x37c   : >> { %9717 = vmatprep.subr.bf16.mxu1 %v9336_v6  ;;  %9337 = vmatprep.subr.bf16.mxu0 %v9336_v6  ;;  %v9342_v34 = vpack.c.bf16 %v2976_v13, %v2975_v16  ;;  %v9344_v19 = vpack.c.bf16 %v2994_v51, %v2993_v55  ;;  %v2978_v36 = vld [vmem:[#allocation10 + $0x638] sm:$0xff]  ;;  %v2995_v32 = vld [vmem:[#allocation10 + $0x6c0] sm:$0xff]  ;;  %v2996_v30 = vld [vmem:[#allocation10 + $0x6c8] sm:$0xff] }
 0x37d   : >> { %v11345_v28 = vld [vmem:[%s11342_s20 + $0x57] sm:$0xff]  ;;  %v9346_v58 = vpack.c.bf16 %v2978_v36, %v2977_v38  ;;  %v9348_v42 = vpack.c.bf16 %v2996_v30, %v2995_v32  ;;  %v2979_v4 = vld [vmem:[#allocation10 + $0x640] sm:$0xff]  ;;  %v2980_v0 = vld [vmem:[#allocation10 + $0x648] sm:$0xff] }
 0x37e   : >> { %3107 = vmatprep.mubr.f32.mxu1 %v11345_v28  ;;  %v11349_v41 = vld [vmem:[%s11342_s20 + $0x17] sm:$0xff]  ;;  %v9350_v29 = vpack.c.bf16 %v2980_v0, %v2979_v4  ;;  %v2999_v15 = vld [vmem:[#allocation10 + $0x6e0] sm:$0xff]  ;;  %v3000_v37 = vld [vmem:[#allocation10 + $0x6e8] sm:$0xff] }
 0x37f   : >> { %9725 = vmatpush3.bf16.msra.mxu1 %v9338_v14  ;;  %9339 = vmatpush3.bf16.msra.mxu0 %v9338_v14  ;;  %v2997_v53 = vld [vmem:[#allocation10 + $0x6d0] sm:$0xff]  ;;  %v2998_v27 = vld [vmem:[#allocation10 + $0x6d8] sm:$0xff]  ;;  %v9356_v60 = vpack.c.bf16 %v3000_v37, %v2999_v15  ;;  %v2983_v54 = vld [vmem:[#allocation10 + $0x660] sm:$0xff] }
 0x380   : >> { %9718 = vmatprep.subr.bf16.mxu1 %v9340_v12  ;;  %9341 = vmatprep.subr.bf16.mxu0 %v9340_v12  ;;  %v9352_v63 = vpack.c.bf16 %v2998_v27, %v2997_v53  ;;  %v2981_v17 = vld [vmem:[#allocation10 + $0x650] sm:$0xff]  ;;  %v2982_v48 = vld [vmem:[#allocation10 + $0x658] sm:$0xff]  ;;  %v2984_v7 = vld [vmem:[#allocation10 + $0x668] sm:$0xff] }
 0x381   : >> { %3067 = vmatprep.mubr.f32.mxu0 %v11349_v41  ;;  %v9354_v46 = vpack.c.bf16 %v2982_v48, %v2981_v17  ;;  %v3001_v49 = vld [vmem:[#allocation10 + $0x6f0] sm:$0xff]  ;;  %v3002_v50 = vld [vmem:[#allocation10 + $0x6f8] sm:$0xff]  ;;  %v9358_v3 = vpack.c.bf16 %v2984_v7, %v2983_v54  ;;  %v2918_v18 = vld [vmem:[#allocation10 + $0x580] sm:$0xff] }
 0x382   : >> { %v9360_v62 = vpack.c.bf16 %v3002_v50, %v3001_v49  ;;  %v2985_v5 = vld [vmem:[#allocation10 + $0x670] sm:$0xff]  ;;  %v2986_v11 = vld [vmem:[#allocation10 + $0x678] sm:$0xff]  ;;  %v2919_v20 = vld [vmem:[#allocation10 + $0x588] sm:$0xff] }
 0x383   : >> { %9726 = vmatpush3.bf16.msra.mxu1 %v9342_v34  ;;  %9343 = vmatpush3.bf16.msra.mxu0 %v9342_v34  ;;  %v3346_v35 = vld [vmem:[#allocation10 + $0x780] sm:$0xff]  ;;  %v3347_v26 = vld [vmem:[#allocation10 + $0x788] sm:$0xff]  ;;  %v9362_v2 = vpack.c.bf16 %v2986_v11, %v2985_v5  ;;  %v9364_v40 = vpack.c.bf16 %v2919_v20, %v2918_v18  ;;  %v2920_v61 = vld [vmem:[#allocation10 + $0x590] sm:$0xff] }
 0x384   : >> { %9719 = vmatprep.subr.bf16.mxu1 %v9344_v19  ;;  %9345 = vmatprep.subr.bf16.mxu0 %v9344_v19  ;;  %v2902_v47 = vld [vmem:[#allocation10 + $0x500] sm:$0xff]  ;;  %v2903_v21 = vld [vmem:[#allocation10 + $0x508] sm:$0xff]  ;;  %v9396_v8 = vpack.c.bf16 %v3347_v26, %v3346_v35  ;;  %v2921_v25 = vld [vmem:[#allocation10 + $0x598] sm:$0xff] }
 0x385   : >> { %v3330_v57 = vld [vmem:[#allocation10 + $0x700] sm:$0xff]  ;;  %v3331_v1 = vld [vmem:[#allocation10 + $0x708] sm:$0xff]  ;;  %v3348_v24 = vld [vmem:[#allocation10 + $0x790] sm:$0xff]  ;;  %v9366_v23 = vpack.c.bf16 %v2903_v21, %v2902_v47  ;;  %v9368_v59 = vpack.c.bf16 %v2921_v25, %v2920_v61 }
 0x386   : >> { %v3349_v43 = vld [vmem:[#allocation10 + $0x798] sm:$0xff]  ;;  %v11353_v22 = vld [vmem:[%s11342_s20 + $0x47] sm:$0xff]  ;;  %v9398_v6 = vpack.c.bf16 %v3331_v1, %v3330_v57  ;;  %v2904_v39 = vld [vmem:[#allocation10 + $0x510] sm:$0xff] }
 0x387   : >> { %9727 = vmatpush3.bf16.msra.mxu1 %v9346_v58  ;;  %9347 = vmatpush3.bf16.msra.mxu0 %v9346_v58  ;;  %v7182_v44 = vld [vmem:[%s11342_s20 + $0x7] sm:$0xff]  ;;  %v11357_v33 = vld [vmem:[%s11342_s20 + $0x5f] sm:$0xff]  ;;  %v3332_v56 = vld [vmem:[#allocation10 + $0x710] sm:$0xff]  ;;  %v9400_v14 = vpack.c.bf16 %v3349_v43, %v3348_v24 }
 0x388   : >> { %9720 = vmatprep.subr.bf16.mxu1 %v9348_v42  ;;  %9349 = vmatprep.subr.bf16.mxu0 %v9348_v42  ;;  %v2905_v45 = vld [vmem:[#allocation10 + $0x518] sm:$0xff]  ;;  %v2922_v16 = vld [vmem:[#allocation10 + $0x5a0] sm:$0xff]  ;;  %v2923_v13 = vld [vmem:[#allocation10 + $0x5a8] sm:$0xff] }
 0x389   : >> { %v3333_v12 = vld [vmem:[#allocation10 + $0x718] sm:$0xff]  ;;  %v3350_v51 = vld [vmem:[#allocation10 + $0x7a0] sm:$0xff]  ;;  %v3351_v34 = vld [vmem:[#allocation10 + $0x7a8] sm:$0xff]  ;;  %v9370_v38 = vpack.c.bf16 %v2905_v45, %v2904_v39  ;;  %v9372_v58 = vpack.c.bf16 %v2923_v13, %v2922_v16 }
 0x38a   : >> { %v11361_v55 = vld [vmem:[%s11342_s20 + $0x1f] sm:$0xff]  ;;  %v11365_v19 = vld [vmem:[%s11342_s20 + $0x4f] sm:$0xff]  ;;  %v11369_v32 = vld [vmem:[%s11342_s20 + $0x67] sm:$0xff]  ;;  %v9402_v30 = vpack.c.bf16 %v3333_v12, %v3332_v56  ;;  %v9404_v53 = vpack.c.bf16 %v3351_v34, %v3350_v51 }
 0x38b   : >> { %9728 = vmatpush3.bf16.msra.mxu1 %v9350_v29  ;;  %9351 = vmatpush3.bf16.msra.mxu0 %v9350_v29  ;;  %v7183_v36 = vld [vmem:[%s11342_s20 + $0xf] sm:$0xff]  ;;  %v2906_v42 = vld [vmem:[#allocation10 + $0x520] sm:$0xff]  ;;  %v3353_v15 = vld [vmem:[#allocation10 + $0x7b8] sm:$0xff] }
 0x38c   : >> { %9721 = vmatprep.subr.bf16.mxu1 %v9352_v63  ;;  %9353 = vmatprep.subr.bf16.mxu0 %v9352_v63  ;;  %v2907_v4 = vld [vmem:[#allocation10 + $0x528] sm:$0xff]  ;;  %v3334_v0 = vld [vmem:[#allocation10 + $0x720] sm:$0xff]  ;;  %v2924_v29 = vld [vmem:[#allocation10 + $0x5b0] sm:$0xff] }
 0x38d   : >> { %v3335_v27 = vld [vmem:[#allocation10 + $0x728] sm:$0xff]  ;;  %v2925_v63 = vld [vmem:[#allocation10 + $0x5b8] sm:$0xff]  ;;  %v3352_v48 = vld [vmem:[#allocation10 + $0x7b0] sm:$0xff]  ;;  %v9374_v37 = vpack.c.bf16 %v2907_v4, %v2906_v42 }
 0x38e   : >> { %v11374_v17 = vld [vmem:[%s11342_s20 + $0x27] sm:$0xff]  ;;  %v9376_v54 = vpack.c.bf16 %v2925_v63, %v2924_v29  ;;  %v2908_v7 = vld [vmem:[#allocation10 + $0x530] sm:$0xff]  ;;  %v2909_v49 = vld [vmem:[#allocation10 + $0x538] sm:$0xff] }
 0x38f   : >> { %9729 = vmatpush3.bf16.msra.mxu1 %v9354_v46  ;;  %9355 = vmatpush3.bf16.msra.mxu0 %v9354_v46  ;;  %v11378_v46 = vld [vmem:[%s11342_s20 + $0x6f] sm:$0xff]  ;;  %v2926_v5 = vld [vmem:[#allocation10 + $0x5c0] sm:$0xff]  ;;  %v9378_v26 = vpack.c.bf16 %v2909_v49, %v2908_v7  ;;  %v2929_v61 = vld [vmem:[#allocation10 + $0x5d8] sm:$0xff] }
 0x390   : >> { %9722 = vmatprep.subr.bf16.mxu1 %v9356_v60  ;;  %9357 = vmatprep.subr.bf16.mxu0 %v9356_v60  ;;  %v9406_v60 = vpack.c.bf16 %v3335_v27, %v3334_v0  ;;  %v3336_v50 = vld [vmem:[#allocation10 + $0x730] sm:$0xff]  ;;  %v2927_v11 = vld [vmem:[#allocation10 + $0x5c8] sm:$0xff]  ;;  %v3354_v20 = vld [vmem:[#allocation10 + $0x7c0] sm:$0xff] }
 0x391   : >> { %v11384_v18 = vld [vmem:[%s11342_s20 + $0x2f] sm:$0xff]  ;;  %v9380_v47 = vpack.c.bf16 %v2927_v11, %v2926_v5  ;;  %v2910_v21 = vld [vmem:[#allocation10 + $0x540] sm:$0xff]  ;;  %v11394_v25 = vld [vmem:[%s11342_s20 + $0x37] sm:$0xff] }
 0x392   : >> { %v3355_v35 = vld [vmem:[#allocation10 + $0x7c8] sm:$0xff]  ;;  %v2928_v1 = vld [vmem:[#allocation10 + $0x5d0] sm:$0xff]  ;;  %v3357_v43 = vld [vmem:[#allocation10 + $0x7d8] sm:$0xff] }
 0x393   : >> { %9730 = vmatpush3.bf16.msra.mxu1 %v9358_v3  ;;  %9359 = vmatpush3.bf16.msra.mxu0 %v9358_v3  ;;  %v9408_v3 = vpack.c.bf16 %v3353_v15, %v3352_v48  ;;  %v3339_v57 = vld [vmem:[#allocation10 + $0x748] sm:$0xff]  ;;  %v3356_v24 = vld [vmem:[#allocation10 + $0x7d0] sm:$0xff]  ;;  %v2913_v45 = vld [vmem:[#allocation10 + $0x558] sm:$0xff] }
 0x394   : >> { %9723 = vmatprep.subr.bf16.mxu1 %v9360_v62  ;;  %9361 = vmatprep.subr.bf16.mxu0 %v9360_v62  ;;  %v3337_v62 = vld [vmem:[#allocation10 + $0x738] sm:$0xff]  ;;  %v2912_v39 = vld [vmem:[#allocation10 + $0x550] sm:$0xff]  ;;  %v9416_v56 = vpack.c.bf16 %v3357_v43, %v3356_v24  ;;  %v2930_v12 = vld [vmem:[#allocation10 + $0x5e0] sm:$0xff] }
 0x395   : >> { %v2931_v16 = vld [vmem:[#allocation10 + $0x5e8] sm:$0xff]  ;;  %v7204_v13 = vld [vmem:[%s11342_s20 + $0x3f] sm:$0xff]  ;;  %v9386_v34 = vpack.c.bf16 %v2913_v45, %v2912_v39  ;;  %v3360_v29 = vld [vmem:[#allocation10 + $0x7f0] sm:$0xff] }
 0x396   : >> { %v3359_v51 = vld [vmem:[#allocation10 + $0x7e8] sm:$0xff]  ;;  %v3342_v4 = vld [vmem:[#allocation10 + $0x760] sm:$0xff]  ;;  %v2933_v27 = vld [vmem:[#allocation10 + $0x5f8] sm:$0xff] }
 0x397   : >> { %9731 = vmatpush3.bf16.msra.mxu1 %v9362_v2  ;;  %9363 = vmatpush3.bf16.msra.mxu0 %v9362_v2  ;;  %v11388_v2 = vld [vmem:[%s11342_s20 + $0x77] sm:$0xff]  ;;  %v2915_v42 = vld [vmem:[#allocation10 + $0x568] sm:$0xff]  ;;  %v7234_v43 = vld [vmem:[%s11342_s20 + $0x21] sm:$0xff] }
 0x398   : >> { %9365 = vmatprep.subr.bf16.mxu1 %v9364_v40  ;;  %9397 = vmatprep.subr.bf16.mxu0 %v9396_v8  ;;  %v9410_v40 = vpack.c.bf16 %v3337_v62, %v3336_v50  ;;  %v2911_v8 = vld [vmem:[#allocation10 + $0x548] sm:$0xff]  ;;  %v3361_v63 = vld [vmem:[#allocation10 + $0x7f8] sm:$0xff]  ;;  %v3344_v7 = vld [vmem:[#allocation10 + $0x770] sm:$0xff] }
 0x399   : >> { %v3343_v0 = vld [vmem:[#allocation10 + $0x768] sm:$0xff]  ;;  %v3345_v49 = vld [vmem:[#allocation10 + $0x778] sm:$0xff]  ;;  %v3576_v50 = vld [vmem:[#allocation10 + $0x880] sm:$0xff] }
 0x39a   : >> { %3108 = vmatmul.mubr.f32.vlgmr.msra.gmra.mrb[0].mxu1 %v11353_v22  ;;  %3068 = vmatmul.mubr.f32.vlgmr.msra.gmra.mrb[0].mxu0 %v7182_v44  ;;  %v11398_v44 = vld [vmem:[%s11342_s20 + $0x7f] sm:$0xff]  ;;  %v7214_v48 = vld [vmem:[%s11342_s20 + $0x8f] sm:$0xff]  ;;  %v9422_v15 = vpack.c.bf16 %v3343_v0, %v3342_v4 }
 0x39b   : >> { %9367 = vmatpush3.bf16.msra.mxu1 %v9366_v23  ;;  %3112 = vmatprep.mubr.f32.mxu1 %v11357_v33  ;;  %v9382_v23 = vpack.c.bf16 %v2911_v8, %v2910_v21  ;;  %v3788_v62 = vld [vmem:[#allocation10 + $0x980] sm:$0xff]  ;;  %v3789_v5 = vld [vmem:[#allocation10 + $0x988] sm:$0xff]  ;;  %v7233_v21 = vld [vmem:[%s11342_s20 + $0x19] sm:$0xff] }
 0x39c   : >> { %9399 = vmatpush3.bf16.msra.mxu0 %v9398_v6  ;;  %9369 = vmatprep.subr.bf16.mxu1 %v9368_v59  ;;  %v9384_v59 = vpack.c.bf16 %v2929_v61, %v2928_v1  ;;  %v3578_v8 = vld [vmem:[#allocation10 + $0x890] sm:$0xff]  ;;  %v3791_v61 = vld [vmem:[#allocation10 + $0x998] sm:$0xff] }
 0x39d   : >> { %3072 = vmatprep.mubr.f32.mxu0 %v11361_v55  ;;  %9401 = vmatprep.subr.bf16.mxu0 %v9400_v14  ;;  %v3341_v14 = vld [vmem:[#allocation10 + $0x758] sm:$0xff]  ;;  %v3790_v1 = vld [vmem:[#allocation10 + $0x990] sm:$0xff] }
 0x39e   : >> { %3113 = vmatmul.mubr.f32.gmra.mrb[2].mxu1 %v11365_v19  ;;  %3073 = vmatmul.mubr.f32.gmra.mrb[2].mxu0 %v7183_v36  ;;  %v9464_v39 = vpack.c.bf16 %v3791_v61, %v3790_v1  ;;  %v3775_v45 = vld [vmem:[#allocation10 + $0x918] sm:$0xff]  ;;  %v3582_v0 = vld [vmem:[#allocation10 + $0x8b0] sm:$0xff] }
 0x39f   : >> { %9371 = vmatpush3.bf16.msra.mxu1 %v9370_v38  ;;  %3117 = vmatprep.mubr.f32.mxu1 %v11369_v32  ;;  %v7213_v38 = vld [vmem:[%s11342_s20 + $0x87] sm:$0xff]  ;;  %v3586_v1 = vld [vmem:[#allocation10 + $0x8d0] sm:$0xff]  ;;  %v3587_v61 = vld [vmem:[#allocation10 + $0x8d8] sm:$0xff] }
 0x3a0   : >> { %9403 = vmatpush3.bf16.msra.mxu0 %v9402_v30  ;;  %9373 = vmatprep.subr.bf16.mxu1 %v9372_v58  ;;  %v9388_v30 = vpack.c.bf16 %v2931_v16, %v2930_v12  ;;  %v2914_v58 = vld [vmem:[#allocation10 + $0x560] sm:$0xff]  ;;  %v3793_v16 = vld [vmem:[#allocation10 + $0x9a8] sm:$0xff] }
 0x3a1   : >> { %3077 = vmatprep.mubr.f32.mxu0 %v11374_v17  ;;  %9405 = vmatprep.subr.bf16.mxu0 %v9404_v53  ;;  %v2932_v53 = vld [vmem:[#allocation10 + $0x5f0] sm:$0xff]  ;;  %v3792_v12 = vld [vmem:[#allocation10 + $0x9a0] sm:$0xff] }
 0x3a2   : >> { %3118 = vmatmul.mubr.f32.gmra.mrb[4].mxu1 %v11345_v28  ;;  %3078 = vmatmul.mubr.f32.gmra.mrb[4].mxu0 %v11349_v41  ;;  %v3338_v28 = vld [vmem:[#allocation10 + $0x740] sm:$0xff]  ;;  %v9412_v41 = vpack.c.bf16 %v3355_v35, %v3354_v20  ;;  %v9426_v20 = vpack.c.bf16 %v3345_v49, %v3344_v7  ;;  %v9468_v4 = vpack.c.bf16 %v3793_v16, %v3792_v12  ;;  %v3566_v7 = vld [vmem:[#allocation10 + $0x830] sm:$0xff]  ;;  %v3783_v12 = vld [vmem:[#allocation10 + $0x958] sm:$0xff] }
 0x3a3   : >> { %9375 = vmatpush3.bf16.msra.mxu1 %v9374_v37  ;;  %3122 = vmatprep.mubr.f32.mxu1 %v11378_v46  ;;  %v9414_v6 = vpack.c.bf16 %v3339_v57, %v3338_v28  ;;  %v9392_v37 = vpack.c.bf16 %v2933_v27, %v2932_v53  ;;  %v3560_v35 = vld [vmem:[#allocation10 + $0x800] sm:$0xff]  ;;  %v3579_v28 = vld [vmem:[#allocation10 + $0x898] sm:$0xff]  ;;  %v3778_v49 = vld [vmem:[#allocation10 + $0x930] sm:$0xff] }
 0x3a4   : >> { %9407 = vmatpush3.bf16.msra.mxu0 %v9406_v60  ;;  %9377 = vmatprep.subr.bf16.mxu1 %v9376_v54  ;;  %v2916_v60 = vld [vmem:[#allocation10 + $0x570] sm:$0xff]  ;;  %v2917_v54 = vld [vmem:[#allocation10 + $0x578] sm:$0xff]  ;;  %v3588_v16 = vld [vmem:[#allocation10 + $0x8e0] sm:$0xff] }
 0x3a5   : >> { %3082 = vmatprep.mubr.f32.mxu0 %v11384_v18  ;;  %9409 = vmatprep.subr.bf16.mxu0 %v9408_v3  ;;  %v3577_v3 = vld [vmem:[#allocation10 + $0x888] sm:$0xff]  ;;  %v9394_v11 = vpack.c.bf16 %v2917_v54, %v2916_v60  ;;  %v3583_v53 = vld [vmem:[#allocation10 + $0x8b8] sm:$0xff] }
 0x3a6   : >> { %3123 = vmatmul.mubr.f32.gmra.mrb[6].mxu1 %v11357_v33  ;;  %3083 = vmatmul.mubr.f32.gmra.mrb[6].mxu0 %v11361_v55  ;;  %v3340_v33 = vld [vmem:[#allocation10 + $0x750] sm:$0xff]  ;;  %v3358_v55 = vld [vmem:[#allocation10 + $0x7e0] sm:$0xff]  ;;  %v9440_v54 = vpack.c.bf16 %v3583_v53, %v3582_v0  ;;  %v3573_v53 = vld [vmem:[#allocation10 + $0x868] sm:$0xff] }
 0x3a7   : >> { %9379 = vmatpush3.bf16.msra.mxu1 %v9378_v26  ;;  %3127 = vmatprep.mubr.f32.mxu1 %v11388_v2  ;;  %v9418_v36 = vpack.c.bf16 %v3341_v14, %v3340_v33  ;;  %v3561_v26 = vld [vmem:[#allocation10 + $0x808] sm:$0xff]  ;;  %v3580_v33 = vld [vmem:[#allocation10 + $0x8a0] sm:$0xff]  ;;  %v7150_v27 = vld [vmem:[%s11342_s20 + $0x15] sm:$0xff] }
 0x3a8   : >> { %9411 = vmatpush3.bf16.msra.mxu0 %v9410_v40  ;;  %9381 = vmatprep.subr.bf16.mxu1 %v9380_v47  ;;  %v3772_v40 = vld [vmem:[#allocation10 + $0x900] sm:$0xff]  ;;  %v3773_v47 = vld [vmem:[#allocation10 + $0x908] sm:$0xff]  ;;  %v9430_v57 = vpack.c.bf16 %v3561_v26, %v3560_v35  ;;  %v11438_v26 = vld [vmem:[%s11342_s20 + $0x39] sm:$0xff] }
 0x3a9   : >> { %3087 = vmatprep.mubr.f32.mxu0 %v11394_v25  ;;  %9413 = vmatprep.subr.bf16.mxu0 %v9412_v41  ;;  %v7148_v41 = vld [vmem:[%s11342_s20 + $0x5] sm:$0xff]  ;;  %v9462_v24 = vpack.c.bf16 %v3773_v47, %v3772_v40  ;;  %v7149_v14 = vld [vmem:[%s11342_s20 + $0xd] sm:$0xff] }
 0x3aa   : >> { %3128 = vmatmul.mubr.f32.gmra.mrb[8].mxu1 %v11369_v32  ;;  %3088 = vmatmul.mubr.f32.gmra.mrb[8].mxu0 %v11374_v17  ;;  %v9420_v32 = vpack.c.bf16 %v3359_v51, %v3358_v55  ;;  %v9390_v17 = vpack.c.bf16 %v2915_v42, %v2914_v58  ;;  %v7167_v55 = vld [vmem:[%s11342_s20 + $0x16] sm:$0xff]  ;;  %v11424_v51 = vld [vmem:[%s11342_s20 + $0x29] sm:$0xff] }
 0x3ab   : >> { %9383 = vmatpush3.bf16.msra.mxu1 %v9382_v23  ;;  %3132 = vmatprep.mubr.f32.mxu1 %v11398_v44  ;;  %v9432_v23 = vpack.c.bf16 %v3579_v28, %v3578_v8  ;;  %v3565_v58 = vld [vmem:[#allocation10 + $0x828] sm:$0xff]  ;;  %v3776_v42 = vld [vmem:[#allocation10 + $0x920] sm:$0xff] }
 0x3ac   : >> { %9415 = vmatpush3.bf16.msra.mxu0 %v9414_v6  ;;  %9385 = vmatprep.subr.bf16.mxu1 %v9384_v59  ;;  %v3563_v6 = vld [vmem:[#allocation10 + $0x818] sm:$0xff]  ;;  %v3774_v59 = vld [vmem:[#allocation10 + $0x910] sm:$0xff]  ;;  %v7169_v35 = vld [vmem:[%s11342_s20 + $0x26] sm:$0xff] }
 0x3ad   : >> { %3092 = vmatprep.mubr.f32.mxu0 %v7204_v13  ;;  %9417 = vmatprep.subr.bf16.mxu0 %v9416_v56  ;;  %v3581_v56 = vld [vmem:[#allocation10 + $0x8a8] sm:$0xff]  ;;  %v3780_v28 = vld [vmem:[#allocation10 + $0x940] sm:$0xff] }
 0x3ae   : >> { %3133 = vmatmul.mubr.f32.gmra.mrb[10].mxu1 %v11378_v46  ;;  %3093 = vmatmul.mubr.f32.gmra.mrb[10].mxu0 %v11384_v18  ;;  %v9424_v46 = vpack.c.bf16 %v3361_v63, %v3360_v29  ;;  %v7165_v18 = vld [vmem:[%s11342_s20 + $0x6] sm:$0xff]  ;;  %v3794_v29 = vld [vmem:[#allocation10 + $0x9b0] sm:$0xff]  ;;  %v3795_v63 = vld [vmem:[#allocation10 + $0x9b8] sm:$0xff] }
 0x3af   : >> { %9387 = vmatpush3.bf16.msra.mxu1 %v9386_v34  ;;  %3137 = vmatprep.mubr.f32.mxu1 %v7213_v38  ;;  %v9466_v38 = vpack.c.bf16 %v3775_v45, %v3774_v59  ;;  %v3569_v8 = vld [vmem:[#allocation10 + $0x848] sm:$0xff]  ;;  %v3570_v45 = vld [vmem:[#allocation10 + $0x850] sm:$0xff]  ;;  %v3572_v0 = vld [vmem:[#allocation10 + $0x860] sm:$0xff] }
 0x3b0   : >> { %9419 = vmatpush3.bf16.msra.mxu0 %v9418_v36  ;;  %9389 = vmatprep.subr.bf16.mxu1 %v9388_v30  ;;  %v9436_v36 = vpack.c.bf16 %v3581_v56, %v3580_v33  ;;  %v3564_v30 = vld [vmem:[#allocation10 + $0x820] sm:$0xff]  ;;  %v3571_v33 = vld [vmem:[#allocation10 + $0x858] sm:$0xff]  ;;  %v3782_v56 = vld [vmem:[#allocation10 + $0x950] sm:$0xff] }
 0x3b1   : >> { %3097 = vmatprep.mubr.f32.mxu0 %v11353_v22  ;;  %9421 = vmatprep.subr.bf16.mxu0 %v9420_v32  ;;  %v9428_v22 = vpack.c.bf16 %v3577_v3, %v3576_v50  ;;  %v3777_v32 = vld [vmem:[#allocation10 + $0x928] sm:$0xff]  ;;  %v9472_v50 = vpack.c.bf16 %v3795_v63, %v3794_v29  ;;  %v3779_v3 = vld [vmem:[#allocation10 + $0x938] sm:$0xff] }
 0x3b2   : >> { %3138 = vmatmul.mubr.f32.gmra.mrb[12].mxu1 %v11388_v2  ;;  %3098 = vmatmul.mubr.f32.gmra.mrb[12].mxu0 %v11394_v25  ;;  %v9460_v2 = vpack.c.bf16 %v3789_v5, %v3788_v62  ;;  %v7166_v25 = vld [vmem:[%s11342_s20 + $0xe] sm:$0xff]  ;;  %v9470_v60 = vpack.c.bf16 %v3777_v32, %v3776_v42  ;;  %v3584_v62 = vld [vmem:[#allocation10 + $0x8c0] sm:$0xff]  ;;  %v9474_v40 = vpack.c.bf16 %v3779_v3, %v3778_v49 }
 0x3b3   : >> { %9391 = vmatpush3.bf16.msra.mxu1 %v9390_v17  ;;  %3142 = vmatprep.mubr.f32.mxu1 %v7214_v48  ;;  %v7218_v17 = vld [vmem:[%s11342_s20 + $0x28] sm:$0xff]  ;;  %v7168_v48 = vld [vmem:[%s11342_s20 + $0x1e] sm:$0xff]  ;;  %v9450_v42 = vpack.c.bf16 %v3571_v33, %v3570_v45  ;;  %v9454_v49 = vpack.c.bf16 %v3573_v53, %v3572_v0  ;;  %v7227_v45 = vld [vmem:[%s11342_s20 + $0x70] sm:$0xff] }
 0x3b4   : >> { %9423 = vmatpush3.bf16.msra.mxu0 %v9422_v15  ;;  %9393 = vmatprep.subr.bf16.mxu1 %v9392_v37  ;;  %v11431_v15 = vld [vmem:[%s11342_s20 + $0x31] sm:$0xff]  ;;  %v9438_v37 = vpack.c.bf16 %v3565_v58, %v3564_v30  ;;  %v11452_v58 = vld [vmem:[%s11342_s20 + $0x49] sm:$0xff]  ;;  %v7163_v0 = vld [vmem:[%s11342_s20 + $0x7d] sm:$0xff] }
 0x3b5   : >> { %3102 = vmatprep.mubr.f32.mxu0 %v11365_v19  ;;  %9425 = vmatprep.subr.bf16.mxu0 %v9424_v46  ;;  %v7216_v19 = vld [vmem:[%s11342_s20 + $0x18] sm:$0xff]  ;;  %v3585_v5 = vld [vmem:[#allocation10 + $0x8c8] sm:$0xff] }
 0x3b6   : >> { %3143 = vmatmul.mubr.f32.gmra.mrb[14].mxu1 %v11398_v44  ;;  %3103 = vmatmul.mubr.f32.gmra.mrb[14].mxu0 %v7204_v13  ;;  %v3562_v44 = vld [vmem:[#allocation10 + $0x810] sm:$0xff]  ;;  %v7217_v13 = vld [vmem:[%s11342_s20 + $0x20] sm:$0xff]  ;;  %v9444_v47 = vpack.c.bf16 %v3585_v5, %v3584_v62  ;;  %v3785_v63 = vld [vmem:[#allocation10 + $0x968] sm:$0xff] }
 0x3b7   : >> { %9395 = vmatpush3.bf16.msra.mxu1 %v9394_v11  ;;  %3212 = vmatprep.mubr.f32.mxu1 %v7165_v18  ;;  %v9434_v34 = vpack.c.bf16 %v3563_v6, %v3562_v44  ;;  %v3567_v46 = vld [vmem:[#allocation10 + $0x838] sm:$0xff]  ;;  %v3796_v18 = vld [vmem:[#allocation10 + $0x9c0] sm:$0xff]  ;;  %v3574_v5 = vld [vmem:[#allocation10 + $0x870] sm:$0xff] }
 0x3b8   : >> { %9427 = vmatpush3.bf16.msra.mxu0 %v9426_v20  ;;  %9429 = vmatprep.subr.bf16.mxu1 %v9428_v22  ;;  %v7151_v11 = vld [vmem:[%s11342_s20 + $0x1d] sm:$0xff]  ;;  %v3797_v20 = vld [vmem:[#allocation10 + $0x9c8] sm:$0xff] }
 0x3b9   : >> { %3426 = vmatprep.mubr.f32.mxu0 %v7233_v21  ;;  %9461 = vmatprep.subr.bf16.mxu0 %v9460_v2  ;;  %v7219_v22 = vld [vmem:[%s11342_s20 + $0x30] sm:$0xff]  ;;  %v9442_v2 = vpack.c.bf16 %v3567_v46, %v3566_v7  ;;  %v3568_v21 = vld [vmem:[#allocation10 + $0x840] sm:$0xff] }
 0x3ba   : >> { %3213 = vmatmul.mubr.f32.vlgmr.msra.gmra.mrb[16].mxu1 %v7148_v41  ;;  %v9476_v41 = vpack.c.bf16 %v3797_v20, %v3796_v18  ;;  %v11445_v44 = vld [vmem:[%s11342_s20 + $0x41] sm:$0xff]  ;;  %v9446_v6 = vpack.c.bf16 %v3569_v8, %v3568_v21  ;;  %v7171_v30 = vld [vmem:[%s11342_s20 + $0x36] sm:$0xff] }
 0x3bb   : >> { %9431 = vmatpush3.bf16.msra.mxu1 %v9430_v57  ;;  %3427 = vmatmul.mubr.f32.vlgmr.msra.gmra.mrb[16].mxu0 %v7216_v19  ;;  %v3781_v57 = vld [vmem:[#allocation10 + $0x948] sm:$0xff]  ;;  %v7172_v46 = vld [vmem:[%s11342_s20 + $0x3e] sm:$0xff]  ;;  %v3786_v20 = vld [vmem:[#allocation10 + $0x970] sm:$0xff] }
 0x3bc   : >> { %3217 = vmatprep.mubr.f32.mxu1 %v7166_v25  ;;  %9463 = vmatpush3.bf16.msra.mxu0 %v9462_v24  ;;  %v7152_v19 = vld [vmem:[%s11342_s20 + $0x25] sm:$0xff]  ;;  %v3798_v25 = vld [vmem:[#allocation10 + $0x9d0] sm:$0xff]  ;;  %v3799_v24 = vld [vmem:[#allocation10 + $0x9d8] sm:$0xff]  ;;  %v9478_v59 = vpack.c.bf16 %v3781_v57, %v3780_v28 }
 0x3bd   : >> { %3431 = vmatprep.mubr.f32.mxu0 %v7234_v43  ;;  %9433 = vmatprep.subr.bf16.mxu1 %v9432_v23  ;;  %v7220_v43 = vld [vmem:[%s11342_s20 + $0x38] sm:$0xff]  ;;  %v7170_v23 = vld [vmem:[%s11342_s20 + $0x2e] sm:$0xff]  ;;  %v7156_v28 = vld [vmem:[%s11342_s20 + $0x45] sm:$0xff] }
 0x3be   : >> { %3218 = vmatmul.mubr.f32.gmra.mrb[18].mxu1 %v7149_v14  ;;  %9465 = vmatprep.subr.bf16.mxu0 %v9464_v39  ;;  %v9448_v39 = vpack.c.bf16 %v3587_v61, %v3586_v1  ;;  %v9480_v14 = vpack.c.bf16 %v3799_v24, %v3798_v25  ;;  %v7222_v7 = vld [vmem:[%s11342_s20 + $0x48] sm:$0xff]  ;;  %v11466_v21 = vld [vmem:[%s11342_s20 + $0x59] sm:$0xff]  ;;  %v7231_v53 = vld [vmem:[%s11342_s20 + $0x90] sm:$0xff] }
 0x3bf   : >> { %3432 = vmatmul.mubr.f32.gmra.mrb[18].mxu0 %v7217_v13  ;;  %3222 = vmatprep.mubr.f32.mxu1 %v7167_v55  ;;  %v3589_v13 = vld [vmem:[#allocation10 + $0x8e8] sm:$0xff]  ;;  %v11473_v1 = vld [vmem:[%s11342_s20 + $0x61] sm:$0xff]  ;;  %v7175_v25 = vld [vmem:[%s11342_s20 + $0x56] sm:$0xff] }
 0x3c0   : >> { %3436 = vmatprep.mubr.f32.mxu0 %v11424_v51  ;;  %9435 = vmatpush3.bf16.msra.mxu1 %v9434_v34  ;;  %v7153_v55 = vld [vmem:[%s11342_s20 + $0x2d] sm:$0xff]  ;;  %v3800_v34 = vld [vmem:[#allocation10 + $0x9e0] sm:$0xff]  ;;  %v9452_v32 = vpack.c.bf16 %v3589_v13, %v3588_v16 }
 0x3c1   : >> { %9467 = vmatpush3.bf16.msra.mxu0 %v9466_v38  ;;  %9437 = vmatprep.subr.bf16.mxu1 %v9436_v36  ;;  %v3801_v38 = vld [vmem:[#allocation10 + $0x9e8] sm:$0xff]  ;;  %v7221_v36 = vld [vmem:[%s11342_s20 + $0x40] sm:$0xff] }
 0x3c2   : >> { %3223 = vmatmul.mubr.f32.gmra.mrb[20].mxu1 %v7150_v27  ;;  %9469 = vmatprep.subr.bf16.mxu0 %v9468_v4  ;;  %v9482_v4 = vpack.c.bf16 %v3783_v12, %v3782_v56  ;;  %v3784_v27 = vld [vmem:[#allocation10 + $0x960] sm:$0xff]  ;;  %v9484_v29 = vpack.c.bf16 %v3801_v38, %v3800_v34  ;;  %v7174_v57 = vld [vmem:[%s11342_s20 + $0x4e] sm:$0xff]  ;;  %v11494_v56 = vld [vmem:[%s11342_s20 + $0x79] sm:$0xff] }
 0x3c3   : >> { %3437 = vmatmul.mubr.f32.gmra.mrb[20].mxu0 %v7218_v17  ;;  %3227 = vmatprep.mubr.f32.mxu1 %v7168_v48  ;;  %v3590_v17 = vld [vmem:[#allocation10 + $0x8f0] sm:$0xff]  ;;  %v3591_v48 = vld [vmem:[#allocation10 + $0x8f8] sm:$0xff]  ;;  %v9486_v3 = vpack.c.bf16 %v3785_v63, %v3784_v27  ;;  %v11480_v24 = vld [vmem:[%s11342_s20 + $0x69] sm:$0xff] }
 0x3c4   : >> { %3441 = vmatprep.mubr.f32.mxu0 %v11431_v15  ;;  %9439 = vmatpush3.bf16.msra.mxu1 %v9438_v37  ;;  %v7154_v37 = vld [vmem:[%s11342_s20 + $0x35] sm:$0xff]  ;;  %v9456_v62 = vpack.c.bf16 %v3591_v48, %v3590_v17  ;;  %v7157_v61 = vld [vmem:[%s11342_s20 + $0x4d] sm:$0xff]  ;;  %v11501_v13 = vld [vmem:[%s11342_s20 + $0x81] sm:$0xff] }
 0x3c5   : >> { %9471 = vmatpush3.bf16.msra.mxu0 %v9470_v60  ;;  %9441 = vmatprep.subr.bf16.mxu1 %v9440_v54  ;;  %v3802_v60 = vld [vmem:[#allocation10 + $0x9f0] sm:$0xff]  ;;  %v3803_v54 = vld [vmem:[#allocation10 + $0x9f8] sm:$0xff]  ;;  %v7177_v33 = vld [vmem:[%s11342_s20 + $0x66] sm:$0xff] }
 0x3c6   : >> { %3228 = vmatmul.mubr.f32.gmra.mrb[22].mxu1 %v7151_v11  ;;  %9473 = vmatprep.subr.bf16.mxu0 %v9472_v50  ;;  %v11459_v50 = vld [vmem:[%s11342_s20 + $0x51] sm:$0xff]  ;;  %v3575_v11 = vld [vmem:[#allocation10 + $0x878] sm:$0xff]  ;;  %v9488_v18 = vpack.c.bf16 %v3803_v54, %v3802_v60  ;;  %v7270_v60 = vld [vmem:[%s11342_s20 + $0x42] sm:$0xff] }
 0x3c7   : >> { %3442 = vmatmul.mubr.f32.gmra.mrb[22].mxu0 %v7219_v22  ;;  %3232 = vmatprep.mubr.f32.mxu1 %v7169_v35  ;;  %v3787_v22 = vld [vmem:[#allocation10 + $0x978] sm:$0xff]  ;;  %v7178_v16 = vld [vmem:[%s11342_s20 + $0x6e] sm:$0xff]  ;;  %v7287_v54 = vld [vmem:[%s11342_s20 + $0x43] sm:$0xff] }
 0x3c8   : >> { %3446 = vmatprep.mubr.f32.mxu0 %v11438_v26  ;;  %9443 = vmatpush3.bf16.msra.mxu1 %v9442_v2  ;;  %v7155_v35 = vld [vmem:[%s11342_s20 + $0x3d] sm:$0xff]  ;;  %v7223_v2 = vld [vmem:[%s11342_s20 + $0x50] sm:$0xff]  ;;  %v9490_v8 = vpack.c.bf16 %v3787_v22, %v3786_v20 }
 0x3c9   : >> { %9475 = vmatpush3.bf16.msra.mxu0 %v9474_v40  ;;  %9445 = vmatprep.subr.bf16.mxu1 %v9444_v47  ;;  %v7173_v40 = vld [vmem:[%s11342_s20 + $0x46] sm:$0xff]  ;;  %v9458_v47 = vpack.c.bf16 %v3575_v11, %v3574_v5  ;;  %v7228_v12 = vld [vmem:[%s11342_s20 + $0x78] sm:$0xff] }
 0x3ca   : >> { %3233 = vmatmul.mubr.f32.gmra.mrb[24].mxu1 %v7152_v19  ;;  %9477 = vmatprep.subr.bf16.mxu0 %v9476_v41  ;;  %v7224_v41 = vld [vmem:[%s11342_s20 + $0x58] sm:$0xff]  ;;  %v7225_v19 = vld [vmem:[%s11342_s20 + $0x60] sm:$0xff]  ;;  %v7267_v27 = vld [vmem:[%s11342_s20 + $0x2a] sm:$0xff] }
 0x3cb   : >> { %3447 = vmatmul.mubr.f32.gmra.mrb[24].mxu0 %v7220_v43  ;;  %3237 = vmatprep.mubr.f32.mxu1 %v7170_v23  ;;  %v7158_v43 = vld [vmem:[%s11342_s20 + $0x55] sm:$0xff]  ;;  %v7226_v23 = vld [vmem:[%s11342_s20 + $0x68] sm:$0xff]  ;;  %v7229_v34 = vld [vmem:[%s11342_s20 + $0x80] sm:$0xff] }
 0x3cc   : >> { %3451 = vmatprep.mubr.f32.mxu0 %v11445_v44  ;;  %9447 = vmatpush3.bf16.msra.mxu1 %v9446_v6  ;;  %v7176_v6 = vld [vmem:[%s11342_s20 + $0x5e] sm:$0xff]  ;;  %v7179_v38 = vld [vmem:[%s11342_s20 + $0x76] sm:$0xff] }
 0x3cd   : >> { %9479 = vmatpush3.bf16.msra.mxu0 %v9478_v59  ;;  %9449 = vmatprep.subr.bf16.mxu1 %v9448_v39  ;;  %v11487_v59 = vld [vmem:[%s11342_s20 + $0x71] sm:$0xff]  ;;  %v7159_v39 = vld [vmem:[%s11342_s20 + $0x5d] sm:$0xff] }
 0x3ce   : >> { %3238 = vmatmul.mubr.f32.gmra.mrb[26].mxu1 %v7153_v55  ;;  %9481 = vmatprep.subr.bf16.mxu0 %v9480_v14  ;;  %v7160_v14 = vld [vmem:[%s11342_s20 + $0x65] sm:$0xff]  ;;  %v7161_v55 = vld [vmem:[%s11342_s20 + $0x6d] sm:$0xff]  ;;  %v7269_v48 = vld [vmem:[%s11342_s20 + $0x3a] sm:$0xff] }
 0x3cf   : >> { %3452 = vmatmul.mubr.f32.gmra.mrb[26].mxu0 %v7221_v36  ;;  %3242 = vmatprep.mubr.f32.mxu1 %v7171_v30  ;;  %v11508_v36 = vld [vmem:[%s11342_s20 + $0x89] sm:$0xff]  ;;  %v7162_v30 = vld [vmem:[%s11342_s20 + $0x75] sm:$0xff] }
 0x3d0   : >> { %3456 = vmatprep.mubr.f32.mxu0 %v11452_v58  ;;  %9451 = vmatpush3.bf16.msra.mxu1 %v9450_v42  ;;  %v7230_v42 = vld [vmem:[%s11342_s20 + $0x88] sm:$0xff]  ;;  %v7268_v63 = vld [vmem:[%s11342_s20 + $0x32] sm:$0xff]  ;;  %v7277_v11 = vld [vmem:[%s11342_s20 + $0x7a] sm:$0xff] }
 0x3d1   : >> { %9483 = vmatpush3.bf16.msra.mxu0 %v9482_v4  ;;  %9453 = vmatprep.subr.bf16.mxu1 %v9452_v32  ;;  %v7180_v4 = vld [vmem:[%s11342_s20 + $0x7e] sm:$0xff]  ;;  %v11515_v32 = vld [vmem:[%s11342_s20 + $0x91] sm:$0xff] }
 0x3d2   : >> { %3243 = vmatmul.mubr.f32.gmra.mrb[28].mxu1 %v7154_v37  ;;  %9485 = vmatprep.subr.bf16.mxu0 %v9484_v29  ;;  %v7284_v29 = vld [vmem:[%s11342_s20 + $0x2b] sm:$0xff]  ;;  %v7285_v17 = vld [vmem:[%s11342_s20 + $0x33] sm:$0xff]  ;;  %v7286_v37 = vld [vmem:[%s11342_s20 + $0x3b] sm:$0xff] }
 0x3d3   : >> { %3457 = vmatmul.mubr.f32.gmra.mrb[28].mxu0 %v7222_v7  ;;  %3247 = vmatprep.mubr.f32.mxu1 %v7172_v46  ;;  %v7288_v7 = vld [vmem:[%s11342_s20 + $0x4b] sm:$0xff]  ;;  %v7289_v46 = vld [vmem:[%s11342_s20 + $0x53] sm:$0xff]  ;;  %v7278_v20 = vld [vmem:[%s11342_s20 + $0x82] sm:$0xff] }
 0x3d4   : >> { %3461 = vmatprep.mubr.f32.mxu0 %v11459_v50  ;;  %9455 = vmatpush3.bf16.msra.mxu1 %v9454_v49  ;;  %v7290_v49 = vld [vmem:[%s11342_s20 + $0x5b] sm:$0xff]  ;;  %v7293_v5 = vld [vmem:[%s11342_s20 + $0x73] sm:$0xff]  ;;  %v7295_v22 = vld [vmem:[%s11342_s20 + $0x83] sm:$0xff] }
 0x3d5   : >> { %9487 = vmatpush3.bf16.msra.mxu0 %v9486_v3  ;;  %9457 = vmatprep.subr.bf16.mxu1 %v9456_v62  ;;  %v7291_v3 = vld [vmem:[%s11342_s20 + $0x63] sm:$0xff]  ;;  %v7292_v62 = vld [vmem:[%s11342_s20 + $0x6b] sm:$0xff] }
 0x3d6   : >> { %3248 = vmatmul.mubr.f32.gmra.mrb[30].mxu1 %v7155_v35  ;;  %9489 = vmatprep.subr.bf16.mxu0 %v9488_v18  ;;  %v7294_v18 = vld [vmem:[%s11342_s20 + $0x7b] sm:$0xff]  ;;  %v7279_v35 = vld [vmem:[%s11342_s20 + $0x8a] sm:$0xff] }
 0x3d7   : >> { %3462 = vmatmul.mubr.f32.gmra.mrb[30].mxu0 %v7223_v2  ;;  %3252 = vmatprep.mubr.f32.mxu1 %v7173_v40  ;;  %v7296_v2 = vld [vmem:[%s11342_s20 + $0x8b] sm:$0xff] }
 0x3d8   : >> { %3466 = vmatprep.mubr.f32.mxu0 %v11466_v21  ;;  %9459 = vmatpush3.bf16.msra.mxu1 %v9458_v47  ;;  %v7280_v40 = vld [vmem:[%s11342_s20 + $0x92] sm:$0xff] }
 0x3d9   : >> { %9491 = vmatpush3.bf16.msra.mxu0 %v9490_v8  ;;  %v7297_v47 = vld [vmem:[%s11342_s20 + $0x93] sm:$0xff]  ;;  %v7298_v8 = vld [vmem:[%s11342_s20 + $0x9b] sm:$0xff] }
 0x3da   : >> { %3253 = vmatmul.mubr.f32.gmra.mrb[32].mxu1 %v7156_v28  ;;  %v7264_v28 = vld [vmem:[%s11342_s20 + $0x99] sm:$0xff] }
 0x3db   : >> { %3467 = vmatmul.mubr.f32.gmra.mrb[32].mxu0 %v7224_v41  ;;  %3257 = vmatprep.mubr.f32.mxu1 %v7174_v57  ;;  %v7282_v41 = vld [vmem:[%s11342_s20 + $0xa2] sm:$0xff] }
 0x3dc   : >> { %3471 = vmatprep.mubr.f32.mxu0 %v11473_v1  ;;  %v7299_v57 = vld [vmem:[%s11342_s20 + $0xa3] sm:$0xff] }
 0x3de   : >> { %3258 = vmatmul.mubr.f32.gmra.mrb[34].mxu1 %v7157_v61  ;;  %v11569_v61 = vstv %s4022_s26 }
 0x3df   : >> { %3472 = vmatmul.mubr.f32.gmra.mrb[34].mxu0 %v7225_v19  ;;  %3262 = vmatprep.mubr.f32.mxu1 %v7175_v25  ;;  %v12779_v19 = vld [vmem:[#allocation21_spill] sm:$0xff] }
 0x3e0   : >> { %3476 = vmatprep.mubr.f32.mxu0 %v11480_v24  ;;  %v4024_v25 = vadd.s32 %v11569_v61, %v12779_v19 }
 0x3e2   : >> { %3263 = vmatmul.mubr.f32.gmra.mrb[36].mxu1 %v7158_v43  ;;  %vm4040_vm10 = vcmp.ge.s32.totalorder %v4024_v25, 18 }
 0x3e3   : >> { %3477 = vmatmul.mubr.f32.gmra.mrb[36].mxu0 %v7226_v23  ;;  %3267 = vmatprep.mubr.f32.mxu1 %v7176_v6  ;;  %v12780_v23 = vld [vmem:[#allocation22_spill] sm:$0xff] }
 0x3e4   : >> { %3481 = vmatprep.mubr.f32.mxu0 %v11487_v59  ;;  %v4025_v6 = vadd.s32 %v11569_v61, %v12780_v23 }
 0x3e6   : >> { %3268 = vmatmul.mubr.f32.gmra.mrb[38].mxu1 %v7159_v39  ;;  %v7302_v39 = vadd.s32 4294967278, %v4025_v6  ;;  %vm4041_vm2 = vcmp.ge.s32.totalorder %v4025_v6, 18 }
 0x3e7   : >> { %3482 = vmatmul.mubr.f32.gmra.mrb[38].mxu0 %v7227_v45  ;;  %3272 = vmatprep.mubr.f32.mxu1 %v7177_v33  ;;  %v12781_v33 = vld [vmem:[#allocation27_spill] sm:$0xff] }
 0x3e8   : >> { %3486 = vmatprep.mubr.f32.mxu0 %v11494_v56 }
 0x3ea   : >> { %3273 = vmatmul.mubr.f32.gmra.mrb[40].mxu1 %v7160_v14  ;;  %v4073_v14 = vsel %vm4041_vm2, %v7302_v39, %v4025_v6 }
 0x3eb   : >> { %3487 = vmatmul.mubr.f32.gmra.mrb[40].mxu0 %v7228_v12  ;;  %3277 = vmatprep.mubr.f32.mxu1 %v7178_v16  ;;  %v7318_v16 = vadd.s32 4294967278, %v4073_v14  ;;  %vm4089_vm0 = vcmp.ge.s32.totalorder %v4073_v14, 18 }
 0x3ec   : >> { %3491 = vmatprep.mubr.f32.mxu0 %v11501_v13 }
 0x3ee   : >> { %3278 = vmatmul.mubr.f32.gmra.mrb[42].mxu1 %v7161_v55 }
 0x3ef   : >> { %3492 = vmatmul.mubr.f32.gmra.mrb[42].mxu0 %v7229_v34  ;;  %3282 = vmatprep.mubr.f32.mxu1 %v7179_v38  ;;  %v4121_v34 = vsel %vm4089_vm0, %v7318_v16, %v4073_v14 }
 0x3f0   : >> { %3496 = vmatprep.mubr.f32.mxu0 %v11508_v36  ;;  %vm4137_vm3 = vcmp.ge.s32.totalorder %v4121_v34, 18 }
 0x3f2   : >> { %3283 = vmatmul.mubr.f32.gmra.mrb[44].mxu1 %v7162_v30  ;;  %v7334_v30 = vadd.s32 4294967278, %v4121_v34 }
 0x3f3   : >> { %3497 = vmatmul.mubr.f32.gmra.mrb[44].mxu0 %v7230_v42  ;;  %3287 = vmatprep.mubr.f32.mxu1 %v7180_v4  ;;  %v12782_v4 = vld [vmem:[#allocation25_spill] sm:$0xff] }
 0x3f4   : >> { %3501 = vmatprep.mubr.f32.mxu0 %v11515_v32 }
 0x3f6   : >> { %3288 = vmatmul.mubr.f32.gmra.mrb[46].mxu1 %v7163_v0 }
 0x3f7   : >> { %3502 = vmatmul.mubr.f32.gmra.mrb[46].mxu0 %v7231_v53  ;;  %3656 = vmatprep.mubr.f32.mxu1 %v7267_v27  ;;  %v4169_v53 = vsel %vm4137_vm3, %v7334_v30, %v4121_v34 }
 0x3f8   : >> { %3868 = vmatprep.mubr.f32.mxu0 %v7284_v29  ;;  %vm4185_vm6 = vcmp.ge.s32.totalorder %v4169_v53, 18 }
 0x3fa   : >> { %3657 = vmatmul.mubr.f32.vlgmr.msra.gmra.mrb[48].mxu1 %v11424_v51  ;;  %v7271_v51 = vld [vmem:[%s11342_s20 + $0x4a] sm:$0xff] }
 0x3fb   : >> { %3869 = vmatmul.mubr.f32.vlgmr.msra.gmra.mrb[48].mxu0 %v7284_v29  ;;  %3661 = vmatprep.mubr.f32.mxu1 %v7268_v63 }
 0x3fc   : >> { %3873 = vmatprep.mubr.f32.mxu0 %v7285_v17 }
 0x3fe   : >> { %3662 = vmatmul.mubr.f32.gmra.mrb[50].mxu1 %v11431_v15  ;;  %v7272_v15 = vld [vmem:[%s11342_s20 + $0x52] sm:$0xff] }
 0x3ff   : >> { %3874 = vmatmul.mubr.f32.gmra.mrb[50].mxu0 %v7285_v17  ;;  %3666 = vmatprep.mubr.f32.mxu1 %v7269_v48  ;;  %v7350_v17 = vadd.s32 4294967278, %v4169_v53 }
 0x400   : >> { %3878 = vmatprep.mubr.f32.mxu0 %v7286_v37 }
 0x402   : >> { %3667 = vmatmul.mubr.f32.gmra.mrb[52].mxu1 %v11438_v26  ;;  %v7273_v26 = vld [vmem:[%s11342_s20 + $0x5a] sm:$0xff] }
 0x403   : >> { %3879 = vmatmul.mubr.f32.gmra.mrb[52].mxu0 %v7286_v37  ;;  %3671 = vmatprep.mubr.f32.mxu1 %v7270_v60 }
 0x404   : >> { %3883 = vmatprep.mubr.f32.mxu0 %v7287_v54 }
 0x406   : >> { %3672 = vmatmul.mubr.f32.gmra.mrb[54].mxu1 %v11445_v44  ;;  %v7274_v44 = vld [vmem:[%s11342_s20 + $0x62] sm:$0xff] }
 0x407   : >> { %3884 = vmatmul.mubr.f32.gmra.mrb[54].mxu0 %v7287_v54  ;;  %3676 = vmatprep.mubr.f32.mxu1 %v7271_v51  ;;  %v4217_v54 = vsel %vm4185_vm6, %v7350_v17, %v4169_v53 }
 0x408   : >> { %3888 = vmatprep.mubr.f32.mxu0 %v7288_v7  ;;  %vm4233_vm11 = vcmp.ge.s32.totalorder %v4217_v54, 18 }
 0x40a   : >> { %3677 = vmatmul.mubr.f32.gmra.mrb[56].mxu1 %v11452_v58  ;;  %v7275_v58 = vld [vmem:[%s11342_s20 + $0x6a] sm:$0xff] }
 0x40b   : >> { %3889 = vmatmul.mubr.f32.gmra.mrb[56].mxu0 %v7288_v7  ;;  %3681 = vmatprep.mubr.f32.mxu1 %v7272_v15 }
 0x40c   : >> { %3893 = vmatprep.mubr.f32.mxu0 %v7289_v46 }
 0x40e   : >> { %3682 = vmatmul.mubr.f32.gmra.mrb[58].mxu1 %v11459_v50  ;;  %v7276_v50 = vld [vmem:[%s11342_s20 + $0x72] sm:$0xff] }
 0x40f   : >> { %3894 = vmatmul.mubr.f32.gmra.mrb[58].mxu0 %v7289_v46  ;;  %3686 = vmatprep.mubr.f32.mxu1 %v7273_v26 }
 0x410   : >> { %3898 = vmatprep.mubr.f32.mxu0 %v7290_v49 }
 0x412   : >> { %3687 = vmatmul.mubr.f32.gmra.mrb[60].mxu1 %v11466_v21  ;;  %v7281_v21 = vld [vmem:[%s11342_s20 + $0x9a] sm:$0xff] }
 0x413   : >> { %3899 = vmatmul.mubr.f32.gmra.mrb[60].mxu0 %v7290_v49  ;;  %3691 = vmatprep.mubr.f32.mxu1 %v7274_v44 }
 0x414   : >> { %3903 = vmatprep.mubr.f32.mxu0 %v7291_v3 }
 0x416   : >> { %3692 = vmatmul.mubr.f32.gmra.mrb[62].mxu1 %v11473_v1  ;;  %v7265_v1 = vld [vmem:[%s11342_s20 + $0xa1] sm:$0xff] }
 0x417   : >> { %3904 = vmatmul.mubr.f32.gmra.mrb[62].mxu0 %v7291_v3  ;;  %3696 = vmatprep.mubr.f32.mxu1 %v7275_v58  ;;  %v7366_v3 = vadd.s32 4294967278, %v4217_v54 }
 0x418   : >> { %3908 = vmatprep.mubr.f32.mxu0 %v7292_v62 }
 0x41a   : >> { %3697 = vmatmul.mubr.f32.gmra.mrb[64].mxu1 %v11480_v24  ;;  %v7301_v24 = vadd.s32 4294967278, %v4024_v25 }
 0x41b   : >> { %3909 = vmatmul.mubr.f32.gmra.mrb[64].mxu0 %v7292_v62  ;;  %3701 = vmatprep.mubr.f32.mxu1 %v7276_v50 }
 0x41c   : >> { %3913 = vmatprep.mubr.f32.mxu0 %v7293_v5  ;;  %v4072_v43 = vsel %vm4040_vm10, %v7301_v24, %v4024_v25 }
 0x41d   : >> { %vm4088_vm14 = vcmp.ge.s32.totalorder %v4072_v43, 18 }
 0x41e   : >> { %3702 = vmatmul.mubr.f32.gmra.mrb[66].mxu1 %v11487_v59  ;;  %v7317_v59 = vadd.s32 4294967278, %v4072_v43 }
 0x41f   : >> { %3914 = vmatmul.mubr.f32.gmra.mrb[66].mxu0 %v7293_v5  ;;  %3706 = vmatprep.mubr.f32.mxu1 %v7277_v11 }
 0x420   : >> { %3918 = vmatprep.mubr.f32.mxu0 %v7294_v18  ;;  %v4120_v45 = vsel %vm4088_vm14, %v7317_v59, %v4072_v43 }
 0x421   : >> { %v7333_v12 = vadd.s32 4294967278, %v4120_v45  ;;  %vm4136_vm1 = vcmp.ge.s32.totalorder %v4120_v45, 18 }
 0x422   : >> { %3707 = vmatmul.mubr.f32.gmra.mrb[68].mxu1 %v11494_v56  ;;  %v4026_v56 = vadd.s32 %v11569_v61, %v12781_v33 }
 0x423   : >> { %3919 = vmatmul.mubr.f32.gmra.mrb[68].mxu0 %v7294_v18  ;;  %3711 = vmatprep.mubr.f32.mxu1 %v7278_v20  ;;  %v4168_v55 = vsel %vm4136_vm1, %v7333_v12, %v4120_v45 }
 0x424   : >> { %3923 = vmatprep.mubr.f32.mxu0 %v7295_v22  ;;  %vm4042_vm13 = vcmp.ge.s32.totalorder %v4026_v56, 18  ;;  %vm4184_vm15 = vcmp.ge.s32.totalorder %v4168_v55, 18 }
 0x426   : >> { %3712 = vmatmul.mubr.f32.gmra.mrb[70].mxu1 %v11501_v13  ;;  %v7303_v13 = vadd.s32 4294967278, %v4026_v56 }
 0x427   : >> { %3924 = vmatmul.mubr.f32.gmra.mrb[70].mxu0 %v7295_v22  ;;  %3716 = vmatprep.mubr.f32.mxu1 %v7279_v35 }
 0x428   : >> { %3928 = vmatprep.mubr.f32.mxu0 %v7296_v2  ;;  %v4074_v38 = vsel %vm4042_vm13, %v7303_v13, %v4026_v56 }
 0x429   : >> { %v7319_v42 = vadd.s32 4294967278, %v4074_v38  ;;  %vm4090_vm5 = vcmp.ge.s32.totalorder %v4074_v38, 18 }
 0x42a   : >> { %3717 = vmatmul.mubr.f32.gmra.mrb[72].mxu1 %v11508_v36  ;;  %v7349_v36 = vadd.s32 4294967278, %v4168_v55 }
 0x42b   : >> { %3929 = vmatmul.mubr.f32.gmra.mrb[72].mxu0 %v7296_v2  ;;  %3721 = vmatprep.mubr.f32.mxu1 %v7280_v40  ;;  %v4122_v27 = vsel %vm4090_vm5, %v7319_v42, %v4074_v38  ;;  %v4265_v2 = vsel %vm4233_vm11, %v7366_v3, %v4217_v54 }
 0x42c   : >> { %3933 = vmatprep.mubr.f32.mxu0 %v7297_v47  ;;  %v4216_v0 = vsel %vm4184_vm15, %v7349_v36, %v4168_v55  ;;  %v7335_v48 = vadd.s32 4294967278, %v4122_v27  ;;  %vm4138_vm8 = vcmp.ge.s32.totalorder %v4122_v27, 18  ;;  %v7382_v25 = vadd.s32 4294967278, %v4265_v2 }
 0x42d   : >> { %v7365_v63 = vadd.s32 4294967278, %v4216_v0  ;;  %vm4232_vm4 = vcmp.ge.s32.totalorder %v4216_v0, 18  ;;  %vm4281_vm2 = vcmp.ge.s32.totalorder %v4265_v2, 18 }
 0x42e   : >> { %3722 = vmatmul.mubr.f32.gmra.mrb[74].mxu1 %v11515_v32  ;;  %v4027_v32 = vadd.s32 %v11569_v61, %v12782_v4  ;;  %v4170_v51 = vsel %vm4138_vm8, %v7335_v48, %v4122_v27  ;;  %v4313_v13 = vsel %vm4281_vm2, %v7382_v25, %v4265_v2  ;;  %v12784_v48 = vld [vmem:[#allocation29_spill] sm:$0xff] }
 0x42f   : >> { %3934 = vmatmul.mubr.f32.gmra.mrb[74].mxu0 %v7297_v47  ;;  %3726 = vmatprep.mubr.f32.mxu1 %v7281_v21  ;;  %v4264_v60 = vsel %vm4232_vm4, %v7365_v63, %v4216_v0  ;;  %v7351_v58 = vadd.s32 4294967278, %v4170_v51  ;;  %vm4186_vm10 = vcmp.ge.s32.totalorder %v4170_v51, 18  ;;  %v7398_v53 = vadd.s32 4294967278, %v4313_v13 }
 0x430   : >> { %3938 = vmatprep.mubr.f32.mxu0 %v7298_v8  ;;  %v7304_v29 = vadd.s32 4294967278, %v4027_v32  ;;  %vm4043_vm12 = vcmp.ge.s32.totalorder %v4027_v32, 18  ;;  %v7381_v26 = vadd.s32 4294967278, %v4264_v60  ;;  %vm4280_vm7 = vcmp.ge.s32.totalorder %v4264_v60, 18 }
 0x431   : >> { %v4218_v40 = vsel %vm4186_vm10, %v7351_v58, %v4170_v51  ;;  %vm4329_vm3 = vcmp.ge.s32.totalorder %v4313_v13, 18 }
 0x432   : >> { %3727 = vmatmul.mubr.f32.gmra.mrb[76].mxu1 %v7264_v28  ;;  %v4075_v37 = vsel %vm4043_vm12, %v7304_v29, %v4027_v32  ;;  %v4312_v35 = vsel %vm4280_vm7, %v7381_v26, %v4264_v60  ;;  %v12783_v28 = vld [vmem:[#allocation30_spill] sm:$0xff]  ;;  %v7367_v59 = vadd.s32 4294967278, %v4218_v40  ;;  %vm4234_vm1 = vcmp.ge.s32.totalorder %v4218_v40, 18 }
 0x433   : >> { %3939 = vmatmul.mubr.f32.gmra.mrb[76].mxu0 %v7298_v8  ;;  %3731 = vmatprep.mubr.f32.mxu1 %v7282_v41  ;;  %v7320_v7 = vadd.s32 4294967278, %v4075_v37  ;;  %vm4091_vm9 = vcmp.ge.s32.totalorder %v4075_v37, 18  ;;  %v4028_v41 = vadd.s32 %v11569_v61, %v12783_v28  ;;  %v7397_v6 = vadd.s32 4294967278, %v4312_v35 }
 0x434   : >> { %3943 = vmatprep.mubr.f32.mxu0 %v7299_v57  ;;  %vm4328_vm0 = vcmp.ge.s32.totalorder %v4312_v35, 18  ;;  %v4266_v36 = vsel %vm4234_vm1, %v7367_v59, %v4218_v40  ;;  %v11604_v26 = vstv %s11339_s19  ;;  %v12785_v59 = vld [vmem:[#allocation32_spill] sm:$0xff] }
 0x435   : >> { %v4123_v5 = vsel %vm4091_vm9, %v7320_v7, %v4075_v37  ;;  %v7305_v14 = vadd.s32 4294967278, %v4028_v41  ;;  %vm4044_vm13 = vcmp.ge.s32.totalorder %v4028_v41, 18  ;;  %v4360_v32 = vsel %vm4328_vm0, %v7397_v6, %v4312_v35 }
 0x436   : >> { %3732 = vmatmul.mubr.f32.gmra.mrb[78].mxu1 %v7265_v1  ;;  %v7336_v47 = vadd.s32 4294967278, %v4123_v5  ;;  %vm4139_vm14 = vcmp.ge.s32.totalorder %v4123_v5, 18  ;;  %v7383_v63 = vadd.s32 4294967278, %v4266_v36  ;;  %v4029_v37 = vadd.s32 %v11569_v61, %v12784_v48 }
 0x437   : >> { %3944 = vmatmul.mubr.f32.gmra.mrb[78].mxu0 %v7299_v57  ;;  %v4076_v0 = vsel %vm4044_vm13, %v7305_v14, %v4028_v41  ;;  %v7413_v51 = vadd.s32 4294967278, %v4360_v32  ;;  %vm4282_vm5 = vcmp.ge.s32.totalorder %v4266_v36, 18  ;;  %vm4376_vm4 = vcmp.ge.s32.totalorder %v4360_v32, 18 }
 0x438   : >> { %v4171_v39 = vsel %vm4139_vm14, %v7336_v47, %v4123_v5  ;;  %v7321_v7 = vadd.s32 4294967278, %v4076_v0  ;;  %vm4092_vm12 = vcmp.ge.s32.totalorder %v4076_v0, 18  ;;  %v4314_v5 = vsel %vm4282_vm5, %v7383_v63, %v4266_v36 }
 0x439   : >> { %v7352_v55 = vadd.s32 4294967278, %v4171_v39  ;;  %vm4187_vm15 = vcmp.ge.s32.totalorder %v4171_v39, 18  ;;  %vm4045_vm8 = vcmp.ge.s32.totalorder %v4029_v37, 18  ;;  %v4408_v47 = vsel %vm4376_vm4, %v7413_v51, %v4360_v32 }
 0x43a   : >> { %v4124_v35 = vsel %vm4092_vm12, %v7321_v7, %v4076_v0  ;;  %vm4330_vm7 = vcmp.ge.s32.totalorder %v4314_v5, 18  ;;  %vm4441_vm11 = vcmp.lt.s32.totalorder %v4408_v47, 16 }
 0x43b   : >> { %v4219_v17 = vsel %vm4187_vm15, %v7352_v55, %v4171_v39  ;;  %v4030_v39 = vadd.s32 %v11569_v61, %v12785_v59  ;;  %vm4140_vm14 = vcmp.ge.s32.totalorder %v4124_v35, 18 }
 0x43c   : >> { %vm4235_vm6 = vcmp.ge.s32.totalorder %v4219_v17, 18 }
 0x43d   : >> { %vm4046_vm13 = vcmp.ge.s32.totalorder %v4030_v39, 18 }
 0x46d   : >> { %v8252_v15 = vpop.f32.mrb[0].mxu1  ;;  %v8228_v46 = vpop.f32.mrb[0].mxu0 }
 0x46e   : >> { %v8253_v49 = vpop.f32.mrb[1].mxu1  ;;  %v8229_v44 = vpop.f32.mrb[1].mxu0 }
 0x46f   : >> { %v11579_v62 = vadd.f32 %v8253_v49, %v8252_v15  ;;  %v11581_v50 = vadd.f32 %v8229_v44, %v8228_v46  ;;  %v4361_v49 = vsel %vm4329_vm3, %v7398_v53, %v4313_v13  ;;  %v7368_v44 = vadd.s32 4294967278, %v4219_v17 }
 0x470   : >> { %v7414_v41 = vadd.s32 4294967278, %v4361_v49  ;;  %vm4377_vm9 = vcmp.ge.s32.totalorder %v4361_v49, 18 }
 0x471   : >> { %v8255_v11 = vpop.f32.mrb[2].mxu1  ;;  %v8231_v18 = vpop.f32.mrb[2].mxu0 }
 0x472   : >> { %v8256_v20 = vpop.f32.mrb[3].mxu1  ;;  %v8232_v22 = vpop.f32.mrb[3].mxu0  ;;  %v4409_v13 = vsel %vm4377_vm9, %v7414_v41, %v4361_v49 }
 0x473   : >> { %v11583_v21 = vadd.f32 %v8256_v20, %v8255_v11  ;;  %v11585_v8 = vadd.f32 %v8232_v22, %v8231_v18  ;;  %v7306_v11 = vadd.s32 4294967278, %v4029_v37  ;;  %v4425_v22 = vadd.s32 %v11604_v26, %v12779_v19 }
 0x474   : >> { %vm4442_vm0 = vcmp.lt.s32.totalorder %v4409_v13, 16 }
 0x475   : >> { %v8258_v57 = vpop.f32.mrb[4].mxu1  ;;  %v8234_v1 = vpop.f32.mrb[4].mxu0  ;;  %v4077_v6 = vsel %vm4045_vm8, %v7306_v11, %v4029_v37  ;;  %vm4457_vm10 = vcmp.lt.s32.totalorder %v4425_v22, 288  ;;  %v12684_v11 = vmov 0.0  }
 0x476   : >> { %v8259_v24 = vpop.f32.mrb[5].mxu1  ;;  %v8235_v43 = vpop.f32.mrb[5].mxu0  ;;  %v7322_v36 = vadd.s32 4294967278, %v4077_v6  ;;  %vm4093_vm1 = vcmp.ge.s32.totalorder %v4077_v6, 18  ;;  %vm4473_vm15 = vmand %vm4441_vm11, %vm4457_vm10 }
 0x477   : >> { %v11589_v45 = vadd.f32 %v8259_v24, %v8258_v57  ;;  %v11591_v56 = vadd.f32 %v8235_v43, %v8234_v1  ;;  %v7399_v57 = vadd.s32 4294967278, %v4314_v5  ;;  %v4267_v1 = vsel %vm4235_vm6, %v7368_v44, %v4219_v17  ;;  %v12786_v44 = vld [vmem:[#allocation31_spill] sm:$0xff] }
 0x478   : >> { %v7337_v43 = vadd.s32 4294967278, %v4124_v35  ;;  %v7384_v55 = vadd.s32 4294967278, %v4267_v1  ;;  %vm4283_vm2 = vcmp.ge.s32.totalorder %v4267_v1, 18  ;;  %v4125_v51 = vsel %vm4093_vm1, %v7322_v36, %v4077_v6 }
 0x479   : >> { %v8261_v12 = vpop.f32.mrb[6].mxu1  ;;  %v8237_v16 = vpop.f32.mrb[6].mxu0  ;;  %vm4141_vm8 = vcmp.ge.s32.totalorder %v4125_v51, 18 }
 0x47a   : >> { %v8262_v34 = vpop.f32.mrb[7].mxu1  ;;  %v8238_v38 = vpop.f32.mrb[7].mxu0  ;;  %v4172_v53 = vsel %vm4140_vm14, %v7337_v43, %v4124_v35 }
 0x47b   : >> { %v11593_v30 = vadd.f32 %v8262_v34, %v8261_v12  ;;  %v11595_v42 = vadd.f32 %v8238_v38, %v8237_v16  ;;  %v4426_v34 = vadd.s32 %v11604_v26, %v12780_v23  ;;  %v4362_v38 = vsel %vm4330_vm7, %v7399_v57, %v4314_v5 }
 0x47c   : >> { %v7415_v23 = vadd.s32 4294967278, %v4362_v38  ;;  %vm4378_vm5 = vcmp.ge.s32.totalorder %v4362_v38, 18  ;;  %vm4188_vm12 = vcmp.ge.s32.totalorder %v4172_v53, 18  ;;  %v7338_v57 = vadd.s32 4294967278, %v4125_v51 }
 0x47d   : >> { %v8264_v27 = vpop.f32.mrb[8].mxu1  ;;  %v8240_v29 = vpop.f32.mrb[8].mxu0  ;;  %vm4458_vm3 = vcmp.lt.s32.totalorder %v4426_v34, 288 }
 0x47e   : >> { %v8265_v60 = vpop.f32.mrb[9].mxu1  ;;  %v8241_v54 = vpop.f32.mrb[9].mxu0  ;;  %vm4474_vm4 = vmand %vm4442_vm0, %vm4458_vm3  ;;  %v4410_v41 = vsel %vm4378_vm5, %v7415_v23, %v4362_v38  ;;  %v11651_v23 = vadd.s32 %v11604_v26, %v12782_v4 }
 0x47f   : >> { %v11599_v15 = vadd.f32 %v8265_v60, %v8264_v27  ;;  %v11601_v46 = vadd.f32 %v8241_v54, %v8240_v29  ;;  %v7307_v27 = vadd.s32 4294967278, %v4030_v39  ;;  %v4315_v60 = vsel %vm4283_vm2, %v7384_v55, %v4267_v1 }
 0x480   : >> { %v7353_v54 = vadd.s32 4294967278, %v4172_v53  ;;  %v7400_v22 = vadd.s32 4294967278, %v4315_v60  ;;  %vm4331_vm6 = vcmp.ge.s32.totalorder %v4315_v60, 18  ;;  %v11642_v55 = vsel %vm4474_vm4, 1.0, %v12684_v11 }
 0x481   : >> { %v8267_v3 = vpop.f32.mrb[10].mxu1  ;;  %v8243_v58 = vpop.f32.mrb[10].mxu0  ;;  %v4078_v49 = vsel %vm4046_vm13, %v7307_v27, %v4030_v39  ;;  %v12787_v39 = vld [vmem:[#allocation24_spill] sm:$0xff]  ;;  %vm4443_vm7 = vcmp.lt.s32.totalorder %v4410_v41, 16  ;;  %vm4460_vm5 = vcmp.lt.s32.totalorder %v11651_v23, 288 }
 0x482   : >> { %v8268_v18 = vpop.f32.mrb[11].mxu1  ;;  %v8244_v20 = vpop.f32.mrb[11].mxu0  ;;  %vm4094_vm9 = vcmp.ge.s32.totalorder %v4078_v49, 18  ;;  %v4363_v34 = vsel %vm4331_vm6, %v7400_v22, %v4315_v60 }
 0x483   : >> { %v11608_v2 = vadd.f32 %v8268_v18, %v8267_v3  ;;  %v11610_v40 = vadd.f32 %v8244_v20, %v8243_v58  ;;  %v4031_v3 = vadd.s32 %v11569_v61, %v12786_v44  ;;  %v11630_v18 = vsel %vm4473_vm15, 1.0, %v12684_v11 }
 0x484   : >> { %v4427_v20 = vadd.s32 %v11604_v26, %v12781_v33  ;;  %vm4379_vm2 = vcmp.ge.s32.totalorder %v4363_v34, 18 }
 0x485   : >> { %v8270_v25 = vpop.f32.mrb[12].mxu1  ;;  %v8246_v24 = vpop.f32.mrb[12].mxu0  ;;  %v7308_v33 = vadd.s32 4294967278, %v4031_v3  ;;  %vm4047_vm11 = vcmp.ge.s32.totalorder %v4031_v3, 18 }
 0x486   : >> { %v8271_v19 = vpop.f32.mrb[13].mxu1  ;;  %v8247_v14 = vpop.f32.mrb[13].mxu0  ;;  %vm4459_vm10 = vcmp.lt.s32.totalorder %v4427_v20, 288 }
 0x487   : >> { %v11614_v12 = vadd.f32 %v8271_v19, %v8270_v25  ;;  %v11616_v16 = vadd.f32 %v8247_v14, %v8246_v24  ;;  %v4220_v25 = vsel %vm4188_vm12, %v7353_v54, %v4172_v53  ;;  %v7323_v24 = vadd.s32 4294967278, %v4078_v49  ;;  %vm4475_vm13 = vmand %vm4443_vm7, %vm4459_vm10 }
 0x488   : >> { %v4032_v19 = vadd.s32 %v11569_v61, %v12787_v39  ;;  %vm4236_vm14 = vcmp.ge.s32.totalorder %v4220_v25, 18  ;;  %v4079_v60 = vsel %vm4047_vm11, %v7308_v33, %v4031_v3  ;;  %v11662_v20 = vsel %vm4475_vm13, 1.0, %v12684_v11 }
 0x489   : >> { %v8273_v32 = vpop.f32.mrb[14].mxu1  ;;  %v8249_v0 = vpop.f32.mrb[14].mxu0  ;;  %v4126_v27 = vsel %vm4094_vm9, %v7323_v24, %v4078_v49  ;;  %v7324_v3 = vadd.s32 4294967278, %v4079_v60  ;;  %vm4095_vm3 = vcmp.ge.s32.totalorder %v4079_v60, 18 }
 0x48a   : >> { %v8274_v29 = vpop.f32.mrb[15].mxu1  ;;  %v8250_v63 = vpop.f32.mrb[15].mxu0  ;;  %v7309_v54 = vadd.s32 4294967278, %v4032_v19  ;;  %vm4048_vm0 = vcmp.ge.s32.totalorder %v4032_v19, 18  ;;  %v7339_v49 = vadd.s32 4294967278, %v4126_v27  ;;  %vm4142_vm15 = vcmp.ge.s32.totalorder %v4126_v27, 18 }
 0x48b   : >> { %v11621_v17 = vadd.f32 %v8274_v29, %v8273_v32  ;;  %v11623_v37 = vadd.f32 %v8250_v63, %v8249_v0  ;;  %v7369_v0 = vadd.s32 4294967278, %v4220_v25 }
 0x48c   : >> { %v4080_v24 = vsel %vm4048_vm0, %v7309_v54, %v4032_v19  ;;  %v4174_v19 = vsel %vm4142_vm15, %v7339_v49, %v4126_v27 }
 0x48d   : >> { %v8308_v7 = vpop.f32.mrb[16].mxu1  ;;  %vm4096_vm6 = vcmp.ge.s32.totalorder %v4080_v24, 18  ;;  %vm4190_vm9 = vcmp.ge.s32.totalorder %v4174_v19, 18 }
 0x48e   : >> { %v8309_v58 = vpop.f32.mrb[17].mxu1  ;;  %v8388_v5 = vpop.f32.mrb[16].mxu0 }
 0x48f   : >> { %v8310_v35 = vadd.f32 %v8309_v58, %v8308_v7  ;;  %v8389_v47 = vpop.f32.mrb[17].mxu0 }
 0x490   : >> { %v8390_v1 = vadd.f32 %v8389_v47, %v8388_v5  ;;  %v7416_v47 = vadd.s32 4294967278, %v4363_v34 }
 0x491   : >> { %v3215_v43 = vadd.f32 %v8310_v35, %v11581_v50  ;;  %v8311_v6 = vpop.f32.mrb[18].mxu1  ;;  %v4173_v50 = vsel %vm4141_vm8, %v7338_v57, %v4125_v51 }
 0x492   : >> { %v8312_v14 = vpop.f32.mrb[19].mxu1  ;;  %v8391_v13 = vpop.f32.mrb[18].mxu0  ;;  %vm4189_vm1 = vcmp.ge.s32.totalorder %v4173_v50, 18  ;;  %v7354_v5 = vadd.s32 4294967278, %v4173_v50 }
 0x493   : >> { %v11644_v38 = vadd.f32 %v8390_v1, %v3215_v43  ;;  %v8313_v36 = vadd.f32 %v8312_v14, %v8311_v6  ;;  %v8392_v32 = vpop.f32.mrb[19].mxu0  ;;  %v12788_v43 = vld [vmem:[#allocation23_spill] sm:$0xff] }
 0x494   : >> { %v8393_v53 = vadd.f32 %v8392_v32, %v8391_v13  ;;  %v4033_v6 = vadd.s32 %v11569_v61, %v12788_v43 }
 0x495   : >> { %v3220_v29 = vadd.f32 %v8313_v36, %v11585_v8  ;;  %v8314_v63 = vpop.f32.mrb[20].mxu1  ;;  %v4268_v8 = vsel %vm4236_vm14, %v7369_v0, %v4220_v25  ;;  %v4221_v25 = vsel %vm4189_vm1, %v7354_v5, %v4173_v50  ;;  %v4411_v0 = vsel %vm4379_vm2, %v7416_v47, %v4363_v34 }
 0x496   : >> { %v8315_v7 = vpop.f32.mrb[21].mxu1  ;;  %v8394_v58 = vpop.f32.mrb[20].mxu0  ;;  %v7385_v41 = vadd.s32 4294967278, %v4268_v8  ;;  %vm4284_vm12 = vcmp.ge.s32.totalorder %v4268_v8, 18  ;;  %vm4237_vm4 = vcmp.ge.s32.totalorder %v4221_v25, 18  ;;  %vm4049_vm8 = vcmp.ge.s32.totalorder %v4033_v6, 18 }
 0x497   : >> { %v11653_v51 = vadd.f32 %v8393_v53, %v3220_v29  ;;  %v8316_v22 = vadd.f32 %v8315_v7, %v8314_v63  ;;  %v8395_v35 = vpop.f32.mrb[21].mxu0  ;;  %v4127_v53 = vsel %vm4095_vm3, %v7324_v3, %v4079_v60  ;;  %v7325_v29 = vadd.s32 4294967278, %v4080_v24 }
 0x498   : >> { %v8396_v4 = vadd.f32 %v8395_v35, %v8394_v58  ;;  %v7310_v7 = vadd.s32 4294967278, %v4033_v6  ;;  %v4316_v5 = vsel %vm4284_vm12, %v7385_v41, %v4268_v8  ;;  %v7355_v35 = vadd.s32 4294967278, %v4174_v19 }
 0x499   : >> { %v3225_v57 = vadd.f32 %v8316_v22, %v11591_v56  ;;  %v8317_v1 = vpop.f32.mrb[22].mxu1  ;;  %v7370_v22 = vadd.s32 4294967278, %v4221_v25  ;;  %v7340_v34 = vadd.s32 4294967278, %v4127_v53  ;;  %vm4143_vm7 = vcmp.ge.s32.totalorder %v4127_v53, 18 }
 0x49a   : >> { %v8318_v33 = vpop.f32.mrb[23].mxu1  ;;  %v8397_v14 = vpop.f32.mrb[22].mxu0  ;;  %v4128_v47 = vsel %vm4096_vm6, %v7325_v29, %v4080_v24  ;;  %vm4444_vm11 = vcmp.lt.s32.totalorder %v4411_v0, 16  ;;  %vm4332_vm10 = vcmp.ge.s32.totalorder %v4316_v5, 18  ;;  %v7401_v41 = vadd.s32 4294967278, %v4316_v5 }
 0x49b   : >> { %v11666_v13 = vadd.f32 %v8396_v4, %v3225_v57  ;;  %v8319_v36 = vadd.f32 %v8318_v33, %v8317_v1  ;;  %v8398_v56 = vpop.f32.mrb[23].mxu0  ;;  %v11682_v57 = vadd.s32 %v11604_v26, %v12784_v48  ;;  %v4081_v1 = vsel %vm4049_vm8, %v7310_v7, %v4033_v6  ;;  %vm11695_vm2 = vmand %vm4444_vm11, %vm4460_vm5 }
 0x49c   : >> { %v8399_v32 = vadd.f32 %v8398_v56, %v8397_v14  ;;  %v7341_v29 = vadd.s32 4294967278, %v4128_v47  ;;  %vm4144_vm14 = vcmp.ge.s32.totalorder %v4128_v47, 18  ;;  %v7326_v48 = vadd.s32 4294967278, %v4081_v1 }
 0x49d   : >> { %v3230_v63 = vadd.f32 %v8319_v36, %v11595_v42  ;;  %v8320_v54 = vpop.f32.mrb[24].mxu1  ;;  %v11676_v42 = vadd.s32 %v11604_v26, %v12783_v28  ;;  %v4269_v36 = vsel %vm4237_vm4, %v7370_v22, %v4221_v25  ;;  %v4222_v28 = vsel %vm4190_vm9, %v7355_v35, %v4174_v19 }
 0x49e   : >> { %v8321_v50 = vpop.f32.mrb[25].mxu1  ;;  %v8400_v58 = vpop.f32.mrb[24].mxu0  ;;  %vm4285_vm1 = vcmp.ge.s32.totalorder %v4269_v36, 18  ;;  %v7386_v19 = vadd.s32 4294967278, %v4269_v36  ;;  %vm4097_vm0 = vcmp.ge.s32.totalorder %v4081_v1, 18  ;;  %v4364_v22 = vsel %vm4332_vm10, %v7401_v41, %v4316_v5 }
 0x49f   : >> { %v11672_v4 = vadd.f32 %v8399_v32, %v3230_v63  ;;  %v8322_v27 = vadd.f32 %v8321_v50, %v8320_v54  ;;  %v8401_v49 = vpop.f32.mrb[25].mxu0  ;;  %v12789_v54 = vld [vmem:[#allocation28_spill] sm:$0xff]  ;;  %vm4238_vm13 = vcmp.ge.s32.totalorder %v4222_v28, 18  ;;  %v7371_v35 = vadd.s32 4294967278, %v4222_v28 }
 0x4a0   : >> { %v8402_v60 = vadd.f32 %v8401_v49, %v8400_v58  ;;  %v4034_v6 = vadd.s32 %v11569_v61, %v12789_v54  ;;  %v4176_v23 = vsel %vm4144_vm14, %v7341_v29, %v4128_v47  ;;  %v4317_v41 = vsel %vm4285_vm1, %v7386_v19, %v4269_v36 }
 0x4a1   : >> { %v3235_v3 = vadd.f32 %v8322_v27, %v11601_v46  ;;  %v8323_v8 = vpop.f32.mrb[26].mxu1  ;;  %v4175_v46 = vsel %vm4143_vm7, %v7340_v34, %v4127_v53  ;;  %vm4380_vm5 = vcmp.ge.s32.totalorder %v4364_v22, 18  ;;  %vm4461_vm12 = vcmp.lt.s32.totalorder %v11676_v42, 288 }
 0x4a2   : >> { %v8324_v33 = vpop.f32.mrb[27].mxu1  ;;  %v8403_v14 = vpop.f32.mrb[26].mxu0  ;;  %v7356_v27 = vadd.s32 4294967278, %v4175_v46  ;;  %vm4191_vm15 = vcmp.ge.s32.totalorder %v4175_v46, 18  ;;  %vm4050_vm3 = vcmp.ge.s32.totalorder %v4034_v6, 18  ;;  %v4270_v47 = vsel %vm4238_vm13, %v7371_v35, %v4222_v28 }
 0x4a3   : >> { %v11686_v56 = vadd.f32 %v8402_v60, %v3235_v3  ;;  %v8325_v24 = vadd.f32 %v8324_v33, %v8323_v8  ;;  %v8404_v32 = vpop.f32.mrb[27].mxu0  ;;  %v11706_v60 = vsel %vm11695_vm2, 1.0, %v12684_v11  ;;  %v4129_v3 = vsel %vm4097_vm0, %v7326_v48, %v4081_v1 }
 0x4a4   : >> { %v8405_v63 = vadd.f32 %v8404_v32, %v8403_v14  ;;  %v7311_v8 = vadd.s32 4294967278, %v4034_v6  ;;  %v7417_v14 = vadd.s32 4294967278, %v4364_v22  ;;  %v4223_v29 = vsel %vm4191_vm15, %v7356_v27, %v4175_v46 }
 0x4a5   : >> { %v3240_v7 = vadd.f32 %v8325_v24, %v11610_v40  ;;  %v8326_v50 = vpop.f32.mrb[28].mxu1  ;;  %vm4192_vm4 = vcmp.ge.s32.totalorder %v4176_v23, 18  ;;  %v7402_v25 = vadd.s32 4294967278, %v4317_v41  ;;  %vm4145_vm6 = vcmp.ge.s32.totalorder %v4129_v3, 18 }
 0x4a6   : >> { %v8327_v53 = vpop.f32.mrb[29].mxu1  ;;  %v8406_v58 = vpop.f32.mrb[28].mxu0  ;;  %v4082_v36 = vsel %vm4050_vm3, %v7311_v8, %v4034_v6  ;;  %v7387_v28 = vadd.s32 4294967278, %v4270_v47  ;;  %v7372_v35 = vadd.s32 4294967278, %v4223_v29  ;;  %vm4333_vm8 = vcmp.ge.s32.totalorder %v4317_v41, 18 }
 0x4a7   : >> { %v11700_v49 = vadd.f32 %v8405_v63, %v3240_v7  ;;  %v8328_v40 = vadd.f32 %v8327_v53, %v8326_v50  ;;  %v8407_v34 = vpop.f32.mrb[29].mxu0  ;;  %v7357_v63 = vadd.s32 4294967278, %v4176_v23  ;;  %vm4286_vm9 = vcmp.ge.s32.totalorder %v4270_v47, 18 }
 0x4a8   : >> { %v8408_v0 = vadd.f32 %v8407_v34, %v8406_v58  ;;  %v4412_v58 = vsel %vm4380_vm5, %v7417_v14, %v4364_v22  ;;  %vm4239_vm7 = vcmp.ge.s32.totalorder %v4223_v29, 18  ;;  %v7327_v8 = vadd.s32 4294967278, %v4082_v36 }
 0x4a9   : >> { %v3245_v5 = vadd.f32 %v8328_v40, %v11616_v16  ;;  %v8329_v33 = vpop.f32.mrb[30].mxu1  ;;  %v7342_v16 = vadd.s32 4294967278, %v4129_v3  ;;  %v4224_v40 = vsel %vm4192_vm4, %v7357_v63, %v4176_v23  ;;  %vm4445_vm11 = vcmp.lt.s32.totalorder %v4412_v58, 16 }
 0x4aa   : >> { %v8330_v24 = vpop.f32.mrb[31].mxu1  ;;  %v8409_v32 = vpop.f32.mrb[30].mxu0  ;;  %v11724_v22 = vadd.s32 %v11604_v26, %v12785_v59  ;;  %vm4098_vm10 = vcmp.ge.s32.totalorder %v4082_v36, 18  ;;  %v4271_v23 = vsel %vm4239_vm7, %v7372_v35, %v4223_v29  ;;  %vm4240_vm14 = vcmp.ge.s32.totalorder %v4224_v40, 18  ;;  %vm11740_vm0 = vmand %vm4445_vm11, %vm4461_vm12 }
 0x4ab   : >> { %v11713_v7 = vadd.f32 %v8408_v0, %v3245_v5  ;;  %v8331_v1 = vadd.f32 %v8330_v24, %v8329_v33  ;;  %v8410_v48 = vpop.f32.mrb[31].mxu0  ;;  %v4177_v6 = vsel %vm4145_vm6, %v7342_v16, %v4129_v3  ;;  %v4365_v24 = vsel %vm4333_vm8, %v7402_v25, %v4317_v41  ;;  %v12792_v3 = vld [vmem:[#allocation26_spill] sm:$0xff] }
 0x4ac   : >> { %v8411_v50 = vadd.f32 %v8410_v48, %v8409_v32  ;;  %v4318_v32 = vsel %vm4286_vm9, %v7387_v28, %v4270_v47  ;;  %v7373_v48 = vadd.s32 4294967278, %v4224_v40  ;;  %v4035_v16 = vadd.s32 %v11569_v61, %v12792_v3 }
 0x4ad   : >> { %v3250_v19 = vadd.f32 %v8331_v1, %v11623_v37  ;;  %v8332_v53 = vpop.f32.mrb[32].mxu1  ;;  %vm4193_vm2 = vcmp.ge.s32.totalorder %v4177_v6, 18  ;;  %vm4381_vm1 = vcmp.ge.s32.totalorder %v4365_v24, 18  ;;  %v7418_v41 = vadd.s32 4294967278, %v4365_v24 }
 0x4ae   : >> { %v8333_v46 = vpop.f32.mrb[33].mxu1  ;;  %v8412_v27 = vpop.f32.mrb[32].mxu0  ;;  %v11734_v47 = vadd.s32 %v11604_v26, %v12786_v44  ;;  %vm4334_vm13 = vcmp.ge.s32.totalorder %v4318_v32, 18  ;;  %v7403_v35 = vadd.s32 4294967278, %v4318_v32  ;;  %vm4287_vm15 = vcmp.ge.s32.totalorder %v4271_v23, 18 }
 0x4af   : >> { %v11719_v34 = vadd.f32 %v8411_v50, %v3250_v19  ;;  %v8334_v0 = vadd.f32 %v8333_v46, %v8332_v53  ;;  %v8413_v5 = vpop.f32.mrb[33].mxu0  ;;  %v7358_v50 = vadd.s32 4294967278, %v4177_v6  ;;  %v4130_v46 = vsel %vm4098_vm10, %v7327_v8, %v4082_v36 }
 0x4b0   : >> { %v8414_v37 = vadd.f32 %v8413_v5, %v8412_v27  ;;  %v7388_v36 = vadd.s32 4294967278, %v4271_v23  ;;  %v4272_v5 = vsel %vm4240_vm14, %v7373_v48, %v4224_v40  ;;  %v7343_v8 = vadd.s32 4294967278, %v4130_v46 }
 0x4b1   : >> { %v3255_v33 = vadd.f32 %v8334_v0, %v11579_v62  ;;  %v8335_v14 = vpop.f32.mrb[34].mxu1  ;;  %v4225_v44 = vsel %vm4193_vm2, %v7358_v50, %v4177_v6  ;;  %vm4146_vm3 = vcmp.ge.s32.totalorder %v4130_v46, 18  ;;  %v7312_v58 = vadd.s32 4294967278, %v4035_v16 }
 0x4b2   : >> { %v8336_v63 = vpop.f32.mrb[35].mxu1  ;;  %v8415_v1 = vpop.f32.mrb[34].mxu0  ;;  %vm4051_vm5 = vcmp.ge.s32.totalorder %v4035_v16, 18  ;;  %v4319_v48 = vsel %vm4287_vm15, %v7388_v36, %v4271_v23  ;;  %v7389_v50 = vadd.s32 4294967278, %v4272_v5  ;;  %vm4462_vm12 = vcmp.lt.s32.totalorder %v11682_v57, 288 }
 0x4b3   : >> { %v11729_v19 = vadd.f32 %v8414_v37, %v3255_v33  ;;  %v8337_v53 = vadd.f32 %v8336_v63, %v8335_v14  ;;  %v8416_v59 = vpop.f32.mrb[35].mxu0  ;;  %v11751_v14 = vsel %vm11740_vm0, 1.0, %v12684_v11  ;;  %v11755_v63 = vadd.s32 %v11604_v26, %v12787_v39 }
 0x4b4   : >> { %v8417_v62 = vadd.f32 %v8416_v59, %v8415_v1  ;;  %v4366_v1 = vsel %vm4334_vm13, %v7403_v35, %v4318_v32  ;;  %vm4288_vm4 = vcmp.ge.s32.totalorder %v4272_v5, 18  ;;  %vm4241_vm6 = vcmp.ge.s32.totalorder %v4225_v44, 18 }
 0x4b5   : >> { %v3260_v29 = vadd.f32 %v8337_v53, %v11583_v21  ;;  %v8338_v25 = vpop.f32.mrb[36].mxu1  ;;  %v4036_v32 = vadd.s32 %v11569_v61, %v10492_v52  ;;  %v4413_v35 = vsel %vm4381_vm1, %v7418_v41, %v4365_v24  ;;  %vm4382_vm8 = vcmp.ge.s32.totalorder %v4366_v1, 18 }
 0x4b6   : >> { %v8339_v27 = vpop.f32.mrb[37].mxu1  ;;  %v8418_v0 = vpop.f32.mrb[36].mxu0  ;;  %v7419_v36 = vadd.s32 4294967278, %v4366_v1  ;;  %vm4335_vm9 = vcmp.ge.s32.totalorder %v4319_v48, 18  ;;  %vm4463_vm7 = vcmp.lt.s32.totalorder %v11724_v22, 288  ;;  %vm4446_vm14 = vcmp.lt.s32.totalorder %v4413_v35, 16 }
 0x4b7   : >> { %v11746_v21 = vadd.f32 %v8417_v62, %v3260_v29  ;;  %v8340_v37 = vadd.f32 %v8339_v27, %v8338_v25  ;;  %v8419_v42 = vpop.f32.mrb[37].mxu0  ;;  %v7374_v62 = vadd.s32 4294967278, %v4225_v44  ;;  %v4178_v29 = vsel %vm4146_vm3, %v7343_v8, %v4130_v46 }
 0x4b8   : >> { %v8420_v33 = vadd.f32 %v8419_v42, %v8418_v0  ;;  %v4320_v46 = vsel %vm4288_vm4, %v7389_v50, %v4272_v5  ;;  %vm4194_vm11 = vcmp.ge.s32.totalorder %v4178_v29, 18  ;;  %vm4052_vm2 = vcmp.ge.s32.totalorder %v4036_v32, 18 }
 0x4b9   : >> { %v3265_v40 = vadd.f32 %v8340_v37, %v11589_v45  ;;  %v8341_v6 = vpop.f32.mrb[38].mxu1  ;;  %v4083_v45 = vsel %vm4051_vm5, %v7312_v58, %v4035_v16  ;;  %v7404_v37 = vadd.s32 4294967278, %v4319_v48  ;;  %v4273_v16 = vsel %vm4241_vm6, %v7374_v62, %v4225_v44  ;;  %vm11788_vm5 = vmand %vm4446_vm14, %vm4462_vm12 }
 0x4ba   : >> { %v8342_v53 = vpop.f32.mrb[39].mxu1  ;;  %v8421_v59 = vpop.f32.mrb[38].mxu0  ;;  %v7359_v58 = vadd.s32 4294967278, %v4178_v29  ;;  %vm4099_vm10 = vcmp.ge.s32.totalorder %v4083_v45, 18  ;;  %v7405_v44 = vadd.s32 4294967278, %v4320_v46  ;;  %v7390_v62 = vadd.s32 4294967278, %v4273_v16 }
 0x4bb   : >> { %v11762_v39 = vadd.f32 %v8420_v33, %v3265_v40  ;;  %v8343_v25 = vadd.f32 %v8342_v53, %v8341_v6  ;;  %v8422_v28 = vpop.f32.mrb[39].mxu0  ;;  %v7328_v33 = vadd.s32 4294967278, %v4083_v45  ;;  %v4414_v53 = vsel %vm4382_vm8, %v7419_v36, %v4366_v1 }
 0x4bc   : >> { %v8423_v23 = vadd.f32 %v8422_v28, %v8421_v59  ;;  %v4367_v59 = vsel %vm4335_vm9, %v7404_v37, %v4319_v48  ;;  %vm4336_vm1 = vcmp.ge.s32.totalorder %v4320_v46, 18  ;;  %vm4289_vm0 = vcmp.ge.s32.totalorder %v4273_v16, 18 }
 0x4bd   : >> { %v3270_v27 = vadd.f32 %v8343_v25, %v11593_v30  ;;  %v8344_v0 = vpop.f32.mrb[40].mxu1  ;;  %v7313_v30 = vadd.s32 4294967278, %v4036_v32  ;;  %vm4447_vm13 = vcmp.lt.s32.totalorder %v4414_v53, 16  ;;  %vm4383_vm15 = vcmp.ge.s32.totalorder %v4367_v59, 18 }
 0x4be   : >> { %v8345_v8 = vpop.f32.mrb[41].mxu1  ;;  %v8424_v42 = vpop.f32.mrb[40].mxu0  ;;  %v7420_v48 = vadd.s32 4294967278, %v4367_v59  ;;  %vm4464_vm3 = vcmp.lt.s32.totalorder %v11734_v47, 288  ;;  %vm11806_vm9 = vmand %vm4447_vm13, %vm4463_vm7  ;;  %v11850_v47 = vadd.s32 %v11604_v26, %v12792_v3 }
 0x4bf   : >> { %v11772_v40 = vadd.f32 %v8423_v23, %v3270_v27  ;;  %v8346_v24 = vadd.f32 %v8345_v8, %v8344_v0  ;;  %v8425_v41 = vpop.f32.mrb[41].mxu0  ;;  %v4226_v23 = vsel %vm4194_vm11, %v7359_v58, %v4178_v29  ;;  %v4131_v27 = vsel %vm4099_vm10, %v7328_v33, %v4083_v45 }
 0x4c0   : >> { %v8426_v6 = vadd.f32 %v8425_v41, %v8424_v42  ;;  %v4084_v36 = vsel %vm4052_vm2, %v7313_v30, %v4036_v32  ;;  %v4368_v45 = vsel %vm4336_vm1, %v7405_v44, %v4320_v46  ;;  %v4321_v32 = vsel %vm4289_vm0, %v7390_v62, %v4273_v16 }
 0x4c1   : >> { %v3275_v5 = vadd.f32 %v8346_v24, %v11599_v15  ;;  %v8347_v50 = vpop.f32.mrb[42].mxu1  ;;  %v4037_v15 = vadd.s32 %v11569_v61, %v10475_v31  ;;  %vm4242_vm4 = vcmp.ge.s32.totalorder %v4226_v23, 18  ;;  %v7375_v41 = vadd.s32 4294967278, %v4226_v23 }
 0x4c2   : >> { %v8348_v25 = vpop.f32.mrb[43].mxu1  ;;  %v8427_v28 = vpop.f32.mrb[42].mxu0  ;;  %vm4147_vm6 = vcmp.ge.s32.totalorder %v4131_v27, 18  ;;  %v7344_v30 = vadd.s32 4294967278, %v4131_v27  ;;  %vm4100_vm8 = vcmp.ge.s32.totalorder %v4084_v36, 18  ;;  %v11799_v46 = vsel %vm11788_vm5, 1.0, %v12684_v11 }
 0x4c3   : >> { %v11779_v0 = vadd.f32 %v8426_v6, %v3275_v5  ;;  %v8349_v8 = vadd.f32 %v8348_v25, %v8347_v50  ;;  %v8428_v1 = vpop.f32.mrb[43].mxu0  ;;  %v7329_v6 = vadd.s32 4294967278, %v4084_v36  ;;  %v7314_v35 = vadd.s32 4294967278, %v4037_v15 }
 0x4c4   : >> { %v8429_v42 = vadd.f32 %v8428_v1, %v8427_v28  ;;  %v4415_v16 = vsel %vm4383_vm15, %v7420_v48, %v4367_v59  ;;  %vm4053_vm12 = vcmp.ge.s32.totalorder %v4037_v15, 18  ;;  %vm4384_vm11 = vcmp.ge.s32.totalorder %v4368_v45, 18 }
 0x4c5   : >> { %v3280_v37 = vadd.f32 %v8349_v8, %v11608_v2  ;;  %v8350_v24 = vpop.f32.mrb[44].mxu1  ;;  %v7421_v28 = vadd.s32 4294967278, %v4368_v45  ;;  %v7406_v8 = vadd.s32 4294967278, %v4321_v32  ;;  %vm4337_vm10 = vcmp.ge.s32.totalorder %v4321_v32, 18 }
 0x4c6   : >> { %v8351_v58 = vpop.f32.mrb[45].mxu1  ;;  %v8430_v33 = vpop.f32.mrb[44].mxu0  ;;  %v4179_v59 = vsel %vm4147_vm6, %v7344_v30, %v4131_v27  ;;  %v4038_v29 = vadd.s32 %v11569_v61, %v10547_v10  ;;  %vm4448_vm7 = vcmp.lt.s32.totalorder %v4415_v16, 16  ;;  %v11836_v30 = vadd.s32 %v11604_v26, %v12789_v54 }
 0x4c7   : >> { %v11794_v2 = vadd.f32 %v8429_v42, %v3280_v37  ;;  %v8352_v5 = vadd.f32 %v8351_v58, %v8350_v24  ;;  %v8431_v57 = vpop.f32.mrb[45].mxu0  ;;  %v4274_v37 = vsel %vm4242_vm4, %v7375_v41, %v4226_v23  ;;  %v4085_v24 = vsel %vm4053_vm12, %v7314_v35, %v4037_v15  ;;  %vm4480_vm14 = vmand %vm4448_vm7, %vm4464_vm3 }
 0x4c8   : >> { %v8432_v50 = vadd.f32 %v8431_v57, %v8430_v33  ;;  %v11821_v33 = vsel %vm11806_vm9, 1.0, %v12684_v11  ;;  %v11825_v23 = vadd.s32 %v11604_v26, %v12788_v43  ;;  %v11829_v41 = vsel %vm4384_vm11, %v7421_v28, %v4368_v45  ;;  %v11846_v28 = vld [vmem:[#allocation11 + $0x1] ss:$0 sm:$0xff] }
 0x4c9   : >> { %v3285_v44 = vadd.f32 %v8352_v5, %v11614_v12  ;;  %v8353_v62 = vpop.f32.mrb[46].mxu1  ;;  %v4132_v12 = vsel %vm4100_vm8, %v7329_v6, %v4084_v36  ;;  %v11832_v15 = vsel %vm4337_vm10, %v7406_v8, %v4321_v32  ;;  %v7391_v57 = vadd.s32 4294967278, %v4274_v37 }
 0x4ca   : >> { %v8354_v1 = vpop.f32.mrb[47].mxu1  ;;  %v8433_v42 = vpop.f32.mrb[46].mxu0  ;;  %v7360_v35 = vadd.s32 4294967278, %v4179_v59  ;;  %v7330_v43 = vadd.s32 4294967278, %v4085_v24  ;;  %vm4101_vm2 = vcmp.ge.s32.totalorder %v4085_v24, 18  ;;  %v7315_v45 = vadd.s32 4294967278, %v4038_v29 }
 0x4cb   : >> { %v11813_v48 = vadd.f32 %v8432_v50, %v3285_v44  ;;  %v8355_v22 = vadd.f32 %v8354_v1, %v8353_v62  ;;  %v8434_v53 = vpop.f32.mrb[47].mxu0  ;;  %v7345_v50 = vadd.s32 4294967278, %v4132_v12  ;;  %vm4148_vm1 = vcmp.ge.s32.totalorder %v4132_v12, 18 }
 0x4cc   : >> { %v8435_v58 = vadd.f32 %v8434_v53, %v8433_v42  ;;  %vm4054_vm0 = vcmp.ge.s32.totalorder %v4038_v29, 18  ;;  %v4039_v54 = vadd.s32 %v11569_v61, %v10518_v9  ;;  %vm4290_vm13 = vcmp.ge.s32.totalorder %v4274_v37, 18 }
 0x4cd   : >> { %v3290_v27 = vadd.f32 %v8355_v22, %v11621_v17  ;;  %v8468_v36 = vpop.f32.mrb[48].mxu1  ;;  %vm4195_vm15 = vcmp.ge.s32.totalorder %v4179_v59, 18  ;;  %v11853_v42 = vsel %vm4480_vm14, 1.0, %v12684_v11  ;;  %vm4449_vm3 = vcmp.lt.s32.totalorder %v11829_v41, 16 }
 0x4ce   : >> { %v8469_v6 = vpop.f32.mrb[49].mxu1  ;;  %v8548_v5 = vpop.f32.mrb[48].mxu0  ;;  %vm4465_vm5 = vcmp.lt.s32.totalorder %v11755_v63, 288  ;;  %v11858_v61 = vadd.s32 4294967278, %v11832_v15  ;;  %v4180_v3 = vsel %vm4148_vm1, %v7345_v50, %v4132_v12  ;;  %vm4055_vm4 = vcmp.ge.s32.totalorder %v4039_v54, 18 }
 0x4cf   : >> { %v11838_v44 = vadd.f32 %v8435_v58, %v3290_v27  ;;  %v8470_v17 = vadd.f32 %v8469_v6, %v8468_v36  ;;  %v8549_v62 = vpop.f32.mrb[49].mxu0  ;;  %v4086_v27 = vsel %vm4054_vm0, %v7315_v45, %v4038_v29  ;;  %v11864_v6 = vsel %vm4290_vm13, %v7391_v57, %v4274_v37  ;;  %vm4481_vm14 = vmand %vm4449_vm3, %vm4465_vm5 }
 0x4d0   : >> { %v8550_v32 = vadd.f32 %v8549_v62, %v8548_v5  ;;  %v4227_v5 = vsel %vm4195_vm15, %v7360_v35, %v4179_v59  ;;  %vm4196_vm6 = vcmp.ge.s32.totalorder %v4180_v3, 18  ;;  %v7361_v12 = vadd.s32 4294967278, %v4180_v3 }
 0x4d1   : >> { %12799 = vst [vmem:[#allocation35_spill] sm:$0xff] %v11838_v44  ;;  %v3737_v25 = vadd.f32 %v8470_v17, %v11644_v38  ;;  %v8471_v8 = vpop.f32.mrb[50].mxu1  ;;  %v4133_v38 = vsel %vm4101_vm2, %v7330_v43, %v4085_v24  ;;  %v7316_v17 = vadd.s32 4294967278, %v4039_v54  ;;  %v7331_v29 = vadd.s32 4294967278, %v4086_v27 }
 0x4d2   : >> { %v8472_v16 = vpop.f32.mrb[51].mxu1  ;;  %v8551_v1 = vpop.f32.mrb[50].mxu0  ;;  %v7346_v24 = vadd.s32 4294967278, %v4133_v38  ;;  %vm4149_vm8 = vcmp.ge.s32.totalorder %v4133_v38, 18  ;;  %vm4102_vm12 = vcmp.ge.s32.totalorder %v4086_v27, 18  ;;  %vm4338_vm9 = vcmp.ge.s32.totalorder %v11864_v6, 18 }
 0x4d3   : >> { %v3949_v22 = vadd.f32 %v8550_v32, %v3737_v25  ;;  %v8473_v53 = vadd.f32 %v8472_v16, %v8471_v8  ;;  %v8552_v58 = vpop.f32.mrb[51].mxu0  ;;  %v4087_v35 = vsel %vm4055_vm4, %v7316_v17, %v4039_v54  ;;  %vm4243_vm11 = vcmp.ge.s32.totalorder %v4227_v5, 18 }
 0x4d4   : >> { %v8553_v36 = vadd.f32 %v8552_v58, %v8551_v1  ;;  %v4228_v58 = vsel %vm4196_vm6, %v7361_v12, %v4180_v3  ;;  %vm4103_vm7 = vcmp.ge.s32.totalorder %v4087_v35, 18  ;;  %vm4385_vm13 = vcmp.ge.s32.totalorder %v11832_v15, 18 }
 0x4d5   : >> { %v3973_v62 = vadd.f32 %v11846_v28, %v3949_v22  ;;  %v3738_v11 = vadd.f32 %v8473_v53, %v11653_v51  ;;  %v8474_v44 = vpop.f32.mrb[52].mxu1  ;;  %v7407_v51 = vadd.s32 4294967278, %v11864_v6  ;;  %v4181_v22 = vsel %vm4149_vm8, %v7346_v24, %v4133_v38 }
 0x4d6   : >> { %v8475_v43 = vpop.f32.mrb[53].mxu1  ;;  %v8554_v32 = vpop.f32.mrb[52].mxu0  ;;  %vm4197_vm10 = vcmp.ge.s32.totalorder %v4181_v22, 18  ;;  %vm4244_vm2 = vcmp.ge.s32.totalorder %v4228_v58, 18 }
 0x4d7   : >> { %v3989_v50 = vmax.f32 %v3973_v62, 0.0  ;;  %v3950_v45 = vadd.f32 %v8553_v36, %v3738_v11  ;;  %v8476_v37 = vadd.f32 %v8475_v43, %v8474_v44  ;;  %v8555_v57 = vpop.f32.mrb[53].mxu0  ;;  %v7376_v44 = vadd.s32 4294967278, %v4227_v5 }
 0x4d8   : >> { %v8556_v59 = vadd.f32 %v8555_v57, %v8554_v32  ;;  %v4134_v36 = vsel %vm4102_vm12, %v7331_v29, %v4086_v27  ;;  %v7332_v43 = vadd.s32 4294967278, %v4087_v35 }
 0x4d9   : >> { %v4521_v25 = vmul.f32 %v11630_v18, %v3989_v50  ;;  %v3974_v8 = vadd.f32 %v11846_v28, %v3950_v45  ;;  %v3739_v16 = vadd.f32 %v8476_v37, %v11666_v13  ;;  %v8477_v1 = vpop.f32.mrb[54].mxu1  ;;  %v7362_v13 = vadd.s32 4294967278, %v4181_v22 }
 0x4da   : >> { %v8478_v53 = vpop.f32.mrb[55].mxu1  ;;  %v8557_v11 = vpop.f32.mrb[54].mxu0  ;;  %v7347_v12 = vadd.s32 4294967278, %v4134_v36  ;;  %v4275_v45 = vsel %vm4243_vm11, %v7376_v44, %v4227_v5  ;;  %v7377_v37 = vadd.s32 4294967278, %v4228_v58  ;;  %vm4150_vm1 = vcmp.ge.s32.totalorder %v4134_v36, 18 }
 0x4db   : >> { %7446 = vst [vmem:[%s11876_s27 + $0x18] sm:$0xff] %v4521_v25  ;;  %v3990_v54 = vmax.f32 %v3974_v8, 0.0  ;;  %v3951_v17 = vadd.f32 %v8556_v59, %v3739_v16  ;;  %v8479_v18 = vadd.f32 %v8478_v53, %v8477_v1  ;;  %v8558_v62 = vpop.f32.mrb[55].mxu0  ;;  %v12800_v8 = vmov 0.0  }
 0x4dc   : >> { %v8559_v32 = vadd.f32 %v8558_v62, %v8557_v11  ;;  %v11890_v41 = vsel %vm4481_vm14, 1.0, %v12800_v8  ;;  %v11895_v16 = vsel %vm4338_vm9, %v7407_v51, %v11864_v6  ;;  %v4229_v5 = vsel %vm4197_vm10, %v7362_v13, %v4181_v22 }
 0x4dd   : >> { %v4522_v38 = vmul.f32 %v11642_v55, %v3990_v54  ;;  %v3975_v24 = vadd.f32 %v11846_v28, %v3951_v17  ;;  %v3740_v3 = vadd.f32 %v8479_v18, %v11672_v4  ;;  %v8480_v27 = vpop.f32.mrb[56].mxu1  ;;  %v4135_v4 = vsel %vm4103_vm7, %v7332_v43, %v4087_v35 }
 0x4de   : >> { %v8481_v29 = vpop.f32.mrb[57].mxu1  ;;  %v8560_v50 = vpop.f32.mrb[56].mxu0  ;;  %v4182_v35 = vsel %vm4150_vm1, %v7347_v12, %v4134_v36  ;;  %vm4291_vm0 = vcmp.ge.s32.totalorder %v4275_v45, 18  ;;  %v7392_v18 = vadd.s32 4294967278, %v4275_v45  ;;  %v4276_v62 = vsel %vm4244_vm2, %v7377_v37, %v4228_v58 }
 0x4df   : >> { %7447 = vst [vmem:[%s11876_s27 + $0x20] sm:$0xff] %v4522_v38  ;;  %v3991_v55 = vmax.f32 %v3975_v24, 0.0  ;;  %v3952_v57 = vadd.f32 %v8559_v32, %v3740_v3  ;;  %v8482_v59 = vadd.f32 %v8481_v29, %v8480_v27  ;;  %v8561_v25 = vpop.f32.mrb[57].mxu0  ;;  %v7348_v43 = vadd.s32 4294967278, %v4135_v4 }
 0x4e0   : >> { %v8562_v63 = vadd.f32 %v8561_v25, %v8560_v50  ;;  %vm4151_vm15 = vcmp.ge.s32.totalorder %v4135_v4, 18  ;;  %vm4245_vm3 = vcmp.ge.s32.totalorder %v4229_v5, 18  ;;  %v7363_v36 = vadd.s32 4294967278, %v4182_v35 }
 0x4e1   : >> { %v4523_v1 = vmul.f32 %v11662_v20, %v3991_v55  ;;  %v3976_v53 = vadd.f32 %v11846_v28, %v3952_v57  ;;  %v3741_v11 = vadd.f32 %v8482_v59, %v11686_v56  ;;  %v8483_v44 = vpop.f32.mrb[58].mxu1  ;;  %v7378_v56 = vadd.s32 4294967278, %v4229_v5 }
 0x4e2   : >> { %v8484_v54 = vpop.f32.mrb[59].mxu1  ;;  %v8563_v17 = vpop.f32.mrb[58].mxu0  ;;  %vm4198_vm5 = vcmp.ge.s32.totalorder %v4182_v35, 18  ;;  %vm4386_vm4 = vcmp.ge.s32.totalorder %v11895_v16, 18  ;;  %v4323_v12 = vsel %vm4291_vm0, %v7392_v18, %v4275_v45  ;;  %v7393_v29 = vadd.s32 4294967278, %v4276_v62 }
 0x4e3   : >> { %7448 = vst [vmem:[%s11876_s27 + $0x28] sm:$0xff] %v4523_v1  ;;  %v3992_v6 = vmax.f32 %v3976_v53, 0.0  ;;  %v3953_v51 = vadd.f32 %v8562_v63, %v3741_v11  ;;  %v8485_v32 = vadd.f32 %v8484_v54, %v8483_v44  ;;  %v8564_v22 = vpop.f32.mrb[59].mxu0  ;;  %v4183_v50 = vsel %vm4151_vm15, %v7348_v43, %v4135_v4 }
 0x4e4   : >> { %v8565_v20 = vadd.f32 %v8564_v22, %v8563_v17  ;;  %vm4292_vm6 = vcmp.ge.s32.totalorder %v4276_v62, 18  ;;  %v4277_v25 = vsel %vm4245_vm3, %v7378_v56, %v4229_v5  ;;  %v4230_v63 = vsel %vm4198_vm5, %v7363_v36, %v4182_v35 }
 0x4e5   : >> { %v4524_v13 = vmul.f32 %v11706_v60, %v3992_v6  ;;  %v3977_v38 = vadd.f32 %v11846_v28, %v3953_v51  ;;  %v3742_v58 = vadd.f32 %v8485_v32, %v11700_v49  ;;  %v8486_v24 = vpop.f32.mrb[60].mxu1  ;;  %v7423_v49 = vadd.s32 4294967278, %v11895_v16 }
 0x4e6   : >> { %v8487_v3 = vpop.f32.mrb[61].mxu1  ;;  %v8566_v27 = vpop.f32.mrb[60].mxu0  ;;  %v7364_v11 = vadd.s32 4294967278, %v4183_v50  ;;  %vm4339_vm8 = vcmp.ge.s32.totalorder %v4323_v12, 18  ;;  %v7408_v17 = vadd.s32 4294967278, %v4323_v12  ;;  %v4324_v18 = vsel %vm4292_vm6, %v7393_v29, %v4276_v62 }
 0x4e7   : >> { %7449 = vst [vmem:[%s11876_s27 + $0x30] sm:$0xff] %v4524_v13  ;;  %v3993_v37 = vmax.f32 %v3977_v38, 0.0  ;;  %v3954_v55 = vadd.f32 %v8565_v20, %v3742_v58  ;;  %v8488_v57 = vadd.f32 %v8487_v3, %v8486_v24  ;;  %v8567_v59 = vpop.f32.mrb[61].mxu0  ;;  %vm4199_vm12 = vcmp.ge.s32.totalorder %v4183_v50, 18 }
 0x4e8   : >> { %v8568_v60 = vadd.f32 %v8567_v59, %v8566_v27  ;;  %v7379_v35 = vadd.s32 4294967278, %v4230_v63  ;;  %vm4466_vm9 = vcmp.lt.s32.totalorder %v11825_v23, 288  ;;  %vm4293_vm11 = vcmp.ge.s32.totalorder %v4277_v25, 18 }
 0x4e9   : >> { %v4525_v1 = vmul.f32 %v11751_v14, %v3993_v37  ;;  %v3978_v45 = vadd.f32 %v11846_v28, %v3954_v55  ;;  %v3743_v4 = vadd.f32 %v8488_v57, %v11713_v7  ;;  %v8489_v53 = vpop.f32.mrb[62].mxu1  ;;  %v7394_v7 = vadd.s32 4294967278, %v4277_v25 }
 0x4ea   : >> { %v8490_v44 = vpop.f32.mrb[63].mxu1  ;;  %v8569_v54 = vpop.f32.mrb[62].mxu0  ;;  %vm4246_vm10 = vcmp.ge.s32.totalorder %v4230_v63, 18  ;;  %v4231_v56 = vsel %vm4199_vm12, %v7364_v11, %v4183_v50  ;;  %v4417_v38 = vsel %vm4385_vm13, %v11858_v61, %v11832_v15  ;;  %v4371_v58 = vsel %vm4339_vm8, %v7408_v17, %v4323_v12 }
 0x4eb   : >> { %7450 = vst [vmem:[%s11876_s27 + $0x38] sm:$0xff] %v4525_v1  ;;  %v3994_v43 = vmax.f32 %v3978_v45, 0.0  ;;  %v3955_v6 = vadd.f32 %v8568_v60, %v3743_v4  ;;  %v8491_v5 = vadd.f32 %v8490_v44, %v8489_v53  ;;  %v8570_v51 = vpop.f32.mrb[63].mxu0  ;;  %vm4340_vm7 = vcmp.ge.s32.totalorder %v4324_v18, 18 }
 0x4ec   : >> { %v8571_v32 = vadd.f32 %v8570_v51, %v8569_v54  ;;  %v7409_v24 = vadd.s32 4294967278, %v4324_v18  ;;  %v4418_v50 = vsel %vm4386_vm4, %v7423_v49, %v11895_v16  ;;  %vm4467_vm14 = vcmp.lt.s32.totalorder %v11836_v30, 288 }
 0x4ed   : >> { %v4526_v14 = vmul.f32 %v11799_v46, %v3994_v43  ;;  %v3979_v22 = vadd.f32 %v11846_v28, %v3955_v6  ;;  %v3744_v62 = vadd.f32 %v8491_v5, %v11719_v34  ;;  %v8492_v20 = vpop.f32.mrb[64].mxu1  ;;  %v4278_v34 = vsel %vm4246_vm10, %v7379_v35, %v4230_v63 }
 0x4ee   : >> { %v8493_v36 = vpop.f32.mrb[65].mxu1  ;;  %v8572_v13 = vpop.f32.mrb[64].mxu0  ;;  %v4325_v15 = vsel %vm4293_vm11, %v7394_v7, %v4277_v25  ;;  %v7380_v61 = vadd.s32 4294967278, %v4231_v56  ;;  %vm4247_vm2 = vcmp.ge.s32.totalorder %v4231_v56, 18  ;;  %vm4387_vm1 = vcmp.ge.s32.totalorder %v4371_v58, 18 }
 0x4ef   : >> { %7451 = vst [vmem:[%s11876_s27 + $0x40] sm:$0xff] %v4526_v14  ;;  %v3995_v46 = vmax.f32 %v3979_v22, 0.0  ;;  %v3956_v3 = vadd.f32 %v8571_v32, %v3744_v62  ;;  %v8494_v27 = vadd.f32 %v8493_v36, %v8492_v20  ;;  %v8573_v29 = vpop.f32.mrb[65].mxu0  ;;  %v7424_v1 = vadd.s32 4294967278, %v4371_v58 }
 0x4f0   : >> { %v8574_v37 = vadd.f32 %v8573_v29, %v8572_v13  ;;  %v4372_v45 = vsel %vm4340_vm7, %v7409_v24, %v4324_v18  ;;  %v7395_v16 = vadd.s32 4294967278, %v4278_v34  ;;  %vm4294_vm0 = vcmp.ge.s32.totalorder %v4278_v34, 18 }
 0x4f1   : >> { %v4527_v12 = vmul.f32 %v11821_v33, %v3995_v46  ;;  %v3980_v55 = vadd.f32 %v11846_v28, %v3956_v3  ;;  %v3745_v57 = vadd.f32 %v8494_v27, %v11729_v19  ;;  %v8495_v59 = vpop.f32.mrb[66].mxu1  ;;  %vm4450_vm13 = vcmp.lt.s32.totalorder %v4417_v38, 16 }
 0x4f2   : >> { %v8496_v60 = vpop.f32.mrb[67].mxu1  ;;  %v8575_v63 = vpop.f32.mrb[66].mxu0  ;;  %vm4468_vm15 = vcmp.lt.s32.totalorder %v11850_v47, 288  ;;  %v7410_v19 = vadd.s32 4294967278, %v4325_v15  ;;  %v4279_v11 = vsel %vm4247_vm2, %v7380_v61, %v4231_v56  ;;  %vm4341_vm3 = vcmp.ge.s32.totalorder %v4325_v15, 18  ;;  %vm4482_vm6 = vmand %vm4450_vm13, %vm4466_vm9 }
 0x4f3   : >> { %7452 = vst [vmem:[%s11876_s27 + $0x48] sm:$0xff] %v4527_v12  ;;  %v3996_v49 = vmax.f32 %v3980_v55, 0.0  ;;  %v3957_v4 = vadd.f32 %v8574_v37, %v3745_v57  ;;  %v8497_v25 = vadd.f32 %v8496_v60, %v8495_v59  ;;  %v8576_v53 = vpop.f32.mrb[67].mxu0  ;;  %vm4451_vm5 = vcmp.lt.s32.totalorder %v4418_v50, 16 }
 0x4f4   : >> { %v8577_v33 = vadd.f32 %v8576_v53, %v8575_v63  ;;  %v4419_v5 = vsel %vm4387_vm1, %v7424_v1, %v4371_v58  ;;  %vm4388_vm4 = vcmp.ge.s32.totalorder %v4372_v45, 18  ;;  %v4326_v51 = vsel %vm4294_vm0, %v7395_v16, %v4278_v34  ;;  %vm4483_vm11 = vmand %vm4451_vm5, %vm4467_vm14 }
 0x4f5   : >> { %v4528_v44 = vmul.f32 %v11853_v42, %v3996_v49  ;;  %v3981_v54 = vadd.f32 %v11846_v28, %v3957_v4  ;;  %v3746_v17 = vadd.f32 %v8497_v25, %v11746_v21  ;;  %v8498_v18 = vpop.f32.mrb[68].mxu1  ;;  %v7396_v21 = vadd.s32 4294967278, %v4279_v11 }
 0x4f6   : >> { %v8499_v43 = vpop.f32.mrb[69].mxu1  ;;  %v8578_v6 = vpop.f32.mrb[68].mxu0  ;;  %v7425_v22 = vadd.s32 4294967278, %v4372_v45  ;;  %v4373_v62 = vsel %vm4341_vm3, %v7410_v19, %v4325_v15  ;;  %vm4295_vm8 = vcmp.ge.s32.totalorder %v4279_v11, 18  ;;  %v7411_v58 = vadd.s32 4294967278, %v4326_v51 }
 0x4f7   : >> { %7453 = vst [vmem:[%s11876_s27 + $0x50] sm:$0xff] %v4528_v44  ;;  %v3997_v35 = vmax.f32 %v3981_v54, 0.0  ;;  %v3958_v32 = vadd.f32 %v8577_v33, %v3746_v17  ;;  %v8500_v42 = vadd.f32 %v8499_v43, %v8498_v18  ;;  %v8579_v7 = vpop.f32.mrb[69].mxu0  ;;  %v7438_v23 = vsel %vm4482_vm6, 1.0, %v12800_v8 }
 0x4f8   : >> { %v8580_v14 = vadd.f32 %v8579_v7, %v8578_v6  ;;  %vm4452_vm12 = vcmp.lt.s32.totalorder %v4419_v5, 16  ;;  %v4437_v46 = vadd.s32 %v11604_v26, %v10492_v52  ;;  %vm4342_vm9 = vcmp.ge.s32.totalorder %v4326_v51, 18 }
 0x4f9   : >> { %v4529_v20 = vmul.f32 %v11890_v41, %v3997_v35  ;;  %v3982_v56 = vadd.f32 %v11846_v28, %v3958_v32  ;;  %v3747_v36 = vadd.f32 %v8500_v42, %v11762_v39  ;;  %v8501_v13 = vpop.f32.mrb[70].mxu1  ;;  %v4327_v29 = vsel %vm4295_vm8, %v7396_v21, %v4279_v11  ;;  %vm4484_vm14 = vmand %vm4452_vm12, %vm4468_vm15 }
 0x4fa   : >> { %v8502_v38 = vpop.f32.mrb[71].mxu1  ;;  %v8581_v24 = vpop.f32.mrb[70].mxu0  ;;  %v4420_v37 = vsel %vm4388_vm4, %v7425_v22, %v4372_v45  ;;  %vm4389_vm10 = vcmp.ge.s32.totalorder %v4373_v62, 18  ;;  %v7426_v15 = vadd.s32 4294967278, %v4373_v62  ;;  %v4374_v30 = vsel %vm4342_vm9, %v7411_v58, %v4326_v51 }
 0x4fb   : >> { %7454 = vst [vmem:[%s11876_s27 + $0x58] sm:$0xff] %v4529_v20  ;;  %v3998_v3 = vmax.f32 %v3982_v56, 0.0  ;;  %v3959_v27 = vadd.f32 %v8580_v14, %v3747_v36  ;;  %v8503_v41 = vadd.f32 %v8502_v38, %v8501_v13  ;;  %v8582_v39 = vpop.f32.mrb[71].mxu0  ;;  %v7439_v50 = vsel %vm4483_vm11, 1.0, %v12800_v8 }
 0x4fc   : >> { %v8583_v34 = vadd.f32 %v8582_v39, %v8581_v24  ;;  %vm4469_vm7 = vcmp.lt.s32.totalorder %v4437_v46, 288  ;;  %v4438_v63 = vadd.s32 %v11604_v26, %v10475_v31  ;;  %v7412_v1 = vadd.s32 4294967278, %v4327_v29 }
 0x4fd   : >> { %v4530_v61 = vmul.f32 %v7438_v23, %v3998_v3  ;;  %v3983_v12 = vadd.f32 %v11846_v28, %v3959_v27  ;;  %v3748_v55 = vadd.f32 %v8503_v41, %v11772_v40  ;;  %v8504_v57 = vpop.f32.mrb[72].mxu1  ;;  %vm4343_vm2 = vcmp.ge.s32.totalorder %v4327_v29, 18 }
 0x4fe   : >> { %v8505_v59 = vpop.f32.mrb[73].mxu1  ;;  %v8584_v60 = vpop.f32.mrb[72].mxu0  ;;  %vm4453_vm1 = vcmp.lt.s32.totalorder %v4420_v37, 16  ;;  %v4421_v25 = vsel %vm4389_vm10, %v7426_v15, %v4373_v62  ;;  %v7427_v53 = vadd.s32 4294967278, %v4374_v30  ;;  %vm4390_vm0 = vcmp.ge.s32.totalorder %v4374_v30, 18 }
 0x4ff   : >> { %7455 = vst [vmem:[%s11876_s27 + $0x60] sm:$0xff] %v4530_v61  ;;  %v3999_v45 = vmax.f32 %v3983_v12, 0.0  ;;  %v3960_v16 = vadd.f32 %v8583_v34, %v3748_v55  ;;  %v8506_v40 = vadd.f32 %v8505_v59, %v8504_v57  ;;  %v8585_v49 = vpop.f32.mrb[73].mxu0  ;;  %v7440_v47 = vsel %vm4484_vm14, 1.0, %v12800_v8  ;;  %vm4485_vm13 = vmand %vm4453_vm1, %vm4469_vm7  ;;  %v12801_v57 = vld [vmem:[#allocation35_spill] sm:$0xff] }
 0x500   : >> { %v8586_v4 = vadd.f32 %v8585_v49, %v8584_v60  ;;  %v4375_v18 = vsel %vm4343_vm2, %v7412_v1, %v4327_v29  ;;  %vm4470_vm15 = vcmp.lt.s32.totalorder %v4438_v63, 288  ;;  %vm4454_vm3 = vcmp.lt.s32.totalorder %v4421_v25, 16 }
 0x501   : >> { %v4531_v33 = vmul.f32 %v7439_v50, %v3999_v45  ;;  %v3984_v19 = vadd.f32 %v11846_v28, %v3960_v16  ;;  %v3749_v11 = vadd.f32 %v8506_v40, %v11779_v0  ;;  %v8507_v44 = vpop.f32.mrb[74].mxu1  ;;  %v4422_v0 = vsel %vm4390_vm0, %v7427_v53, %v4374_v30  ;;  %vm4486_vm4 = vmand %vm4454_vm3, %vm4470_vm15 }
 0x502   : >> { %v8508_v54 = vpop.f32.mrb[75].mxu1  ;;  %v8587_v17 = vpop.f32.mrb[74].mxu0  ;;  %v4439_v32 = vadd.s32 %v11604_v26, %v10547_v10  ;;  %v7428_v22 = vadd.s32 4294967278, %v4375_v18  ;;  %v7441_v62 = vsel %vm4485_vm13, 1.0, %v12800_v8  ;;  %vm4391_vm5 = vcmp.ge.s32.totalorder %v4375_v18, 18 }
 0x503   : >> { %7456 = vst [vmem:[%s11876_s27 + $0x68] sm:$0xff] %v4531_v33  ;;  %v4000_v43 = vmax.f32 %v3984_v19, 0.0  ;;  %v3961_v6 = vadd.f32 %v8586_v4, %v3749_v11  ;;  %v8509_v5 = vadd.f32 %v8508_v54, %v8507_v44  ;;  %v8588_v51 = vpop.f32.mrb[75].mxu0  ;;  %vm4455_vm6 = vcmp.lt.s32.totalorder %v4422_v0, 16 }
 0x504   : >> { %v8589_v35 = vadd.f32 %v8588_v51, %v8587_v17  ;;  %vm4471_vm8 = vcmp.lt.s32.totalorder %v4439_v32, 288  ;;  %v4423_v41 = vsel %vm4391_vm5, %v7428_v22, %v4375_v18  ;;  %v7442_v39 = vsel %vm4486_vm4, 1.0, %v12800_v8 }
 0x505   : >> { %v4532_v42 = vmul.f32 %v7440_v47, %v4000_v43  ;;  %v3985_v7 = vadd.f32 %v11846_v28, %v3961_v6  ;;  %v3750_v21 = vadd.f32 %v8509_v5, %v11794_v2  ;;  %v8510_v14 = vpop.f32.mrb[76].mxu1  ;;  %v4440_v2 = vadd.s32 %v11604_v26, %v10518_v9  ;;  %vm4487_vm12 = vmand %vm4455_vm6, %vm4471_vm8 }
 0x506   : >> { %v8511_v20 = vpop.f32.mrb[77].mxu1  ;;  %v8590_v56 = vpop.f32.mrb[76].mxu0  ;;  %vm4456_vm9 = vcmp.lt.s32.totalorder %v4423_v41, 16  ;;  %v7443_v50 = vsel %vm4487_vm12, 1.0, %v12800_v8 }
 0x507   : >> { %7457 = vst [vmem:[%s11876_s27 + $0x70] sm:$0xff] %v4532_v42  ;;  %v4001_v36 = vmax.f32 %v3985_v7, 0.0  ;;  %v3962_v13 = vadd.f32 %v8589_v35, %v3750_v21  ;;  %v8512_v58 = vadd.f32 %v8511_v20, %v8510_v14  ;;  %v8591_v23 = vpop.f32.mrb[77].mxu0  ;;  %vm4472_vm11 = vcmp.lt.s32.totalorder %v4440_v2, 288 }
 0x508   : >> { %v8592_v38 = vadd.f32 %v8591_v23, %v8590_v56  ;;  %vm4488_vm10 = vmand %vm4456_vm9, %vm4472_vm11 }
 0x509   : >> { %v4533_v24 = vmul.f32 %v7441_v62, %v4001_v36  ;;  %v3986_v46 = vadd.f32 %v11846_v28, %v3962_v13  ;;  %v3751_v3 = vadd.f32 %v8512_v58, %v11813_v48  ;;  %v8513_v27 = vpop.f32.mrb[78].mxu1  ;;  %v7444_v45 = vsel %vm4488_vm10, 1.0, %v12800_v8 }
 0x50a   : >> { %v8514_v29 = vpop.f32.mrb[79].mxu1  ;;  %v8593_v34 = vpop.f32.mrb[78].mxu0 }
 0x50b   : >> { %7458 = vst [vmem:[%s11876_s27 + $0x78] sm:$0xff] %v4533_v24  ;;  %v4002_v37 = vmax.f32 %v3986_v46, 0.0  ;;  %v3963_v15 = vadd.f32 %v8592_v38, %v3751_v3  ;;  %v8515_v61 = vadd.f32 %v8514_v29, %v8513_v27  ;;  %v8594_v12 = vpop.f32.mrb[79].mxu0 }
 0x50c   : >> { %v8595_v26 = vadd.f32 %v8594_v12, %v8593_v34 }
 0x50d   : >> { %v4534_v55 = vmul.f32 %v7442_v39, %v4002_v37  ;;  %v3987_v48 = vadd.f32 %v11846_v28, %v3963_v15  ;;  %v3752_v30 = vadd.f32 %v8515_v61, %v12801_v57 }
 0x50f   : >> { %7459 = vst [vmem:[%s11876_s27 + $0x80] sm:$0xff] %v4534_v55  ;;  %v4003_v59 = vmax.f32 %v3987_v48, 0.0  ;;  %v3964_v60 = vadd.f32 %v8595_v26, %v3752_v30 }
 0x511   : >> { %v4535_v63 = vmul.f32 %v7443_v50, %v4003_v59  ;;  %v3988_v1 = vadd.f32 %v11846_v28, %v3964_v60  ;;  %2862 = sbr.rel (!%p2860_p6) target bundleno = 887 (0x377), region = 201 }
 0x513   : >> { %7460 = vst [vmem:[%s11876_s27 + $0x88] sm:$0xff] %v4535_v63  ;;  %v4004_v16 = vmax.f32 %v3988_v1, 0.0 }
 0x515   : >> { %v4536_v40 = vmul.f32 %v7444_v45, %v4004_v16 }
 0x517   : >> { %7461 = vst [vmem:[%s11876_s27 + $0x90] sm:$0xff] %v4536_v40 }
 0x518 LB: >> { %v4683_v28 = vld [vmem:[#allocation10 + $0xb80] sm:$0xff]  ;;  %v4684_v49 = vld [vmem:[#allocation10 + $0xb88] sm:$0xff]  ;;  %v4685_v54 = vld [vmem:[#allocation10 + $0xb90] sm:$0xff]  ;;  %s12011_s16 = sshll.u32 %s10080_s13, 7  ;;  %s5718_s28 = sld [smem:[#allocation5 + %s10080_s13]]  ;;  %s10080_s13 = sphi %s12005_s13, %s4559_s13  }
 0x519   : >> { %v4614_v8 = vld [vmem:[#allocation10 + $0xa80] sm:$0xff]  ;;  %v9492_v4 = vpack.c.bf16 %v4684_v49, %v4683_v28  ;;  %v4615_v25 = vld [vmem:[#allocation10 + $0xa88] sm:$0xff]  ;;  %v4686_v18 = vld [vmem:[#allocation10 + $0xb98] sm:$0xff]  ;;  %s12014_s24 = scalar_lea.vmem [#allocation2], %s12011_s16  ;;  %s12583_s29 = scalar_lea.vmem %s10344_s30, %s12011_s16 }
 0x51a   : >> { %v4667_v53 = vld [vmem:[#allocation10 + $0xb00] sm:$0xff]  ;;  %v4668_v33 = vld [vmem:[#allocation10 + $0xb08] sm:$0xff]  ;;  %v9524_v19 = vpack.c.bf16 %v4615_v25, %v4614_v8  ;;  %v4616_v43 = vld [vmem:[#allocation10 + $0xa90] sm:$0xff]  ;;  %v9496_v5 = vpack.c.bf16 %v4686_v18, %v4685_v54  ;;  %s4559_s13 = sadd.s32 1, %s10080_s13  }
 0x51b   : >> { %v9494_v11 = vpack.c.bf16 %v4668_v33, %v4667_v53  ;;  %v4598_v44 = vld [vmem:[#allocation10 + $0xa00] sm:$0xff]  ;;  %v4599_v47 = vld [vmem:[#allocation10 + $0xa08] sm:$0xff]  ;;  %9493 = vmatprep.subr.bf16.mxu0 %v9492_v4  ;;  %v4617_v6 = vld [vmem:[#allocation10 + $0xa98] sm:$0xff]  ;;  %p4556_p9 = scmp.ge.s32.totalorder %s4559_s13, 3  }
 0x51c   : >> { %v9526_v17 = vpack.c.bf16 %v4599_v47, %v4598_v44  ;;  %9525 = vmatprep.subr.bf16.mxu1 %v9524_v19  ;;  %v9528_v51 = vpack.c.bf16 %v4617_v6, %v4616_v43  ;;  %v4669_v35 = vld [vmem:[#allocation10 + $0xb10] sm:$0xff]  ;;  %v4670_v0 = vld [vmem:[#allocation10 + $0xb18] sm:$0xff]  ;;  %v4687_v21 = vld [vmem:[#allocation10 + $0xba0] sm:$0xff] }
 0x51d   : >> { %9495 = vmatpush3.bf16.msra.mxu0 %v9494_v11  ;;  %v4600_v32 = vld [vmem:[#allocation10 + $0xa10] sm:$0xff]  ;;  %v9498_v42 = vpack.c.bf16 %v4670_v0, %v4669_v35  ;;  %v4601_v7 = vld [vmem:[#allocation10 + $0xa18] sm:$0xff]  ;;  %v4688_v14 = vld [vmem:[#allocation10 + $0xba8] sm:$0xff] }
 0x51e   : >> { %9527 = vmatpush3.bf16.msra.mxu1 %v9526_v17  ;;  %9497 = vmatprep.subr.bf16.mxu0 %v9496_v5  ;;  %v9530_v22 = vpack.c.bf16 %v4601_v7, %v4600_v32  ;;  %v9500_v62 = vpack.c.bf16 %v4688_v14, %v4687_v21  ;;  %v4618_v20 = vld [vmem:[#allocation10 + $0xaa0] sm:$0xff]  ;;  %v4619_v56 = vld [vmem:[#allocation10 + $0xaa8] sm:$0xff]  ;;  %v4689_v24 = vld [vmem:[#allocation10 + $0xbb0] sm:$0xff] }
 0x51f   : >> { %9529 = vmatprep.subr.bf16.mxu1 %v9528_v51  ;;  %v4671_v36 = vld [vmem:[#allocation10 + $0xb20] sm:$0xff]  ;;  %v9532_v13 = vpack.c.bf16 %v4619_v56, %v4618_v20  ;;  %v4672_v58 = vld [vmem:[#allocation10 + $0xb28] sm:$0xff]  ;;  %v4690_v46 = vld [vmem:[#allocation10 + $0xbb8] sm:$0xff] }
 0x520   : >> { %v4602_v23 = vld [vmem:[#allocation10 + $0xa20] sm:$0xff]  ;;  %v4603_v38 = vld [vmem:[#allocation10 + $0xa28] sm:$0xff]  ;;  %v9502_v2 = vpack.c.bf16 %v4672_v58, %v4671_v36  ;;  %v4620_v3 = vld [vmem:[#allocation10 + $0xab0] sm:$0xff]  ;;  %v9504_v41 = vpack.c.bf16 %v4690_v46, %v4689_v24 }
 0x521   : >> { %9499 = vmatpush3.bf16.msra.mxu0 %v9498_v42  ;;  %v9534_v27 = vpack.c.bf16 %v4603_v38, %v4602_v23  ;;  %v4621_v39 = vld [vmem:[#allocation10 + $0xab8] sm:$0xff]  ;;  %v4673_v29 = vld [vmem:[#allocation10 + $0xb30] sm:$0xff]  ;;  %v4691_v12 = vld [vmem:[#allocation10 + $0xbc0] sm:$0xff] }
 0x522   : >> { %9531 = vmatpush3.bf16.msra.mxu1 %v9530_v22  ;;  %9501 = vmatprep.subr.bf16.mxu0 %v9500_v62  ;;  %v4674_v34 = vld [vmem:[#allocation10 + $0xb38] sm:$0xff]  ;;  %v9536_v37 = vpack.c.bf16 %v4621_v39, %v4620_v3  ;;  %v4604_v15 = vld [vmem:[#allocation10 + $0xa30] sm:$0xff]  ;;  %v4692_v26 = vld [vmem:[#allocation10 + $0xbc8] sm:$0xff] }
 0x523   : >> { %9533 = vmatprep.subr.bf16.mxu1 %v9532_v13  ;;  %v4605_v61 = vld [vmem:[#allocation10 + $0xa38] sm:$0xff]  ;;  %v4622_v55 = vld [vmem:[#allocation10 + $0xac0] sm:$0xff]  ;;  %v4623_v48 = vld [vmem:[#allocation10 + $0xac8] sm:$0xff]  ;;  %v9506_v57 = vpack.c.bf16 %v4674_v34, %v4673_v29  ;;  %v9508_v50 = vpack.c.bf16 %v4692_v26, %v4691_v12 }
 0x524   : >> { %v9538_v30 = vpack.c.bf16 %v4605_v61, %v4604_v15  ;;  %v4675_v59 = vld [vmem:[#allocation10 + $0xb40] sm:$0xff]  ;;  %v4676_v60 = vld [vmem:[#allocation10 + $0xb48] sm:$0xff]  ;;  %v9540_v1 = vpack.c.bf16 %v4623_v48, %v4622_v55  ;;  %v4693_v16 = vld [vmem:[#allocation10 + $0xbd0] sm:$0xff] }
 0x525   : >> { %9503 = vmatpush3.bf16.msra.mxu0 %v9502_v2  ;;  %v4606_v63 = vld [vmem:[#allocation10 + $0xa40] sm:$0xff]  ;;  %v4607_v45 = vld [vmem:[#allocation10 + $0xa48] sm:$0xff]  ;;  %v4694_v40 = vld [vmem:[#allocation10 + $0xbd8] sm:$0xff]  ;;  %v9510_v8 = vpack.c.bf16 %v4676_v60, %v4675_v59 }
 0x526   : >> { %9535 = vmatpush3.bf16.msra.mxu1 %v9534_v27  ;;  %9505 = vmatprep.subr.bf16.mxu0 %v9504_v41  ;;  %v4624_v28 = vld [vmem:[#allocation10 + $0xad0] sm:$0xff]  ;;  %v4625_v49 = vld [vmem:[#allocation10 + $0xad8] sm:$0xff]  ;;  %v9542_v4 = vpack.c.bf16 %v4607_v45, %v4606_v63  ;;  %v9512_v25 = vpack.c.bf16 %v4694_v40, %v4693_v16  ;;  %v4695_v47 = vld [vmem:[#allocation10 + $0xbe0] sm:$0xff] }
 0x527   : >> { %9537 = vmatprep.subr.bf16.mxu1 %v9536_v37  ;;  %v4677_v53 = vld [vmem:[#allocation10 + $0xb50] sm:$0xff]  ;;  %v4678_v33 = vld [vmem:[#allocation10 + $0xb58] sm:$0xff]  ;;  %v9544_v11 = vpack.c.bf16 %v4625_v49, %v4624_v28  ;;  %v4696_v54 = vld [vmem:[#allocation10 + $0xbe8] sm:$0xff] }
 0x528   : >> { %v4608_v19 = vld [vmem:[#allocation10 + $0xa50] sm:$0xff]  ;;  %v4609_v44 = vld [vmem:[#allocation10 + $0xa58] sm:$0xff]  ;;  %v4626_v17 = vld [vmem:[#allocation10 + $0xae0] sm:$0xff]  ;;  %v9514_v43 = vpack.c.bf16 %v4678_v33, %v4677_v53  ;;  %v9516_v35 = vpack.c.bf16 %v4696_v54, %v4695_v47 }
 0x529   : >> { %9507 = vmatpush3.bf16.msra.mxu0 %v9506_v57  ;;  %v4627_v18 = vld [vmem:[#allocation10 + $0xae8] sm:$0xff]  ;;  %v4679_v6 = vld [vmem:[#allocation10 + $0xb60] sm:$0xff]  ;;  %v9546_v51 = vpack.c.bf16 %v4609_v44, %v4608_v19  ;;  %v12017_v32 = vld [vmem:[%s12014_s24 + $0x17] sm:$0xff] }
 0x52a   : >> { %9539 = vmatpush3.bf16.msra.mxu1 %v9538_v30  ;;  %9509 = vmatprep.subr.bf16.mxu0 %v9508_v50  ;;  %v4680_v5 = vld [vmem:[#allocation10 + $0xb68] sm:$0xff]  ;;  %v4610_v0 = vld [vmem:[#allocation10 + $0xa60] sm:$0xff]  ;;  %v9548_v7 = vpack.c.bf16 %v4627_v18, %v4626_v17  ;;  %v4697_v14 = vld [vmem:[#allocation10 + $0xbf0] sm:$0xff] }
 0x52b   : >> { %9541 = vmatprep.subr.bf16.mxu1 %v9540_v1  ;;  %v7481_v42 = vld [vmem:[%s12014_s24 + $0x6] sm:$0xff]  ;;  %v4698_v22 = vld [vmem:[#allocation10 + $0xbf8] sm:$0xff]  ;;  %4763 = vmatprep.mubr.f32.mxu0 %v12017_v32  ;;  %v4628_v62 = vld [vmem:[#allocation10 + $0xaf0] sm:$0xff]  ;;  %v9518_v56 = vpack.c.bf16 %v4680_v5, %v4679_v6 }
 0x52c   : >> { %v4611_v21 = vld [vmem:[#allocation10 + $0xa68] sm:$0xff]  ;;  %v4629_v20 = vld [vmem:[#allocation10 + $0xaf8] sm:$0xff]  ;;  %4908 = vmatprep.mubr.f32.mxu1 %v7481_v42  ;;  %v9520_v13 = vpack.c.bf16 %v4698_v22, %v4697_v14  ;;  %v4681_v58 = vld [vmem:[#allocation10 + $0xb70] sm:$0xff] }
 0x52d   : >> { %9511 = vmatpush3.bf16.msra.mxu0 %v9510_v8  ;;  %v9550_v36 = vpack.c.bf16 %v4611_v21, %v4610_v0  ;;  %v4682_v23 = vld [vmem:[#allocation10 + $0xb78] sm:$0xff]  ;;  %v4612_v38 = vld [vmem:[#allocation10 + $0xa70] sm:$0xff]  ;;  %v9552_v2 = vpack.c.bf16 %v4629_v20, %v4628_v62  ;;  %v5042_v46 = vld [vmem:[#allocation10 + $0xc80] sm:$0xff] }
 0x52e   : >> { %9543 = vmatpush3.bf16.msra.mxu1 %v9542_v4  ;;  %9513 = vmatprep.subr.bf16.mxu0 %v9512_v25  ;;  %v4613_v24 = vld [vmem:[#allocation10 + $0xa78] sm:$0xff]  ;;  %v5043_v3 = vld [vmem:[#allocation10 + $0xc88] sm:$0xff]  ;;  %v9522_v27 = vpack.c.bf16 %v4682_v23, %v4681_v58  ;;  %v5026_v29 = vld [vmem:[#allocation10 + $0xc00] sm:$0xff] }
 0x52f   : >> { %9545 = vmatprep.subr.bf16.mxu1 %v9544_v11  ;;  %v9554_v41 = vpack.c.bf16 %v4613_v24, %v4612_v38  ;;  %v9556_v39 = vpack.c.bf16 %v5043_v3, %v5042_v46  ;;  %v5027_v34 = vld [vmem:[#allocation10 + $0xc08] sm:$0xff]  ;;  %v5044_v37 = vld [vmem:[#allocation10 + $0xc90] sm:$0xff]  ;;  %v5045_v15 = vld [vmem:[#allocation10 + $0xc98] sm:$0xff] }
 0x530   : >> { %v7498_v61 = vld [vmem:[%s12014_s24 + $0x7] sm:$0xff]  ;;  %v9558_v12 = vpack.c.bf16 %v5027_v34, %v5026_v29  ;;  %v12024_v55 = vld [vmem:[%s12014_s24 + $0x1f] sm:$0xff]  ;;  %v9560_v57 = vpack.c.bf16 %v5045_v15, %v5044_v37  ;;  %v5028_v30 = vld [vmem:[#allocation10 + $0xc10] sm:$0xff] }
 0x531   : >> { %9515 = vmatpush3.bf16.msra.mxu0 %v9514_v43  ;;  %v7464_v26 = vld [vmem:[%s12014_s24 + $0x5] sm:$0xff]  ;;  %v7482_v48 = vld [vmem:[%s12014_s24 + $0xe] sm:$0xff]  ;;  %v5029_v50 = vld [vmem:[#allocation10 + $0xc18] sm:$0xff] }
 0x532   : >> { %9547 = vmatpush3.bf16.msra.mxu1 %v9546_v51  ;;  %9517 = vmatprep.subr.bf16.mxu0 %v9516_v35  ;;  %v5046_v59 = vld [vmem:[#allocation10 + $0xca0] sm:$0xff]  ;;  %v5047_v60 = vld [vmem:[#allocation10 + $0xca8] sm:$0xff]  ;;  %v7483_v16 = vld [vmem:[%s12014_s24 + $0x16] sm:$0xff]  ;;  %v9562_v40 = vpack.c.bf16 %v5029_v50, %v5028_v30 }
 0x533   : >> { %9549 = vmatprep.subr.bf16.mxu1 %v9548_v7  ;;  %v7499_v63 = vld [vmem:[%s12014_s24 + $0xf] sm:$0xff]  ;;  %v12030_v45 = vld [vmem:[%s12014_s24 + $0x27] sm:$0xff]  ;;  %v9564_v8 = vpack.c.bf16 %v5047_v60, %v5046_v59  ;;  %v5049_v33 = vld [vmem:[#allocation10 + $0xcb8] sm:$0xff] }
 0x534   : >> { %v7465_v1 = vld [vmem:[%s12014_s24 + $0xd] sm:$0xff]  ;;  %v5030_v28 = vld [vmem:[#allocation10 + $0xc20] sm:$0xff]  ;;  %v7466_v47 = vld [vmem:[%s12014_s24 + $0x15] sm:$0xff] }
 0x535   : >> { %9519 = vmatpush3.bf16.msra.mxu0 %v9518_v56  ;;  %v5272_v49 = vld [vmem:[#allocation10 + $0xd80] sm:$0xff]  ;;  %v5031_v4 = vld [vmem:[#allocation10 + $0xc28] sm:$0xff]  ;;  %v5048_v25 = vld [vmem:[#allocation10 + $0xcb0] sm:$0xff] }
 0x536   : >> { %9551 = vmatpush3.bf16.msra.mxu1 %v9550_v36  ;;  %9521 = vmatprep.subr.bf16.mxu0 %v9520_v13  ;;  %v5273_v53 = vld [vmem:[#allocation10 + $0xd88] sm:$0xff]  ;;  %v5256_v11 = vld [vmem:[#allocation10 + $0xd00] sm:$0xff]  ;;  %v5274_v17 = vld [vmem:[#allocation10 + $0xd90] sm:$0xff]  ;;  %v9566_v6 = vpack.c.bf16 %v5031_v4, %v5030_v28  ;;  %v9568_v0 = vpack.c.bf16 %v5049_v33, %v5048_v25 }
 0x537   : >> { %9553 = vmatprep.subr.bf16.mxu1 %v9552_v2  ;;  %v9588_v19 = vpack.c.bf16 %v5273_v53, %v5272_v49  ;;  %v5257_v44 = vld [vmem:[#allocation10 + $0xd08] sm:$0xff]  ;;  %v5275_v18 = vld [vmem:[#allocation10 + $0xd98] sm:$0xff]  ;;  %v5258_v5 = vld [vmem:[#allocation10 + $0xd10] sm:$0xff] }
 0x538   : >> { %v9590_v54 = vpack.c.bf16 %v5257_v44, %v5256_v11  ;;  %v12037_v43 = vld [vmem:[%s12014_s24 + $0x2f] sm:$0xff]  ;;  %v5259_v51 = vld [vmem:[#allocation10 + $0xd18] sm:$0xff]  ;;  %v9592_v21 = vpack.c.bf16 %v5275_v18, %v5274_v17  ;;  %v5050_v14 = vld [vmem:[#allocation10 + $0xcc0] sm:$0xff] }
 0x539   : >> { %9523 = vmatpush3.bf16.msra.mxu0 %v9522_v27  ;;  %v7484_v35 = vld [vmem:[%s12014_s24 + $0x1e] sm:$0xff]  ;;  %v5032_v42 = vld [vmem:[#allocation10 + $0xc30] sm:$0xff]  ;;  %v5051_v22 = vld [vmem:[#allocation10 + $0xcc8] sm:$0xff]  ;;  %v9594_v62 = vpack.c.bf16 %v5259_v51, %v5258_v5 }
 0x53a   : >> { %9555 = vmatpush3.bf16.msra.mxu1 %v9554_v41  ;;  %9557 = vmatprep.subr.bf16.mxu0 %v9556_v39  ;;  %v5033_v7 = vld [vmem:[#allocation10 + $0xc38] sm:$0xff]  ;;  %v5276_v20 = vld [vmem:[#allocation10 + $0xda0] sm:$0xff]  ;;  %v5277_v13 = vld [vmem:[#allocation10 + $0xda8] sm:$0xff] }
 0x53b   : >> { %9589 = vmatprep.subr.bf16.mxu1 %v9588_v19  ;;  %v7467_v56 = vld [vmem:[%s12014_s24 + $0x1d] sm:$0xff]  ;;  %v7485_v58 = vld [vmem:[%s12014_s24 + $0x26] sm:$0xff]  ;;  %v9570_v23 = vpack.c.bf16 %v5033_v7, %v5032_v42  ;;  %v5052_v3 = vld [vmem:[#allocation10 + $0xcd0] sm:$0xff]  ;;  %v9596_v27 = vpack.c.bf16 %v5277_v13, %v5276_v20 }
 0x53c   : >> { %4764 = vmatmul.mubr.f32.vlgmr.msra.gmra.mrb[0].mxu0 %v7498_v61  ;;  %v12044_v36 = vld [vmem:[%s12014_s24 + $0x37] sm:$0xff]  ;;  %v5260_v38 = vld [vmem:[#allocation10 + $0xd20] sm:$0xff]  ;;  %v5261_v2 = vld [vmem:[#allocation10 + $0xd28] sm:$0xff] }
 0x53d   : >> { %4909 = vmatmul.mubr.f32.vlgmr.msra.gmra.mrb[0].mxu1 %v7464_v26  ;;  %9559 = vmatpush3.bf16.msra.mxu0 %v9558_v12  ;;  %v5034_v24 = vld [vmem:[#allocation10 + $0xc40] sm:$0xff]  ;;  %v5035_v46 = vld [vmem:[#allocation10 + $0xc48] sm:$0xff]  ;;  %v5053_v41 = vld [vmem:[#allocation10 + $0xcd8] sm:$0xff]  ;;  %v9598_v39 = vpack.c.bf16 %v5261_v2, %v5260_v38 }
 0x53e   : >> { %4768 = vmatprep.mubr.f32.mxu0 %v12024_v55  ;;  %4913 = vmatprep.mubr.f32.mxu1 %v7482_v48  ;;  %v5278_v29 = vld [vmem:[#allocation10 + $0xdb0] sm:$0xff]  ;;  %v5279_v34 = vld [vmem:[#allocation10 + $0xdb8] sm:$0xff]  ;;  %v7468_v61 = vld [vmem:[%s12014_s24 + $0x25] sm:$0xff]  ;;  %v9574_v48 = vpack.c.bf16 %v5035_v46, %v5034_v24 }
 0x53f   : >> { %9561 = vmatprep.subr.bf16.mxu0 %v9560_v57  ;;  %9591 = vmatpush3.bf16.msra.mxu1 %v9590_v54  ;;  %v5262_v37 = vld [vmem:[#allocation10 + $0xd30] sm:$0xff]  ;;  %v5263_v15 = vld [vmem:[#allocation10 + $0xd38] sm:$0xff]  ;;  %v9576_v57 = vpack.c.bf16 %v5053_v41, %v5052_v3  ;;  %v9600_v50 = vpack.c.bf16 %v5279_v34, %v5278_v29  ;;  %v5054_v59 = vld [vmem:[#allocation10 + $0xce0] sm:$0xff] }
 0x540   : >> { %4769 = vmatmul.mubr.f32.gmra.mrb[2].mxu0 %v7499_v63  ;;  %9593 = vmatprep.subr.bf16.mxu1 %v9592_v21  ;;  %v12051_v12 = vld [vmem:[%s12014_s24 + $0x3f] sm:$0xff]  ;;  %v7486_v26 = vld [vmem:[%s12014_s24 + $0x2e] sm:$0xff]  ;;  %v9602_v60 = vpack.c.bf16 %v5263_v15, %v5262_v37  ;;  %v7487_v4 = vld [vmem:[%s12014_s24 + $0x36] sm:$0xff] }
 0x541   : >> { %4914 = vmatmul.mubr.f32.gmra.mrb[2].mxu1 %v7465_v1  ;;  %4773 = vmatprep.mubr.f32.mxu0 %v12030_v45  ;;  %v5037_v30 = vld [vmem:[#allocation10 + $0xc58] sm:$0xff]  ;;  %v5055_v63 = vld [vmem:[#allocation10 + $0xce8] sm:$0xff]  ;;  %v5280_v1 = vld [vmem:[#allocation10 + $0xdc0] sm:$0xff] }
 0x542   : >> { %4918 = vmatprep.mubr.f32.mxu1 %v7483_v16  ;;  %9563 = vmatpush3.bf16.msra.mxu0 %v9562_v40  ;;  %v5281_v16 = vld [vmem:[#allocation10 + $0xdc8] sm:$0xff]  ;;  %v5264_v40 = vld [vmem:[#allocation10 + $0xd40] sm:$0xff]  ;;  %v5282_v11 = vld [vmem:[#allocation10 + $0xdd0] sm:$0xff] }
 0x543   : >> { %9565 = vmatprep.subr.bf16.mxu0 %v9564_v8  ;;  %9595 = vmatpush3.bf16.msra.mxu1 %v9594_v62  ;;  %v5265_v28 = vld [vmem:[#allocation10 + $0xd48] sm:$0xff]  ;;  %v5038_v53 = vld [vmem:[#allocation10 + $0xc60] sm:$0xff]  ;;  %v9604_v19 = vpack.c.bf16 %v5281_v16, %v5280_v1  ;;  %v5056_v54 = vld [vmem:[#allocation10 + $0xcf0] sm:$0xff] }
 0x544   : >> { %4774 = vmatmul.mubr.f32.gmra.mrb[4].mxu0 %v12017_v32  ;;  %v9572_v32 = vpack.c.bf16 %v5051_v22, %v5050_v14  ;;  %9597 = vmatprep.subr.bf16.mxu1 %v9596_v27  ;;  %v7469_v49 = vld [vmem:[%s12014_s24 + $0x2d] sm:$0xff]  ;;  %v9606_v44 = vpack.c.bf16 %v5265_v28, %v5264_v40  ;;  %v5057_v17 = vld [vmem:[#allocation10 + $0xcf8] sm:$0xff]  ;;  %v5284_v22 = vld [vmem:[#allocation10 + $0xde0] sm:$0xff] }
 0x545   : >> { %4919 = vmatmul.mubr.f32.gmra.mrb[4].mxu1 %v7466_v47  ;;  %4778 = vmatprep.mubr.f32.mxu0 %v12037_v43  ;;  %v12058_v8 = vld [vmem:[%s12014_s24 + $0x47] sm:$0xff]  ;;  %v5283_v47 = vld [vmem:[#allocation10 + $0xdd8] sm:$0xff]  ;;  %v5266_v18 = vld [vmem:[#allocation10 + $0xd50] sm:$0xff] }
 0x546   : >> { %4923 = vmatprep.mubr.f32.mxu1 %v7484_v35  ;;  %9567 = vmatpush3.bf16.msra.mxu0 %v9566_v6  ;;  %v5039_v33 = vld [vmem:[#allocation10 + $0xc68] sm:$0xff]  ;;  %v5267_v6 = vld [vmem:[#allocation10 + $0xd58] sm:$0xff]  ;;  %v9608_v42 = vpack.c.bf16 %v5283_v47, %v5282_v11  ;;  %v5040_v7 = vld [vmem:[#allocation10 + $0xc70] sm:$0xff] }
 0x547   : >> { %9569 = vmatprep.subr.bf16.mxu0 %v9568_v0  ;;  %9599 = vmatpush3.bf16.msra.mxu1 %v9598_v39  ;;  %v7470_v5 = vld [vmem:[%s12014_s24 + $0x35] sm:$0xff]  ;;  %v9582_v35 = vpack.c.bf16 %v5039_v33, %v5038_v53  ;;  %v7488_v0 = vld [vmem:[%s12014_s24 + $0x3e] sm:$0xff]  ;;  %v9610_v14 = vpack.c.bf16 %v5267_v6, %v5266_v18  ;;  %v5285_v62 = vld [vmem:[#allocation10 + $0xde8] sm:$0xff] }
 0x548   : >> { %4779 = vmatmul.mubr.f32.gmra.mrb[6].mxu0 %v12024_v55  ;;  %v5036_v55 = vld [vmem:[#allocation10 + $0xc50] sm:$0xff]  ;;  %9601 = vmatprep.subr.bf16.mxu1 %v9600_v50  ;;  %v5041_v21 = vld [vmem:[#allocation10 + $0xc78] sm:$0xff]  ;;  %v5268_v20 = vld [vmem:[#allocation10 + $0xd60] sm:$0xff] }
 0x549   : >> { %4924 = vmatmul.mubr.f32.gmra.mrb[6].mxu1 %v7467_v56  ;;  %4783 = vmatprep.mubr.f32.mxu0 %v12044_v36  ;;  %v9578_v25 = vpack.c.bf16 %v5037_v30, %v5036_v55  ;;  %v7522_v51 = vld [vmem:[%s12014_s24 + $0x4f] sm:$0xff]  ;;  %v5484_v13 = vld [vmem:[#allocation10 + $0xe80] sm:$0xff]  ;;  %v7523_v38 = vld [vmem:[%s12014_s24 + $0x57] sm:$0xff]  ;;  %v9586_v2 = vpack.c.bf16 %v5041_v21, %v5040_v7 }
 0x54a   : >> { %4928 = vmatprep.mubr.f32.mxu1 %v7485_v58  ;;  %9571 = vmatpush3.bf16.msra.mxu0 %v9570_v23  ;;  %v5269_v56 = vld [vmem:[#allocation10 + $0xd68] sm:$0xff]  ;;  %v7471_v23 = vld [vmem:[%s12014_s24 + $0x3d] sm:$0xff]  ;;  %v5286_v24 = vld [vmem:[#allocation10 + $0xdf0] sm:$0xff] }
 0x54b   : >> { %9573 = vmatprep.subr.bf16.mxu0 %v9572_v32  ;;  %9603 = vmatpush3.bf16.msra.mxu1 %v9602_v60  ;;  %v5485_v58 = vld [vmem:[#allocation10 + $0xe88] sm:$0xff]  ;;  %v5287_v46 = vld [vmem:[#allocation10 + $0xdf8] sm:$0xff]  ;;  %v9614_v27 = vpack.c.bf16 %v5269_v56, %v5268_v20  ;;  %v5270_v41 = vld [vmem:[#allocation10 + $0xd70] sm:$0xff] }
 0x54c   : >> { %4784 = vmatmul.mubr.f32.gmra.mrb[8].mxu0 %v12030_v45  ;;  %v9580_v45 = vpack.c.bf16 %v5055_v63, %v5054_v59  ;;  %9605 = vmatprep.subr.bf16.mxu1 %v9604_v19  ;;  %v7489_v32 = vld [vmem:[%s12014_s24 + $0x46] sm:$0xff]  ;;  %v9620_v3 = vpack.c.bf16 %v5485_v58, %v5484_v13  ;;  %v5271_v39 = vld [vmem:[#allocation10 + $0xd78] sm:$0xff]  ;;  %v9616_v37 = vpack.c.bf16 %v5287_v46, %v5286_v24  ;;  %v7490_v15 = vld [vmem:[%s12014_s24 + $0x4e] sm:$0xff] }
 0x54d   : >> { %4929 = vmatmul.mubr.f32.gmra.mrb[8].mxu1 %v7468_v61  ;;  %4788 = vmatprep.mubr.f32.mxu0 %v12051_v12  ;;  %v7472_v29 = vld [vmem:[%s12014_s24 + $0x45] sm:$0xff]  ;;  %v9618_v61 = vpack.c.bf16 %v5271_v39, %v5270_v41  ;;  %v7526_v55 = vld [vmem:[%s12014_s24 + $0x6f] sm:$0xff]  ;;  %v7475_v50 = vld [vmem:[%s12014_s24 + $0x5d] sm:$0xff] }
 0x54e   : >> { %4933 = vmatprep.mubr.f32.mxu1 %v7486_v26  ;;  %9575 = vmatpush3.bf16.msra.mxu0 %v9574_v48  ;;  %v7524_v34 = vld [vmem:[%s12014_s24 + $0x5f] sm:$0xff]  ;;  %v7525_v26 = vld [vmem:[%s12014_s24 + $0x67] sm:$0xff]  ;;  %v7491_v48 = vld [vmem:[%s12014_s24 + $0x56] sm:$0xff] }
 0x54f   : >> { %9577 = vmatprep.subr.bf16.mxu0 %v9576_v57  ;;  %9607 = vmatpush3.bf16.msra.mxu1 %v9606_v44  ;;  %v7474_v57 = vld [vmem:[%s12014_s24 + $0x55] sm:$0xff]  ;;  %v7492_v30 = vld [vmem:[%s12014_s24 + $0x5e] sm:$0xff]  ;;  %v7493_v60 = vld [vmem:[%s12014_s24 + $0x66] sm:$0xff] }
 0x550   : >> { %4789 = vmatmul.mubr.f32.gmra.mrb[10].mxu0 %v12037_v43  ;;  %v9584_v43 = vpack.c.bf16 %v5057_v17, %v5056_v54  ;;  %9609 = vmatprep.subr.bf16.mxu1 %v9608_v42  ;;  %v7527_v59 = vld [vmem:[%s12014_s24 + $0x77] sm:$0xff]  ;;  %v7476_v63 = vld [vmem:[%s12014_s24 + $0x65] sm:$0xff]  ;;  %v7494_v16 = vld [vmem:[%s12014_s24 + $0x6e] sm:$0xff] }
 0x551   : >> { %4934 = vmatmul.mubr.f32.gmra.mrb[10].mxu1 %v7469_v49  ;;  %4793 = vmatprep.mubr.f32.mxu0 %v12058_v8  ;;  %v7528_v1 = vld [vmem:[%s12014_s24 + $0x7f] sm:$0xff]  ;;  %v7477_v40 = vld [vmem:[%s12014_s24 + $0x6d] sm:$0xff]  ;;  %v7495_v49 = vld [vmem:[%s12014_s24 + $0x76] sm:$0xff] }
 0x552   : >> { %4938 = vmatprep.mubr.f32.mxu1 %v7487_v4  ;;  %9579 = vmatpush3.bf16.msra.mxu0 %v9578_v25  ;;  %v7529_v28 = vld [vmem:[%s12014_s24 + $0x87] sm:$0xff]  ;;  %v7530_v4 = vld [vmem:[%s12014_s24 + $0x8f] sm:$0xff]  ;;  %v7496_v25 = vld [vmem:[%s12014_s24 + $0x7e] sm:$0xff] }
 0x553   : >> { %9581 = vmatprep.subr.bf16.mxu0 %v9580_v45  ;;  %9611 = vmatpush3.bf16.msra.mxu1 %v9610_v14  ;;  %v7479_v45 = vld [vmem:[%s12014_s24 + $0x7d] sm:$0xff]  ;;  %v5469_v19 = vld [vmem:[#allocation10 + $0xe08] sm:$0xff]  ;;  %v5486_v44 = vld [vmem:[#allocation10 + $0xe90] sm:$0xff] }
 0x554   : >> { %4794 = vmatmul.mubr.f32.gmra.mrb[12].mxu0 %v12044_v36  ;;  %v9612_v36 = vpack.c.bf16 %v5285_v62, %v5284_v22  ;;  %v7549_v53 = vld [vmem:[%s12014_s24 + $0x19] sm:$0xff]  ;;  %v5468_v33 = vld [vmem:[#allocation10 + $0xe00] sm:$0xff]  ;;  %v7583_v11 = vld [vmem:[%s12014_s24 + $0x2a] sm:$0xff] }
 0x555   : >> { %4939 = vmatmul.mubr.f32.gmra.mrb[12].mxu1 %v7470_v5  ;;  %4798 = vmatprep.mubr.f32.mxu0 %v7522_v51  ;;  %v5487_v47 = vld [vmem:[#allocation10 + $0xe98] sm:$0xff]  ;;  %v9622_v17 = vpack.c.bf16 %v5469_v19, %v5468_v33  ;;  %v7566_v18 = vld [vmem:[%s12014_s24 + $0x29] sm:$0xff]  ;;  %v7584_v5 = vld [vmem:[%s12014_s24 + $0x32] sm:$0xff] }
 0x556   : >> { %4943 = vmatprep.mubr.f32.mxu1 %v7488_v0  ;;  %9583 = vmatpush3.bf16.msra.mxu0 %v9582_v35  ;;  %v7532_v54 = vld [vmem:[%s12014_s24 + $0x18] sm:$0xff]  ;;  %v7550_v6 = vld [vmem:[%s12014_s24 + $0x21] sm:$0xff]  ;;  %v5473_v56 = vld [vmem:[#allocation10 + $0xe28] sm:$0xff] }
 0x557   : >> { %9585 = vmatprep.subr.bf16.mxu0 %v9584_v43  ;;  %9613 = vmatprep.subr.bf16.mxu1 %v9612_v36  ;;  %v5470_v35 = vld [vmem:[#allocation10 + $0xe10] sm:$0xff]  ;;  %v5471_v0 = vld [vmem:[#allocation10 + $0xe18] sm:$0xff]  ;;  %v5488_v42 = vld [vmem:[#allocation10 + $0xea0] sm:$0xff] }
 0x558   : >> { %4799 = vmatmul.mubr.f32.gmra.mrb[14].mxu0 %v12051_v12  ;;  %9615 = vmatpush3.bf16.msra.mxu1 %v9614_v27  ;;  %v7473_v12 = vld [vmem:[%s12014_s24 + $0x4d] sm:$0xff]  ;;  %v7533_v7 = vld [vmem:[%s12014_s24 + $0x20] sm:$0xff]  ;;  %v9626_v14 = vpack.c.bf16 %v5471_v0, %v5470_v35  ;;  %v7540_v35 = vld [vmem:[%s12014_s24 + $0x58] sm:$0xff] }
 0x559   : >> { %4944 = vmatmul.mubr.f32.gmra.mrb[14].mxu1 %v7471_v23  ;;  %4803 = vmatprep.mubr.f32.mxu0 %v7523_v38  ;;  %v5489_v43 = vld [vmem:[#allocation10 + $0xea8] sm:$0xff]  ;;  %v7585_v22 = vld [vmem:[%s12014_s24 + $0x3a] sm:$0xff]  ;;  %v5472_v20 = vld [vmem:[#allocation10 + $0xe20] sm:$0xff] }
 0x55a   : >> { %4948 = vmatprep.mubr.f32.mxu1 %v7489_v32  ;;  %9587 = vmatpush3.bf16.msra.mxu0 %v9586_v2  ;;  %v7567_v21 = vld [vmem:[%s12014_s24 + $0x31] sm:$0xff]  ;;  %v9628_v62 = vpack.c.bf16 %v5489_v43, %v5488_v42  ;;  %v5491_v58 = vld [vmem:[#allocation10 + $0xeb8] sm:$0xff]  ;;  %v7534_v23 = vld [vmem:[%s12014_s24 + $0x28] sm:$0xff]  ;;  %v9630_v2 = vpack.c.bf16 %v5473_v56, %v5472_v20 }
 0x55b   : >> { %9621 = vmatprep.subr.bf16.mxu0 %v9620_v3  ;;  %9617 = vmatprep.subr.bf16.mxu1 %v9616_v37  ;;  %v5490_v13 = vld [vmem:[#allocation10 + $0xeb0] sm:$0xff]  ;;  %v7586_v32 = vld [vmem:[%s12014_s24 + $0x42] sm:$0xff]  ;;  %v5475_v46 = vld [vmem:[#allocation10 + $0xe38] sm:$0xff] }
 0x55c   : >> { %4804 = vmatmul.mubr.f32.gmra.mrb[16].mxu0 %v12058_v8  ;;  %9619 = vmatpush3.bf16.msra.mxu1 %v9618_v61  ;;  %v7478_v8 = vld [vmem:[%s12014_s24 + $0x75] sm:$0xff]  ;;  %v9632_v36 = vpack.c.bf16 %v5491_v58, %v5490_v13  ;;  %v5492_v3 = vld [vmem:[#allocation10 + $0xec0] sm:$0xff]  ;;  %v5493_v27 = vld [vmem:[#allocation10 + $0xec8] sm:$0xff] }
 0x55d   : >> { %4949 = vmatmul.mubr.f32.gmra.mrb[16].mxu1 %v7472_v29  ;;  %4808 = vmatprep.mubr.f32.mxu0 %v7524_v34  ;;  %v5474_v24 = vld [vmem:[#allocation10 + $0xe30] sm:$0xff]  ;;  %v7569_v39 = vld [vmem:[%s12014_s24 + $0x41] sm:$0xff]  ;;  %v9636_v37 = vpack.c.bf16 %v5493_v27, %v5492_v3  ;;  %v5477_v61 = vld [vmem:[#allocation10 + $0xe48] sm:$0xff] }
 0x55e   : >> { %4953 = vmatprep.mubr.f32.mxu1 %v7490_v15  ;;  %v7535_v41 = vld [vmem:[%s12014_s24 + $0x30] sm:$0xff]  ;;  %v9634_v29 = vpack.c.bf16 %v5475_v46, %v5474_v24  ;;  %v5476_v15 = vld [vmem:[#allocation10 + $0xe40] sm:$0xff]  ;;  %v7572_v19 = vld [vmem:[%s12014_s24 + $0x59] sm:$0xff] }
 0x55f   : >> { %v7538_v33 = vld [vmem:[%s12014_s24 + $0x48] sm:$0xff]  ;;  %v7592_v42 = vld [vmem:[%s12014_s24 + $0x72] sm:$0xff]  ;;  %v7541_v43 = vld [vmem:[%s12014_s24 + $0x60] sm:$0xff] }
 0x560   : >> { %4809 = vmatmul.mubr.f32.gmra.mrb[18].mxu0 %v7522_v51  ;;  %v9624_v51 = vpack.c.bf16 %v5487_v47, %v5486_v44  ;;  %v7590_v44 = vld [vmem:[%s12014_s24 + $0x62] sm:$0xff]  ;;  %v7543_v20 = vld [vmem:[%s12014_s24 + $0x70] sm:$0xff]  ;;  %v7544_v58 = vld [vmem:[%s12014_s24 + $0x78] sm:$0xff] }
 0x561   : >> { %4954 = vmatmul.mubr.f32.gmra.mrb[18].mxu1 %v7473_v12  ;;  %4813 = vmatprep.mubr.f32.mxu0 %v7525_v26  ;;  %v5494_v12 = vld [vmem:[#allocation10 + $0xed0] sm:$0xff]  ;;  %v7574_v0 = vld [vmem:[%s12014_s24 + $0x69] sm:$0xff]  ;;  %v7577_v56 = vld [vmem:[%s12014_s24 + $0x81] sm:$0xff] }
 0x562   : >> { %4958 = vmatprep.mubr.f32.mxu1 %v7491_v48  ;;  %v7536_v48 = vld [vmem:[%s12014_s24 + $0x38] sm:$0xff]  ;;  %v7595_v13 = vld [vmem:[%s12014_s24 + $0x8a] sm:$0xff]  ;;  %v7598_v3 = vld [vmem:[%s12014_s24 + $0xa2] sm:$0xff] }
 0x563   : >> { %v7546_v24 = vld [vmem:[%s12014_s24 + $0x88] sm:$0xff]  ;;  %v7580_v46 = vld [vmem:[%s12014_s24 + $0x99] sm:$0xff]  ;;  %v7547_v27 = vld [vmem:[%s12014_s24 + $0x90] sm:$0xff] }
 0x564   : >> { %4814 = vmatmul.mubr.f32.gmra.mrb[20].mxu0 %v7523_v38  ;;  %v7568_v38 = vld [vmem:[%s12014_s24 + $0x39] sm:$0xff] }
 0x565   : >> { %4959 = vmatmul.mubr.f32.gmra.mrb[20].mxu1 %v7474_v57  ;;  %4818 = vmatprep.mubr.f32.mxu0 %v7526_v55  ;;  %v7570_v57 = vld [vmem:[%s12014_s24 + $0x49] sm:$0xff] }
 0x566   : >> { %4963 = vmatprep.mubr.f32.mxu1 %v7492_v30  ;;  %v7588_v30 = vld [vmem:[%s12014_s24 + $0x52] sm:$0xff] }
 0x568   : >> { %4819 = vmatmul.mubr.f32.gmra.mrb[22].mxu0 %v7524_v34  ;;  %v7587_v34 = vld [vmem:[%s12014_s24 + $0x4a] sm:$0xff] }
 0x569   : >> { %4964 = vmatmul.mubr.f32.gmra.mrb[22].mxu1 %v7475_v50  ;;  %4823 = vmatprep.mubr.f32.mxu0 %v7527_v59 }
 0x56a   : >> { %4968 = vmatprep.mubr.f32.mxu1 %v7493_v60  ;;  %v5479_v60 = vld [vmem:[#allocation10 + $0xe58] sm:$0xff] }
 0x56c   : >> { %4824 = vmatmul.mubr.f32.gmra.mrb[24].mxu0 %v7525_v26  ;;  %v5495_v26 = vld [vmem:[#allocation10 + $0xed8] sm:$0xff] }
 0x56d   : >> { %4969 = vmatmul.mubr.f32.gmra.mrb[24].mxu1 %v7476_v63  ;;  %4828 = vmatprep.mubr.f32.mxu0 %v7528_v1  ;;  %v9640_v50 = vpack.c.bf16 %v5495_v26, %v5494_v12  ;;  %v5496_v63 = vld [vmem:[#allocation10 + $0xee0] sm:$0xff] }
 0x56e   : >> { %4973 = vmatprep.mubr.f32.mxu1 %v7494_v16  ;;  %v7537_v16 = vld [vmem:[%s12014_s24 + $0x40] sm:$0xff] }
 0x56f   : >> { %v7606_v12 = vld [vmem:[%s12014_s24 + $0x5b] sm:$0xff]  ;;  %v7607_v26 = vld [vmem:[%s12014_s24 + $0x63] sm:$0xff] }
 0x570   : >> { %4829 = vmatmul.mubr.f32.gmra.mrb[26].mxu0 %v7526_v55  ;;  %v9638_v55 = vpack.c.bf16 %v5477_v61, %v5476_v15  ;;  %v7604_v15 = vld [vmem:[%s12014_s24 + $0x4b] sm:$0xff]  ;;  %v7605_v61 = vld [vmem:[%s12014_s24 + $0x53] sm:$0xff] }
 0x571   : >> { %4974 = vmatmul.mubr.f32.gmra.mrb[26].mxu1 %v7477_v40  ;;  %4833 = vmatprep.mubr.f32.mxu0 %v7529_v28  ;;  %v7571_v40 = vld [vmem:[%s12014_s24 + $0x51] sm:$0xff] }
 0x572   : >> { %4978 = vmatprep.mubr.f32.mxu1 %v7495_v49  ;;  %v7589_v49 = vld [vmem:[%s12014_s24 + $0x5a] sm:$0xff] }
 0x574   : >> { %4834 = vmatmul.mubr.f32.gmra.mrb[28].mxu0 %v7527_v59  ;;  %v5478_v59 = vld [vmem:[#allocation10 + $0xe50] sm:$0xff] }
 0x575   : >> { %4979 = vmatmul.mubr.f32.gmra.mrb[28].mxu1 %v7478_v8  ;;  %4838 = vmatprep.mubr.f32.mxu0 %v7530_v4  ;;  %v9642_v28 = vpack.c.bf16 %v5479_v60, %v5478_v59  ;;  %v5480_v4 = vld [vmem:[#allocation10 + $0xe60] sm:$0xff]  ;;  %v7613_v59 = vld [vmem:[%s12014_s24 + $0x93] sm:$0xff] }
 0x576   : >> { %4983 = vmatprep.mubr.f32.mxu1 %v7496_v25  ;;  %v5481_v25 = vld [vmem:[#allocation10 + $0xe68] sm:$0xff]  ;;  %v7614_v60 = vld [vmem:[%s12014_s24 + $0x9b] sm:$0xff] }
 0x578   : >> { %4839 = vmatmul.mubr.f32.gmra.mrb[30].mxu0 %v7528_v1  ;;  %v5497_v1 = vld [vmem:[#allocation10 + $0xee8] sm:$0xff] }
 0x579   : >> { %4984 = vmatmul.mubr.f32.gmra.mrb[30].mxu1 %v7479_v45  ;;  %5122 = vmatprep.mubr.f32.mxu0 %v7549_v53  ;;  %v9644_v8 = vpack.c.bf16 %v5497_v1, %v5496_v63  ;;  %v5498_v45 = vld [vmem:[#allocation10 + $0xef0] sm:$0xff]  ;;  %v5499_v53 = vld [vmem:[#allocation10 + $0xef8] sm:$0xff]  ;;  %v7615_v63 = vld [vmem:[%s12014_s24 + $0xa3] sm:$0xff] }
 0x57a   : >> { %5352 = vmatprep.mubr.f32.mxu1 %v7583_v11  ;;  %v9646_v11 = vpack.c.bf16 %v5481_v25, %v5480_v4  ;;  %v9648_v47 = vpack.c.bf16 %v5499_v53, %v5498_v45  ;;  %v6233_v1 = vld [vmem:[#allocation13] sm:$0xff]  ;;  %v6238_v25 = vld [vmem:[#allocation13 + $0x28] sm:$0xff]  ;;  %v6239_v53 = vld [vmem:[#allocation13 + $0x30] sm:$0xff] }
 0x57b   : >> { %v6237_v4 = vld [vmem:[#allocation13 + $0x20] sm:$0xff] }
 0x57c   : >> { %5123 = vmatmul.mubr.f32.vlgmr.msra.gmra.mrb[32].mxu0 %v7532_v54  ;;  %v5482_v54 = vld [vmem:[#allocation10 + $0xe70] sm:$0xff]  ;;  %v9660_v45 = vpack.c.bf16 %v6238_v25, %v6237_v4 }
 0x57d   : >> { %9623 = vmatpush3.bf16.msra.mxu0 %v9622_v17  ;;  %5353 = vmatmul.mubr.f32.vlgmr.msra.gmra.mrb[32].mxu1 %v7566_v18  ;;  %v5483_v17 = vld [vmem:[#allocation10 + $0xe78] sm:$0xff] }
 0x57e   : >> { %5127 = vmatprep.mubr.f32.mxu0 %v7550_v6  ;;  %5357 = vmatprep.mubr.f32.mxu1 %v7584_v5  ;;  %v7573_v6 = vld [vmem:[%s12014_s24 + $0x61] sm:$0xff]  ;;  %v9650_v5 = vpack.c.bf16 %v5483_v17, %v5482_v54  ;;  %v12161_v54 = vstv %s5718_s28 }
 0x57f   : >> { %9625 = vmatprep.subr.bf16.mxu0 %v9624_v51  ;;  %v7591_v51 = vld [vmem:[%s12014_s24 + $0x6a] sm:$0xff] }
 0x580   : >> { %5128 = vmatmul.mubr.f32.gmra.mrb[34].mxu0 %v7533_v7  ;;  %v7575_v7 = vld [vmem:[%s12014_s24 + $0x71] sm:$0xff] }
 0x581   : >> { %5358 = vmatmul.mubr.f32.gmra.mrb[34].mxu1 %v7567_v21  ;;  %5132 = vmatprep.mubr.f32.mxu0 %v7566_v18  ;;  %v7539_v18 = vld [vmem:[%s12014_s24 + $0x50] sm:$0xff] }
 0x582   : >> { %5362 = vmatprep.mubr.f32.mxu1 %v7585_v22  ;;  %9627 = vmatpush3.bf16.msra.mxu0 %v9626_v14  ;;  %v7542_v14 = vld [vmem:[%s12014_s24 + $0x68] sm:$0xff]  ;;  %v7576_v22 = vld [vmem:[%s12014_s24 + $0x79] sm:$0xff] }
 0x583   : >> { %9629 = vmatprep.subr.bf16.mxu0 %v9628_v62  ;;  %v7594_v62 = vld [vmem:[%s12014_s24 + $0x82] sm:$0xff] }
 0x584   : >> { %5133 = vmatmul.mubr.f32.gmra.mrb[36].mxu0 %v7534_v23  ;;  %v7578_v23 = vld [vmem:[%s12014_s24 + $0x89] sm:$0xff] }
 0x585   : >> { %5363 = vmatmul.mubr.f32.gmra.mrb[36].mxu1 %v7568_v38  ;;  %5137 = vmatprep.mubr.f32.mxu0 %v7567_v21  ;;  %v7593_v21 = vld [vmem:[%s12014_s24 + $0x7a] sm:$0xff] }
 0x586   : >> { %5367 = vmatprep.mubr.f32.mxu1 %v7586_v32  ;;  %9631 = vmatpush3.bf16.msra.mxu0 %v9630_v2  ;;  %v7545_v2 = vld [vmem:[%s12014_s24 + $0x80] sm:$0xff]  ;;  %v7579_v32 = vld [vmem:[%s12014_s24 + $0x91] sm:$0xff] }
 0x587   : >> { %9633 = vmatprep.subr.bf16.mxu0 %v9632_v36  ;;  %v7597_v36 = vld [vmem:[%s12014_s24 + $0x9a] sm:$0xff] }
 0x588   : >> { %5138 = vmatmul.mubr.f32.gmra.mrb[38].mxu0 %v7535_v41  ;;  %v7581_v41 = vld [vmem:[%s12014_s24 + $0xa1] sm:$0xff] }
 0x589   : >> { %5368 = vmatmul.mubr.f32.gmra.mrb[38].mxu1 %v7569_v39  ;;  %5142 = vmatprep.mubr.f32.mxu0 %v7568_v38  ;;  %v7596_v38 = vld [vmem:[%s12014_s24 + $0x92] sm:$0xff] }
 0x58a   : >> { %5372 = vmatprep.mubr.f32.mxu1 %v7587_v34  ;;  %9635 = vmatpush3.bf16.msra.mxu0 %v9634_v29  ;;  %v7601_v29 = vld [vmem:[%s12014_s24 + $0x33] sm:$0xff]  ;;  %v7602_v34 = vld [vmem:[%s12014_s24 + $0x3b] sm:$0xff] }
 0x58b   : >> { %9637 = vmatprep.subr.bf16.mxu0 %v9636_v37  ;;  %v7603_v37 = vld [vmem:[%s12014_s24 + $0x43] sm:$0xff] }
 0x58c   : >> { %5143 = vmatmul.mubr.f32.gmra.mrb[40].mxu0 %v7536_v48  ;;  %v7608_v48 = vld [vmem:[%s12014_s24 + $0x6b] sm:$0xff] }
 0x58d   : >> { %5373 = vmatmul.mubr.f32.gmra.mrb[40].mxu1 %v7570_v57  ;;  %5147 = vmatprep.mubr.f32.mxu0 %v7569_v39  ;;  %v7600_v39 = vld [vmem:[%s12014_s24 + $0x2b] sm:$0xff] }
 0x58e   : >> { %5377 = vmatprep.mubr.f32.mxu1 %v7588_v30  ;;  %9639 = vmatpush3.bf16.msra.mxu0 %v9638_v55  ;;  %v7610_v55 = vld [vmem:[%s12014_s24 + $0x7b] sm:$0xff]  ;;  %v7611_v30 = vld [vmem:[%s12014_s24 + $0x83] sm:$0xff] }
 0x58f   : >> { %9641 = vmatprep.subr.bf16.mxu0 %v9640_v50  ;;  %v7612_v50 = vld [vmem:[%s12014_s24 + $0x8b] sm:$0xff] }
 0x590   : >> { %5148 = vmatmul.mubr.f32.gmra.mrb[42].mxu0 %v7537_v16  ;;  %v6234_v16 = vld [vmem:[#allocation13 + $0x8] sm:$0xff] }
 0x591   : >> { %5378 = vmatmul.mubr.f32.gmra.mrb[42].mxu1 %v7571_v40  ;;  %5152 = vmatprep.mubr.f32.mxu0 %v7570_v57  ;;  %v7609_v57 = vld [vmem:[%s12014_s24 + $0x73] sm:$0xff] }
 0x592   : >> { %5382 = vmatprep.mubr.f32.mxu1 %v7589_v49  ;;  %9643 = vmatpush3.bf16.msra.mxu0 %v9642_v28  ;;  %v6235_v28 = vld [vmem:[#allocation13 + $0x10] sm:$0xff]  ;;  %v6236_v49 = vld [vmem:[#allocation13 + $0x18] sm:$0xff] }
 0x593   : >> { %9645 = vmatprep.subr.bf16.mxu0 %v9644_v8  ;;  %v9656_v8 = vpack.c.bf16 %v6236_v49, %v6235_v28 }
 0x594   : >> { %5153 = vmatmul.mubr.f32.gmra.mrb[44].mxu0 %v7538_v33  ;;  %v6240_v33 = vld [vmem:[#allocation13 + $0x38] sm:$0xff] }
 0x595   : >> { %5383 = vmatmul.mubr.f32.gmra.mrb[44].mxu1 %v7572_v19  ;;  %5157 = vmatprep.mubr.f32.mxu0 %v7571_v40  ;;  %v9652_v40 = vpack.c.bf16 %v6234_v16, %v6233_v1 }
 0x596   : >> { %5387 = vmatprep.mubr.f32.mxu1 %v7590_v44  ;;  %9647 = vmatpush3.bf16.msra.mxu0 %v9646_v11  ;;  %v6241_v11 = vld [vmem:[#allocation13 + $0x40] sm:$0xff]  ;;  %v6242_v44 = vld [vmem:[#allocation13 + $0x48] sm:$0xff] }
 0x597   : >> { %9649 = vmatprep.subr.bf16.mxu0 %v9648_v47  ;;  %9653 = vmatprep.subr.bf16.mxu1 %v9652_v40  ;;  %v9668_v47 = vpack.c.bf16 %v6242_v44, %v6241_v11 }
 0x598   : >> { %5158 = vmatmul.mubr.f32.gmra.mrb[46].mxu0 %v7539_v18  ;;  %9655 = vmatpush3.bf16.msra.mxu1 %v9652_v40 }
 0x599   : >> { %5388 = vmatmul.mubr.f32.gmra.mrb[46].mxu1 %v7573_v6  ;;  %5162 = vmatprep.mubr.f32.mxu0 %v7572_v19  ;;  %v9664_v19 = vpack.c.bf16 %v6240_v33, %v6239_v53 }
 0x59a   : >> { %5392 = vmatprep.mubr.f32.mxu1 %v7591_v51  ;;  %9651 = vmatpush3.bf16.msra.mxu0 %v9650_v5 }
 0x59b   : >> { %9657 = vmatprep.subr.bf16.mxu1 %v9656_v8 }
 0x59c   : >> { %5163 = vmatmul.mubr.f32.gmra.mrb[48].mxu0 %v7540_v35  ;;  %9659 = vmatpush3.bf16.msra.mxu1 %v9656_v8  ;;  %v6243_v35 = vld [vmem:[#allocation13 + $0x50] sm:$0xff] }
 0x59d   : >> { %5393 = vmatmul.mubr.f32.gmra.mrb[48].mxu1 %v7574_v0  ;;  %5167 = vmatprep.mubr.f32.mxu0 %v7573_v6 }
 0x59e   : >> { %5397 = vmatprep.mubr.f32.mxu1 %v7592_v42  ;;  %9661 = vmatprep.subr.bf16.mxu1 %v9660_v45  ;;  %v12802_v42 = vld [vmem:[#allocation21_spill] sm:$0xff] }
 0x5a0   : >> { %5168 = vmatmul.mubr.f32.gmra.mrb[50].mxu0 %v7541_v43  ;;  %9663 = vmatpush3.bf16.msra.mxu1 %v9660_v45  ;;  %v5720_v43 = vadd.s32 %v12161_v54, %v12802_v42 }
 0x5a1   : >> { %5398 = vmatmul.mubr.f32.gmra.mrb[50].mxu1 %v7575_v7  ;;  %5172 = vmatprep.mubr.f32.mxu0 %v7574_v0  ;;  %v6244_v0 = vld [vmem:[#allocation13 + $0x58] sm:$0xff] }
 0x5a2   : >> { %5402 = vmatprep.mubr.f32.mxu1 %v7593_v21  ;;  %9665 = vmatprep.subr.bf16.mxu1 %v9664_v19  ;;  %v9672_v21 = vpack.c.bf16 %v6244_v0, %v6243_v35  ;;  %vm5736_vm7 = vcmp.ge.s32.totalorder %v5720_v43, 18 }
 0x5a4   : >> { %5173 = vmatmul.mubr.f32.gmra.mrb[52].mxu0 %v7542_v14  ;;  %9667 = vmatpush3.bf16.msra.mxu1 %v9664_v19 }
 0x5a5   : >> { %5403 = vmatmul.mubr.f32.gmra.mrb[52].mxu1 %v7576_v22  ;;  %5177 = vmatprep.mubr.f32.mxu0 %v7575_v7 }
 0x5a6   : >> { %5407 = vmatprep.mubr.f32.mxu1 %v7594_v62  ;;  %9669 = vmatprep.subr.bf16.mxu1 %v9668_v47 }
 0x5a8   : >> { %5178 = vmatmul.mubr.f32.gmra.mrb[54].mxu0 %v7543_v20  ;;  %9671 = vmatpush3.bf16.msra.mxu1 %v9668_v47 }
 0x5a9   : >> { %5408 = vmatmul.mubr.f32.gmra.mrb[54].mxu1 %v7577_v56  ;;  %5182 = vmatprep.mubr.f32.mxu0 %v7576_v22 }
 0x5aa   : >> { %5412 = vmatprep.mubr.f32.mxu1 %v7595_v13  ;;  %9673 = vmatprep.subr.bf16.mxu1 %v9672_v21 }
 0x5ac   : >> { %5183 = vmatmul.mubr.f32.gmra.mrb[56].mxu0 %v7544_v58  ;;  %9675 = vmatpush3.bf16.msra.mxu1 %v9672_v21  ;;  %v6245_v58 = vld [vmem:[#allocation13 + $0x60] sm:$0xff] }
 0x5ad   : >> { %5413 = vmatmul.mubr.f32.gmra.mrb[56].mxu1 %v7578_v23  ;;  %5187 = vmatprep.mubr.f32.mxu0 %v7577_v56 }
 0x5ae   : >> { %5417 = vmatprep.mubr.f32.mxu1 %v7596_v38  ;;  %v7617_v38 = vadd.s32 4294967278, %v5720_v43 }
 0x5b0   : >> { %5188 = vmatmul.mubr.f32.gmra.mrb[58].mxu0 %v7545_v2 }
 0x5b1   : >> { %5418 = vmatmul.mubr.f32.gmra.mrb[58].mxu1 %v7579_v32  ;;  %5192 = vmatprep.mubr.f32.mxu0 %v7578_v23  ;;  %v6246_v23 = vld [vmem:[#allocation13 + $0x68] sm:$0xff] }
 0x5b2   : >> { %5422 = vmatprep.mubr.f32.mxu1 %v7597_v36 }
 0x5b4   : >> { %5193 = vmatmul.mubr.f32.gmra.mrb[60].mxu0 %v7546_v24 }
 0x5b5   : >> { %5423 = vmatmul.mubr.f32.gmra.mrb[60].mxu1 %v7580_v46  ;;  %5197 = vmatprep.mubr.f32.mxu0 %v7579_v32  ;;  %v9676_v32 = vpack.c.bf16 %v6246_v23, %v6245_v58 }
 0x5b6   : >> { %5427 = vmatprep.mubr.f32.mxu1 %v7598_v3 }
 0x5b7   : >> { %9677 = vmatprep.subr.bf16.mxu1 %v9676_v32 }
 0x5b8   : >> { %5198 = vmatmul.mubr.f32.gmra.mrb[62].mxu0 %v7547_v27  ;;  %9679 = vmatpush3.bf16.msra.mxu1 %v9676_v32 }
 0x5b9   : >> { %5428 = vmatmul.mubr.f32.gmra.mrb[62].mxu1 %v7581_v41  ;;  %5564 = vmatprep.mubr.f32.mxu0 %v7600_v39 }
 0x5bc   : >> { %5565 = vmatmul.mubr.f32.vlgmr.msra.gmra.mrb[64].mxu0 %v7600_v39  ;;  %v6247_v39 = vld [vmem:[#allocation13 + $0x70] sm:$0xff] }
 0x5bd   : >> { %5569 = vmatprep.mubr.f32.mxu0 %v7601_v29 }
 0x5c0   : >> { %5570 = vmatmul.mubr.f32.gmra.mrb[66].mxu0 %v7601_v29  ;;  %v6248_v29 = vld [vmem:[#allocation13 + $0x78] sm:$0xff] }
 0x5c1   : >> { %5574 = vmatprep.mubr.f32.mxu0 %v7602_v34 }
 0x5c4   : >> { %5575 = vmatmul.mubr.f32.gmra.mrb[68].mxu0 %v7602_v34  ;;  %v5768_v34 = vsel %vm5736_vm7, %v7617_v38, %v5720_v43 }
 0x5c5   : >> { %5579 = vmatprep.mubr.f32.mxu0 %v7603_v37  ;;  %vm5784_vm14 = vcmp.ge.s32.totalorder %v5768_v34, 18 }
 0x5c8   : >> { %5580 = vmatmul.mubr.f32.gmra.mrb[70].mxu0 %v7603_v37 }
 0x5c9   : >> { %5584 = vmatprep.mubr.f32.mxu0 %v7604_v15 }
 0x5cc   : >> { %5585 = vmatmul.mubr.f32.gmra.mrb[72].mxu0 %v7604_v15  ;;  %v12803_v15 = vld [vmem:[#allocation22_spill] sm:$0xff] }
 0x5cd   : >> { %5589 = vmatprep.mubr.f32.mxu0 %v7605_v61 }
 0x5d0   : >> { %5590 = vmatmul.mubr.f32.gmra.mrb[74].mxu0 %v7605_v61  ;;  %v5721_v61 = vadd.s32 %v12161_v54, %v12803_v15 }
 0x5d1   : >> { %5594 = vmatprep.mubr.f32.mxu0 %v7606_v12 }
 0x5d2   : >> { %vm5737_vm2 = vcmp.ge.s32.totalorder %v5721_v61, 18 }
 0x5d4   : >> { %5595 = vmatmul.mubr.f32.gmra.mrb[76].mxu0 %v7606_v12  ;;  %v9680_v12 = vpack.c.bf16 %v6248_v29, %v6247_v39 }
 0x5d5   : >> { %5599 = vmatprep.mubr.f32.mxu0 %v7607_v26 }
 0x5d6   : >> { %9681 = vmatprep.subr.bf16.mxu1 %v9680_v12 }
 0x5d7   : >> { %9683 = vmatpush3.bf16.msra.mxu1 %v9680_v12 }
 0x5d8   : >> { %5600 = vmatmul.mubr.f32.gmra.mrb[78].mxu0 %v7607_v26 }
 0x5d9   : >> { %5604 = vmatprep.mubr.f32.mxu0 %v7608_v48 }
 0x5dc   : >> { %5605 = vmatmul.mubr.f32.gmra.mrb[80].mxu0 %v7608_v48 }
 0x5dd   : >> { %5609 = vmatprep.mubr.f32.mxu0 %v7609_v57 }
 0x5e0   : >> { %5610 = vmatmul.mubr.f32.gmra.mrb[82].mxu0 %v7609_v57 }
 0x5e1   : >> { %5614 = vmatprep.mubr.f32.mxu0 %v7610_v55 }
 0x5e4   : >> { %5615 = vmatmul.mubr.f32.gmra.mrb[84].mxu0 %v7610_v55 }
 0x5e5   : >> { %5619 = vmatprep.mubr.f32.mxu0 %v7611_v30 }
 0x5e8   : >> { %5620 = vmatmul.mubr.f32.gmra.mrb[86].mxu0 %v7611_v30  ;;  %v7633_v30 = vadd.s32 4294967278, %v5768_v34 }
 0x5e9   : >> { %5624 = vmatprep.mubr.f32.mxu0 %v7612_v50 }
 0x5ea   : >> { %v5816_v49 = vsel %vm5784_vm14, %v7633_v30, %v5768_v34 }
 0x5eb   : >> { %v7649_v33 = vadd.s32 4294967278, %v5816_v49  ;;  %vm5832_vm1 = vcmp.ge.s32.totalorder %v5816_v49, 18 }
 0x5ec   : >> { %5625 = vmatmul.mubr.f32.gmra.mrb[88].mxu0 %v7612_v50 }
 0x5ed   : >> { %5629 = vmatprep.mubr.f32.mxu0 %v7613_v59  ;;  %v5864_v0 = vsel %vm5832_vm1, %v7649_v33, %v5816_v49 }
 0x5ee   : >> { %v7665_v58 = vadd.s32 4294967278, %v5864_v0  ;;  %vm5880_vm15 = vcmp.ge.s32.totalorder %v5864_v0, 18 }
 0x5f0   : >> { %5630 = vmatmul.mubr.f32.gmra.mrb[90].mxu0 %v7613_v59  ;;  %v5912_v34 = vsel %vm5880_vm15, %v7665_v58, %v5864_v0 }
 0x5f1   : >> { %5634 = vmatprep.mubr.f32.mxu0 %v7614_v60  ;;  %vm5928_vm4 = vcmp.ge.s32.totalorder %v5912_v34, 18 }
 0x5f4   : >> { %5635 = vmatmul.mubr.f32.gmra.mrb[92].mxu0 %v7614_v60 }
 0x5f5   : >> { %5639 = vmatprep.mubr.f32.mxu0 %v7615_v63 }
 0x5f8   : >> { %5640 = vmatmul.mubr.f32.gmra.mrb[94].mxu0 %v7615_v63  ;;  %v7618_v63 = vadd.s32 4294967278, %v5721_v61 }
 0x5fa   : >> { %v5769_v45 = vsel %vm5737_vm2, %v7618_v63, %v5721_v61 }
 0x5fb   : >> { %vm5785_vm0 = vcmp.ge.s32.totalorder %v5769_v45, 18 }
 0x60f   : >> { %v8628_v17 = vpop.f32.mrb[0].mxu0 }
 0x610   : >> { %v8708_v18 = vpop.f32.mrb[0].mxu1  ;;  %v8629_v6 = vpop.f32.mrb[1].mxu0 }
 0x611   : >> { %v8630_v5 = vadd.f32 %v8629_v6, %v8628_v17  ;;  %v8709_v51 = vpop.f32.mrb[1].mxu1  ;;  %v12804_v6 = vld [vmem:[#allocation27_spill] sm:$0xff] }
 0x612   : >> { %v8710_v7 = vadd.f32 %v8709_v51, %v8708_v18  ;;  %v7634_v18 = vadd.s32 4294967278, %v5769_v45 }
 0x613   : >> { %v8631_v14 = vpop.f32.mrb[2].mxu0 }
 0x614   : >> { %v12165_v22 = vadd.f32 %v8710_v7, %v8630_v5  ;;  %v8711_v62 = vpop.f32.mrb[2].mxu1  ;;  %v8632_v20 = vpop.f32.mrb[3].mxu0  ;;  %v5722_v5 = vadd.s32 %v12161_v54, %v12804_v6 }
 0x615   : >> { %v8633_v56 = vadd.f32 %v8632_v20, %v8631_v14  ;;  %v8712_v13 = vpop.f32.mrb[3].mxu1  ;;  %v5817_v20 = vsel %vm5785_vm0, %v7634_v18, %v5769_v45 }
 0x616   : >> { %v8713_v2 = vadd.f32 %v8712_v13, %v8711_v62  ;;  %vm5738_vm13 = vcmp.ge.s32.totalorder %v5722_v5, 18  ;;  %vm5833_vm3 = vcmp.ge.s32.totalorder %v5817_v20, 18 }
 0x617   : >> { %v8634_v36 = vpop.f32.mrb[4].mxu0 }
 0x618   : >> { %v12167_v24 = vadd.f32 %v8713_v2, %v8633_v56  ;;  %v8714_v46 = vpop.f32.mrb[4].mxu1  ;;  %v8635_v3 = vpop.f32.mrb[5].mxu0  ;;  %v7619_v56 = vadd.s32 4294967278, %v5722_v5 }
 0x619   : >> { %v8636_v27 = vadd.f32 %v8635_v3, %v8634_v36  ;;  %v8715_v41 = vpop.f32.mrb[5].mxu1  ;;  %v7650_v36 = vadd.s32 4294967278, %v5817_v20 }
 0x61a   : >> { %v8716_v37 = vadd.f32 %v8715_v41, %v8714_v46  ;;  %v12805_v41 = vld [vmem:[#allocation25_spill] sm:$0xff] }
 0x61b   : >> { %v8637_v26 = vpop.f32.mrb[6].mxu0  ;;  %v5723_v39 = vadd.s32 %v12161_v54, %v12805_v41 }
 0x61c   : >> { %v12171_v48 = vadd.f32 %v8716_v37, %v8636_v27  ;;  %v8717_v57 = vpop.f32.mrb[6].mxu1  ;;  %v8638_v55 = vpop.f32.mrb[7].mxu0  ;;  %v5770_v27 = vsel %vm5738_vm13, %v7619_v56, %v5722_v5 }
 0x61d   : >> { %v8639_v50 = vadd.f32 %v8638_v55, %v8637_v26  ;;  %v8718_v59 = vpop.f32.mrb[7].mxu1  ;;  %v7635_v55 = vadd.s32 4294967278, %v5770_v27  ;;  %vm5786_vm5 = vcmp.ge.s32.totalorder %v5770_v27, 18  ;;  %vm5739_vm6 = vcmp.ge.s32.totalorder %v5723_v39, 18 }
 0x61e   : >> { %v8719_v60 = vadd.f32 %v8718_v59, %v8717_v57  ;;  %v5865_v57 = vsel %vm5833_vm3, %v7650_v36, %v5817_v20  ;;  %v7681_v59 = vadd.s32 4294967278, %v5912_v34 }
 0x61f   : >> { %v8640_v1 = vpop.f32.mrb[8].mxu0  ;;  %vm5881_vm8 = vcmp.ge.s32.totalorder %v5865_v57, 18 }
 0x620   : >> { %v12173_v16 = vadd.f32 %v8719_v60, %v8639_v50  ;;  %v8720_v40 = vpop.f32.mrb[8].mxu1  ;;  %v8641_v28 = vpop.f32.mrb[9].mxu0  ;;  %v7620_v60 = vadd.s32 4294967278, %v5723_v39 }
 0x621   : >> { %v8642_v8 = vadd.f32 %v8641_v28, %v8640_v1  ;;  %v8721_v4 = vpop.f32.mrb[9].mxu1 }
 0x622   : >> { %v8722_v25 = vadd.f32 %v8721_v4, %v8720_v40  ;;  %v5818_v4 = vsel %vm5786_vm5, %v7635_v55, %v5770_v27  ;;  %v5771_v33 = vsel %vm5739_vm6, %v7620_v60, %v5723_v39 }
 0x623   : >> { %v8643_v53 = vpop.f32.mrb[10].mxu0  ;;  %vm5834_vm12 = vcmp.ge.s32.totalorder %v5818_v4, 18  ;;  %vm5787_vm9 = vcmp.ge.s32.totalorder %v5771_v33, 18 }
 0x624   : >> { %v12175_v19 = vadd.f32 %v8722_v25, %v8642_v8  ;;  %v8723_v11 = vpop.f32.mrb[10].mxu1  ;;  %v8644_v44 = vpop.f32.mrb[11].mxu0  ;;  %v7666_v8 = vadd.s32 4294967278, %v5865_v57 }
 0x625   : >> { %v8645_v47 = vadd.f32 %v8644_v44, %v8643_v53  ;;  %v8724_v17 = vpop.f32.mrb[11].mxu1  ;;  %v5960_v53 = vsel %vm5928_vm4, %v7681_v59, %v5912_v34 }
 0x626   : >> { %v8725_v51 = vadd.f32 %v8724_v17, %v8723_v11  ;;  %v12806_v11 = vld [vmem:[#allocation30_spill] sm:$0xff]  ;;  %v12807_v17 = vld [vmem:[#allocation29_spill] sm:$0xff]  ;;  %vm5976_vm11 = vcmp.ge.s32.totalorder %v5960_v53, 18 }
 0x627   : >> { %v8646_v35 = vpop.f32.mrb[12].mxu0  ;;  %v5724_v44 = vadd.s32 %v12161_v54, %v12806_v11  ;;  %v5725_v18 = vadd.s32 %v12161_v54, %v12807_v17 }
 0x628   : >> { %v12179_v43 = vadd.f32 %v8725_v51, %v8645_v47  ;;  %v8726_v7 = vpop.f32.mrb[12].mxu1  ;;  %v8647_v21 = vpop.f32.mrb[13].mxu0  ;;  %v7651_v51 = vadd.s32 4294967278, %v5818_v4 }
 0x629   : >> { %v8648_v14 = vadd.f32 %v8647_v21, %v8646_v35  ;;  %v8727_v62 = vpop.f32.mrb[13].mxu1  ;;  %v5913_v21 = vsel %vm5881_vm8, %v7666_v8, %v5865_v57  ;;  %vm5740_vm10 = vcmp.ge.s32.totalorder %v5724_v44, 18  ;;  %vm5741_vm7 = vcmp.ge.s32.totalorder %v5725_v18, 18 }
 0x62a   : >> { %v8728_v13 = vadd.f32 %v8727_v62, %v8726_v7  ;;  %v7636_v62 = vadd.s32 4294967278, %v5771_v33  ;;  %vm5929_vm14 = vcmp.ge.s32.totalorder %v5913_v21, 18  ;;  %v5866_v27 = vsel %vm5834_vm12, %v7651_v51, %v5818_v4 }
 0x62b   : >> { %v8649_v23 = vpop.f32.mrb[14].mxu0  ;;  %vm5882_vm13 = vcmp.ge.s32.totalorder %v5866_v27, 18 }
 0x62c   : >> { %v12181_v38 = vadd.f32 %v8728_v13, %v8648_v14  ;;  %v8729_v2 = vpop.f32.mrb[14].mxu1  ;;  %v8650_v32 = vpop.f32.mrb[15].mxu0  ;;  %v7697_v14 = vadd.s32 4294967278, %v5960_v53  ;;  %v7621_v13 = vadd.s32 4294967278, %v5724_v44  ;;  %v5819_v39 = vsel %vm5787_vm9, %v7636_v62, %v5771_v33 }
 0x62d   : >> { %v8651_v46 = vadd.f32 %v8650_v32, %v8649_v23  ;;  %v8730_v3 = vpop.f32.mrb[15].mxu1  ;;  %v7622_v23 = vadd.s32 4294967278, %v5725_v18  ;;  %v7682_v32 = vadd.s32 4294967278, %v5913_v21  ;;  %v7652_v59 = vadd.s32 4294967278, %v5819_v39 }
 0x62e   : >> { %v8731_v29 = vadd.f32 %v8730_v3, %v8729_v2  ;;  %vm5835_vm2 = vcmp.ge.s32.totalorder %v5819_v39, 18 }
 0x62f   : >> { %v8652_v37 = vpop.f32.mrb[16].mxu0  ;;  %v5773_v57 = vsel %vm5741_vm7, %v7622_v23, %v5725_v18  ;;  %v12204_v23 = vstv %s12011_s16 }
 0x630   : >> { %v12185_v61 = vadd.f32 %v8731_v29, %v8651_v46  ;;  %v8732_v12 = vpop.f32.mrb[16].mxu1  ;;  %v8653_v26 = vpop.f32.mrb[17].mxu0  ;;  %vm5789_vm15 = vcmp.ge.s32.totalorder %v5773_v57, 18 }
 0x631   : >> { %v8654_v30 = vadd.f32 %v8653_v26, %v8652_v37  ;;  %v8733_v50 = vpop.f32.mrb[17].mxu1  ;;  %v6008_v37 = vsel %vm5976_vm11, %v7697_v14, %v5960_v53 }
 0x632   : >> { %v8734_v63 = vadd.f32 %v8733_v50, %v8732_v12  ;;  %v5772_v12 = vsel %vm5740_vm10, %v7621_v13, %v5724_v44  ;;  %v7667_v50 = vadd.s32 4294967278, %v5866_v27  ;;  %vm6024_vm1 = vcmp.ge.s32.totalorder %v6008_v37, 18 }
 0x633   : >> { %v8655_v1 = vpop.f32.mrb[18].mxu0  ;;  %vm5788_vm0 = vcmp.ge.s32.totalorder %v5772_v12, 18  ;;  %v5867_v44 = vsel %vm5835_vm2, %v7652_v59, %v5819_v39 }
 0x634   : >> { %v12187_v40 = vadd.f32 %v8734_v63, %v8654_v30  ;;  %v8735_v28 = vpop.f32.mrb[18].mxu1  ;;  %v8656_v49 = vpop.f32.mrb[19].mxu0  ;;  %v5961_v30 = vsel %vm5929_vm14, %v7682_v32, %v5913_v21  ;;  %v5914_v14 = vsel %vm5882_vm13, %v7667_v50, %v5866_v27  ;;  %vm5883_vm4 = vcmp.ge.s32.totalorder %v5867_v44, 18 }
 0x635   : >> { %v8657_v25 = vadd.f32 %v8656_v49, %v8655_v1  ;;  %v8736_v45 = vpop.f32.mrb[19].mxu1  ;;  %v7637_v49 = vadd.s32 4294967278, %v5772_v12  ;;  %v7698_v53 = vadd.s32 4294967278, %v5961_v30  ;;  %vm5977_vm3 = vcmp.ge.s32.totalorder %v5961_v30, 18 }
 0x636   : >> { %v8737_v47 = vadd.f32 %v8736_v45, %v8735_v28  ;;  %v7713_v28 = vadd.s32 4294967278, %v6008_v37  ;;  %vm5930_vm8 = vcmp.ge.s32.totalorder %v5914_v14, 18 }
 0x637   : >> { %v8658_v5 = vpop.f32.mrb[20].mxu0 }
 0x638   : >> { %v12193_v35 = vadd.f32 %v8737_v47, %v8657_v25  ;;  %v8738_v0 = vpop.f32.mrb[20].mxu1  ;;  %v8659_v7 = vpop.f32.mrb[21].mxu0  ;;  %v7638_v25 = vadd.s32 4294967278, %v5773_v57  ;;  %v6056_v51 = vsel %vm6024_vm1, %v7713_v28, %v6008_v37  ;;  %v7683_v37 = vadd.s32 4294967278, %v5914_v14 }
 0x639   : >> { %v8660_v20 = vadd.f32 %v8659_v7, %v8658_v5  ;;  %v8739_v56 = vpop.f32.mrb[21].mxu1  ;;  %vm6072_vm5 = vcmp.ge.s32.totalorder %v6056_v51, 18 }
 0x63a   : >> { %v8740_v58 = vadd.f32 %v8739_v56, %v8738_v0  ;;  %v5820_v0 = vsel %vm5788_vm0, %v7637_v49, %v5772_v12  ;;  %v5821_v62 = vsel %vm5789_vm15, %v7638_v25, %v5773_v57  ;;  %v5962_v25 = vsel %vm5930_vm8, %v7683_v37, %v5914_v14 }
 0x63b   : >> { %v8661_v2 = vpop.f32.mrb[22].mxu0  ;;  %vm5836_vm6 = vcmp.ge.s32.totalorder %v5820_v0, 18  ;;  %v7654_v27 = vadd.s32 4294967278, %v5821_v62  ;;  %vm5837_vm12 = vcmp.ge.s32.totalorder %v5821_v62, 18  ;;  %vm5978_vm14 = vcmp.ge.s32.totalorder %v5962_v25, 18 }
 0x63c   : >> { %v12195_v36 = vadd.f32 %v8740_v58, %v8660_v20  ;;  %v8741_v46 = vpop.f32.mrb[22].mxu1  ;;  %v8662_v3 = vpop.f32.mrb[23].mxu0  ;;  %v12808_v20 = vld [vmem:[#allocation32_spill] sm:$0xff]  ;;  %v6009_v58 = vsel %vm5977_vm3, %v7698_v53, %v5961_v30 }
 0x63d   : >> { %v8663_v29 = vadd.f32 %v8662_v3, %v8661_v2  ;;  %v8742_v34 = vpop.f32.mrb[23].mxu1  ;;  %v5726_v56 = vadd.s32 %v12161_v54, %v12808_v20  ;;  %v7668_v2 = vadd.s32 4294967278, %v5867_v44  ;;  %v7653_v3 = vadd.s32 4294967278, %v5820_v0 }
 0x63e   : >> { %v8743_v26 = vadd.f32 %v8742_v34, %v8741_v46  ;;  %v7729_v46 = vadd.s32 4294967278, %v6056_v51  ;;  %v7714_v30 = vadd.s32 4294967278, %v6009_v58  ;;  %vm6025_vm11 = vcmp.ge.s32.totalorder %v6009_v58, 18 }
 0x63f   : >> { %v8664_v55 = vpop.f32.mrb[24].mxu0  ;;  %v7623_v57 = vadd.s32 4294967278, %v5726_v56  ;;  %v5915_v50 = vsel %vm5883_vm4, %v7668_v2, %v5867_v44  ;;  %vm5742_vm9 = vcmp.ge.s32.totalorder %v5726_v56, 18  ;;  %v12809_v44 = vld [vmem:[#allocation31_spill] sm:$0xff] }
 0x640   : >> { %v12197_v60 = vadd.f32 %v8743_v26, %v8663_v29  ;;  %v8744_v63 = vpop.f32.mrb[24].mxu1  ;;  %v8665_v1 = vpop.f32.mrb[25].mxu0  ;;  %vm5931_vm10 = vcmp.ge.s32.totalorder %v5915_v50, 18 }
 0x641   : >> { %v8666_v8 = vadd.f32 %v8665_v1, %v8664_v55  ;;  %v8745_v4 = vpop.f32.mrb[25].mxu1  ;;  %v5868_v1 = vsel %vm5836_vm6, %v7653_v3, %v5820_v0 }
 0x642   : >> { %v8746_v45 = vadd.f32 %v8745_v4, %v8744_v63  ;;  %v6121_v63 = vadd.s32 %v12204_v23, %v12802_v42  ;;  %v6104_v4 = vsel %vm6072_vm5, %v7729_v46, %v6056_v51  ;;  %v7669_v42 = vadd.s32 4294967278, %v5868_v1 }
 0x643   : >> { %v8667_v33 = vpop.f32.mrb[26].mxu0  ;;  %vm6137_vm7 = vcmp.lt.s32.totalorder %v6104_v4, 16  ;;  %vm5884_vm2 = vcmp.ge.s32.totalorder %v5868_v1, 18 }
 0x644   : >> { %v12199_v47 = vadd.f32 %v8746_v45, %v8666_v8  ;;  %v8747_v18 = vpop.f32.mrb[26].mxu1  ;;  %v8668_v5 = vpop.f32.mrb[27].mxu0  ;;  %v5869_v45 = vsel %vm5837_vm12, %v7654_v27, %v5821_v62  ;;  %vm6153_vm13 = vcmp.lt.s32.totalorder %v6121_v63, 288  ;;  %v5916_v37 = vsel %vm5884_vm2, %v7669_v42, %v5868_v1 }
 0x645   : >> { %v8669_v7 = vadd.f32 %v8668_v5, %v8667_v33  ;;  %v8748_v21 = vpop.f32.mrb[27].mxu1  ;;  %v5774_v5 = vsel %vm5742_vm9, %v7623_v57, %v5726_v56  ;;  %v7670_v2 = vadd.s32 4294967278, %v5869_v45  ;;  %vm5885_vm1 = vcmp.ge.s32.totalorder %v5869_v45, 18  ;;  %vm12228_vm6 = vmand %vm6137_vm7, %vm6153_vm13 }
 0x646   : >> { %v8749_v13 = vadd.f32 %v8748_v21, %v8747_v18  ;;  %v7684_v18 = vadd.s32 4294967278, %v5915_v50  ;;  %v7639_v56 = vadd.s32 4294967278, %v5774_v5  ;;  %vm5790_vm0 = vcmp.ge.s32.totalorder %v5774_v5, 18 }
 0x647   : >> { %v8670_v32 = vpop.f32.mrb[28].mxu0  ;;  %v5917_v57 = vsel %vm5885_vm1, %v7670_v2, %v5869_v45  ;;  %vm5932_vm4 = vcmp.ge.s32.totalorder %v5916_v37, 18 }
 0x648   : >> { %v12206_v39 = vadd.f32 %v8749_v13, %v8669_v7  ;;  %v8750_v29 = vpop.f32.mrb[28].mxu1  ;;  %v8671_v34 = vpop.f32.mrb[29].mxu0  ;;  %v5727_v7 = vadd.s32 %v12161_v54, %v12809_v44  ;;  %v12215_v13 = vsel %vm6025_vm11, %v7714_v30, %v6009_v58  ;;  %vm5933_vm8 = vcmp.ge.s32.totalorder %v5917_v57, 18 }
 0x649   : >> { %v8672_v12 = vadd.f32 %v8671_v34, %v8670_v32  ;;  %v8751_v26 = vpop.f32.mrb[29].mxu1  ;;  %v7699_v32 = vadd.s32 4294967278, %v5962_v25  ;;  %vm6073_vm5 = vcmp.ge.s32.totalorder %v12215_v13, 18 }
 0x64a   : >> { %v8752_v55 = vadd.f32 %v8751_v26, %v8750_v29  ;;  %v5963_v29 = vsel %vm5931_vm10, %v7684_v18, %v5915_v50  ;;  %v7624_v58 = vadd.s32 4294967278, %v5727_v7  ;;  %vm5743_vm15 = vcmp.ge.s32.totalorder %v5727_v7, 18 }
 0x64b   : >> { %v8673_v59 = vpop.f32.mrb[30].mxu0  ;;  %v7730_v26 = vadd.s32 4294967278, %v12215_v13  ;;  %vm5979_vm3 = vcmp.ge.s32.totalorder %v5963_v29, 18  ;;  %v7685_v18 = vadd.s32 4294967278, %v5916_v37 }
 0x64c   : >> { %v12210_v28 = vadd.f32 %v8752_v55, %v8672_v12  ;;  %v8753_v49 = vpop.f32.mrb[30].mxu1  ;;  %v8674_v8 = vpop.f32.mrb[31].mxu0  ;;  %v5775_v1 = vsel %vm5743_vm15, %v7624_v58, %v5727_v7 }
 0x64d   : >> { %v8675_v53 = vadd.f32 %v8674_v8, %v8673_v59  ;;  %v8754_v33 = vpop.f32.mrb[31].mxu1  ;;  %v6010_v59 = vsel %vm5978_vm14, %v7699_v32, %v5962_v25  ;;  %v5822_v8 = vsel %vm5790_vm0, %v7639_v56, %v5774_v5  ;;  %v5964_v63 = vsel %vm5932_vm4, %v7685_v18, %v5916_v37 }
 0x64e   : >> { %v8755_v21 = vadd.f32 %v8754_v33, %v8753_v49  ;;  %v7700_v49 = vadd.s32 4294967278, %v5963_v29  ;;  %v7715_v5 = vadd.s32 4294967278, %v6010_v59  ;;  %vm6026_vm12 = vcmp.ge.s32.totalorder %v6010_v59, 18 }
 0x64f   : >> { %v8788_v0 = vpop.f32.mrb[32].mxu0  ;;  %vm5838_vm9 = vcmp.ge.s32.totalorder %v5822_v8, 18  ;;  %vm5791_vm11 = vcmp.ge.s32.totalorder %v5775_v1, 18  ;;  %vm5980_vm7 = vcmp.ge.s32.totalorder %v5964_v63, 18 }
 0x650   : >> { %v12217_v51 = vadd.f32 %v8755_v21, %v8675_v53  ;;  %v8789_v14 = vpop.f32.mrb[33].mxu0  ;;  %v8868_v62 = vpop.f32.mrb[32].mxu1  ;;  %v6011_v7 = vsel %vm5979_vm3, %v7700_v49, %v5963_v29  ;;  %v7701_v49 = vadd.s32 4294967278, %v5964_v63 }
 0x651   : >> { %v8790_v46 = vadd.f32 %v8789_v14, %v8788_v0  ;;  %v8869_v3 = vpop.f32.mrb[33].mxu1  ;;  %v7655_v0 = vadd.s32 4294967278, %v5822_v8  ;;  %vm6027_vm10 = vcmp.ge.s32.totalorder %v6011_v7, 18 }
 0x652   : >> { %v8870_v34 = vadd.f32 %v8869_v3, %v8868_v62  ;;  %v7640_v62 = vadd.s32 4294967278, %v5775_v1  ;;  %v10097_v3 = vmov 0.0  }
 0x653   : >> { %v5203_v27 = vadd.f32 %v8790_v46, %v12165_v22  ;;  %v8791_v12 = vpop.f32.mrb[34].mxu0  ;;  %v7686_v22 = vadd.s32 4294967278, %v5917_v57  ;;  %v12238_v46 = vadd.s32 %v12204_v23, %v12803_v15  ;;  %v12243_v58 = vsel %vm12228_vm6, 1.0, %v10097_v3 }
 0x654   : >> { %v8792_v55 = vpop.f32.mrb[35].mxu0  ;;  %v8871_v30 = vpop.f32.mrb[34].mxu1  ;;  %v5870_v37 = vsel %vm5838_vm9, %v7655_v0, %v5822_v8  ;;  %v7716_v15 = vadd.s32 4294967278, %v6011_v7 }
 0x655   : >> { %v12222_v50 = vadd.f32 %v8870_v34, %v5203_v27  ;;  %v8793_v53 = vadd.f32 %v8792_v55, %v8791_v12  ;;  %v8872_v33 = vpop.f32.mrb[35].mxu1  ;;  %v5965_v29 = vsel %vm5933_vm8, %v7686_v22, %v5917_v57  ;;  %v6058_v12 = vsel %vm6026_vm12, %v7715_v5, %v6010_v59  ;;  %v12812_v22 = vld [vmem:[#allocation24_spill] sm:$0xff] }
 0x656   : >> { %v8873_v21 = vadd.f32 %v8872_v33, %v8871_v30  ;;  %v7702_v57 = vadd.s32 4294967278, %v5965_v29  ;;  %v12257_v59 = vsel %vm6073_vm5, %v7730_v26, %v12215_v13  ;;  %vm5981_vm14 = vcmp.ge.s32.totalorder %v5965_v29, 18 }
 0x657   : >> { %v5204_v45 = vadd.f32 %v8793_v53, %v12167_v24  ;;  %v8794_v42 = vpop.f32.mrb[36].mxu0  ;;  %v5823_v53 = vsel %vm5791_vm11, %v7640_v62, %v5775_v1  ;;  %v7671_v8 = vadd.s32 4294967278, %v5870_v37  ;;  %v7731_v1 = vadd.s32 4294967278, %v6058_v12 }
 0x658   : >> { %v8795_v2 = vpop.f32.mrb[37].mxu0  ;;  %v8874_v14 = vpop.f32.mrb[36].mxu1  ;;  %vm5886_vm2 = vcmp.ge.s32.totalorder %v5870_v37, 18  ;;  %v7656_v5 = vadd.s32 4294967278, %v5823_v53  ;;  %vm6074_vm1 = vcmp.ge.s32.totalorder %v6058_v12, 18  ;;  %v6012_v62 = vsel %vm5980_vm7, %v7701_v49, %v5964_v63 }
 0x659   : >> { %v12233_v32 = vadd.f32 %v8873_v21, %v5204_v45  ;;  %v8796_v24 = vadd.f32 %v8795_v2, %v8794_v42  ;;  %v8875_v56 = vpop.f32.mrb[37].mxu1  ;;  %vm5839_vm0 = vcmp.ge.s32.totalorder %v5823_v53, 18  ;;  %vm6028_vm15 = vcmp.ge.s32.totalorder %v6012_v62, 18 }
 0x65a   : >> { %v8876_v4 = vadd.f32 %v8875_v56, %v8874_v14  ;;  %v6059_v14 = vsel %vm6027_vm10, %v7716_v15, %v6011_v7  ;;  %v6013_v56 = vsel %vm5981_vm14, %v7702_v57, %v5965_v29  ;;  %v5871_v15 = vsel %vm5839_vm0, %v7656_v5, %v5823_v53 }
 0x65b   : >> { %v5205_v34 = vadd.f32 %v8796_v24, %v12171_v48  ;;  %v8797_v27 = vpop.f32.mrb[38].mxu0  ;;  %v5728_v48 = vadd.s32 %v12161_v54, %v12812_v22  ;;  %v7732_v63 = vadd.s32 4294967278, %v6059_v14  ;;  %vm6029_vm3 = vcmp.ge.s32.totalorder %v6013_v56, 18 }
 0x65c   : >> { %v8798_v55 = vpop.f32.mrb[39].mxu0  ;;  %v8877_v30 = vpop.f32.mrb[38].mxu1  ;;  %v7718_v29 = vadd.s32 4294967278, %v6013_v56  ;;  %vm6138_vm4 = vcmp.lt.s32.totalorder %v12257_v59, 16  ;;  %vm6154_vm6 = vcmp.lt.s32.totalorder %v12238_v46, 288  ;;  %vm6075_vm8 = vcmp.ge.s32.totalorder %v6059_v14, 18 }
 0x65d   : >> { %v12250_v33 = vadd.f32 %v8876_v4, %v5205_v34  ;;  %v8799_v18 = vadd.f32 %v8798_v55, %v8797_v27  ;;  %v8878_v21 = vpop.f32.mrb[39].mxu1  ;;  %v7625_v4 = vadd.s32 4294967278, %v5728_v48  ;;  %v12267_v34 = vadd.s32 %v12204_v23, %v12804_v6 }
 0x65e   : >> { %v8879_v45 = vadd.f32 %v8878_v21, %v8877_v30  ;;  %v5918_v27 = vsel %vm5886_vm2, %v7671_v8, %v5870_v37  ;;  %vm5744_vm13 = vcmp.ge.s32.totalorder %v5728_v48, 18  ;;  %v12270_v30 = vsel %vm6074_vm1, %v7731_v1, %v6058_v12  ;;  %v12813_v12 = vld [vmem:[#allocation23_spill] sm:$0xff] }
 0x65f   : >> { %v5206_v42 = vadd.f32 %v8799_v18, %v12173_v16  ;;  %v8800_v25 = vpop.f32.mrb[40].mxu0  ;;  %v7717_v21 = vadd.s32 4294967278, %v6012_v62  ;;  %v5776_v37 = vsel %vm5744_vm13, %v7625_v4, %v5728_v48  ;;  %vm5934_vm5 = vcmp.ge.s32.totalorder %v5918_v27, 18 }
 0x660   : >> { %v8801_v0 = vpop.f32.mrb[41].mxu0  ;;  %v8880_v2 = vpop.f32.mrb[40].mxu1  ;;  %v12282_v5 = vadd.s32 %v12204_v23, %v12805_v41  ;;  %vm5887_vm12 = vcmp.ge.s32.totalorder %v5871_v15, 18  ;;  %vm6139_vm9 = vcmp.lt.s32.totalorder %v12270_v30, 16  ;;  %vm6155_vm11 = vcmp.lt.s32.totalorder %v12267_v34, 288 }
 0x661   : >> { %v12262_v24 = vadd.f32 %v8879_v45, %v5206_v42  ;;  %v8802_v13 = vadd.f32 %v8801_v0, %v8800_v25  ;;  %v8881_v26 = vpop.f32.mrb[41].mxu1  ;;  %v7687_v42 = vadd.s32 4294967278, %v5918_v27  ;;  %v5729_v25 = vadd.s32 %v12161_v54, %v12813_v12 }
 0x662   : >> { %v8882_v16 = vadd.f32 %v8881_v26, %v8880_v2  ;;  %v6060_v2 = vsel %vm6028_vm15, %v7717_v21, %v6012_v62  ;;  %v7641_v26 = vadd.s32 4294967278, %v5776_v37  ;;  %vm5792_vm10 = vcmp.ge.s32.totalorder %v5776_v37, 18 }
 0x663   : >> { %v5207_v55 = vadd.f32 %v8802_v13, %v12175_v19  ;;  %v8803_v7 = vpop.f32.mrb[42].mxu0  ;;  %v7672_v19 = vadd.s32 4294967278, %v5871_v15  ;;  %v6061_v13 = vsel %vm6029_vm3, %v7718_v29, %v6013_v56  ;;  %v7626_v62 = vadd.s32 4294967278, %v5729_v25 }
 0x664   : >> { %v8804_v49 = vpop.f32.mrb[43].mxu0  ;;  %v8883_v18 = vpop.f32.mrb[42].mxu1  ;;  %vm6076_vm7 = vcmp.ge.s32.totalorder %v6060_v2, 18  ;;  %vm5745_vm14 = vcmp.ge.s32.totalorder %v5729_v25, 18  ;;  %vm6077_vm2 = vcmp.ge.s32.totalorder %v6061_v13, 18  ;;  %vm6156_vm15 = vcmp.lt.s32.totalorder %v12282_v5, 288 }
 0x665   : >> { %v12272_v57 = vadd.f32 %v8882_v16, %v5207_v55  ;;  %v8805_v45 = vadd.f32 %v8804_v49, %v8803_v7  ;;  %v8884_v6 = vpop.f32.mrb[43].mxu1  ;;  %v5966_v55 = vsel %vm5934_vm5, %v7687_v42, %v5918_v27  ;;  %v6107_v49 = vsel %vm6075_vm8, %v7732_v63, %v6059_v14  ;;  %vm12313_vm5 = vmand %vm6138_vm4, %vm6154_vm6 }
 0x666   : >> { %v8885_v8 = vadd.f32 %v8884_v6, %v8883_v18  ;;  %v5919_v18 = vsel %vm5887_vm12, %v7672_v19, %v5871_v15  ;;  %v7734_v6 = vadd.s32 4294967278, %v6061_v13  ;;  %vm5982_vm1 = vcmp.ge.s32.totalorder %v5966_v55, 18 }
 0x667   : >> { %v5208_v53 = vadd.f32 %v8805_v45, %v12179_v43  ;;  %v8806_v1 = vpop.f32.mrb[44].mxu0  ;;  %v12289_v43 = vadd.s32 %v12204_v23, %v12806_v11  ;;  %v7733_v45 = vadd.s32 4294967278, %v6060_v2  ;;  %v7688_v14 = vadd.s32 4294967278, %v5919_v18 }
 0x668   : >> { %v8807_v48 = vpop.f32.mrb[45].mxu0  ;;  %v8886_v0 = vpop.f32.mrb[44].mxu1  ;;  %vm5935_vm0 = vcmp.ge.s32.totalorder %v5919_v18, 18  ;;  %v5777_v15 = vsel %vm5745_vm14, %v7626_v62, %v5729_v25  ;;  %vm6140_vm13 = vcmp.lt.s32.totalorder %v6107_v49, 16  ;;  %v12343_v5 = vsel %vm12313_vm5, 1.0, %v10097_v3 }
 0x669   : >> { %v12292_v4 = vadd.f32 %v8885_v8, %v5208_v53  ;;  %v8808_v41 = vadd.f32 %v8807_v48, %v8806_v1  ;;  %v8887_v16 = vpop.f32.mrb[45].mxu1  ;;  %v7703_v8 = vadd.s32 4294967278, %v5966_v55  ;;  %v5824_v53 = vsel %vm5792_vm10, %v7641_v26, %v5776_v37  ;;  %vm12331_vm6 = vmand %vm6140_vm13, %vm6156_vm15 }
 0x66a   : >> { %v8888_v7 = vadd.f32 %v8887_v16, %v8886_v0  ;;  %v7657_v0 = vadd.s32 4294967278, %v5824_v53  ;;  %v6109_v16 = vsel %vm6077_vm2, %v7734_v6, %v6061_v13  ;;  %vm5840_vm3 = vcmp.ge.s32.totalorder %v5824_v53, 18 }
 0x66b   : >> { %v5209_v21 = vadd.f32 %v8808_v41, %v12181_v38  ;;  %v8809_v11 = vpop.f32.mrb[46].mxu0  ;;  %v6126_v38 = vadd.s32 %v12204_v23, %v12807_v17  ;;  %v6108_v41 = vsel %vm6076_vm7, %v7733_v45, %v6060_v2  ;;  %v5967_v25 = vsel %vm5935_vm0, %v7688_v14, %v5919_v18  ;;  %vm12323_vm7 = vmand %vm6139_vm9, %vm6155_vm11 }
 0x66c   : >> { %v8810_v56 = vpop.f32.mrb[47].mxu0  ;;  %v8889_v29 = vpop.f32.mrb[46].mxu1  ;;  %vm6157_vm8 = vcmp.lt.s32.totalorder %v12289_v43, 288  ;;  %vm5793_vm10 = vcmp.ge.s32.totalorder %v5777_v15, 18  ;;  %vm6141_vm14 = vcmp.lt.s32.totalorder %v6108_v41, 16  ;;  %vm6142_vm4 = vcmp.lt.s32.totalorder %v6109_v16, 16 }
 0x66d   : >> { %v12298_v27 = vadd.f32 %v8888_v7, %v5209_v21  ;;  %v8811_v42 = vadd.f32 %v8810_v56, %v8809_v11  ;;  %v8890_v1 = vpop.f32.mrb[47].mxu1  ;;  %v6014_v7 = vsel %vm5982_vm1, %v7703_v8, %v5966_v55  ;;  %vm6158_vm12 = vcmp.lt.s32.totalorder %v6126_v38, 288  ;;  %vm12359_vm9 = vmand %vm6141_vm14, %vm6157_vm8 }
 0x66e   : >> { %v8891_v63 = vadd.f32 %v8890_v1, %v8889_v29  ;;  %v5872_v46 = vsel %vm5840_vm3, %v7657_v0, %v5824_v53  ;;  %vm6030_vm2 = vcmp.ge.s32.totalorder %v6014_v7, 18  ;;  %v7719_v34 = vadd.s32 4294967278, %v6014_v7  ;;  %v12820_v53 = vld [vmem:[#allocation28_spill] sm:$0xff]  ;;  %vm12369_vm0 = vmand %vm6142_vm4, %vm6158_vm12 }
 0x66f   : >> { %v5210_v19 = vadd.f32 %v8811_v42, %v12185_v61  ;;  %v8812_v48 = vpop.f32.mrb[48].mxu0  ;;  %v7642_v61 = vadd.s32 4294967278, %v5777_v15  ;;  %vm5983_vm1 = vcmp.ge.s32.totalorder %v5967_v25, 18  ;;  %v7704_v30 = vadd.s32 4294967278, %v5967_v25 }
 0x670   : >> { %v8813_v37 = vpop.f32.mrb[49].mxu0  ;;  %v8892_v26 = vpop.f32.mrb[48].mxu1  ;;  %v5730_v42 = vadd.s32 %v12161_v54, %v12820_v53  ;;  %v12348_v49 = vsel %vm12323_vm7, 1.0, %v10097_v3  ;;  %v7673_v14 = vadd.s32 4294967278, %v5872_v46  ;;  %v12365_v0 = vadd.s32 %v12204_v23, %v12808_v20 }
 0x671   : >> { %v12306_v21 = vadd.f32 %v8891_v63, %v5210_v19  ;;  %v8814_v17 = vadd.f32 %v8813_v37, %v8812_v48  ;;  %v8893_v11 = vpop.f32.mrb[49].mxu1  ;;  %v5825_v8 = vsel %vm5793_vm10, %v7642_v61, %v5777_v15  ;;  %v12354_v15 = vsel %vm12331_vm6, 1.0, %v10097_v3 }
 0x672   : >> { %v8894_v62 = vadd.f32 %v8893_v11, %v8892_v26  ;;  %vm5888_vm11 = vcmp.ge.s32.totalorder %v5872_v46, 18  ;;  %v6062_v43 = vsel %vm6030_vm2, %v7719_v34, %v6014_v7  ;;  %v6015_v41 = vsel %vm5983_vm1, %v7704_v30, %v5967_v25 }
 0x673   : >> { %v5211_v2 = vadd.f32 %v8814_v17, %v12187_v40  ;;  %v8815_v13 = vpop.f32.mrb[50].mxu0  ;;  %v12377_v17 = vadd.s32 %v12204_v23, %v12809_v44  ;;  %v7658_v11 = vadd.s32 4294967278, %v5825_v8  ;;  %vm5841_vm13 = vcmp.ge.s32.totalorder %v5825_v8, 18 }
 0x674   : >> { %v8816_v59 = vpop.f32.mrb[51].mxu0  ;;  %v8895_v18 = vpop.f32.mrb[50].mxu1  ;;  %v7627_v38 = vadd.s32 4294967278, %v5730_v42  ;;  %v5920_v56 = vsel %vm5888_vm11, %v7673_v14, %v5872_v46  ;;  %vm5746_vm15 = vcmp.ge.s32.totalorder %v5730_v42, 18  ;;  %v12387_v44 = vsel %vm12359_vm9, 1.0, %v10097_v3 }
 0x675   : >> { %v12335_v45 = vadd.f32 %v8894_v62, %v5211_v2  ;;  %v8817_v29 = vadd.f32 %v8816_v59, %v8815_v13  ;;  %v8896_v6 = vpop.f32.mrb[51].mxu1  ;;  %v12825_v2 = vld [vmem:[#allocation26_spill] sm:$0xff]  ;;  %v12392_v55 = vsel %vm12369_vm0, 1.0, %v10097_v3  ;;  %v7735_v59 = vadd.s32 4294967278, %v6062_v43 }
 0x676   : >> { %v8897_v1 = vadd.f32 %v8896_v6, %v8895_v18  ;;  %v5731_v13 = vadd.s32 %v12161_v54, %v12825_v2  ;;  %vm6078_vm3 = vcmp.ge.s32.totalorder %v6062_v43, 18  ;;  %vm6159_vm5 = vcmp.lt.s32.totalorder %v12365_v0, 288 }
 0x677   : >> { %v5212_v63 = vadd.f32 %v8817_v29, %v12193_v35  ;;  %v8818_v19 = vpop.f32.mrb[52].mxu0  ;;  %vm6031_vm8 = vcmp.ge.s32.totalorder %v6015_v41, 18  ;;  %v7720_v40 = vadd.s32 4294967278, %v6015_v41  ;;  %v7689_v6 = vadd.s32 4294967278, %v5920_v56 }
 0x678   : >> { %v8819_v37 = vpop.f32.mrb[53].mxu0  ;;  %v8898_v35 = vpop.f32.mrb[52].mxu1  ;;  %vm5936_vm12 = vcmp.ge.s32.totalorder %v5920_v56, 18  ;;  %vm5747_vm10 = vcmp.ge.s32.totalorder %v5731_v13, 18  ;;  %vm6160_vm1 = vcmp.lt.s32.totalorder %v12377_v17, 288 }
 0x679   : >> { %v12379_v20 = vadd.f32 %v8897_v1, %v5212_v63  ;;  %v8820_v61 = vadd.f32 %v8819_v37, %v8818_v19  ;;  %v8899_v62 = vpop.f32.mrb[53].mxu1  ;;  %v5778_v1 = vsel %vm5746_vm15, %v7627_v38, %v5730_v42  ;;  %v7628_v63 = vadd.s32 4294967278, %v5731_v13 }
 0x67a   : >> { %v8900_v16 = vadd.f32 %v8899_v62, %v8898_v35  ;;  %v5732_v19 = vadd.s32 %v12161_v54, %v10492_v52  ;;  %v6110_v35 = vsel %vm6078_vm3, %v7735_v59, %v6062_v43  ;;  %v12406_v42 = vadd.s32 %v12204_v23, %v12812_v22 }
 0x67b   : >> { %v5213_v7 = vadd.f32 %v8820_v61, %v12195_v36  ;;  %v8821_v25 = vpop.f32.mrb[54].mxu0  ;;  %v5873_v36 = vsel %vm5841_vm13, %v7658_v11, %v5825_v8  ;;  %v6063_v61 = vsel %vm6031_vm8, %v7720_v40, %v6015_v41  ;;  %v7643_v62 = vadd.s32 4294967278, %v5778_v1 }
 0x67c   : >> { %v8822_v18 = vpop.f32.mrb[55].mxu0  ;;  %v8901_v46 = vpop.f32.mrb[54].mxu1  ;;  %v7674_v26 = vadd.s32 4294967278, %v5873_v36  ;;  %vm5889_vm7 = vcmp.ge.s32.totalorder %v5873_v36, 18  ;;  %vm5794_vm14 = vcmp.ge.s32.totalorder %v5778_v1, 18  ;;  %vm6143_vm4 = vcmp.lt.s32.totalorder %v6110_v35, 16 }
 0x67d   : >> { %v12396_v34 = vadd.f32 %v8900_v16, %v5213_v7  ;;  %v8823_v30 = vadd.f32 %v8822_v18, %v8821_v25  ;;  %v8902_v29 = vpop.f32.mrb[55].mxu1  ;;  %v5779_v25 = vsel %vm5747_vm10, %v7628_v63, %v5731_v13  ;;  %v7629_v59 = vadd.s32 4294967278, %v5732_v19  ;;  %vm12423_vm0 = vmand %vm6143_vm4, %vm6159_vm5 }
 0x67e   : >> { %v8903_v14 = vadd.f32 %v8902_v29, %v8901_v46  ;;  %v5921_v46 = vsel %vm5889_vm7, %v7674_v26, %v5873_v36  ;;  %vm5748_vm6 = vcmp.ge.s32.totalorder %v5732_v19, 18  ;;  %v5733_v22 = vadd.s32 %v12161_v54, %v10475_v31 }
 0x67f   : >> { %v5214_v48 = vadd.f32 %v8823_v30, %v12197_v60  ;;  %v8824_v37 = vpop.f32.mrb[56].mxu0  ;;  %v5968_v60 = vsel %vm5936_vm12, %v7689_v6, %v5920_v56  ;;  %vm6079_vm2 = vcmp.ge.s32.totalorder %v6063_v61, 18  ;;  %v7736_v29 = vadd.s32 4294967278, %v6063_v61 }
 0x680   : >> { %v8825_v8 = vpop.f32.mrb[57].mxu0  ;;  %v8904_v11 = vpop.f32.mrb[56].mxu1  ;;  %v7705_v56 = vadd.s32 4294967278, %v5968_v60  ;;  %v5826_v6 = vsel %vm5794_vm14, %v7643_v62, %v5778_v1  ;;  %vm5984_vm9 = vcmp.ge.s32.totalorder %v5968_v60, 18  ;;  %vm5795_vm11 = vcmp.ge.s32.totalorder %v5779_v25, 18 }
 0x681   : >> { %v12408_v38 = vadd.f32 %v8903_v14, %v5214_v48  ;;  %v8826_v16 = vadd.f32 %v8825_v8, %v8824_v37  ;;  %v8905_v7 = vpop.f32.mrb[57].mxu1  ;;  %v7690_v48 = vadd.s32 4294967278, %v5921_v46  ;;  %v5780_v37 = vsel %vm5748_vm6, %v7629_v59, %v5732_v19 }
 0x682   : >> { %v8906_v43 = vadd.f32 %v8905_v7, %v8904_v11  ;;  %vm5937_vm13 = vcmp.ge.s32.totalorder %v5921_v46, 18  ;;  %v7659_v1 = vadd.s32 4294967278, %v5826_v6  ;;  %v7630_v62 = vadd.s32 4294967278, %v5733_v22 }
 0x683   : >> { %v5215_v18 = vadd.f32 %v8826_v16, %v12199_v47  ;;  %v8827_v41 = vpop.f32.mrb[58].mxu0  ;;  %v7644_v47 = vadd.s32 4294967278, %v5779_v25  ;;  %vm5842_vm15 = vcmp.ge.s32.totalorder %v5826_v6, 18  ;;  %vm5749_vm3 = vcmp.ge.s32.totalorder %v5733_v22, 18 }
 0x684   : >> { %v8828_v40 = vpop.f32.mrb[59].mxu0  ;;  %v8907_v30 = vpop.f32.mrb[58].mxu1  ;;  %v7645_v35 = vadd.s32 4294967278, %v5780_v37  ;;  %vm5796_vm5 = vcmp.ge.s32.totalorder %v5780_v37, 18 }
 0x685   : >> { %v12416_v14 = vadd.f32 %v8906_v43, %v5215_v18  ;;  %v8829_v13 = vadd.f32 %v8828_v40, %v8827_v41  ;;  %v8908_v63 = vpop.f32.mrb[59].mxu1  ;;  %v6111_v43 = vsel %vm6079_vm2, %v7736_v29, %v6063_v61  ;;  %v6016_v18 = vsel %vm5984_vm9, %v7705_v56, %v5968_v60 }
 0x686   : >> { %v8909_v36 = vadd.f32 %v8908_v63, %v8907_v30  ;;  %v5827_v0 = vsel %vm5795_vm11, %v7644_v47, %v5779_v25  ;;  %v12434_v40 = vsel %vm12423_vm0, 1.0, %v10097_v3  ;;  %v5969_v30 = vsel %vm5937_vm13, %v7690_v48, %v5921_v46 }
 0x687   : >> { %v5216_v26 = vadd.f32 %v8829_v13, %v12206_v39  ;;  %v8830_v8 = vpop.f32.mrb[60].mxu0  ;;  %v5874_v29 = vsel %vm5842_vm15, %v7659_v1, %v5826_v6  ;;  %v5781_v56 = vsel %vm5749_vm3, %v7630_v62, %v5733_v22  ;;  %v5734_v13 = vadd.s32 %v12161_v54, %v10547_v10 }
 0x688   : >> { %v8831_v16 = vpop.f32.mrb[61].mxu0  ;;  %v8910_v7 = vpop.f32.mrb[60].mxu1  ;;  %vm6144_vm8 = vcmp.lt.s32.totalorder %v6111_v43, 16  ;;  %vm6032_vm12 = vcmp.ge.s32.totalorder %v6016_v18, 18  ;;  %v7721_v47 = vadd.s32 4294967278, %v6016_v18  ;;  %vm5843_vm10 = vcmp.ge.s32.totalorder %v5827_v0, 18 }
 0x689   : >> { %v12428_v19 = vadd.f32 %v8909_v36, %v5216_v26  ;;  %v8832_v39 = vadd.f32 %v8831_v16, %v8830_v8  ;;  %v8911_v59 = vpop.f32.mrb[61].mxu1  ;;  %v7660_v36 = vadd.s32 4294967278, %v5827_v0  ;;  %v5828_v46 = vsel %vm5796_vm5, %v7645_v35, %v5780_v37  ;;  %vm6176_vm14 = vmand %vm6144_vm8, %vm6160_vm1 }
 0x68a   : >> { %v8912_v41 = vadd.f32 %v8911_v59, %v8910_v7  ;;  %v7706_v48 = vadd.s32 4294967278, %v5969_v30  ;;  %vm5890_vm7 = vcmp.ge.s32.totalorder %v5874_v29, 18  ;;  %v7646_v22 = vadd.s32 4294967278, %v5781_v56 }
 0x68b   : >> { %v5217_v61 = vadd.f32 %v8832_v39, %v12210_v28  ;;  %v8833_v60 = vpop.f32.mrb[62].mxu0  ;;  %v7675_v62 = vadd.s32 4294967278, %v5874_v29  ;;  %vm5797_vm4 = vcmp.ge.s32.totalorder %v5781_v56, 18  ;;  %v7631_v16 = vadd.s32 4294967278, %v5734_v13 }
 0x68c   : >> { %v8834_v63 = vpop.f32.mrb[63].mxu0  ;;  %v8913_v25 = vpop.f32.mrb[62].mxu1  ;;  %v5875_v39 = vsel %vm5843_vm10, %v7660_v36, %v5827_v0  ;;  %v7661_v59 = vadd.s32 4294967278, %v5828_v46  ;;  %vm5750_vm6 = vcmp.ge.s32.totalorder %v5734_v13, 18  ;;  %v5735_v37 = vadd.s32 %v12161_v54, %v10518_v9 }
 0x68d   : >> { %v12440_v26 = vadd.f32 %v8912_v41, %v5217_v61  ;;  %v8835_v8 = vadd.f32 %v8834_v63, %v8833_v60  ;;  %v8914_v11 = vpop.f32.mrb[63].mxu1  ;;  %vm5985_vm2 = vcmp.ge.s32.totalorder %v5969_v30, 18  ;;  %vm5844_vm9 = vcmp.ge.s32.totalorder %v5828_v46, 18 }
 0x68e   : >> { %v8915_v28 = vadd.f32 %v8914_v11, %v8913_v25  ;;  %v12454_v17 = vsel %vm6176_vm14, 1.0, %v10097_v3  ;;  %v12457_v43 = vsel %vm6032_vm12, %v7721_v47, %v6016_v18  ;;  %v12461_v0 = vadd.s32 %v12204_v23, %v12813_v12 }
 0x68f   : >> { %v5218_v6 = vadd.f32 %v8835_v8, %v12217_v51  ;;  %v8948_v1 = vpop.f32.mrb[64].mxu0  ;;  %v12451_v51 = vld [vmem:[#allocation11 + $0x2] ss:$0 sm:$0xff]  ;;  %v5829_v61 = vsel %vm5797_vm4, %v7646_v22, %v5781_v56  ;;  %v5922_v63 = vsel %vm5890_vm7, %v7675_v62, %v5874_v29  ;;  %v7676_v25 = vadd.s32 4294967278, %v5875_v39 }
 0x690   : >> { %v8949_v7 = vpop.f32.mrb[65].mxu0  ;;  %v5782_v36 = vsel %vm5750_vm6, %v7631_v16, %v5734_v13  ;;  %v12465_v11 = vsel %vm5985_vm2, %v7706_v48, %v5969_v30  ;;  %vm5891_vm1 = vcmp.ge.s32.totalorder %v5875_v39, 18  ;;  %vm5751_vm11 = vcmp.ge.s32.totalorder %v5735_v37, 18 }
 0x691   : >> { %v12449_v35 = vadd.f32 %v8915_v28, %v5218_v6  ;;  %v8950_v41 = vadd.f32 %v8949_v7, %v8948_v1  ;;  %v5876_v28 = vsel %vm5844_vm9, %v7661_v59, %v5828_v46  ;;  %v7632_v6 = vadd.s32 4294967278, %v5735_v37 }
 0x692   : >> { %v7662_v1 = vadd.s32 4294967278, %v5829_v61  ;;  %vm5938_vm0 = vcmp.ge.s32.totalorder %v5922_v63, 18  ;;  %v7691_v12 = vadd.s32 4294967278, %v5922_v63  ;;  %vm5845_vm13 = vcmp.ge.s32.totalorder %v5829_v61, 18 }
 0x693   : >> { %v5645_v54 = vadd.f32 %v8950_v41, %v12222_v50  ;;  %v8951_v60 = vpop.f32.mrb[66].mxu0  ;;  %v7647_v50 = vadd.s32 4294967278, %v5782_v36  ;;  %v5923_v13 = vsel %vm5891_vm1, %v7676_v25, %v5875_v39  ;;  %vm5798_vm15 = vcmp.ge.s32.totalorder %v5782_v36, 18 }
 0x694   : >> { %v8952_v8 = vpop.f32.mrb[67].mxu0  ;;  %v12471_v46 = vadd.s32 %v12204_v23, %v12820_v53  ;;  %vm5892_vm3 = vcmp.ge.s32.totalorder %v5876_v28, 18  ;;  %v7677_v48 = vadd.s32 4294967278, %v5876_v28  ;;  %v5783_v62 = vsel %vm5751_vm11, %v7632_v6, %v5735_v37 }
 0x695   : >> { %v5669_v18 = vadd.f32 %v12451_v51, %v5645_v54  ;;  %v8953_v47 = vadd.f32 %v8952_v8, %v8951_v60  ;;  %v5877_v41 = vsel %vm5845_vm13, %v7662_v1, %v5829_v61  ;;  %vm6033_vm5 = vcmp.ge.s32.totalorder %v12465_v11, 18 }
 0x696   : >> { %vm5939_vm8 = vcmp.ge.s32.totalorder %v5923_v13, 18  ;;  %v5830_v39 = vsel %vm5798_vm15, %v7647_v50, %v5782_v36  ;;  %vm6080_vm12 = vcmp.ge.s32.totalorder %v12457_v43, 18  ;;  %v7692_v37 = vadd.s32 4294967278, %v5923_v13 }
 0x697   : >> { %v5685_v56 = vmax.f32 %v5669_v18, 0.0  ;;  %v5646_v29 = vadd.f32 %v8953_v47, %v12233_v32  ;;  %v8954_v22 = vpop.f32.mrb[68].mxu0  ;;  %v5970_v32 = vsel %vm5938_vm0, %v7691_v12, %v5922_v63  ;;  %v7648_v25 = vadd.s32 4294967278, %v5783_v62 }
 0x698   : >> { %v8955_v30 = vpop.f32.mrb[69].mxu0  ;;  %v5924_v6 = vsel %vm5892_vm3, %v7677_v48, %v5876_v28  ;;  %vm5893_vm10 = vcmp.ge.s32.totalorder %v5877_v41, 18  ;;  %vm5799_vm7 = vcmp.ge.s32.totalorder %v5783_v62, 18  ;;  %v7663_v18 = vadd.s32 4294967278, %v5830_v39 }
 0x699   : >> { %v5670_v16 = vadd.f32 %v12451_v51, %v5646_v29  ;;  %v8956_v7 = vadd.f32 %v8955_v30, %v8954_v22  ;;  %v6217_v59 = vmul.f32 %v12243_v58, %v5685_v56  ;;  %v7678_v58 = vadd.s32 4294967278, %v5877_v41 }
 0x69a   : >> { %vm5986_vm14 = vcmp.ge.s32.totalorder %v5970_v32, 18  ;;  %v7707_v47 = vadd.s32 4294967278, %v5970_v32  ;;  %vm5846_vm4 = vcmp.ge.s32.totalorder %v5830_v39, 18  ;;  %v5971_v28 = vsel %vm5939_vm8, %v7692_v37, %v5923_v13 }
 0x69b   : >> { %v5686_v54 = vmax.f32 %v5670_v16, 0.0  ;;  %v5647_v60 = vadd.f32 %v8956_v7, %v12250_v33  ;;  %v8957_v53 = vpop.f32.mrb[70].mxu0  ;;  %9116 = vmatprep.mubr.f32.mxu1 %v6217_v59  ;;  %v7722_v33 = vadd.s32 4294967278, %v12465_v11  ;;  %v5831_v56 = vsel %vm5799_vm7, %v7648_v25, %v5783_v62 }
 0x69c   : >> { %v8958_v8 = vpop.f32.mrb[71].mxu0  ;;  %vm5940_vm6 = vcmp.ge.s32.totalorder %v5924_v6, 18  ;;  %v7693_v22 = vadd.s32 4294967278, %v5924_v6  ;;  %v5925_v30 = vsel %vm5893_vm10, %v7678_v58, %v5877_v41  ;;  %v5878_v59 = vsel %vm5846_vm4, %v7663_v18, %v5830_v39 }
 0x69d   : >> { %v6218_v61 = vmul.f32 %v12343_v5, %v5686_v54  ;;  %v5671_v63 = vadd.f32 %v12451_v51, %v5647_v60  ;;  %v8959_v36 = vadd.f32 %v8958_v8, %v8957_v53  ;;  %v7737_v5 = vadd.s32 4294967278, %v12457_v43 }
 0x69e   : >> { %v6018_v13 = vsel %vm5986_vm14, %v7707_v47, %v5970_v32  ;;  %vm5987_vm2 = vcmp.ge.s32.totalorder %v5971_v28, 18  ;;  %v7664_v62 = vadd.s32 4294967278, %v5831_v56  ;;  %v7708_v41 = vadd.s32 4294967278, %v5971_v28 }
 0x69f   : >> { %v5687_v1 = vmax.f32 %v5671_v63, 0.0  ;;  %v5648_v12 = vadd.f32 %v8959_v36, %v12262_v24  ;;  %v8960_v50 = vpop.f32.mrb[72].mxu0  ;;  %9117 = vmatmul.mubr.f32.vlgmr.msra.gmra.mrb[64].mxu1 %v6218_v61  ;;  %v6065_v24 = vsel %vm6033_vm5, %v7722_v33, %v12465_v11  ;;  %vm5847_vm9 = vcmp.ge.s32.totalorder %v5831_v56, 18 }
 0x6a0   : >> { %v8961_v29 = vpop.f32.mrb[73].mxu0  ;;  %v5972_v25 = vsel %vm5940_vm6, %v7693_v22, %v5924_v6  ;;  %vm5941_vm1 = vcmp.ge.s32.totalorder %v5925_v30, 18  ;;  %v7679_v39 = vadd.s32 4294967278, %v5878_v59  ;;  %vm5894_vm11 = vcmp.ge.s32.totalorder %v5878_v59, 18 }
 0x6a1   : >> { %v5672_v48 = vadd.f32 %v12451_v51, %v5648_v12  ;;  %v8962_v16 = vadd.f32 %v8961_v29, %v8960_v50  ;;  %v6219_v7 = vmul.f32 %v12348_v49, %v5687_v1  ;;  %v7694_v49 = vadd.s32 4294967278, %v5925_v30 }
 0x6a2   : >> { %vm6081_vm0 = vcmp.ge.s32.totalorder %v6065_v24, 18  ;;  %v7723_v58 = vadd.s32 4294967278, %v6018_v13  ;;  %v5879_v61 = vsel %vm5847_vm9, %v7664_v62, %v5831_v56  ;;  %vm6034_vm13 = vcmp.ge.s32.totalorder %v6018_v13, 18 }
 0x6a3   : >> { %v5688_v54 = vmax.f32 %v5672_v48, 0.0  ;;  %v5649_v60 = vadd.f32 %v8962_v16, %v12272_v57  ;;  %v8963_v53 = vpop.f32.mrb[74].mxu0  ;;  %9119 = vmatprep.mubr.f32.mxu1 %v6219_v7  ;;  %v12500_v57 = vsel %vm6080_vm12, %v7737_v5, %v12457_v43  ;;  %v6019_v18 = vsel %vm5987_vm2, %v7708_v41, %v5971_v28 }
 0x6a4   : >> { %v8964_v37 = vpop.f32.mrb[75].mxu0  ;;  %vm6161_vm15 = vcmp.lt.s32.totalorder %v12406_v42, 288  ;;  %vm5988_vm3 = vcmp.ge.s32.totalorder %v5972_v25, 18  ;;  %v5973_v47 = vsel %vm5941_vm1, %v7694_v49, %v5925_v30  ;;  %v5926_v43 = vsel %vm5894_vm11, %v7679_v39, %v5878_v59 }
 0x6a5   : >> { %v5673_v8 = vadd.f32 %v12451_v51, %v5649_v60  ;;  %v8965_v11 = vadd.f32 %v8964_v37, %v8963_v53  ;;  %v6220_v32 = vmul.f32 %v12354_v15, %v5688_v54  ;;  %v7709_v15 = vadd.s32 4294967278, %v5972_v25 }
 0x6a6   : >> { %v7738_v56 = vadd.s32 4294967278, %v6065_v24  ;;  %v6066_v29 = vsel %vm6034_vm13, %v7723_v58, %v6018_v13  ;;  %vm6035_vm5 = vcmp.ge.s32.totalorder %v6019_v18, 18  ;;  %vm5895_vm8 = vcmp.ge.s32.totalorder %v5879_v61, 18 }
 0x6a7   : >> { %v5689_v63 = vmax.f32 %v5673_v8, 0.0  ;;  %v5650_v6 = vadd.f32 %v8965_v11, %v12292_v4  ;;  %v8966_v36 = vpop.f32.mrb[76].mxu0  ;;  %9120 = vmatmul.mubr.f32.gmra.mrb[66].mxu1 %v6220_v32  ;;  %v7680_v4 = vadd.s32 4294967278, %v5879_v61  ;;  %v7724_v48 = vadd.s32 4294967278, %v6019_v18 }
 0x6a8   : >> { %v8967_v33 = vpop.f32.mrb[77].mxu0  ;;  %v7695_v16 = vadd.s32 4294967278, %v5926_v43  ;;  %vm6162_vm12 = vcmp.lt.s32.totalorder %v12461_v0, 288  ;;  %v6020_v7 = vsel %vm5988_vm3, %v7709_v15, %v5972_v25  ;;  %vm5989_vm10 = vcmp.ge.s32.totalorder %v5973_v47, 18 }
 0x6a9   : >> { %v5674_v1 = vadd.f32 %v12451_v51, %v5650_v6  ;;  %v8968_v12 = vadd.f32 %v8967_v33, %v8966_v36  ;;  %v6221_v50 = vmul.f32 %v12387_v44, %v5689_v63  ;;  %v7710_v59 = vadd.s32 4294967278, %v5973_v47 }
 0x6aa   : >> { %vm5942_vm7 = vcmp.ge.s32.totalorder %v5926_v43, 18  ;;  %v5927_v54 = vsel %vm5895_vm8, %v7680_v4, %v5879_v61  ;;  %vm6145_vm14 = vcmp.lt.s32.totalorder %v12500_v57, 16  ;;  %vm6082_vm4 = vcmp.ge.s32.totalorder %v6066_v29, 18 }
 0x6ab   : >> { %v5690_v28 = vmax.f32 %v5674_v1, 0.0  ;;  %v5651_v5 = vadd.f32 %v8968_v12, %v12298_v27  ;;  %v8969_v22 = vpop.f32.mrb[78].mxu0  ;;  %9122 = vmatprep.mubr.f32.mxu1 %v6221_v50  ;;  %v6113_v27 = vsel %vm6081_vm0, %v7738_v56, %v6065_v24  ;;  %v7739_v60 = vadd.s32 4294967278, %v6066_v29  ;;  %vm6177_vm1 = vmand %vm6145_vm14, %vm6161_vm15 }
 0x6ac   : >> { %v8970_v30 = vpop.f32.mrb[79].mxu0  ;;  %v6067_v25 = vsel %vm6035_vm5, %v7724_v48, %v6019_v18  ;;  %v5974_v49 = vsel %vm5942_vm7, %v7695_v16, %v5926_v43  ;;  %vm6036_vm6 = vcmp.ge.s32.totalorder %v6020_v7, 18  ;;  %v7725_v8 = vadd.s32 4294967278, %v6020_v7 }
 0x6ad   : >> { %v5675_v44 = vadd.f32 %v12451_v51, %v5651_v5  ;;  %v8971_v13 = vadd.f32 %v8970_v30, %v8969_v22  ;;  %v6222_v62 = vmul.f32 %v12392_v55, %v5690_v28  ;;  %v6021_v55 = vsel %vm5989_vm10, %v7710_v59, %v5973_v47 }
 0x6ae   : >> { %v7696_v11 = vadd.s32 4294967278, %v5927_v54  ;;  %vm5943_vm2 = vcmp.ge.s32.totalorder %v5927_v54, 18  ;;  %vm6146_vm9 = vcmp.lt.s32.totalorder %v6113_v27, 16  ;;  %v12525_v61 = vadd.s32 %v12204_v23, %v12825_v2 }
 0x6af   : >> { %v5691_v53 = vmax.f32 %v5675_v44, 0.0  ;;  %v5652_v41 = vadd.f32 %v8971_v13, %v12306_v21  ;;  %v8972_v37 = vpop.f32.mrb[80].mxu0  ;;  %9123 = vmatmul.mubr.f32.gmra.mrb[68].mxu1 %v6222_v62  ;;  %v6114_v21 = vsel %vm6082_vm4, %v7739_v60, %v6066_v29  ;;  %v7711_v63 = vadd.s32 4294967278, %v5974_v49  ;;  %vm6178_vm5 = vmand %vm6146_vm9, %vm6162_vm12 }
 0x6b0   : >> { %v8973_v39 = vpop.f32.mrb[81].mxu0  ;;  %vm5990_vm11 = vcmp.ge.s32.totalorder %v5974_v49, 18  ;;  %vm6083_vm0 = vcmp.ge.s32.totalorder %v6067_v25, 18  ;;  %v6068_v15 = vsel %vm6036_vm6, %v7725_v8, %v6020_v7  ;;  %v7726_v47 = vadd.s32 4294967278, %v6021_v55 }
 0x6b1   : >> { %v5676_v32 = vadd.f32 %v12451_v51, %v5652_v41  ;;  %v8974_v58 = vadd.f32 %v8973_v39, %v8972_v37  ;;  %v6223_v24 = vmul.f32 %v12434_v40, %v5691_v53  ;;  %v7740_v40 = vadd.s32 4294967278, %v6067_v25 }
 0x6b2   : >> { %v5975_v2 = vsel %vm5943_vm2, %v7696_v11, %v5927_v54  ;;  %vm6037_vm13 = vcmp.ge.s32.totalorder %v6021_v55, 18  ;;  %v7753_v42 = vsel %vm6177_vm1, 1.0, %v10097_v3  ;;  %vm6147_vm3 = vcmp.lt.s32.totalorder %v6114_v21, 16 }
 0x6b3   : >> { %v5692_v6 = vmax.f32 %v5676_v32, 0.0  ;;  %v5653_v36 = vadd.f32 %v8974_v58, %v12335_v45  ;;  %v8975_v18 = vpop.f32.mrb[82].mxu0  ;;  %9125 = vmatprep.mubr.f32.mxu1 %v6223_v24  ;;  %vm6163_vm15 = vcmp.lt.s32.totalorder %v12471_v46, 288  ;;  %v6022_v57 = vsel %vm5990_vm11, %v7711_v63, %v5974_v49 }
 0x6b4   : >> { %v8976_v33 = vpop.f32.mrb[83].mxu0  ;;  %v6115_v56 = vsel %vm6083_vm0, %v7740_v40, %v6067_v25  ;;  %v7712_v29 = vadd.s32 4294967278, %v5975_v2  ;;  %vm6084_vm8 = vcmp.ge.s32.totalorder %v6068_v15, 18  ;;  %v7741_v28 = vadd.s32 4294967278, %v6068_v15  ;;  %vm6179_vm12 = vmand %vm6147_vm3, %vm6163_vm15 }
 0x6b5   : >> { %v5677_v43 = vadd.f32 %v12451_v51, %v5653_v36  ;;  %v8977_v1 = vadd.f32 %v8976_v33, %v8975_v18  ;;  %v6224_v45 = vmul.f32 %v12454_v17, %v5692_v6  ;;  %v6069_v5 = vsel %vm6037_vm13, %v7726_v47, %v6021_v55 }
 0x6b6   : >> { %vm5991_vm10 = vcmp.ge.s32.totalorder %v5975_v2, 18  ;;  %v7727_v30 = vadd.s32 4294967278, %v6022_v57  ;;  %vm6164_vm7 = vcmp.lt.s32.totalorder %v12525_v61, 288  ;;  %vm6038_vm14 = vcmp.ge.s32.totalorder %v6022_v57, 18 }
 0x6b7   : >> { %v5693_v12 = vmax.f32 %v5677_v43, 0.0  ;;  %v5654_v50 = vadd.f32 %v8977_v1, %v12379_v20  ;;  %v8978_v4 = vpop.f32.mrb[84].mxu0  ;;  %9126 = vmatmul.mubr.f32.gmra.mrb[70].mxu1 %v6224_v45  ;;  %v7754_v20 = vsel %vm6178_vm5, 1.0, %v10097_v3  ;;  %v6133_v44 = vadd.s32 %v12204_v23, %v10492_v52 }
 0x6b8   : >> { %v8979_v17 = vpop.f32.mrb[85].mxu0  ;;  %v6023_v13 = vsel %vm5991_vm10, %v7712_v29, %v5975_v2  ;;  %vm6148_vm4 = vcmp.lt.s32.totalorder %v6115_v56, 16  ;;  %v6116_v54 = vsel %vm6084_vm8, %v7741_v28, %v6068_v15  ;;  %vm6085_vm6 = vcmp.ge.s32.totalorder %v6069_v5, 18 }
 0x6b9   : >> { %v5678_v22 = vadd.f32 %v12451_v51, %v5654_v50  ;;  %v8980_v48 = vadd.f32 %v8979_v17, %v8978_v4  ;;  %v6225_v16 = vmul.f32 %v7753_v42, %v5693_v12  ;;  %v7742_v27 = vadd.s32 4294967278, %v6069_v5  ;;  %vm6180_vm2 = vmand %vm6148_vm4, %vm6164_vm7 }
 0x6ba   : >> { %v6070_v41 = vsel %vm6038_vm14, %v7727_v30, %v6022_v57  ;;  %v7755_v46 = vsel %vm6179_vm12, 1.0, %v10097_v3  ;;  %v7728_v37 = vadd.s32 4294967278, %v6023_v13  ;;  %vm6165_vm9 = vcmp.lt.s32.totalorder %v6133_v44, 288 }
 0x6bb   : >> { %v5694_v0 = vmax.f32 %v5678_v22, 0.0  ;;  %v5655_v7 = vadd.f32 %v8980_v48, %v12396_v34  ;;  %v8981_v59 = vpop.f32.mrb[86].mxu0  ;;  %9128 = vmatprep.mubr.f32.mxu1 %v6225_v16  ;;  %vm6039_vm1 = vcmp.ge.s32.totalorder %v6023_v13, 18  ;;  %vm6149_vm11 = vcmp.lt.s32.totalorder %v6116_v54, 16 }
 0x6bc   : >> { %v8982_v62 = vpop.f32.mrb[87].mxu0  ;;  %v6117_v55 = vsel %vm6085_vm6, %v7742_v27, %v6069_v5  ;;  %v6134_v11 = vadd.s32 %v12204_v23, %v10475_v31  ;;  %v7743_v32 = vadd.s32 4294967278, %v6070_v41  ;;  %vm6086_vm0 = vcmp.ge.s32.totalorder %v6070_v41, 18  ;;  %vm6181_vm13 = vmand %vm6149_vm11, %vm6165_vm9 }
 0x6bd   : >> { %v5679_v60 = vadd.f32 %v12451_v51, %v5655_v7  ;;  %v8983_v53 = vadd.f32 %v8982_v62, %v8981_v59  ;;  %v6226_v34 = vmul.f32 %v7754_v20, %v5694_v0  ;;  %v6071_v63 = vsel %vm6039_vm1, %v7728_v37, %v6023_v13  ;;  %v7761_v62 = vld [vmem:[#allocation14] ss:$0 sm:$0xff] }
 0x6be   : >> { %vm6150_vm3 = vcmp.lt.s32.totalorder %v6117_v55, 16  ;;  %vm6166_vm15 = vcmp.lt.s32.totalorder %v6134_v11, 288  ;;  %v6118_v40 = vsel %vm6086_vm0, %v7743_v32, %v6070_v41  ;;  %v6135_v33 = vadd.s32 %v12204_v23, %v10547_v10 }
 0x6bf   : >> { %v5695_v25 = vmax.f32 %v5679_v60, 0.0  ;;  %v5656_v49 = vadd.f32 %v8983_v53, %v12408_v38  ;;  %v8984_v39 = vpop.f32.mrb[88].mxu0  ;;  %9129 = vmatmul.mubr.f32.gmra.mrb[72].mxu1 %v6226_v34  ;;  %v7756_v38 = vsel %vm6180_vm2, 1.0, %v10097_v3  ;;  %v7744_v43 = vadd.s32 4294967278, %v6071_v63  ;;  %vm6182_vm8 = vmand %vm6150_vm3, %vm6166_vm15 }
 0x6c0   : >> { %v8985_v8 = vpop.f32.mrb[89].mxu0  ;;  %v7757_v1 = vsel %vm6181_vm13, 1.0, %v10097_v3  ;;  %vm6087_vm5 = vcmp.ge.s32.totalorder %v6071_v63, 18  ;;  %vm6151_vm10 = vcmp.lt.s32.totalorder %v6118_v40, 16  ;;  %vm6167_vm7 = vcmp.lt.s32.totalorder %v6135_v33, 288 }
 0x6c1   : >> { %v5680_v58 = vadd.f32 %v12451_v51, %v5656_v49  ;;  %v8986_v24 = vadd.f32 %v8985_v8, %v8984_v39  ;;  %v6227_v21 = vmul.f32 %v7755_v46, %v5695_v25  ;;  %v6136_v12 = vadd.s32 %v12204_v23, %v10518_v9  ;;  %vm6183_vm14 = vmand %vm6151_vm10, %vm6167_vm7 }
 0x6c2   : >> { %v6119_v29 = vsel %vm6087_vm5, %v7744_v43, %v6071_v63  ;;  %v7758_v17 = vsel %vm6182_vm8, 1.0, %v10097_v3  ;;  %v7759_v30 = vsel %vm6183_vm14, 1.0, %v10097_v3  ;;  %vm6402_vm2 = vcmask 64512  }
 0x6c3   : >> { %v5696_v61 = vmax.f32 %v5680_v58, 0.0  ;;  %v5657_v6 = vadd.f32 %v8986_v24, %v12416_v14  ;;  %v8987_v36 = vpop.f32.mrb[90].mxu0  ;;  %9131 = vmatprep.mubr.f32.mxu1 %v6227_v21  ;;  %vm6152_vm12 = vcmp.lt.s32.totalorder %v6119_v29, 16  ;;  %vm6168_vm4 = vcmp.lt.s32.totalorder %v6136_v12, 288 }
 0x6c4   : >> { %v8988_v18 = vpop.f32.mrb[91].mxu0  ;;  %vm6184_vm6 = vmand %vm6152_vm12, %vm6168_vm4 }
 0x6c5   : >> { %v5681_v15 = vadd.f32 %v12451_v51, %v5657_v6  ;;  %v8989_v47 = vadd.f32 %v8988_v18, %v8987_v36  ;;  %v6228_v2 = vmul.f32 %v7756_v38, %v5696_v61  ;;  %v7760_v59 = vsel %vm6184_vm6, 1.0, %v10097_v3 }
 0x6c7   : >> { %v5697_v14 = vmax.f32 %v5681_v15, 0.0  ;;  %v5658_v45 = vadd.f32 %v8989_v47, %v12428_v19  ;;  %v8990_v42 = vpop.f32.mrb[92].mxu0  ;;  %9132 = vmatmul.mubr.f32.gmra.mrb[74].mxu1 %v6228_v2 }
 0x6c8   : >> { %v8991_v57 = vpop.f32.mrb[93].mxu0 }
 0x6c9   : >> { %v5682_v50 = vadd.f32 %v12451_v51, %v5658_v45  ;;  %v8992_v4 = vadd.f32 %v8991_v57, %v8990_v42  ;;  %v6229_v56 = vmul.f32 %v7757_v1, %v5697_v14 }
 0x6cb   : >> { %v5698_v28 = vmax.f32 %v5682_v50, 0.0  ;;  %v5659_v5 = vadd.f32 %v8992_v4, %v12440_v26  ;;  %v8993_v19 = vpop.f32.mrb[94].mxu0  ;;  %9134 = vmatprep.mubr.f32.mxu1 %v6229_v56 }
 0x6cc   : >> { %v8994_v22 = vpop.f32.mrb[95].mxu0 }
 0x6cd   : >> { %v5683_v48 = vadd.f32 %v12451_v51, %v5659_v5  ;;  %v8995_v16 = vadd.f32 %v8994_v22, %v8993_v19  ;;  %v6230_v23 = vmul.f32 %v7758_v17, %v5698_v28 }
 0x6cf   : >> { %v5699_v20 = vmax.f32 %v5683_v48, 0.0  ;;  %v5660_v0 = vadd.f32 %v8995_v16, %v12449_v35  ;;  %9135 = vmatmul.mubr.f32.gmra.mrb[76].mxu1 %v6230_v23 }
 0x6d1   : >> { %v5684_v26 = vadd.f32 %v12451_v51, %v5660_v0  ;;  %v6231_v7 = vmul.f32 %v7759_v30, %v5699_v20 }
 0x6d3   : >> { %v5700_v44 = vmax.f32 %v5684_v26, 0.0  ;;  %9137 = vmatprep.mubr.f32.mxu1 %v6231_v7 }
 0x6d5   : >> { %v6232_v13 = vmul.f32 %v7760_v59, %v5700_v44 }
 0x6d7   : >> { %9138 = vmatmul.mubr.f32.gmra.mrb[78].mxu1 %v6232_v13 }
 0x772   : >> { %v9118_v54 = vpop.f32.mrb[64].mxu1 }
 0x773   : >> { %v6328_v35 = vadd.f32 %v9118_v54, %v7761_v62  ;;  %v6322_v51 = vpop.f32.mrb[65].mxu1 }
 0x774   : >> { %v6323_v27 = vadd.f32 %v7761_v62, %v6322_v51 }
 0x775   : >> { %6404 = vst.msk [vmem:[%s12583_s29 + $0x8] sm:$0xff] %vm6402_vm2, %v6328_v35 }
 0x776   : >> { %6403 = vst.msk [vmem:[%s12583_s29] sm:$0xff] %vm6402_vm2, %v6323_v27 }
 0x77a   : >> { %v9121_v3 = vpop.f32.mrb[66].mxu1 }
 0x77b   : >> { %v6338_v60 = vadd.f32 %v9121_v3, %v7761_v62  ;;  %v6332_v53 = vpop.f32.mrb[67].mxu1 }
 0x77c   : >> { %v6333_v34 = vadd.f32 %v7761_v62, %v6332_v53 }
 0x77d   : >> { %6406 = vst.msk [vmem:[%s12583_s29 + $0x18] sm:$0xff] %vm6402_vm2, %v6338_v60 }
 0x77e   : >> { %6405 = vst.msk [vmem:[%s12583_s29 + $0x10] sm:$0xff] %vm6402_vm2, %v6333_v34 }
 0x782   : >> { %v9124_v41 = vpop.f32.mrb[68].mxu1 }
 0x783   : >> { %v6348_v46 = vadd.f32 %v9124_v41, %v7761_v62  ;;  %v6342_v37 = vpop.f32.mrb[69].mxu1 }
 0x784   : >> { %v6343_v25 = vadd.f32 %v7761_v62, %v6342_v37 }
 0x785   : >> { %6408 = vst.msk [vmem:[%s12583_s29 + $0x28] sm:$0xff] %vm6402_vm2, %v6348_v46 }
 0x786   : >> { %6407 = vst.msk [vmem:[%s12583_s29 + $0x20] sm:$0xff] %vm6402_vm2, %v6343_v25 }
 0x78a   : >> { %v9127_v49 = vpop.f32.mrb[70].mxu1 }
 0x78b   : >> { %v6358_v39 = vadd.f32 %v9127_v49, %v7761_v62  ;;  %v6352_v8 = vpop.f32.mrb[71].mxu1 }
 0x78c   : >> { %v6353_v55 = vadd.f32 %v7761_v62, %v6352_v8 }
 0x78d   : >> { %6410 = vst.msk [vmem:[%s12583_s29 + $0x38] sm:$0xff] %vm6402_vm2, %v6358_v39 }
 0x78e   : >> { %6409 = vst.msk [vmem:[%s12583_s29 + $0x30] sm:$0xff] %vm6402_vm2, %v6353_v55 }
 0x792   : >> { %v9130_v11 = vpop.f32.mrb[72].mxu1 }
 0x793   : >> { %v6368_v32 = vadd.f32 %v9130_v11, %v7761_v62  ;;  %v6362_v58 = vpop.f32.mrb[73].mxu1 }
 0x794   : >> { %v6363_v24 = vadd.f32 %v7761_v62, %v6362_v58 }
 0x795   : >> { %6412 = vst.msk [vmem:[%s12583_s29 + $0x48] sm:$0xff] %vm6402_vm2, %v6368_v32 }
 0x796   : >> { %6411 = vst.msk [vmem:[%s12583_s29 + $0x40] sm:$0xff] %vm6402_vm2, %v6363_v24 }
 0x79a   : >> { %v9133_v21 = vpop.f32.mrb[74].mxu1 }
 0x79b   : >> { %v6378_v38 = vadd.f32 %v9133_v21, %v7761_v62  ;;  %v6372_v63 = vpop.f32.mrb[75].mxu1 }
 0x79c   : >> { %v6373_v61 = vadd.f32 %v7761_v62, %v6372_v63 }
 0x79d   : >> { %6414 = vst.msk [vmem:[%s12583_s29 + $0x58] sm:$0xff] %vm6402_vm2, %v6378_v38 }
 0x79e   : >> { %6413 = vst.msk [vmem:[%s12583_s29 + $0x50] sm:$0xff] %vm6402_vm2, %v6373_v61 }
 0x7a2   : >> { %v9136_v6 = vpop.f32.mrb[76].mxu1 }
 0x7a3   : >> { %v6388_v36 = vadd.f32 %v9136_v6, %v7761_v62  ;;  %v6382_v18 = vpop.f32.mrb[77].mxu1 }
 0x7a4   : >> { %v6383_v40 = vadd.f32 %v7761_v62, %v6382_v18 }
 0x7a5   : >> { %6416 = vst.msk [vmem:[%s12583_s29 + $0x68] sm:$0xff] %vm6402_vm2, %v6388_v36 }
 0x7a6   : >> { %6415 = vst.msk [vmem:[%s12583_s29 + $0x60] sm:$0xff] %vm6402_vm2, %v6383_v40 }
 0x7a8   : > { %4558 = sbr.rel (!%p4556_p9) target bundleno = 1304 (0x518), region = 212 }
 0x7aa   : >> { %v9139_v33 = vpop.f32.mrb[78].mxu1 }
 0x7ab   : >> { %v6398_v15 = vadd.f32 %v9139_v33, %v7761_v62  ;;  %v6392_v47 = vpop.f32.mrb[79].mxu1 }
 0x7ac   : >> { %v6393_v2 = vadd.f32 %v7761_v62, %v6392_v47 }
 0x7ad   : >> { %6418 = vst.msk [vmem:[%s12583_s29 + $0x78] sm:$0xff] %vm6402_vm2, %v6398_v15 }
 0x7ae   : >> { %6417 = vst.msk [vmem:[%s12583_s29 + $0x70] sm:$0xff] %vm6402_vm2, %v6393_v2 }
 0x7af PF: > { %s28_s10 = sadd.s32 1, %s10064_s10  }
 0x7b0   : > { %p25_p11 = scmp.ge.s32.totalorder %s28_s10, 4  }
 0x7b2   :  { %27 = sbr.rel (!%p25_p11) target bundleno = 19 (0x13), region = 223 }
 0x7b9   :  { %6440 = vsyncpa [#allocation7], 1 }
 0x7ba   :  { %6442 = vsyncpa [#allocation7 + $0x1], 1 }
 0x7bb   :  { %6443 = vsyncpa [#allocation9], 1 }
 0x7bc   :  { %6444 = vsyncpa [#allocation12], 1 }
 0x7bd   :  { %6445 = vsyncpa [#allocation15], 1 }

</bundles_post_ra>
